<compile_context>
chip_gen: v6e
topology: v6e:2x2x1
jax: 0.10.0
libtpu: 0.0.40
codegen_flags: <defaults>
</compile_context>

<pallas_src>
import functools

import jax
import jax.numpy as jnp
from jax import lax
from jax.experimental import pallas as pl
from jax.experimental.pallas import tpu as pltpu

BN_EPS = 1e-5
DEFAULT_TM = 1024                  # rows per tile for the 1x1 / elementwise stages (auto-capped)
ACT_DTYPE = jnp.float32            # set to jnp.bfloat16 to halve inter-stage HBM traffic
                                   # (kept f32 so the 2e-4 reference check stays meaningful)


def same_padding(input_size, kernel_size, stride_size):
    return (input_size - 1 - (input_size - kernel_size // stride_size)) // 2


@functools.lru_cache(maxsize=None)
def _vmem_limit_bytes():
    # Generation-aware scoped-VMEM request: ~half of physical, clamped to [32, 96] MiB.
    try:
        cap = int(pltpu.get_tpu_info().vmem_capacity_bytes)
    except Exception:
        return 32 * 1024 * 1024
    return int(min(max(cap // 2, 32 * 1024 * 1024), 96 * 1024 * 1024))


def _compiler_params(semantics):
    return pltpu.CompilerParams(dimension_semantics=semantics,
                                vmem_limit_bytes=_vmem_limit_bytes())


def _choose_tm(m, tm):
    tm = min(tm, m)
    tm = (tm // 8) * 8
    return max(tm, min(m, 8))


# ------------------------------------------------------------------------------------------------
# In-kernel helpers
# ------------------------------------------------------------------------------------------------
def _mask_tail_rows(y, tile_idx, m_total, tm):
    """Zero rows that fall beyond the real M (only compiled in when the last tile is partial)."""
    if m_total % tm == 0:
        return y
    rows = tile_idx * tm + lax.broadcasted_iota(jnp.int32, (tm, 1), 0)
    return jnp.where(rows < m_total, y, 0.0)


def _stats_tile(y):
    """(8, C) tile with row 0 = per-channel sum, row 1 = per-channel sum of squares, rest zero."""
    s = jnp.sum(y, axis=0, keepdims=True)
    q = jnp.sum(y * y, axis=0, keepdims=True)
    r = lax.broadcasted_iota(jnp.int32, (8, y.shape[-1]), 0)
    return jnp.where(r == 0, s, 0.0) + jnp.where(r == 1, q, 0.0)


# ------------------------------------------------------------------------------------------------
# Stage 1:  raw conv1x1 (x @ w1 + b1) + partial BN1 stats                    (one pass over x)
# ------------------------------------------------------------------------------------------------
def _conv1x1_stats_kernel(x_ref, w_ref, b_ref, y_ref, stats_ref, *, m_total, tm):
    i = pl.program_id(0)
    y = (jnp.dot(x_ref[...].astype(jnp.float32), w_ref[...].astype(jnp.float32),
                 preferred_element_type=jnp.float32)
         + b_ref[...].astype(jnp.float32))
    y_ref[...] = y.astype(y_ref.dtype)
    stats_ref[0] = _stats_tile(_mask_tail_rows(y, i, m_total, tm))


def _conv1x1_stats_call(x2, w, b, tm, out_dtype):
    m, k = x2.shape
    c = w.shape[1]
    tm = _choose_tm(m, tm)
    g = pl.cdiv(m, tm)
    kern = functools.partial(_conv1x1_stats_kernel, m_total=m, tm=tm)
    return pl.pallas_call(
        kern,
        out_shape=(jax.ShapeDtypeStruct((m, c), out_dtype),
                   jax.ShapeDtypeStruct((g, 8, c), jnp.float32)),
        grid=(g,),
        in_specs=[pl.BlockSpec((tm, k), lambda i: (i, 0)),
                  pl.BlockSpec((k, c), lambda i: (0, 0)),
                  pl.BlockSpec((1, c), lambda i: (0, 0))],
        out_specs=(pl.BlockSpec((tm, c), lambda i: (i, 0)),
                   pl.BlockSpec((1, 8, c), lambda i: (i, 0, 0))),
        compiler_params=_compiler_params(("parallel",)),
    )(x2, w, b)


# ------------------------------------------------------------------------------------------------
# Stage 2:  bn1+relu (on the fly) -> 3x3 conv (raw) + partial BN2 stats      (one image per step)
# ------------------------------------------------------------------------------------------------
def _conv3x3_fused_kernel(y1_ref, scale_ref, shift_ref, w2_ref, b2_ref,
                          y2_ref, stats_ref, a_pad):
    _, H, W, C = y1_ref.shape
    Co = w2_ref.shape[3]

    scale = scale_ref[...].astype(jnp.float32)          # (1, C)
    shift = shift_ref[...].astype(jnp.float32)          # (1, C)
    b2 = b2_ref[...].astype(jnp.float32)                # (1, Co)
    w_taps = [[w2_ref[ky, kx].astype(jnp.float32) for kx in range(3)] for ky in range(3)]

    # ---- build the zero-padded activation a1 = relu(bn1(y1)) in VMEM (no XLA pad pass) ----
    zrow = jnp.zeros((W + 2, C), jnp.float32)
    a_pad[0] = zrow
    a_pad[H + 1] = zrow
    for hh in range(H):
        a_row = jnp.maximum(y1_ref[0, hh].astype(jnp.float32) * scale + shift, 0.0)   # (W, C)
        a_pad[hh + 1] = zrow
        a_pad[hh + 1, pl.ds(1, W), :] = a_row

    # ---- 3x3 conv (9 taps), one matmul-accumulated output row at a time; stats on the fly ----
    sum_acc = jnp.zeros((1, Co), jnp.float32)
    sq_acc = jnp.zeros((1, Co), jnp.float32)
    for h in range(H):
        acc = jnp.zeros((W, Co), jnp.float32)
        for ky in range(3):
            r = a_pad[h + ky]                            # (W+2, C)
            for kx in range(3):
                acc = acc + jnp.dot(r[kx:kx + W, :], w_taps[ky][kx],
                                    preferred_element_type=jnp.float32)
        y = acc + b2                                     # raw conv2 output row (pre-BN)
        y2_ref[0, h] = y.astype(y2_ref.dtype)
        sum_acc = sum_acc + jnp.sum(y, axis=0, keepdims=True)
        sq_acc = sq_acc + jnp.sum(y * y, axis=0, keepdims=True)

    rows8 = lax.broadcasted_iota(jnp.int32, (8, Co), 0)
    stats_ref[0] = jnp.where(rows8 == 0, sum_acc, 0.0) + jnp.where(rows8 == 1, sq_acc, 0.0)


def _conv3x3_fused_call(y1_img, scale, shift, w2, b2, out_dtype):
    n, h, w, c = y1_img.shape
    co = w2.shape[3]
    return pl.pallas_call(
        _conv3x3_fused_kernel,
        out_shape=(jax.ShapeDtypeStruct((n, h, w, co), out_dtype),
                   jax.ShapeDtypeStruct((n, 8, co), jnp.float32)),
        grid=(n,),
        in_specs=[pl.BlockSpec((1, h, w, c), lambda i: (i, 0, 0, 0)),
                  pl.BlockSpec((1, c), lambda i: (0, 0)),
                  pl.BlockSpec((1, c), lambda i: (0, 0)),
                  pl.BlockSpec((3, 3, c, co), lambda i: (0, 0, 0, 0)),
                  pl.BlockSpec((1, co), lambda i: (0, 0))],
        out_specs=(pl.BlockSpec((1, h, w, co), lambda i: (i, 0, 0, 0)),
                   pl.BlockSpec((1, 8, co), lambda i: (i, 0, 0))),
        scratch_shapes=[pltpu.VMEM((h + 2, w + 2, c), jnp.float32)],
        compiler_params=_compiler_params(("parallel",)),
    )(y1_img, scale, shift, w2, b2)


# ------------------------------------------------------------------------------------------------
# Stage 3:  bn2+relu (on the fly) -> raw conv1x1 + partial BN3 stats
# ------------------------------------------------------------------------------------------------
def _bn_relu_conv1x1_stats_kernel(y_in_ref, scale_ref, shift_ref, w_ref, b_ref,
                                  y_ref, stats_ref, *, m_total, tm):
    i = pl.program_id(0)
    a = jnp.maximum(y_in_ref[...].astype(jnp.float32) * scale_ref[...] + shift_ref[...], 0.0)
    y = (jnp.dot(a, w_ref[...].astype(jnp.float32), preferred_element_type=jnp.float32)
         + b_ref[...].astype(jnp.float32))
    y_ref[...] = y.astype(y_ref.dtype)
    stats_ref[0] = _stats_tile(_mask_tail_rows(y, i, m_total, tm))


def _bn_relu_conv1x1_stats_call(y2, scale, shift, w, b, tm, out_dtype):
    m, k = y2.shape
    c = w.shape[1]
    tm = _choose_tm(m, tm)
    g = pl.cdiv(m, tm)
    kern = functools.partial(_bn_relu_conv1x1_stats_kernel, m_total=m, tm=tm)
    return pl.pallas_call(
        kern,
        out_shape=(jax.ShapeDtypeStruct((m, c), out_dtype),
                   jax.ShapeDtypeStruct((g, 8, c), jnp.float32)),
        grid=(g,),
        in_specs=[pl.BlockSpec((tm, k), lambda i: (i, 0)),
                  pl.BlockSpec((1, k), lambda i: (0, 0)),
                  pl.BlockSpec((1, k), lambda i: (0, 0)),
                  pl.BlockSpec((k, c), lambda i: (0, 0)),
                  pl.BlockSpec((1, c), lambda i: (0, 0))],
        out_specs=(pl.BlockSpec((tm, c), lambda i: (i, 0)),
                   pl.BlockSpec((1, 8, c), lambda i: (i, 0, 0))),
        compiler_params=_compiler_params(("parallel",)),
    )(y2, scale, shift, w, b)


# ------------------------------------------------------------------------------------------------
# Stage 4:  bn3 + residual + relu (pure elementwise)
# ------------------------------------------------------------------------------------------------
def _bn_residual_relu_kernel(y_ref, scale_ref, shift_ref, res_ref, o_ref):
    y = (y_ref[...].astype(jnp.float32) * scale_ref[...] + shift_ref[...]
         + res_ref[...].astype(jnp.float32))
    o_ref[...] = jnp.maximum(y, 0.0).astype(o_ref.dtype)


def _bn_residual_relu_call(y3, scale, shift, x2, tm):
    m, c = y3.shape
    tm = _choose_tm(m, tm)
    return pl.pallas_call(
        _bn_residual_relu_kernel,
        out_shape=jax.ShapeDtypeStruct((m, c), jnp.float32),
        grid=(pl.cdiv(m, tm),),
        in_specs=[pl.BlockSpec((tm, c), lambda i: (i, 0)),
                  pl.BlockSpec((1, c), lambda i: (0, 0)),
                  pl.BlockSpec((1, c), lambda i: (0, 0)),
                  pl.BlockSpec((tm, c), lambda i: (i, 0))],
        out_specs=pl.BlockSpec((tm, c), lambda i: (i, 0)),
        compiler_params=_compiler_params(("parallel",)),
    )(y3, scale, shift, x2)


# ------------------------------------------------------------------------------------------------
# BN stats reduction / folding (tiny per-channel math; stays in the JAX wrapper)
# ------------------------------------------------------------------------------------------------
def _reduce_stats(stats):
    t = jnp.sum(stats, axis=0)        # (8, C): row 0 = sum, row 1 = sumsq
    return t[0:1, :], t[1:2, :]


def _fold_bn(sum_, sumsq, m, gamma, beta):
    mean = sum_ / m
    var = jnp.maximum(sumsq / m - mean * mean, 0.0)      # biased variance (training-mode BN)
    scale = gamma * lax.rsqrt(var + BN_EPS)              # (1, C)
    shift = beta - mean * scale
    return scale.astype(jnp.float32), shift.astype(jnp.float32)


# ------------------------------------------------------------------------------------------------
# Full forward
# ------------------------------------------------------------------------------------------------
def bottleneck2_forward(x_nchw, p, *, tm=DEFAULT_TM, act_dtype=ACT_DTYPE):
    """Pallas implementation of Bottleneck2.forward. x_nchw: (N, Cin, H, W) float32."""
    n, cin, h, w = x_nchw.shape
    c = p["w1"].shape[1]
    assert same_padding(h, 3, 1) == 1
    m = n * h * w

    # glue: NCHW -> NHWC -> (M, Cin)
    x2 = jnp.transpose(x_nchw, (0, 2, 3, 1)).astype(jnp.float32).reshape(m, cin)

    # ---- stage 1: raw conv1x1 + BN1 batch stats (one pass over x) ----
    y1, st1 = _conv1x1_stats_call(x2, p["w1"], p["b1"], tm, act_dtype)
    scale1, shift1 = _fold_bn(*_reduce_stats(st1), m, p["g1"], p["beta1"])

    # ---- stage 2: bn1+relu on the fly -> 3x3 conv (raw) + BN2 stats (one image per step) ----
    y2, st2 = _conv3x3_fused_call(y1.reshape(n, h, w, c), scale1, shift1,
                                  p["w2"], p["b2"], act_dtype)
    scale2, shift2 = _fold_bn(*_reduce_stats(st2), m, p["g2"], p["beta2"])

    # ---- stage 3: bn2+relu on the fly -> raw conv1x1 + BN3 stats ----
    y3, st3 = _bn_relu_conv1x1_stats_call(y2.reshape(m, c), scale2, shift2,
                                          p["w3"], p["b3"], tm, act_dtype)
    scale3, shift3 = _fold_bn(*_reduce_stats(st3), m, p["g3"], p["beta3"])

    # ---- stage 4: bn3 + shortcut add + relu ----
    out = _bn_residual_relu_call(y3, scale3, shift3, x2, tm)

    # glue: back to NCHW
    return out.reshape(n, h, w, cin).transpose(0, 3, 1, 2)


# ------------------------------------------------------------------------------------------------
# Params + pure-JAX reference (matches the PyTorch module with training-mode BN)
# ------------------------------------------------------------------------------------------------
def init_params(key, in_channels, channels):
    ks = jax.random.split(key, 6)
    return {
        "w1": 0.1 * jax.random.normal(ks[0], (in_channels, channels), jnp.float32),
        "b1": 0.1 * jax.random.normal(ks[1], (1, channels), jnp.float32),
        "g1": jnp.ones((1, channels), jnp.float32),
        "beta1": jnp.zeros((1, channels), jnp.float32),
        # conv2 weights stored as (ky, kx, Cin, Cout)
        "w2": 0.1 * jax.random.normal(ks[2], (3, 3, channels, channels), jnp.float32),
        "b2": 0.1 * jax.random.normal(ks[3], (1, channels), jnp.float32),
        "g2": jnp.ones((1, channels), jnp.float32),
        "beta2": jnp.zeros((1, channels), jnp.float32),
        "w3": 0.1 * jax.random.normal(ks[4], (channels, in_channels), jnp.float32),
        "b3": 0.1 * jax.random.normal(ks[5], (1, in_channels), jnp.float32),
        "g3": jnp.ones((1, in_channels), jnp.float32),
        "beta3": jnp.zeros((1, in_channels), jnp.float32),
    }


def reference_forward(x_nchw, p):
    def bn(x, g, beta):
        mean = jnp.mean(x, axis=(0, 2, 3), keepdims=True)
        var = jnp.mean((x - mean) ** 2, axis=(0, 2, 3), keepdims=True)
        return (g.reshape(1, -1, 1, 1) * (x - mean) * lax.rsqrt(var + BN_EPS)
                + beta.reshape(1, -1, 1, 1))

    def conv1x1(x, w, b):
        return jnp.einsum("nchw,cd->ndhw", x, w) + b.reshape(1, -1, 1, 1)

    x = conv1x1(x_nchw, p["w1"], p["b1"])
    x = jax.nn.relu(bn(x, p["g1"], p["beta1"]))
    w2_oihw = p["w2"].transpose(3, 2, 0, 1)  # (ky,kx,Ci,Co) -> (Co,Ci,kH,kW)
    x = lax.conv_general_dilated(
        x, w2_oihw, window_strides=(1, 1), padding=((1, 1), (1, 1)),
        dimension_numbers=("NCHW", "OIHW", "NCHW"),
    ) + p["b2"].reshape(1, -1, 1, 1)
    x = jax.nn.relu(bn(x, p["g2"], p["beta2"]))
    x = conv1x1(x, p["w3"], p["b3"])
    x = bn(x, p["g3"], p["beta3"])
    return jax.nn.relu(x + x_nchw)


if __name__ == "__main__":
    N, Cin, C, S = 2, 4, 8, 16
    key = jax.random.PRNGKey(0)
    kx_, kp_ = jax.random.split(key)
    x = jax.random.normal(kx_, (N, Cin, S, S), jnp.float32)
    params = init_params(kp_, Cin, C)

    fwd = jax.jit(bottleneck2_forward)
    out = jax.block_until_ready(fwd(x, params))
    ref = jax.block_until_ready(reference_forward(x, params))
    assert out.shape == (N, Cin, S, S)
    err = float(jnp.max(jnp.abs(out - ref)))
    assert jnp.allclose(out, ref, atol=2e-4, rtol=2e-4), err

    # second shape (M = 2*12*12 = 288 with TM = 128) exercises the masked tail tile of the
    # fused stats accumulation in the 1x1 stages
    fwd_tail = jax.jit(functools.partial(bottleneck2_forward, tm=128))
    x_b = jax.random.normal(jax.random.PRNGKey(1), (N, Cin, 12, 12), jnp.float32)
    out_b = jax.block_until_ready(fwd_tail(x_b, params))
    ref_b = jax.block_until_ready(reference_forward(x_b, params))
    err_b = float(jnp.max(jnp.abs(out_b - ref_b)))
    assert jnp.allclose(out_b, ref_b, atol=2e-4, rtol=2e-4), err_b

    print("KERNEL_OK")
</pallas_src>

<mosaic_0001>
module attributes {stable_mosaic.version = 11 : i64} {
  func.func @_conv1x1_stats_kernel(%arg0: i32, %arg1: memref<512x4xf32, #tpu.memory_space<vmem>>, %arg2: memref<4x8xf32, #tpu.memory_space<vmem>>, %arg3: memref<1x8xf32, #tpu.memory_space<vmem>>, %arg4: memref<512x8xf32, #tpu.memory_space<vmem>>, %arg5: memref<1x8x8xf32, #tpu.memory_space<vmem>>) attributes {dimension_semantics = [#tpu.dimension_semantics<parallel>], iteration_bounds = array<i64: 1>, scalar_prefetch = 0 : i64, scratch_operands = 0 : i64, tpu.core_type = #tpu.core_type<tc>, window_params = [{transform_indices = @transform_0, window_bounds = array<i64: 512, 4>}, {pipeline_mode = #tpu.pipeline_mode<synchronous>, transform_indices = @transform_1, window_bounds = array<i64: 4, 8>}, {pipeline_mode = #tpu.pipeline_mode<synchronous>, transform_indices = @transform_2, window_bounds = array<i64: 1, 8>}, {transform_indices = @transform_3, window_bounds = array<i64: 512, 8>}, {transform_indices = @transform_4, window_bounds = array<i64: 1, 8, 8>}]} {
    %c0 = arith.constant 0 : index
    %c0_0 = arith.constant 0 : index
    %0 = vector.load %arg1[%c0, %c0_0] : memref<512x4xf32, #tpu.memory_space<vmem>>, vector<512x4xf32>
    %c0_1 = arith.constant 0 : index
    %c0_2 = arith.constant 0 : index
    %1 = vector.load %arg2[%c0_1, %c0_2] : memref<4x8xf32, #tpu.memory_space<vmem>>, vector<4x8xf32>
    %cst = arith.constant dense<0.000000e+00> : vector<512x8xf32>
    %2 = tpu.matmul %0, %1, %cst {dimension_numbers = #tpu.dot_dimension_numbers<[1], [0], [0], [1], [0, 0, 1, 1], [], []>} : vector<512x4xf32>, vector<4x8xf32>, vector<512x8xf32> -> vector<512x8xf32>
    %c0_3 = arith.constant 0 : index
    %c0_4 = arith.constant 0 : index
    %3 = vector.load %arg3[%c0_3, %c0_4] : memref<1x8xf32, #tpu.memory_space<vmem>>, vector<1x8xf32>
    %4 = vector.broadcast %3 : vector<1x8xf32> to vector<512x8xf32>
    %5 = arith.addf %2, %4 : vector<512x8xf32>
    %c0_5 = arith.constant 0 : index
    %c0_6 = arith.constant 0 : index
    %6 = vector.load %arg4[%c0_5, %c0_6] : memref<512x8xf32, #tpu.memory_space<vmem>>, vector<512x8xf32>
    tpu.vector_store %arg4[%c0_5, %c0_6], %5 {strides = array<i32>} : memref<512x8xf32, #tpu.memory_space<vmem>>, vector<512x8xf32>,
    %cst_7 = arith.constant dense<0.000000e+00> : vector<8xf32>
    %7 = vector.multi_reduction <add>, %5, %cst_7 [0] : vector<512x8xf32> to vector<8xf32>
    %8 = vector.shape_cast %7 : vector<8xf32> to vector<1x8xf32>
    %9 = arith.mulf %5, %5 : vector<512x8xf32>
    %cst_8 = arith.constant dense<0.000000e+00> : vector<8xf32>
    %10 = vector.multi_reduction <add>, %9, %cst_8 [0] : vector<512x8xf32> to vector<8xf32>
    %11 = vector.shape_cast %10 : vector<8xf32> to vector<1x8xf32>
    %12 = tpu.iota {dimensions = array<i32: 0>} : vector<8x8xi32>
    %c0_i32 = arith.constant 0 : i32
    %13 = vector.broadcast %c0_i32 : i32 to vector<8x8xi32>
    %14 = arith.cmpi eq, %12, %13 : vector<8x8xi32>
    %cst_9 = arith.constant 0.000000e+00 : f32
    %15 = vector.shape_cast %8 : vector<1x8xf32> to vector<1x8xf32>
    %16 = vector.broadcast %15 : vector<1x8xf32> to vector<8x8xf32>
    %17 = vector.broadcast %cst_9 : f32 to vector<8x8xf32>
    %18 = arith.select %14, %16, %17 : vector<8x8xi1>, vector<8x8xf32>
    %c1_i32 = arith.constant 1 : i32
    %19 = vector.broadcast %c1_i32 : i32 to vector<8x8xi32>
    %20 = arith.cmpi eq, %12, %19 : vector<8x8xi32>
    %cst_10 = arith.constant 0.000000e+00 : f32
    %21 = vector.shape_cast %11 : vector<1x8xf32> to vector<1x8xf32>
    %22 = vector.broadcast %21 : vector<1x8xf32> to vector<8x8xf32>
    %23 = vector.broadcast %cst_10 : f32 to vector<8x8xf32>
    %24 = arith.select %20, %22, %23 : vector<8x8xi1>, vector<8x8xf32>
    %25 = arith.addf %18, %24 : vector<8x8xf32>
    %c0_11 = arith.constant 0 : index
    %c0_12 = arith.constant 0 : index
    %c0_13 = arith.constant 0 : index
    %26 = vector.load %arg5[%c0_11, %c0_12, %c0_13] : memref<1x8x8xf32, #tpu.memory_space<vmem>>, vector<1x8x8xf32>
    %27 = vector.shape_cast %26 : vector<1x8x8xf32> to vector<8x8xf32>
    %28 = vector.shape_cast %25 : vector<8x8xf32> to vector<1x8x8xf32>
    tpu.vector_store %arg5[%c0_11, %c0_12, %c0_13], %28 {strides = array<i32>} : memref<1x8x8xf32, #tpu.memory_space<vmem>>, vector<1x8x8xf32>,
    return
  }
  func.func @transform_0(%arg0: i32) -> (i32, i32) {
    %c0_i32 = arith.constant 0 : i32
    %c0_i32_0 = arith.constant 0 : i32
    return %arg0, %c0_i32 : i32, i32
  }
  func.func @transform_1(%arg0: i32) -> (i32, i32) {
    %c0_i32 = arith.constant 0 : i32
    %c0_i32_0 = arith.constant 0 : i32
    %c0_i32_1 = arith.constant 0 : i32
    return %c0_i32, %c0_i32_0 : i32, i32
  }
  func.func @transform_2(%arg0: i32) -> (i32, i32) {
    %c0_i32 = arith.constant 0 : i32
    %c0_i32_0 = arith.constant 0 : i32
    %c0_i32_1 = arith.constant 0 : i32
    return %c0_i32, %c0_i32_0 : i32, i32
  }
  func.func @transform_3(%arg0: i32) -> (i32, i32) {
    %c0_i32 = arith.constant 0 : i32
    %c0_i32_0 = arith.constant 0 : i32
    return %arg0, %c0_i32 : i32, i32
  }
  func.func @transform_4(%arg0: i32) -> (i32, i32, i32) {
    %c0_i32 = arith.constant 0 : i32
    %c0_i32_0 = arith.constant 0 : i32
    %c0_i32_1 = arith.constant 0 : i32
    return %arg0, %c0_i32, %c0_i32_0 : i32, i32, i32
  }
}

module attributes {stable_mosaic.version = 11 : i64} {
  func.func @_bn_relu_conv1x1_stats_kernel(%arg0: i32, %arg1: memref<512x8xf32, #tpu.memory_space<vmem>>, %arg2: memref<1x8xf32, #tpu.memory_space<vmem>>, %arg3: memref<1x8xf32, #tpu.memory_space<vmem>>, %arg4: memref<8x4xf32, #tpu.memory_space<vmem>>, %arg5: memref<1x4xf32, #tpu.memory_space<vmem>>, %arg6: memref<512x4xf32, #tpu.memory_space<vmem>>, %arg7: memref<1x8x4xf32, #tpu.memory_space<vmem>>) attributes {dimension_semantics = [#tpu.dimension_semantics<parallel>], iteration_bounds = array<i64: 1>, scalar_prefetch = 0 : i64, scratch_operands = 0 : i64, tpu.core_type = #tpu.core_type<tc>, window_params = [{transform_indices = @transform_0, window_bounds = array<i64: 512, 8>}, {pipeline_mode = #tpu.pipeline_mode<synchronous>, transform_indices = @transform_1, window_bounds = array<i64: 1, 8>}, {pipeline_mode = #tpu.pipeline_mode<synchronous>, transform_indices = @transform_2, window_bounds = array<i64: 1, 8>}, {pipeline_mode = #tpu.pipeline_mode<synchronous>, transform_indices = @transform_3, window_bounds = array<i64: 8, 4>}, {pipeline_mode = #tpu.pipeline_mode<synchronous>, transform_indices = @transform_4, window_bounds = array<i64: 1, 4>}, {transform_indices = @transform_5, window_bounds = array<i64: 512, 4>}, {transform_indices = @transform_6, window_bounds = array<i64: 1, 8, 4>}]} {
    %c0 = arith.constant 0 : index
    %c0_0 = arith.constant 0 : index
    %0 = vector.load %arg1[%c0, %c0_0] : memref<512x8xf32, #tpu.memory_space<vmem>>, vector<512x8xf32>
    %c0_1 = arith.constant 0 : index
    %c0_2 = arith.constant 0 : index
    %1 = vector.load %arg2[%c0_1, %c0_2] : memref<1x8xf32, #tpu.memory_space<vmem>>, vector<1x8xf32>
    %2 = vector.broadcast %1 : vector<1x8xf32> to vector<512x8xf32>
    %3 = arith.mulf %0, %2 : vector<512x8xf32>
    %c0_3 = arith.constant 0 : index
    %c0_4 = arith.constant 0 : index
    %4 = vector.load %arg3[%c0_3, %c0_4] : memref<1x8xf32, #tpu.memory_space<vmem>>, vector<1x8xf32>
    %5 = vector.broadcast %4 : vector<1x8xf32> to vector<512x8xf32>
    %6 = arith.addf %3, %5 : vector<512x8xf32>
    %cst = arith.constant 0.000000e+00 : f32
    %7 = vector.broadcast %cst : f32 to vector<512x8xf32>
    %8 = arith.maximumf %6, %7 : vector<512x8xf32>
    %c0_5 = arith.constant 0 : index
    %c0_6 = arith.constant 0 : index
    %9 = vector.load %arg4[%c0_5, %c0_6] : memref<8x4xf32, #tpu.memory_space<vmem>>, vector<8x4xf32>
    %cst_7 = arith.constant dense<0.000000e+00> : vector<512x4xf32>
    %10 = tpu.matmul %8, %9, %cst_7 {dimension_numbers = #tpu.dot_dimension_numbers<[1], [0], [0], [1], [0, 0, 1, 1], [], []>} : vector<512x8xf32>, vector<8x4xf32>, vector<512x4xf32> -> vector<512x4xf32>
    %c0_8 = arith.constant 0 : index
    %c0_9 = arith.constant 0 : index
    %11 = vector.load %arg5[%c0_8, %c0_9] : memref<1x4xf32, #tpu.memory_space<vmem>>, vector<1x4xf32>
    %12 = vector.broadcast %11 : vector<1x4xf32> to vector<512x4xf32>
    %13 = arith.addf %10, %12 : vector<512x4xf32>
    %c0_10 = arith.constant 0 : index
    %c0_11 = arith.constant 0 : index
    %14 = vector.load %arg6[%c0_10, %c0_11] : memref<512x4xf32, #tpu.memory_space<vmem>>, vector<512x4xf32>
    tpu.vector_store %arg6[%c0_10, %c0_11], %13 {strides = array<i32>} : memref<512x4xf32, #tpu.memory_space<vmem>>, vector<512x4xf32>,
    %cst_12 = arith.constant dense<0.000000e+00> : vector<4xf32>
    %15 = vector.multi_reduction <add>, %13, %cst_12 [0] : vector<512x4xf32> to vector<4xf32>
    %16 = vector.shape_cast %15 : vector<4xf32> to vector<1x4xf32>
    %17 = arith.mulf %13, %13 : vector<512x4xf32>
    %cst_13 = arith.constant dense<0.000000e+00> : vector<4xf32>
    %18 = vector.multi_reduction <add>, %17, %cst_13 [0] : vector<512x4xf32> to vector<4xf32>
    %19 = vector.shape_cast %18 : vector<4xf32> to vector<1x4xf32>
    %20 = tpu.iota {dimensions = array<i32: 0>} : vector<8x4xi32>
    %c0_i32 = arith.constant 0 : i32
    %21 = vector.broadcast %c0_i32 : i32 to vector<8x4xi32>
    %22 = arith.cmpi eq, %20, %21 : vector<8x4xi32>
    %cst_14 = arith.constant 0.000000e+00 : f32
    %23 = vector.shape_cast %16 : vector<1x4xf32> to vector<1x4xf32>
    %24 = vector.broadcast %23 : vector<1x4xf32> to vector<8x4xf32>
    %25 = vector.broadcast %cst_14 : f32 to vector<8x4xf32>
    %26 = arith.select %22, %24, %25 : vector<8x4xi1>, vector<8x4xf32>
    %c1_i32 = arith.constant 1 : i32
    %27 = vector.broadcast %c1_i32 : i32 to vector<8x4xi32>
    %28 = arith.cmpi eq, %20, %27 : vector<8x4xi32>
    %cst_15 = arith.constant 0.000000e+00 : f32
    %29 = vector.shape_cast %19 : vector<1x4xf32> to vector<1x4xf32>
    %30 = vector.broadcast %29 : vector<1x4xf32> to vector<8x4xf32>
    %31 = vector.broadcast %cst_15 : f32 to vector<8x4xf32>
    %32 = arith.select %28, %30, %31 : vector<8x4xi1>, vector<8x4xf32>
    %33 = arith.addf %26, %32 : vector<8x4xf32>
    %c0_16 = arith.constant 0 : index
    %c0_17 = arith.constant 0 : index
    %c0_18 = arith.constant 0 : index
    %34 = vector.load %arg7[%c0_16, %c0_17, %c0_18] : memref<1x8x4xf32, #tpu.memory_space<vmem>>, vector<1x8x4xf32>
    %35 = vector.shape_cast %34 : vector<1x8x4xf32> to vector<8x4xf32>
    %36 = vector.shape_cast %33 : vector<8x4xf32> to vector<1x8x4xf32>
    tpu.vector_store %arg7[%c0_16, %c0_17, %c0_18], %36 {strides = array<i32>} : memref<1x8x4xf32, #tpu.memory_space<vmem>>, vector<1x8x4xf32>,
    return
  }
  func.func @transform_0(%arg0: i32) -> (i32, i32) {
    %c0_i32 = arith.constant 0 : i32
    %c0_i32_0 = arith.constant 0 : i32
    return %arg0, %c0_i32 : i32, i32
  }
  func.func @transform_1(%arg0: i32) -> (i32, i32) {
    %c0_i32 = arith.constant 0 : i32
    %c0_i32_0 = arith.constant 0 : i32
    %c0_i32_1 = arith.constant 0 : i32
    return %c0_i32, %c0_i32_0 : i32, i32
  }
  func.func @transform_2(%arg0: i32) -> (i32, i32) {
    %c0_i32 = arith.constant 0 : i32
    %c0_i32_0 = arith.constant 0 : i32
    %c0_i32_1 = arith.constant 0 : i32
    return %c0_i32, %c0_i32_0 : i32, i32
  }
  func.func @transform_3(%arg0: i32) -> (i32, i32) {
    %c0_i32 = arith.constant 0 : i32
    %c0_i32_0 = arith.constant 0 : i32
    %c0_i32_1 = arith.constant 0 : i32
    return %c0_i32, %c0_i32_0 : i32, i32
  }
  func.func @transform_4(%arg0: i32) -> (i32, i32) {
    %c0_i32 = arith.constant 0 : i32
    %c0_i32_0 = arith.constant 0 : i32
    %c0_i32_1 = arith.constant 0 : i32
    return %c0_i32, %c0_i32_0 : i32, i32
  }
  func.func @transform_5(%arg0: i32) -> (i32, i32) {
    %c0_i32 = arith.constant 0 : i32
    %c0_i32_0 = arith.constant 0 : i32
    return %arg0, %c0_i32 : i32, i32
  }
  func.func @transform_6(%arg0: i32) -> (i32, i32, i32) {
    %c0_i32 = arith.constant 0 : i32
    %c0_i32_0 = arith.constant 0 : i32
    %c0_i32_1 = arith.constant 0 : i32
    return %arg0, %c0_i32, %c0_i32_0 : i32, i32, i32
  }
}

module attributes {stable_mosaic.version = 11 : i64} {
  func.func @_conv3x3_fused_kernel(%arg0: i32, %arg1: memref<1x16x16x8xf32, #tpu.memory_space<vmem>>, %arg2: memref<1x8xf32, #tpu.memory_space<vmem>>, %arg3: memref<1x8xf32, #tpu.memory_space<vmem>>, %arg4: memref<3x3x8x8xf32, #tpu.memory_space<vmem>>, %arg5: memref<1x8xf32, #tpu.memory_space<vmem>>, %arg6: memref<1x16x16x8xf32, #tpu.memory_space<vmem>>, %arg7: memref<1x8x8xf32, #tpu.memory_space<vmem>>, %arg8: memref<18x18x8xf32, #tpu.memory_space<vmem>>) attributes {dimension_semantics = [#tpu.dimension_semantics<parallel>], iteration_bounds = array<i64: 2>, scalar_prefetch = 0 : i64, scratch_operands = 1 : i64, tpu.core_type = #tpu.core_type<tc>, window_params = [{transform_indices = @transform_0, window_bounds = array<i64: 1, 16, 16, 8>}, {pipeline_mode = #tpu.pipeline_mode<synchronous>, transform_indices = @transform_1, window_bounds = array<i64: 1, 8>}, {pipeline_mode = #tpu.pipeline_mode<synchronous>, transform_indices = @transform_2, window_bounds = array<i64: 1, 8>}, {pipeline_mode = #tpu.pipeline_mode<synchronous>, transform_indices = @transform_3, window_bounds = array<i64: 3, 3, 8, 8>}, {pipeline_mode = #tpu.pipeline_mode<synchronous>, transform_indices = @transform_4, window_bounds = array<i64: 1, 8>}, {transform_indices = @transform_5, window_bounds = array<i64: 1, 16, 16, 8>}, {transform_indices = @transform_6, window_bounds = array<i64: 1, 8, 8>}]} {
    %c0 = arith.constant 0 : index
    %c0_0 = arith.constant 0 : index
    %0 = vector.load %arg2[%c0, %c0_0] : memref<1x8xf32, #tpu.memory_space<vmem>>, vector<1x8xf32>
    %c0_1 = arith.constant 0 : index
    %c0_2 = arith.constant 0 : index
    %1 = vector.load %arg3[%c0_1, %c0_2] : memref<1x8xf32, #tpu.memory_space<vmem>>, vector<1x8xf32>
    %c0_3 = arith.constant 0 : index
    %c0_4 = arith.constant 0 : index
    %2 = vector.load %arg5[%c0_3, %c0_4] : memref<1x8xf32, #tpu.memory_space<vmem>>, vector<1x8xf32>
    %c0_5 = arith.constant 0 : index
    %c0_6 = arith.constant 0 : index
    %c0_7 = arith.constant 0 : index
    %c0_8 = arith.constant 0 : index
    %3 = vector.load %arg4[%c0_5, %c0_6, %c0_7, %c0_8] : memref<3x3x8x8xf32, #tpu.memory_space<vmem>>, vector<1x1x8x8xf32>
    %4 = vector.shape_cast %3 : vector<1x1x8x8xf32> to vector<8x8xf32>
    %c0_9 = arith.constant 0 : index
    %c1 = arith.constant 1 : index
    %c0_10 = arith.constant 0 : index
    %c0_11 = arith.constant 0 : index
    %5 = vector.load %arg4[%c0_9, %c1, %c0_10, %c0_11] : memref<3x3x8x8xf32, #tpu.memory_space<vmem>>, vector<1x1x8x8xf32>
    %6 = vector.shape_cast %5 : vector<1x1x8x8xf32> to vector<8x8xf32>
    %c0_12 = arith.constant 0 : index
    %c2 = arith.constant 2 : index
    %c0_13 = arith.constant 0 : index
    %c0_14 = arith.constant 0 : index
    %7 = vector.load %arg4[%c0_12, %c2, %c0_13, %c0_14] : memref<3x3x8x8xf32, #tpu.memory_space<vmem>>, vector<1x1x8x8xf32>
    %8 = vector.shape_cast %7 : vector<1x1x8x8xf32> to vector<8x8xf32>
    %c1_15 = arith.constant 1 : index
    %c0_16 = arith.constant 0 : index
    %c0_17 = arith.constant 0 : index
    %c0_18 = arith.constant 0 : index
    %9 = vector.load %arg4[%c1_15, %c0_16, %c0_17, %c0_18] : memref<3x3x8x8xf32, #tpu.memory_space<vmem>>, vector<1x1x8x8xf32>
    %10 = vector.shape_cast %9 : vector<1x1x8x8xf32> to vector<8x8xf32>
    %c1_19 = arith.constant 1 : index
    %c1_20 = arith.constant 1 : index
    %c0_21 = arith.constant 0 : index
    %c0_22 = arith.constant 0 : index
    %11 = vector.load %arg4[%c1_19, %c1_20, %c0_21, %c0_22] : memref<3x3x8x8xf32, #tpu.memory_space<vmem>>, vector<1x1x8x8xf32>
    %12 = vector.shape_cast %11 : vector<1x1x8x8xf32> to vector<8x8xf32>
    %c1_23 = arith.constant 1 : index
    %c2_24 = arith.constant 2 : index
    %c0_25 = arith.constant 0 : index
    %c0_26 = arith.constant 0 : index
    %13 = vector.load %arg4[%c1_23, %c2_24, %c0_25, %c0_26] : memref<3x3x8x8xf32, #tpu.memory_space<vmem>>, vector<1x1x8x8xf32>
    %14 = vector.shape_cast %13 : vector<1x1x8x8xf32> to vector<8x8xf32>
    %c2_27 = arith.constant 2 : index
    %c0_28 = arith.constant 0 : index
    %c0_29 = arith.constant 0 : index
    %c0_30 = arith.constant 0 : index
    %15 = vector.load %arg4[%c2_27, %c0_28, %c0_29, %c0_30] : memref<3x3x8x8xf32, #tpu.memory_space<vmem>>, vector<1x1x8x8xf32>
    %16 = vector.shape_cast %15 : vector<1x1x8x8xf32> to vector<8x8xf32>
    %c2_31 = arith.constant 2 : index
    %c1_32 = arith.constant 1 : index
    %c0_33 = arith.constant 0 : index
    %c0_34 = arith.constant 0 : index
    %17 = vector.load %arg4[%c2_31, %c1_32, %c0_33, %c0_34] : memref<3x3x8x8xf32, #tpu.memory_space<vmem>>, vector<1x1x8x8xf32>
    %18 = vector.shape_cast %17 : vector<1x1x8x8xf32> to vector<8x8xf32>
    %c2_35 = arith.constant 2 : index
    %c2_36 = arith.constant 2 : index
    %c0_37 = arith.constant 0 : index
    %c0_38 = arith.constant 0 : index
    %19 = vector.load %arg4[%c2_35, %c2_36, %c0_37, %c0_38] : memref<3x3x8x8xf32, #tpu.memory_space<vmem>>, vector<1x1x8x8xf32>
    %20 = vector.shape_cast %19 : vector<1x1x8x8xf32> to vector<8x8xf32>
    %cst = arith.constant 0.000000e+00 : f32
    %21 = vector.broadcast %cst : f32 to vector<18x8xf32>
    %c0_39 = arith.constant 0 : index
    %c0_40 = arith.constant 0 : index
    %c0_41 = arith.constant 0 : index
    %22 = vector.load %arg8[%c0_39, %c0_40, %c0_41] : memref<18x18x8xf32, #tpu.memory_space<vmem>>, vector<1x18x8xf32>
    %23 = vector.shape_cast %22 : vector<1x18x8xf32> to vector<18x8xf32>
    %24 = vector.shape_cast %21 : vector<18x8xf32> to vector<1x18x8xf32>
    tpu.vector_store %arg8[%c0_39, %c0_40, %c0_41], %24 {strides = array<i32>} : memref<18x18x8xf32, #tpu.memory_space<vmem>>, vector<1x18x8xf32>,
    %c17 = arith.constant 17 : index
    %c0_42 = arith.constant 0 : index
    %c0_43 = arith.constant 0 : index
    %25 = vector.load %arg8[%c17, %c0_42, %c0_43] : memref<18x18x8xf32, #tpu.memory_space<vmem>>, vector<1x18x8xf32>
    %26 = vector.shape_cast %25 : vector<1x18x8xf32> to vector<18x8xf32>
    %27 = vector.shape_cast %21 : vector<18x8xf32> to vector<1x18x8xf32>
    tpu.vector_store %arg8[%c17, %c0_42, %c0_43], %27 {strides = array<i32>} : memref<18x18x8xf32, #tpu.memory_space<vmem>>, vector<1x18x8xf32>,
    %c0_44 = arith.constant 0 : index
    %c0_45 = arith.constant 0 : index
    %c0_46 = arith.constant 0 : index
    %c0_47 = arith.constant 0 : index
    %28 = vector.load %arg1[%c0_44, %c0_45, %c0_46, %c0_47] : memref<1x16x16x8xf32, #tpu.memory_space<vmem>>, vector<1x1x16x8xf32>
    %29 = vector.shape_cast %28 : vector<1x1x16x8xf32> to vector<16x8xf32>
    %30 = vector.broadcast %0 : vector<1x8xf32> to vector<16x8xf32>
    %31 = arith.mulf %29, %30 : vector<16x8xf32>
    %32 = vector.broadcast %1 : vector<1x8xf32> to vector<16x8xf32>
    %33 = arith.addf %31, %32 : vector<16x8xf32>
    %cst_48 = arith.constant 0.000000e+00 : f32
    %34 = vector.broadcast %cst_48 : f32 to vector<16x8xf32>
    %35 = arith.maximumf %33, %34 : vector<16x8xf32>
    %c1_49 = arith.constant 1 : index
    %c0_50 = arith.constant 0 : index
    %c0_51 = arith.constant 0 : index
    %36 = vector.load %arg8[%c1_49, %c0_50, %c0_51] : memref<18x18x8xf32, #tpu.memory_space<vmem>>, vector<1x18x8xf32>
    %37 = vector.shape_cast %36 : vector<1x18x8xf32> to vector<18x8xf32>
    %38 = vector.shape_cast %21 : vector<18x8xf32> to vector<1x18x8xf32>
    tpu.vector_store %arg8[%c1_49, %c0_50, %c0_51], %38 {strides = array<i32>} : memref<18x18x8xf32, #tpu.memory_space<vmem>>, vector<1x18x8xf32>,
    %c1_52 = arith.constant 1 : index
    %c1_53 = arith.constant 1 : index
    %c0_54 = arith.constant 0 : index
    %39 = vector.load %arg8[%c1_52, %c1_53, %c0_54] : memref<18x18x8xf32, #tpu.memory_space<vmem>>, vector<1x16x8xf32>
    %40 = vector.shape_cast %39 : vector<1x16x8xf32> to vector<16x8xf32>
    %41 = vector.shape_cast %35 : vector<16x8xf32> to vector<1x16x8xf32>
    tpu.vector_store %arg8[%c1_52, %c1_53, %c0_54], %41 {strides = array<i32>} : memref<18x18x8xf32, #tpu.memory_space<vmem>>, vector<1x16x8xf32>,
    %c0_55 = arith.constant 0 : index
    %c1_56 = arith.constant 1 : index
    %c0_57 = arith.constant 0 : index
    %c0_58 = arith.constant 0 : index
    %42 = vector.load %arg1[%c0_55, %c1_56, %c0_57, %c0_58] : memref<1x16x16x8xf32, #tpu.memory_space<vmem>>, vector<1x1x16x8xf32>
    %43 = vector.shape_cast %42 : vector<1x1x16x8xf32> to vector<16x8xf32>
    %44 = vector.broadcast %0 : vector<1x8xf32> to vector<16x8xf32>
    %45 = arith.mulf %43, %44 : vector<16x8xf32>
    %46 = vector.broadcast %1 : vector<1x8xf32> to vector<16x8xf32>
    %47 = arith.addf %45, %46 : vector<16x8xf32>
    %cst_59 = arith.constant 0.000000e+00 : f32
    %48 = vector.broadcast %cst_59 : f32 to vector<16x8xf32>
    %49 = arith.maximumf %47, %48 : vector<16x8xf32>
    %c2_60 = arith.constant 2 : index
    %c0_61 = arith.constant 0 : index
    %c0_62 = arith.constant 0 : index
    %50 = vector.load %arg8[%c2_60, %c0_61, %c0_62] : memref<18x18x8xf32, #tpu.memory_space<vmem>>, vector<1x18x8xf32>
    %51 = vector.shape_cast %50 : vector<1x18x8xf32> to vector<18x8xf32>
    %52 = vector.shape_cast %21 : vector<18x8xf32> to vector<1x18x8xf32>
    tpu.vector_store %arg8[%c2_60, %c0_61, %c0_62], %52 {strides = array<i32>} : memref<18x18x8xf32, #tpu.memory_space<vmem>>, vector<1x18x8xf32>,
    %c2_63 = arith.constant 2 : index
    %c1_64 = arith.constant 1 : index
    %c0_65 = arith.constant 0 : index
    %53 = vector.load %arg8[%c2_63, %c1_64, %c0_65] : memref<18x18x8xf32, #tpu.memory_space<vmem>>, vector<1x16x8xf32>
    %54 = vector.shape_cast %53 : vector<1x16x8xf32> to vector<16x8xf32>
    %55 = vector.shape_cast %49 : vector<16x8xf32> to vector<1x16x8xf32>
    tpu.vector_store %arg8[%c2_63, %c1_64, %c0_65], %55 {strides = array<i32>} : memref<18x18x8xf32, #tpu.memory_space<vmem>>, vector<1x16x8xf32>,
    %c0_66 = arith.constant 0 : index
    %c2_67 = arith.constant 2 : index
    %c0_68 = arith.constant 0 : index
    %c0_69 = arith.constant 0 : index
    %56 = vector.load %arg1[%c0_66, %c2_67, %c0_68, %c0_69] : memref<1x16x16x8xf32, #tpu.memory_space<vmem>>, vector<1x1x16x8xf32>
    %57 = vector.shape_cast %56 : vector<1x1x16x8xf32> to vector<16x8xf32>
    %58 = vector.broadcast %0 : vector<1x8xf32> to vector<16x8xf32>
    %59 = arith.mulf %57, %58 : vector<16x8xf32>
    %60 = vector.broadcast %1 : vector<1x8xf32> to vector<16x8xf32>
    %61 = arith.addf %59, %60 : vector<16x8xf32>
    %cst_70 = arith.constant 0.000000e+00 : f32
    %62 = vector.broadcast %cst_70 : f32 to vector<16x8xf32>
    %63 = arith.maximumf %61, %62 : vector<16x8xf32>
    %c3 = arith.constant 3 : index
    %c0_71 = arith.constant 0 : index
    %c0_72 = arith.constant 0 : index
    %64 = vector.load %arg8[%c3, %c0_71, %c0_72] : memref<18x18x8xf32, #tpu.memory_space<vmem>>, vector<1x18x8xf32>
    %65 = vector.shape_cast %64 : vector<1x18x8xf32> to vector<18x8xf32>
    %66 = vector.shape_cast %21 : vector<18x8xf32> to vector<1x18x8xf32>
    tpu.vector_store %arg8[%c3, %c0_71, %c0_72], %66 {strides = array<i32>} : memref<18x18x8xf32, #tpu.memory_space<vmem>>, vector<1x18x8xf32>,
    %c3_73 = arith.constant 3 : index
    %c1_74 = arith.constant 1 : index
    %c0_75 = arith.constant 0 : index
    %67 = vector.load %arg8[%c3_73, %c1_74, %c0_75] : memref<18x18x8xf32, #tpu.memory_space<vmem>>, vector<1x16x8xf32>
    %68 = vector.shape_cast %67 : vector<1x16x8xf32> to vector<16x8xf32>
    %69 = vector.shape_cast %63 : vector<16x8xf32> to vector<1x16x8xf32>
    tpu.vector_store %arg8[%c3_73, %c1_74, %c0_75], %69 {strides = array<i32>} : memref<18x18x8xf32, #tpu.memory_space<vmem>>, vector<1x16x8xf32>,
    %c0_76 = arith.constant 0 : index
    %c3_77 = arith.constant 3 : index
    %c0_78 = arith.constant 0 : index
    %c0_79 = arith.constant 0 : index
    %70 = vector.load %arg1[%c0_76, %c3_77, %c0_78, %c0_79] : memref<1x16x16x8xf32, #tpu.memory_space<vmem>>, vector<1x1x16x8xf32>
    %71 = vector.shape_cast %70 : vector<1x1x16x8xf32> to vector<16x8xf32>
    %72 = vector.broadcast %0 : vector<1x8xf32> to vector<16x8xf32>
    %73 = arith.mulf %71, %72 : vector<16x8xf32>
    %74 = vector.broadcast %1 : vector<1x8xf32> to vector<16x8xf32>
    %75 = arith.addf %73, %74 : vector<16x8xf32>
    %cst_80 = arith.constant 0.000000e+00 : f32
    %76 = vector.broadcast %cst_80 : f32 to vector<16x8xf32>
    %77 = arith.maximumf %75, %76 : vector<16x8xf32>
    %c4 = arith.constant 4 : index
    %c0_81 = arith.constant 0 : index
    %c0_82 = arith.constant 0 : index
    %78 = vector.load %arg8[%c4, %c0_81, %c0_82] : memref<18x18x8xf32, #tpu.memory_space<vmem>>, vector<1x18x8xf32>
    %79 = vector.shape_cast %78 : vector<1x18x8xf32> to vector<18x8xf32>
    %80 = vector.shape_cast %21 : vector<18x8xf32> to vector<1x18x8xf32>
    tpu.vector_store %arg8[%c4, %c0_81, %c0_82], %80 {strides = array<i32>} : memref<18x18x8xf32, #tpu.memory_space<vmem>>, vector<1x18x8xf32>,
    %c4_83 = arith.constant 4 : index
    %c1_84 = arith.constant 1 : index
    %c0_85 = arith.constant 0 : index
    %81 = vector.load %arg8[%c4_83, %c1_84, %c0_85] : memref<18x18x8xf32, #tpu.memory_space<vmem>>, vector<1x16x8xf32>
    %82 = vector.shape_cast %81 : vector<1x16x8xf32> to vector<16x8xf32>
    %83 = vector.shape_cast %77 : vector<16x8xf32> to vector<1x16x8xf32>
    tpu.vector_store %arg8[%c4_83, %c1_84, %c0_85], %83 {strides = array<i32>} : memref<18x18x8xf32, #tpu.memory_space<vmem>>, vector<1x16x8xf32>,
    %c0_86 = arith.constant 0 : index
    %c4_87 = arith.constant 4 : index
    %c0_88 = arith.constant 0 : index
    %c0_89 = arith.constant 0 : index
    %84 = vector.load %arg1[%c0_86, %c4_87, %c0_88, %c0_89] : memref<1x16x16x8xf32, #tpu.memory_space<vmem>>, vector<1x1x16x8xf32>
    %85 = vector.shape_cast %84 : vector<1x1x16x8xf32> to vector<16x8xf32>
    %86 = vector.broadcast %0 : vector<1x8xf32> to vector<16x8xf32>
    %87 = arith.mulf %85, %86 : vector<16x8xf32>
    %88 = vector.broadcast %1 : vector<1x8xf32> to vector<16x8xf32>
    %89 = arith.addf %87, %88 : vector<16x8xf32>
    %cst_90 = arith.constant 0.000000e+00 : f32
    %90 = vector.broadcast %cst_90 : f32 to vector<16x8xf32>
    %91 = arith.maximumf %89, %90 : vector<16x8xf32>
    %c5 = arith.constant 5 : index
    %c0_91 = arith.constant 0 : index
    %c0_92 = arith.constant 0 : index
    %92 = vector.load %arg8[%c5, %c0_91, %c0_92] : memref<18x18x8xf32, #tpu.memory_space<vmem>>, vector<1x18x8xf32>
    %93 = vector.shape_cast %92 : vector<1x18x8xf32> to vector<18x8xf32>
    %94 = vector.shape_cast %21 : vector<18x8xf32> to vector<1x18x8xf32>
    tpu.vector_store %arg8[%c5, %c0_91, %c0_92], %94 {strides = array<i32>} : memref<18x18x8xf32, #tpu.memory_space<vmem>>, vector<1x18x8xf32>,
    %c5_93 = arith.constant 5 : index
    %c1_94 = arith.constant 1 : index
    %c0_95 = arith.constant 0 : index
    %95 = vector.load %arg8[%c5_93, %c1_94, %c0_95] : memref<18x18x8xf32, #tpu.memory_space<vmem>>, vector<1x16x8xf32>
    %96 = vector.shape_cast %95 : vector<1x16x8xf32> to vector<16x8xf32>
    %97 = vector.shape_cast %91 : vector<16x8xf32> to vector<1x16x8xf32>
    tpu.vector_store %arg8[%c5_93, %c1_94, %c0_95], %97 {strides = array<i32>} : memref<18x18x8xf32, #tpu.memory_space<vmem>>, vector<1x16x8xf32>,
    %c0_96 = arith.constant 0 : index
    %c5_97 = arith.constant 5 : index
    %c0_98 = arith.constant 0 : index
    %c0_99 = arith.constant 0 : index
    %98 = vector.load %arg1[%c0_96, %c5_97, %c0_98, %c0_99] : memref<1x16x16x8xf32, #tpu.memory_space<vmem>>, vector<1x1x16x8xf32>
    %99 = vector.shape_cast %98 : vector<1x1x16x8xf32> to vector<16x8xf32>
    %100 = vector.broadcast %0 : vector<1x8xf32> to vector<16x8xf32>
    %101 = arith.mulf %99, %100 : vector<16x8xf32>
    %102 = vector.broadcast %1 : vector<1x8xf32> to vector<16x8xf32>
    %103 = arith.addf %101, %102 : vector<16x8xf32>
    %cst_100 = arith.constant 0.000000e+00 : f32
    %104 = vector.broadcast %cst_100 : f32 to vector<16x8xf32>
    %105 = arith.maximumf %103, %104 : vector<16x8xf32>
    %c6 = arith.constant 6 : index
    %c0_101 = arith.constant 0 : index
    %c0_102 = arith.constant 0 : index
    %106 = vector.load %arg8[%c6, %c0_101, %c0_102] : memref<18x18x8xf32, #tpu.memory_space<vmem>>, vector<1x18x8xf32>
    %107 = vector.shape_cast %106 : vector<1x18x8xf32> to vector<18x8xf32>
    %108 = vector.shape_cast %21 : vector<18x8xf32> to vector<1x18x8xf32>
    tpu.vector_store %arg8[%c6, %c0_101, %c0_102], %108 {strides = array<i32>} : memref<18x18x8xf32, #tpu.memory_space<vmem>>, vector<1x18x8xf32>,
    %c6_103 = arith.constant 6 : index
    %c1_104 = arith.constant 1 : index
    %c0_105 = arith.constant 0 : index
    %109 = vector.load %arg8[%c6_103, %c1_104, %c0_105] : memref<18x18x8xf32, #tpu.memory_space<vmem>>, vector<1x16x8xf32>
    %110 = vector.shape_cast %109 : vector<1x16x8xf32> to vector<16x8xf32>
    %111 = vector.shape_cast %105 : vector<16x8xf32> to vector<1x16x8xf32>
    tpu.vector_store %arg8[%c6_103, %c1_104, %c0_105], %111 {strides = array<i32>} : memref<18x18x8xf32, #tpu.memory_space<vmem>>, vector<1x16x8xf32>,
    %c0_106 = arith.constant 0 : index
    %c6_107 = arith.constant 6 : index
    %c0_108 = arith.constant 0 : index
    %c0_109 = arith.constant 0 : index
    %112 = vector.load %arg1[%c0_106, %c6_107, %c0_108, %c0_109] : memref<1x16x16x8xf32, #tpu.memory_space<vmem>>, vector<1x1x16x8xf32>
    %113 = vector.shape_cast %112 : vector<1x1x16x8xf32> to vector<16x8xf32>
    %114 = vector.broadcast %0 : vector<1x8xf32> to vector<16x8xf32>
    %115 = arith.mulf %113, %114 : vector<16x8xf32>
    %116 = vector.broadcast %1 : vector<1x8xf32> to vector<16x8xf32>
    %117 = arith.addf %115, %116 : vector<16x8xf32>
    %cst_110 = arith.constant 0.000000e+00 : f32
    %118 = vector.broadcast %cst_110 : f32 to vector<16x8xf32>
    %119 = arith.maximumf %117, %118 : vector<16x8xf32>
    %c7 = arith.constant 7 : index
    %c0_111 = arith.constant 0 : index
    %c0_112 = arith.constant 0 : index
    %120 = vector.load %arg8[%c7, %c0_111, %c0_112] : memref<18x18x8xf32, #tpu.memory_space<vmem>>, vector<1x18x8xf32>
    %121 = vector.shape_cast %120 : vector<1x18x8xf32> to vector<18x8xf32>
    %122 = vector.shape_cast %21 : vector<18x8xf32> to vector<1x18x8xf32>
    tpu.vector_store %arg8[%c7, %c0_111, %c0_112], %122 {strides = array<i32>} : memref<18x18x8xf32, #tpu.memory_space<vmem>>, vector<1x18x8xf32>,
    %c7_113 = arith.constant 7 : index
    %c1_114 = arith.constant 1 : index
    %c0_115 = arith.constant 0 : index
    %123 = vector.load %arg8[%c7_113, %c1_114, %c0_115] : memref<18x18x8xf32, #tpu.memory_space<vmem>>, vector<1x16x8xf32>
    %124 = vector.shape_cast %123 : vector<1x16x8xf32> to vector<16x8xf32>
    %125 = vector.shape_cast %119 : vector<16x8xf32> to vector<1x16x8xf32>
    tpu.vector_store %arg8[%c7_113, %c1_114, %c0_115], %125 {strides = array<i32>} : memref<18x18x8xf32, #tpu.memory_space<vmem>>, vector<1x16x8xf32>,
    %c0_116 = arith.constant 0 : index
    %c7_117 = arith.constant 7 : index
    %c0_118 = arith.constant 0 : index
    %c0_119 = arith.constant 0 : index
    %126 = vector.load %arg1[%c0_116, %c7_117, %c0_118, %c0_119] : memref<1x16x16x8xf32, #tpu.memory_space<vmem>>, vector<1x1x16x8xf32>
    %127 = vector.shape_cast %126 : vector<1x1x16x8xf32> to vector<16x8xf32>
    %128 = vector.broadcast %0 : vector<1x8xf32> to vector<16x8xf32>
    %129 = arith.mulf %127, %128 : vector<16x8xf32>
    %130 = vector.broadcast %1 : vector<1x8xf32> to vector<16x8xf32>
    %131 = arith.addf %129, %130 : vector<16x8xf32>
    %cst_120 = arith.constant 0.000000e+00 : f32
    %132 = vector.broadcast %cst_120 : f32 to vector<16x8xf32>
    %133 = arith.maximumf %131, %132 : vector<16x8xf32>
    %c8 = arith.constant 8 : index
    %c0_121 = arith.constant 0 : index
    %c0_122 = arith.constant 0 : index
    %134 = vector.load %arg8[%c8, %c0_121, %c0_122] : memref<18x18x8xf32, #tpu.memory_space<vmem>>, vector<1x18x8xf32>
    %135 = vector.shape_cast %134 : vector<1x18x8xf32> to vector<18x8xf32>
    %136 = vector.shape_cast %21 : vector<18x8xf32> to vector<1x18x8xf32>
    tpu.vector_store %arg8[%c8, %c0_121, %c0_122], %136 {strides = array<i32>} : memref<18x18x8xf32, #tpu.memory_space<vmem>>, vector<1x18x8xf32>,
    %c8_123 = arith.constant 8 : index
    %c1_124 = arith.constant 1 : index
    %c0_125 = arith.constant 0 : index
    %137 = vector.load %arg8[%c8_123, %c1_124, %c0_125] : memref<18x18x8xf32, #tpu.memory_space<vmem>>, vector<1x16x8xf32>
    %138 = vector.shape_cast %137 : vector<1x16x8xf32> to vector<16x8xf32>
    %139 = vector.shape_cast %133 : vector<16x8xf32> to vector<1x16x8xf32>
    tpu.vector_store %arg8[%c8_123, %c1_124, %c0_125], %139 {strides = array<i32>} : memref<18x18x8xf32, #tpu.memory_space<vmem>>, vector<1x16x8xf32>,
    %c0_126 = arith.constant 0 : index
    %c8_127 = arith.constant 8 : index
    %c0_128 = arith.constant 0 : index
    %c0_129 = arith.constant 0 : index
    %140 = vector.load %arg1[%c0_126, %c8_127, %c0_128, %c0_129] : memref<1x16x16x8xf32, #tpu.memory_space<vmem>>, vector<1x1x16x8xf32>
    %141 = vector.shape_cast %140 : vector<1x1x16x8xf32> to vector<16x8xf32>
    %142 = vector.broadcast %0 : vector<1x8xf32> to vector<16x8xf32>
    %143 = arith.mulf %141, %142 : vector<16x8xf32>
    %144 = vector.broadcast %1 : vector<1x8xf32> to vector<16x8xf32>
    %145 = arith.addf %143, %144 : vector<16x8xf32>
    %cst_130 = arith.constant 0.000000e+00 : f32
    %146 = vector.broadcast %cst_130 : f32 to vector<16x8xf32>
    %147 = arith.maximumf %145, %146 : vector<16x8xf32>
    %c9 = arith.constant 9 : index
    %c0_131 = arith.constant 0 : index
    %c0_132 = arith.constant 0 : index
    %148 = vector.load %arg8[%c9, %c0_131, %c0_132] : memref<18x18x8xf32, #tpu.memory_space<vmem>>, vector<1x18x8xf32>
    %149 = vector.shape_cast %148 : vector<1x18x8xf32> to vector<18x8xf32>
    %150 = vector.shape_cast %21 : vector<18x8xf32> to vector<1x18x8xf32>
    tpu.vector_store %arg8[%c9, %c0_131, %c0_132], %150 {strides = array<i32>} : memref<18x18x8xf32, #tpu.memory_space<vmem>>, vector<1x18x8xf32>,
    %c9_133 = arith.constant 9 : index
    %c1_134 = arith.constant 1 : index
    %c0_135 = arith.constant 0 : index
    %151 = vector.load %arg8[%c9_133, %c1_134, %c0_135] : memref<18x18x8xf32, #tpu.memory_space<vmem>>, vector<1x16x8xf32>
    %152 = vector.shape_cast %151 : vector<1x16x8xf32> to vector<16x8xf32>
    %153 = vector.shape_cast %147 : vector<16x8xf32> to vector<1x16x8xf32>
    tpu.vector_store %arg8[%c9_133, %c1_134, %c0_135], %153 {strides = array<i32>} : memref<18x18x8xf32, #tpu.memory_space<vmem>>, vector<1x16x8xf32>,
    %c0_136 = arith.constant 0 : index
    %c9_137 = arith.constant 9 : index
    %c0_138 = arith.constant 0 : index
    %c0_139 = arith.constant 0 : index
    %154 = vector.load %arg1[%c0_136, %c9_137, %c0_138, %c0_139] : memref<1x16x16x8xf32, #tpu.memory_space<vmem>>, vector<1x1x16x8xf32>
    %155 = vector.shape_cast %154 : vector<1x1x16x8xf32> to vector<16x8xf32>
    %156 = vector.broadcast %0 : vector<1x8xf32> to vector<16x8xf32>
    %157 = arith.mulf %155, %156 : vector<16x8xf32>
    %158 = vector.broadcast %1 : vector<1x8xf32> to vector<16x8xf32>
    %159 = arith.addf %157, %158 : vector<16x8xf32>
    %cst_140 = arith.constant 0.000000e+00 : f32
    %160 = vector.broadcast %cst_140 : f32 to vector<16x8xf32>
    %161 = arith.maximumf %159, %160 : vector<16x8xf32>
    %c10 = arith.constant 10 : index
    %c0_141 = arith.constant 0 : index
    %c0_142 = arith.constant 0 : index
    %162 = vector.load %arg8[%c10, %c0_141, %c0_142] : memref<18x18x8xf32, #tpu.memory_space<vmem>>, vector<1x18x8xf32>
    %163 = vector.shape_cast %162 : vector<1x18x8xf32> to vector<18x8xf32>
    %164 = vector.shape_cast %21 : vector<18x8xf32> to vector<1x18x8xf32>
    tpu.vector_store %arg8[%c10, %c0_141, %c0_142], %164 {strides = array<i32>} : memref<18x18x8xf32, #tpu.memory_space<vmem>>, vector<1x18x8xf32>,
    %c10_143 = arith.constant 10 : index
    %c1_144 = arith.constant 1 : index
    %c0_145 = arith.constant 0 : index
    %165 = vector.load %arg8[%c10_143, %c1_144, %c0_145] : memref<18x18x8xf32, #tpu.memory_space<vmem>>, vector<1x16x8xf32>
    %166 = vector.shape_cast %165 : vector<1x16x8xf32> to vector<16x8xf32>
    %167 = vector.shape_cast %161 : vector<16x8xf32> to vector<1x16x8xf32>
    tpu.vector_store %arg8[%c10_143, %c1_144, %c0_145], %167 {strides = array<i32>} : memref<18x18x8xf32, #tpu.memory_space<vmem>>, vector<1x16x8xf32>,
    %c0_146 = arith.constant 0 : index
    %c10_147 = arith.constant 10 : index
    %c0_148 = arith.constant 0 : index
    %c0_149 = arith.constant 0 : index
    %168 = vector.load %arg1[%c0_146, %c10_147, %c0_148, %c0_149] : memref<1x16x16x8xf32, #tpu.memory_space<vmem>>, vector<1x1x16x8xf32>
    %169 = vector.shape_cast %168 : vector<1x1x16x8xf32> to vector<16x8xf32>
    %170 = vector.broadcast %0 : vector<1x8xf32> to vector<16x8xf32>
    %171 = arith.mulf %169, %170 : vector<16x8xf32>
    %172 = vector.broadcast %1 : vector<1x8xf32> to vector<16x8xf32>
    %173 = arith.addf %171, %172 : vector<16x8xf32>
    %cst_150 = arith.constant 0.000000e+00 : f32
    %174 = vector.broadcast %cst_150 : f32 to vector<16x8xf32>
    %175 = arith.maximumf %173, %174 : vector<16x8xf32>
    %c11 = arith.constant 11 : index
    %c0_151 = arith.constant 0 : index
    %c0_152 = arith.constant 0 : index
    %176 = vector.load %arg8[%c11, %c0_151, %c0_152] : memref<18x18x8xf32, #tpu.memory_space<vmem>>, vector<1x18x8xf32>
    %177 = vector.shape_cast %176 : vector<1x18x8xf32> to vector<18x8xf32>
    %178 = vector.shape_cast %21 : vector<18x8xf32> to vector<1x18x8xf32>
    tpu.vector_store %arg8[%c11, %c0_151, %c0_152], %178 {strides = array<i32>} : memref<18x18x8xf32, #tpu.memory_space<vmem>>, vector<1x18x8xf32>,
    %c11_153 = arith.constant 11 : index
    %c1_154 = arith.constant 1 : index
    %c0_155 = arith.constant 0 : index
    %179 = vector.load %arg8[%c11_153, %c1_154, %c0_155] : memref<18x18x8xf32, #tpu.memory_space<vmem>>, vector<1x16x8xf32>
    %180 = vector.shape_cast %179 : vector<1x16x8xf32> to vector<16x8xf32>
    %181 = vector.shape_cast %175 : vector<16x8xf32> to vector<1x16x8xf32>
    tpu.vector_store %arg8[%c11_153, %c1_154, %c0_155], %181 {strides = array<i32>} : memref<18x18x8xf32, #tpu.memory_space<vmem>>, vector<1x16x8xf32>,
    %c0_156 = arith.constant 0 : index
    %c11_157 = arith.constant 11 : index
    %c0_158 = arith.constant 0 : index
    %c0_159 = arith.constant 0 : index
    %182 = vector.load %arg1[%c0_156, %c11_157, %c0_158, %c0_159] : memref<1x16x16x8xf32, #tpu.memory_space<vmem>>, vector<1x1x16x8xf32>
    %183 = vector.shape_cast %182 : vector<1x1x16x8xf32> to vector<16x8xf32>
    %184 = vector.broadcast %0 : vector<1x8xf32> to vector<16x8xf32>
    %185 = arith.mulf %183, %184 : vector<16x8xf32>
    %186 = vector.broadcast %1 : vector<1x8xf32> to vector<16x8xf32>
    %187 = arith.addf %185, %186 : vector<16x8xf32>
    %cst_160 = arith.constant 0.000000e+00 : f32
    %188 = vector.broadcast %cst_160 : f32 to vector<16x8xf32>
    %189 = arith.maximumf %187, %188 : vector<16x8xf32>
    %c12 = arith.constant 12 : index
    %c0_161 = arith.constant 0 : index
    %c0_162 = arith.constant 0 : index
    %190 = vector.load %arg8[%c12, %c0_161, %c0_162] : memref<18x18x8xf32, #tpu.memory_space<vmem>>, vector<1x18x8xf32>
    %191 = vector.shape_cast %190 : vector<1x18x8xf32> to vector<18x8xf32>
    %192 = vector.shape_cast %21 : vector<18x8xf32> to vector<1x18x8xf32>
    tpu.vector_store %arg8[%c12, %c0_161, %c0_162], %192 {strides = array<i32>} : memref<18x18x8xf32, #tpu.memory_space<vmem>>, vector<1x18x8xf32>,
    %c12_163 = arith.constant 12 : index
    %c1_164 = arith.constant 1 : index
    %c0_165 = arith.constant 0 : index
    %193 = vector.load %arg8[%c12_163, %c1_164, %c0_165] : memref<18x18x8xf32, #tpu.memory_space<vmem>>, vector<1x16x8xf32>
    %194 = vector.shape_cast %193 : vector<1x16x8xf32> to vector<16x8xf32>
    %195 = vector.shape_cast %189 : vector<16x8xf32> to vector<1x16x8xf32>
    tpu.vector_store %arg8[%c12_163, %c1_164, %c0_165], %195 {strides = array<i32>} : memref<18x18x8xf32, #tpu.memory_space<vmem>>, vector<1x16x8xf32>,
    %c0_166 = arith.constant 0 : index
    %c12_167 = arith.constant 12 : index
    %c0_168 = arith.constant 0 : index
    %c0_169 = arith.constant 0 : index
    %196 = vector.load %arg1[%c0_166, %c12_167, %c0_168, %c0_169] : memref<1x16x16x8xf32, #tpu.memory_space<vmem>>, vector<1x1x16x8xf32>
    %197 = vector.shape_cast %196 : vector<1x1x16x8xf32> to vector<16x8xf32>
    %198 = vector.broadcast %0 : vector<1x8xf32> to vector<16x8xf32>
    %199 = arith.mulf %197, %198 : vector<16x8xf32>
    %200 = vector.broadcast %1 : vector<1x8xf32> to vector<16x8xf32>
    %201 = arith.addf %199, %200 : vector<16x8xf32>
    %cst_170 = arith.constant 0.000000e+00 : f32
    %202 = vector.broadcast %cst_170 : f32 to vector<16x8xf32>
    %203 = arith.maximumf %201, %202 : vector<16x8xf32>
    %c13 = arith.constant 13 : index
    %c0_171 = arith.constant 0 : index
    %c0_172 = arith.constant 0 : index
    %204 = vector.load %arg8[%c13, %c0_171, %c0_172] : memref<18x18x8xf32, #tpu.memory_space<vmem>>, vector<1x18x8xf32>
    %205 = vector.shape_cast %204 : vector<1x18x8xf32> to vector<18x8xf32>
    %206 = vector.shape_cast %21 : vector<18x8xf32> to vector<1x18x8xf32>
    tpu.vector_store %arg8[%c13, %c0_171, %c0_172], %206 {strides = array<i32>} : memref<18x18x8xf32, #tpu.memory_space<vmem>>, vector<1x18x8xf32>,
    %c13_173 = arith.constant 13 : index
    %c1_174 = arith.constant 1 : index
    %c0_175 = arith.constant 0 : index
    %207 = vector.load %arg8[%c13_173, %c1_174, %c0_175] : memref<18x18x8xf32, #tpu.memory_space<vmem>>, vector<1x16x8xf32>
    %208 = vector.shape_cast %207 : vector<1x16x8xf32> to vector<16x8xf32>
    %209 = vector.shape_cast %203 : vector<16x8xf32> to vector<1x16x8xf32>
    tpu.vector_store %arg8[%c13_173, %c1_174, %c0_175], %209 {strides = array<i32>} : memref<18x18x8xf32, #tpu.memory_space<vmem>>, vector<1x16x8xf32>,
    %c0_176 = arith.constant 0 : index
    %c13_177 = arith.constant 13 : index
    %c0_178 = arith.constant 0 : index
    %c0_179 = arith.constant 0 : index
    %210 = vector.load %arg1[%c0_176, %c13_177, %c0_178, %c0_179] : memref<1x16x16x8xf32, #tpu.memory_space<vmem>>, vector<1x1x16x8xf32>
    %211 = vector.shape_cast %210 : vector<1x1x16x8xf32> to vector<16x8xf32>
    %212 = vector.broadcast %0 : vector<1x8xf32> to vector<16x8xf32>
    %213 = arith.mulf %211, %212 : vector<16x8xf32>
    %214 = vector.broadcast %1 : vector<1x8xf32> to vector<16x8xf32>
    %215 = arith.addf %213, %214 : vector<16x8xf32>
    %cst_180 = arith.constant 0.000000e+00 : f32
    %216 = vector.broadcast %cst_180 : f32 to vector<16x8xf32>
    %217 = arith.maximumf %215, %216 : vector<16x8xf32>
    %c14 = arith.constant 14 : index
    %c0_181 = arith.constant 0 : index
    %c0_182 = arith.constant 0 : index
    %218 = vector.load %arg8[%c14, %c0_181, %c0_182] : memref<18x18x8xf32, #tpu.memory_space<vmem>>, vector<1x18x8xf32>
    %219 = vector.shape_cast %218 : vector<1x18x8xf32> to vector<18x8xf32>
    %220 = vector.shape_cast %21 : vector<18x8xf32> to vector<1x18x8xf32>
    tpu.vector_store %arg8[%c14, %c0_181, %c0_182], %220 {strides = array<i32>} : memref<18x18x8xf32, #tpu.memory_space<vmem>>, vector<1x18x8xf32>,
    %c14_183 = arith.constant 14 : index
    %c1_184 = arith.constant 1 : index
    %c0_185 = arith.constant 0 : index
    %221 = vector.load %arg8[%c14_183, %c1_184, %c0_185] : memref<18x18x8xf32, #tpu.memory_space<vmem>>, vector<1x16x8xf32>
    %222 = vector.shape_cast %221 : vector<1x16x8xf32> to vector<16x8xf32>
    %223 = vector.shape_cast %217 : vector<16x8xf32> to vector<1x16x8xf32>
    tpu.vector_store %arg8[%c14_183, %c1_184, %c0_185], %223 {strides = array<i32>} : memref<18x18x8xf32, #tpu.memory_space<vmem>>, vector<1x16x8xf32>,
    %c0_186 = arith.constant 0 : index
    %c14_187 = arith.constant 14 : index
    %c0_188 = arith.constant 0 : index
    %c0_189 = arith.constant 0 : index
    %224 = vector.load %arg1[%c0_186, %c14_187, %c0_188, %c0_189] : memref<1x16x16x8xf32, #tpu.memory_space<vmem>>, vector<1x1x16x8xf32>
    %225 = vector.shape_cast %224 : vector<1x1x16x8xf32> to vector<16x8xf32>
    %226 = vector.broadcast %0 : vector<1x8xf32> to vector<16x8xf32>
    %227 = arith.mulf %225, %226 : vector<16x8xf32>
    %228 = vector.broadcast %1 : vector<1x8xf32> to vector<16x8xf32>
    %229 = arith.addf %227, %228 : vector<16x8xf32>
    %cst_190 = arith.constant 0.000000e+00 : f32
    %230 = vector.broadcast %cst_190 : f32 to vector<16x8xf32>
    %231 = arith.maximumf %229, %230 : vector<16x8xf32>
    %c15 = arith.constant 15 : index
    %c0_191 = arith.constant 0 : index
    %c0_192 = arith.constant 0 : index
    %232 = vector.load %arg8[%c15, %c0_191, %c0_192] : memref<18x18x8xf32, #tpu.memory_space<vmem>>, vector<1x18x8xf32>
    %233 = vector.shape_cast %232 : vector<1x18x8xf32> to vector<18x8xf32>
    %234 = vector.shape_cast %21 : vector<18x8xf32> to vector<1x18x8xf32>
    tpu.vector_store %arg8[%c15, %c0_191, %c0_192], %234 {strides = array<i32>} : memref<18x18x8xf32, #tpu.memory_space<vmem>>, vector<1x18x8xf32>,
    %c15_193 = arith.constant 15 : index
    %c1_194 = arith.constant 1 : index
    %c0_195 = arith.constant 0 : index
    %235 = vector.load %arg8[%c15_193, %c1_194, %c0_195] : memref<18x18x8xf32, #tpu.memory_space<vmem>>, vector<1x16x8xf32>
    %236 = vector.shape_cast %235 : vector<1x16x8xf32> to vector<16x8xf32>
    %237 = vector.shape_cast %231 : vector<16x8xf32> to vector<1x16x8xf32>
    tpu.vector_store %arg8[%c15_193, %c1_194, %c0_195], %237 {strides = array<i32>} : memref<18x18x8xf32, #tpu.memory_space<vmem>>, vector<1x16x8xf32>,
    %c0_196 = arith.constant 0 : index
    %c15_197 = arith.constant 15 : index
    %c0_198 = arith.constant 0 : index
    %c0_199 = arith.constant 0 : index
    %238 = vector.load %arg1[%c0_196, %c15_197, %c0_198, %c0_199] : memref<1x16x16x8xf32, #tpu.memory_space<vmem>>, vector<1x1x16x8xf32>
    %239 = vector.shape_cast %238 : vector<1x1x16x8xf32> to vector<16x8xf32>
    %240 = vector.broadcast %0 : vector<1x8xf32> to vector<16x8xf32>
    %241 = arith.mulf %239, %240 : vector<16x8xf32>
    %242 = vector.broadcast %1 : vector<1x8xf32> to vector<16x8xf32>
    %243 = arith.addf %241, %242 : vector<16x8xf32>
    %cst_200 = arith.constant 0.000000e+00 : f32
    %244 = vector.broadcast %cst_200 : f32 to vector<16x8xf32>
    %245 = arith.maximumf %243, %244 : vector<16x8xf32>
    %c16 = arith.constant 16 : index
    %c0_201 = arith.constant 0 : index
    %c0_202 = arith.constant 0 : index
    %246 = vector.load %arg8[%c16, %c0_201, %c0_202] : memref<18x18x8xf32, #tpu.memory_space<vmem>>, vector<1x18x8xf32>
    %247 = vector.shape_cast %246 : vector<1x18x8xf32> to vector<18x8xf32>
    %248 = vector.shape_cast %21 : vector<18x8xf32> to vector<1x18x8xf32>
    tpu.vector_store %arg8[%c16, %c0_201, %c0_202], %248 {strides = array<i32>} : memref<18x18x8xf32, #tpu.memory_space<vmem>>, vector<1x18x8xf32>,
    %c16_203 = arith.constant 16 : index
    %c1_204 = arith.constant 1 : index
    %c0_205 = arith.constant 0 : index
    %249 = vector.load %arg8[%c16_203, %c1_204, %c0_205] : memref<18x18x8xf32, #tpu.memory_space<vmem>>, vector<1x16x8xf32>
    %250 = vector.shape_cast %249 : vector<1x16x8xf32> to vector<16x8xf32>
    %251 = vector.shape_cast %245 : vector<16x8xf32> to vector<1x16x8xf32>
    tpu.vector_store %arg8[%c16_203, %c1_204, %c0_205], %251 {strides = array<i32>} : memref<18x18x8xf32, #tpu.memory_space<vmem>>, vector<1x16x8xf32>,
    %cst_206 = arith.constant 0.000000e+00 : f32
    %252 = vector.broadcast %cst_206 : f32 to vector<1x8xf32>
    %cst_207 = arith.constant 0.000000e+00 : f32
    %253 = vector.broadcast %cst_207 : f32 to vector<1x8xf32>
    %cst_208 = arith.constant 0.000000e+00 : f32
    %254 = vector.broadcast %cst_208 : f32 to vector<16x8xf32>
    %c0_209 = arith.constant 0 : index
    %c0_210 = arith.constant 0 : index
    %c0_211 = arith.constant 0 : index
    %255 = vector.load %arg8[%c0_209, %c0_210, %c0_211] : memref<18x18x8xf32, #tpu.memory_space<vmem>>, vector<1x18x8xf32>
    %256 = vector.shape_cast %255 : vector<1x18x8xf32> to vector<18x8xf32>
    %257 = vector.extract_strided_slice %256 {offsets = [0, 0], sizes = [16, 8], strides = [1, 1]} : vector<18x8xf32> to vector<16x8xf32>
    %cst_212 = arith.constant dense<0.000000e+00> : vector<16x8xf32>
    %258 = tpu.matmul %257, %4, %cst_212 {dimension_numbers = #tpu.dot_dimension_numbers<[1], [0], [0], [1], [0, 0, 1, 1], [], []>} : vector<16x8xf32>, vector<8x8xf32>, vector<16x8xf32> -> vector<16x8xf32>
    %259 = arith.addf %254, %258 : vector<16x8xf32>
    %260 = vector.extract_strided_slice %256 {offsets = [1, 0], sizes = [16, 8], strides = [1, 1]} : vector<18x8xf32> to vector<16x8xf32>
    %cst_213 = arith.constant dense<0.000000e+00> : vector<16x8xf32>
    %261 = tpu.matmul %260, %6, %cst_213 {dimension_numbers = #tpu.dot_dimension_numbers<[1], [0], [0], [1], [0, 0, 1, 1], [], []>} : vector<16x8xf32>, vector<8x8xf32>, vector<16x8xf32> -> vector<16x8xf32>
    %262 = arith.addf %259, %261 : vector<16x8xf32>
    %263 = vector.extract_strided_slice %256 {offsets = [2, 0], sizes = [16, 8], strides = [1, 1]} : vector<18x8xf32> to vector<16x8xf32>
    %cst_214 = arith.constant dense<0.000000e+00> : vector<16x8xf32>
    %264 = tpu.matmul %263, %8, %cst_214 {dimension_numbers = #tpu.dot_dimension_numbers<[1], [0], [0], [1], [0, 0, 1, 1], [], []>} : vector<16x8xf32>, vector<8x8xf32>, vector<16x8xf32> -> vector<16x8xf32>
    %265 = arith.addf %262, %264 : vector<16x8xf32>
    %c1_215 = arith.constant 1 : index
    %c0_216 = arith.constant 0 : index
    %c0_217 = arith.constant 0 : index
    %266 = vector.load %arg8[%c1_215, %c0_216, %c0_217] : memref<18x18x8xf32, #tpu.memory_space<vmem>>, vector<1x18x8xf32>
    %267 = vector.shape_cast %266 : vector<1x18x8xf32> to vector<18x8xf32>
    %268 = vector.extract_strided_slice %267 {offsets = [0, 0], sizes = [16, 8], strides = [1, 1]} : vector<18x8xf32> to vector<16x8xf32>
    %cst_218 = arith.constant dense<0.000000e+00> : vector<16x8xf32>
    %269 = tpu.matmul %268, %10, %cst_218 {dimension_numbers = #tpu.dot_dimension_numbers<[1], [0], [0], [1], [0, 0, 1, 1], [], []>} : vector<16x8xf32>, vector<8x8xf32>, vector<16x8xf32> -> vector<16x8xf32>
    %270 = arith.addf %265, %269 : vector<16x8xf32>
    %271 = vector.extract_strided_slice %267 {offsets = [1, 0], sizes = [16, 8], strides = [1, 1]} : vector<18x8xf32> to vector<16x8xf32>
    %cst_219 = arith.constant dense<0.000000e+00> : vector<16x8xf32>
    %272 = tpu.matmul %271, %12, %cst_219 {dimension_numbers = #tpu.dot_dimension_numbers<[1], [0], [0], [1], [0, 0, 1, 1], [], []>} : vector<16x8xf32>, vector<8x8xf32>, vector<16x8xf32> -> vector<16x8xf32>
    %273 = arith.addf %270, %272 : vector<16x8xf32>
    %274 = vector.extract_strided_slice %267 {offsets = [2, 0], sizes = [16, 8], strides = [1, 1]} : vector<18x8xf32> to vector<16x8xf32>
    %cst_220 = arith.constant dense<0.000000e+00> : vector<16x8xf32>
    %275 = tpu.matmul %274, %14, %cst_220 {dimension_numbers = #tpu.dot_dimension_numbers<[1], [0], [0], [1], [0, 0, 1, 1], [], []>} : vector<16x8xf32>, vector<8x8xf32>, vector<16x8xf32> -> vector<16x8xf32>
    %276 = arith.addf %273, %275 : vector<16x8xf32>
    %c2_221 = arith.constant 2 : index
    %c0_222 = arith.constant 0 : index
    %c0_223 = arith.constant 0 : index
    %277 = vector.load %arg8[%c2_221, %c0_222, %c0_223] : memref<18x18x8xf32, #tpu.memory_space<vmem>>, vector<1x18x8xf32>
    %278 = vector.shape_cast %277 : vector<1x18x8xf32> to vector<18x8xf32>
    %279 = vector.extract_strided_slice %278 {offsets = [0, 0], sizes = [16, 8], strides = [1, 1]} : vector<18x8xf32> to vector<16x8xf32>
    %cst_224 = arith.constant dense<0.000000e+00> : vector<16x8xf32>
    %280 = tpu.matmul %279, %16, %cst_224 {dimension_numbers = #tpu.dot_dimension_numbers<[1], [0], [0], [1], [0, 0, 1, 1], [], []>} : vector<16x8xf32>, vector<8x8xf32>, vector<16x8xf32> -> vector<16x8xf32>
    %281 = arith.addf %276, %280 : vector<16x8xf32>
    %282 = vector.extract_strided_slice %278 {offsets = [1, 0], sizes = [16, 8], strides = [1, 1]} : vector<18x8xf32> to vector<16x8xf32>
    %cst_225 = arith.constant dense<0.000000e+00> : vector<16x8xf32>
    %283 = tpu.matmul %282, %18, %cst_225 {dimension_numbers = #tpu.dot_dimension_numbers<[1], [0], [0], [1], [0, 0, 1, 1], [], []>} : vector<16x8xf32>, vector<8x8xf32>, vector<16x8xf32> -> vector<16x8xf32>
    %284 = arith.addf %281, %283 : vector<16x8xf32>
    %285 = vector.extract_strided_slice %278 {offsets = [2, 0], sizes = [16, 8], strides = [1, 1]} : vector<18x8xf32> to vector<16x8xf32>
    %cst_226 = arith.constant dense<0.000000e+00> : vector<16x8xf32>
    %286 = tpu.matmul %285, %20, %cst_226 {dimension_numbers = #tpu.dot_dimension_numbers<[1], [0], [0], [1], [0, 0, 1, 1], [], []>} : vector<16x8xf32>, vector<8x8xf32>, vector<16x8xf32> -> vector<16x8xf32>
    %287 = arith.addf %284, %286 : vector<16x8xf32>
    %288 = vector.broadcast %2 : vector<1x8xf32> to vector<16x8xf32>
    %289 = arith.addf %287, %288 : vector<16x8xf32>
    %c0_227 = arith.constant 0 : index
    %c0_228 = arith.constant 0 : index
    %c0_229 = arith.constant 0 : index
    %c0_230 = arith.constant 0 : index
    %290 = vector.load %arg6[%c0_227, %c0_228, %c0_229, %c0_230] : memref<1x16x16x8xf32, #tpu.memory_space<vmem>>, vector<1x1x16x8xf32>
    %291 = vector.shape_cast %290 : vector<1x1x16x8xf32> to vector<16x8xf32>
    %292 = vector.shape_cast %289 : vector<16x8xf32> to vector<1x1x16x8xf32>
    tpu.vector_store %arg6[%c0_227, %c0_228, %c0_229, %c0_230], %292 {strides = array<i32>} : memref<1x16x16x8xf32, #tpu.memory_space<vmem>>, vector<1x1x16x8xf32>,
    %cst_231 = arith.constant dense<0.000000e+00> : vector<8xf32>
    %293 = vector.multi_reduction <add>, %289, %cst_231 [0] : vector<16x8xf32> to vector<8xf32>
    %294 = vector.shape_cast %293 : vector<8xf32> to vector<1x8xf32>
    %295 = arith.addf %252, %294 : vector<1x8xf32>
    %296 = arith.mulf %289, %289 : vector<16x8xf32>
    %cst_232 = arith.constant dense<0.000000e+00> : vector<8xf32>
    %297 = vector.multi_reduction <add>, %296, %cst_232 [0] : vector<16x8xf32> to vector<8xf32>
    %298 = vector.shape_cast %297 : vector<8xf32> to vector<1x8xf32>
    %299 = arith.addf %253, %298 : vector<1x8xf32>
    %cst_233 = arith.constant 0.000000e+00 : f32
    %300 = vector.broadcast %cst_233 : f32 to vector<16x8xf32>
    %c1_234 = arith.constant 1 : index
    %c0_235 = arith.constant 0 : index
    %c0_236 = arith.constant 0 : index
    %301 = vector.load %arg8[%c1_234, %c0_235, %c0_236] : memref<18x18x8xf32, #tpu.memory_space<vmem>>, vector<1x18x8xf32>
    %302 = vector.shape_cast %301 : vector<1x18x8xf32> to vector<18x8xf32>
    %303 = vector.extract_strided_slice %302 {offsets = [0, 0], sizes = [16, 8], strides = [1, 1]} : vector<18x8xf32> to vector<16x8xf32>
    %cst_237 = arith.constant dense<0.000000e+00> : vector<16x8xf32>
    %304 = tpu.matmul %303, %4, %cst_237 {dimension_numbers = #tpu.dot_dimension_numbers<[1], [0], [0], [1], [0, 0, 1, 1], [], []>} : vector<16x8xf32>, vector<8x8xf32>, vector<16x8xf32> -> vector<16x8xf32>
    %305 = arith.addf %300, %304 : vector<16x8xf32>
    %306 = vector.extract_strided_slice %302 {offsets = [1, 0], sizes = [16, 8], strides = [1, 1]} : vector<18x8xf32> to vector<16x8xf32>
    %cst_238 = arith.constant dense<0.000000e+00> : vector<16x8xf32>
    %307 = tpu.matmul %306, %6, %cst_238 {dimension_numbers = #tpu.dot_dimension_numbers<[1], [0], [0], [1], [0, 0, 1, 1], [], []>} : vector<16x8xf32>, vector<8x8xf32>, vector<16x8xf32> -> vector<16x8xf32>
    %308 = arith.addf %305, %307 : vector<16x8xf32>
    %309 = vector.extract_strided_slice %302 {offsets = [2, 0], sizes = [16, 8], strides = [1, 1]} : vector<18x8xf32> to vector<16x8xf32>
    %cst_239 = arith.constant dense<0.000000e+00> : vector<16x8xf32>
    %310 = tpu.matmul %309, %8, %cst_239 {dimension_numbers = #tpu.dot_dimension_numbers<[1], [0], [0], [1], [0, 0, 1, 1], [], []>} : vector<16x8xf32>, vector<8x8xf32>, vector<16x8xf32> -> vector<16x8xf32>
    %311 = arith.addf %308, %310 : vector<16x8xf32>
    %c2_240 = arith.constant 2 : index
    %c0_241 = arith.constant 0 : index
    %c0_242 = arith.constant 0 : index
    %312 = vector.load %arg8[%c2_240, %c0_241, %c0_242] : memref<18x18x8xf32, #tpu.memory_space<vmem>>, vector<1x18x8xf32>
    %313 = vector.shape_cast %312 : vector<1x18x8xf32> to vector<18x8xf32>
    %314 = vector.extract_strided_slice %313 {offsets = [0, 0], sizes = [16, 8], strides = [1, 1]} : vector<18x8xf32> to vector<16x8xf32>
    %cst_243 = arith.constant dense<0.000000e+00> : vector<16x8xf32>
    %315 = tpu.matmul %314, %10, %cst_243 {dimension_numbers = #tpu.dot_dimension_numbers<[1], [0], [0], [1], [0, 0, 1, 1], [], []>} : vector<16x8xf32>, vector<8x8xf32>, vector<16x8xf32> -> vector<16x8xf32>
    %316 = arith.addf %311, %315 : vector<16x8xf32>
    %317 = vector.extract_strided_slice %313 {offsets = [1, 0], sizes = [16, 8], strides = [1, 1]} : vector<18x8xf32> to vector<16x8xf32>
    %cst_244 = arith.constant dense<0.000000e+00> : vector<16x8xf32>
    %318 = tpu.matmul %317, %12, %cst_244 {dimension_numbers = #tpu.dot_dimension_numbers<[1], [0], [0], [1], [0, 0, 1, 1], [], []>} : vector<16x8xf32>, vector<8x8xf32>, vector<16x8xf32> -> vector<16x8xf32>
    %319 = arith.addf %316, %318 : vector<16x8xf32>
    %320 = vector.extract_strided_slice %313 {offsets = [2, 0], sizes = [16, 8], strides = [1, 1]} : vector<18x8xf32> to vector<16x8xf32>
    %cst_245 = arith.constant dense<0.000000e+00> : vector<16x8xf32>
    %321 = tpu.matmul %320, %14, %cst_245 {dimension_numbers = #tpu.dot_dimension_numbers<[1], [0], [0], [1], [0, 0, 1, 1], [], []>} : vector<16x8xf32>, vector<8x8xf32>, vector<16x8xf32> -> vector<16x8xf32>
    %322 = arith.addf %319, %321 : vector<16x8xf32>
    %c3_246 = arith.constant 3 : index
    %c0_247 = arith.constant 0 : index
    %c0_248 = arith.constant 0 : index
    %323 = vector.load %arg8[%c3_246, %c0_247, %c0_248] : memref<18x18x8xf32, #tpu.memory_space<vmem>>, vector<1x18x8xf32>
    %324 = vector.shape_cast %323 : vector<1x18x8xf32> to vector<18x8xf32>
    %325 = vector.extract_strided_slice %324 {offsets = [0, 0], sizes = [16, 8], strides = [1, 1]} : vector<18x8xf32> to vector<16x8xf32>
    %cst_249 = arith.constant dense<0.000000e+00> : vector<16x8xf32>
    %326 = tpu.matmul %325, %16, %cst_249 {dimension_numbers = #tpu.dot_dimension_numbers<[1], [0], [0], [1], [0, 0, 1, 1], [], []>} : vector<16x8xf32>, vector<8x8xf32>, vector<16x8xf32> -> vector<16x8xf32>
    %327 = arith.addf %322, %326 : vector<16x8xf32>
    %328 = vector.extract_strided_slice %324 {offsets = [1, 0], sizes = [16, 8], strides = [1, 1]} : vector<18x8xf32> to vector<16x8xf32>
    %cst_250 = arith.constant dense<0.000000e+00> : vector<16x8xf32>
    %329 = tpu.matmul %328, %18, %cst_250 {dimension_numbers = #tpu.dot_dimension_numbers<[1], [0], [0], [1], [0, 0, 1, 1], [], []>} : vector<16x8xf32>, vector<8x8xf32>, vector<16x8xf32> -> vector<16x8xf32>
    %330 = arith.addf %327, %329 : vector<16x8xf32>
    %331 = vector.extract_strided_slice %324 {offsets = [2, 0], sizes = [16, 8], strides = [1, 1]} : vector<18x8xf32> to vector<16x8xf32>
    %cst_251 = arith.constant dense<0.000000e+00> : vector<16x8xf32>
    %332 = tpu.matmul %331, %20, %cst_251 {dimension_numbers = #tpu.dot_dimension_numbers<[1], [0], [0], [1], [0, 0, 1, 1], [], []>} : vector<16x8xf32>, vector<8x8xf32>, vector<16x8xf32> -> vector<16x8xf32>
    %333 = arith.addf %330, %332 : vector<16x8xf32>
    %334 = vector.broadcast %2 : vector<1x8xf32> to vector<16x8xf32>
    %335 = arith.addf %333, %334 : vector<16x8xf32>
    %c0_252 = arith.constant 0 : index
    %c1_253 = arith.constant 1 : index
    %c0_254 = arith.constant 0 : index
    %c0_255 = arith.constant 0 : index
    %336 = vector.load %arg6[%c0_252, %c1_253, %c0_254, %c0_255] : memref<1x16x16x8xf32, #tpu.memory_space<vmem>>, vector<1x1x16x8xf32>
    %337 = vector.shape_cast %336 : vector<1x1x16x8xf32> to vector<16x8xf32>
    %338 = vector.shape_cast %335 : vector<16x8xf32> to vector<1x1x16x8xf32>
    tpu.vector_store %arg6[%c0_252, %c1_253, %c0_254, %c0_255], %338 {strides = array<i32>} : memref<1x16x16x8xf32, #tpu.memory_space<vmem>>, vector<1x1x16x8xf32>,
    %cst_256 = arith.constant dense<0.000000e+00> : vector<8xf32>
    %339 = vector.multi_reduction <add>, %335, %cst_256 [0] : vector<16x8xf32> to vector<8xf32>
    %340 = vector.shape_cast %339 : vector<8xf32> to vector<1x8xf32>
    %341 = arith.addf %295, %340 : vector<1x8xf32>
    %342 = arith.mulf %335, %335 : vector<16x8xf32>
    %cst_257 = arith.constant dense<0.000000e+00> : vector<8xf32>
    %343 = vector.multi_reduction <add>, %342, %cst_257 [0] : vector<16x8xf32> to vector<8xf32>
    %344 = vector.shape_cast %343 : vector<8xf32> to vector<1x8xf32>
    %345 = arith.addf %299, %344 : vector<1x8xf32>
    %cst_258 = arith.constant 0.000000e+00 : f32
    %346 = vector.broadcast %cst_258 : f32 to vector<16x8xf32>
    %c2_259 = arith.constant 2 : index
    %c0_260 = arith.constant 0 : index
    %c0_261 = arith.constant 0 : index
    %347 = vector.load %arg8[%c2_259, %c0_260, %c0_261] : memref<18x18x8xf32, #tpu.memory_space<vmem>>, vector<1x18x8xf32>
    %348 = vector.shape_cast %347 : vector<1x18x8xf32> to vector<18x8xf32>
    %349 = vector.extract_strided_slice %348 {offsets = [0, 0], sizes = [16, 8], strides = [1, 1]} : vector<18x8xf32> to vector<16x8xf32>
    %cst_262 = arith.constant dense<0.000000e+00> : vector<16x8xf32>
    %350 = tpu.matmul %349, %4, %cst_262 {dimension_numbers = #tpu.dot_dimension_numbers<[1], [0], [0], [1], [0, 0, 1, 1], [], []>} : vector<16x8xf32>, vector<8x8xf32>, vector<16x8xf32> -> vector<16x8xf32>
    %351 = arith.addf %346, %350 : vector<16x8xf32>
    %352 = vector.extract_strided_slice %348 {offsets = [1, 0], sizes = [16, 8], strides = [1, 1]} : vector<18x8xf32> to vector<16x8xf32>
    %cst_263 = arith.constant dense<0.000000e+00> : vector<16x8xf32>
    %353 = tpu.matmul %352, %6, %cst_263 {dimension_numbers = #tpu.dot_dimension_numbers<[1], [0], [0], [1], [0, 0, 1, 1], [], []>} : vector<16x8xf32>, vector<8x8xf32>, vector<16x8xf32> -> vector<16x8xf32>
    %354 = arith.addf %351, %353 : vector<16x8xf32>
    %355 = vector.extract_strided_slice %348 {offsets = [2, 0], sizes = [16, 8], strides = [1, 1]} : vector<18x8xf32> to vector<16x8xf32>
    %cst_264 = arith.constant dense<0.000000e+00> : vector<16x8xf32>
    %356 = tpu.matmul %355, %8, %cst_264 {dimension_numbers = #tpu.dot_dimension_numbers<[1], [0], [0], [1], [0, 0, 1, 1], [], []>} : vector<16x8xf32>, vector<8x8xf32>, vector<16x8xf32> -> vector<16x8xf32>
    %357 = arith.addf %354, %356 : vector<16x8xf32>
    %c3_265 = arith.constant 3 : index
    %c0_266 = arith.constant 0 : index
    %c0_267 = arith.constant 0 : index
    %358 = vector.load %arg8[%c3_265, %c0_266, %c0_267] : memref<18x18x8xf32, #tpu.memory_space<vmem>>, vector<1x18x8xf32>
    %359 = vector.shape_cast %358 : vector<1x18x8xf32> to vector<18x8xf32>
    %360 = vector.extract_strided_slice %359 {offsets = [0, 0], sizes = [16, 8], strides = [1, 1]} : vector<18x8xf32> to vector<16x8xf32>
    %cst_268 = arith.constant dense<0.000000e+00> : vector<16x8xf32>
    %361 = tpu.matmul %360, %10, %cst_268 {dimension_numbers = #tpu.dot_dimension_numbers<[1], [0], [0], [1], [0, 0, 1, 1], [], []>} : vector<16x8xf32>, vector<8x8xf32>, vector<16x8xf32> -> vector<16x8xf32>
    %362 = arith.addf %357, %361 : vector<16x8xf32>
    %363 = vector.extract_strided_slice %359 {offsets = [1, 0], sizes = [16, 8], strides = [1, 1]} : vector<18x8xf32> to vector<16x8xf32>
    %cst_269 = arith.constant dense<0.000000e+00> : vector<16x8xf32>
    %364 = tpu.matmul %363, %12, %cst_269 {dimension_numbers = #tpu.dot_dimension_numbers<[1], [0], [0], [1], [0, 0, 1, 1], [], []>} : vector<16x8xf32>, vector<8x8xf32>, vector<16x8xf32> -> vector<16x8xf32>
    %365 = arith.addf %362, %364 : vector<16x8xf32>
    %366 = vector.extract_strided_slice %359 {offsets = [2, 0], sizes = [16, 8], strides = [1, 1]} : vector<18x8xf32> to vector<16x8xf32>
    %cst_270 = arith.constant dense<0.000000e+00> : vector<16x8xf32>
    %367 = tpu.matmul %366, %14, %cst_270 {dimension_numbers = #tpu.dot_dimension_numbers<[1], [0], [0], [1], [0, 0, 1, 1], [], []>} : vector<16x8xf32>, vector<8x8xf32>, vector<16x8xf32> -> vector<16x8xf32>
    %368 = arith.addf %365, %367 : vector<16x8xf32>
    %c4_271 = arith.constant 4 : index
    %c0_272 = arith.constant 0 : index
    %c0_273 = arith.constant 0 : index
    %369 = vector.load %arg8[%c4_271, %c0_272, %c0_273] : memref<18x18x8xf32, #tpu.memory_space<vmem>>, vector<1x18x8xf32>
    %370 = vector.shape_cast %369 : vector<1x18x8xf32> to vector<18x8xf32>
    %371 = vector.extract_strided_slice %370 {offsets = [0, 0], sizes = [16, 8], strides = [1, 1]} : vector<18x8xf32> to vector<16x8xf32>
    %cst_274 = arith.constant dense<0.000000e+00> : vector<16x8xf32>
    %372 = tpu.matmul %371, %16, %cst_274 {dimension_numbers = #tpu.dot_dimension_numbers<[1], [0], [0], [1], [0, 0, 1, 1], [], []>} : vector<16x8xf32>, vector<8x8xf32>, vector<16x8xf32> -> vector<16x8xf32>
    %373 = arith.addf %368, %372 : vector<16x8xf32>
    %374 = vector.extract_strided_slice %370 {offsets = [1, 0], sizes = [16, 8], strides = [1, 1]} : vector<18x8xf32> to vector<16x8xf32>
    %cst_275 = arith.constant dense<0.000000e+00> : vector<16x8xf32>
    %375 = tpu.matmul %374, %18, %cst_275 {dimension_numbers = #tpu.dot_dimension_numbers<[1], [0], [0], [1], [0, 0, 1, 1], [], []>} : vector<16x8xf32>, vector<8x8xf32>, vector<16x8xf32> -> vector<16x8xf32>
    %376 = arith.addf %373, %375 : vector<16x8xf32>
    %377 = vector.extract_strided_slice %370 {offsets = [2, 0], sizes = [16, 8], strides = [1, 1]} : vector<18x8xf32> to vector<16x8xf32>
    %cst_276 = arith.constant dense<0.000000e+00> : vector<16x8xf32>
    %378 = tpu.matmul %377, %20, %cst_276 {dimension_numbers = #tpu.dot_dimension_numbers<[1], [0], [0], [1], [0, 0, 1, 1], [], []>} : vector<16x8xf32>, vector<8x8xf32>, vector<16x8xf32> -> vector<16x8xf32>
    %379 = arith.addf %376, %378 : vector<16x8xf32>
    %380 = vector.broadcast %2 : vector<1x8xf32> to vector<16x8xf32>
    %381 = arith.addf %379, %380 : vector<16x8xf32>
    %c0_277 = arith.constant 0 : index
    %c2_278 = arith.constant 2 : index
    %c0_279 = arith.constant 0 : index
    %c0_280 = arith.constant 0 : index
    %382 = vector.load %arg6[%c0_277, %c2_278, %c0_279, %c0_280] : memref<1x16x16x8xf32, #tpu.memory_space<vmem>>, vector<1x1x16x8xf32>
    %383 = vector.shape_cast %382 : vector<1x1x16x8xf32> to vector<16x8xf32>
    %384 = vector.shape_cast %381 : vector<16x8xf32> to vector<1x1x16x8xf32>
    tpu.vector_store %arg6[%c0_277, %c2_278, %c0_279, %c0_280], %384 {strides = array<i32>} : memref<1x16x16x8xf32, #tpu.memory_space<vmem>>, vector<1x1x16x8xf32>,
    %cst_281 = arith.constant dense<0.000000e+00> : vector<8xf32>
    %385 = vector.multi_reduction <add>, %381, %cst_281 [0] : vector<16x8xf32> to vector<8xf32>
    %386 = vector.shape_cast %385 : vector<8xf32> to vector<1x8xf32>
    %387 = arith.addf %341, %386 : vector<1x8xf32>
    %388 = arith.mulf %381, %381 : vector<16x8xf32>
    %cst_282 = arith.constant dense<0.000000e+00> : vector<8xf32>
    %389 = vector.multi_reduction <add>, %388, %cst_282 [0] : vector<16x8xf32> to vector<8xf32>
    %390 = vector.shape_cast %389 : vector<8xf32> to vector<1x8xf32>
    %391 = arith.addf %345, %390 : vector<1x8xf32>
    %cst_283 = arith.constant 0.000000e+00 : f32
    %392 = vector.broadcast %cst_283 : f32 to vector<16x8xf32>
    %c3_284 = arith.constant 3 : index
    %c0_285 = arith.constant 0 : index
    %c0_286 = arith.constant 0 : index
    %393 = vector.load %arg8[%c3_284, %c0_285, %c0_286] : memref<18x18x8xf32, #tpu.memory_space<vmem>>, vector<1x18x8xf32>
    %394 = vector.shape_cast %393 : vector<1x18x8xf32> to vector<18x8xf32>
    %395 = vector.extract_strided_slice %394 {offsets = [0, 0], sizes = [16, 8], strides = [1, 1]} : vector<18x8xf32> to vector<16x8xf32>
    %cst_287 = arith.constant dense<0.000000e+00> : vector<16x8xf32>
    %396 = tpu.matmul %395, %4, %cst_287 {dimension_numbers = #tpu.dot_dimension_numbers<[1], [0], [0], [1], [0, 0, 1, 1], [], []>} : vector<16x8xf32>, vector<8x8xf32>, vector<16x8xf32> -> vector<16x8xf32>
    %397 = arith.addf %392, %396 : vector<16x8xf32>
    %398 = vector.extract_strided_slice %394 {offsets = [1, 0], sizes = [16, 8], strides = [1, 1]} : vector<18x8xf32> to vector<16x8xf32>
    %cst_288 = arith.constant dense<0.000000e+00> : vector<16x8xf32>
    %399 = tpu.matmul %398, %6, %cst_288 {dimension_numbers = #tpu.dot_dimension_numbers<[1], [0], [0], [1], [0, 0, 1, 1], [], []>} : vector<16x8xf32>, vector<8x8xf32>, vector<16x8xf32> -> vector<16x8xf32>
    %400 = arith.addf %397, %399 : vector<16x8xf32>
    %401 = vector.extract_strided_slice %394 {offsets = [2, 0], sizes = [16, 8], strides = [1, 1]} : vector<18x8xf32> to vector<16x8xf32>
    %cst_289 = arith.constant dense<0.000000e+00> : vector<16x8xf32>
    %402 = tpu.matmul %401, %8, %cst_289 {dimension_numbers = #tpu.dot_dimension_numbers<[1], [0], [0], [1], [0, 0, 1, 1], [], []>} : vector<16x8xf32>, vector<8x8xf32>, vector<16x8xf32> -> vector<16x8xf32>
    %403 = arith.addf %400, %402 : vector<16x8xf32>
    %c4_290 = arith.constant 4 : index
    %c0_291 = arith.constant 0 : index
    %c0_292 = arith.constant 0 : index
    %404 = vector.load %arg8[%c4_290, %c0_291, %c0_292] : memref<18x18x8xf32, #tpu.memory_space<vmem>>, vector<1x18x8xf32>
    %405 = vector.shape_cast %404 : vector<1x18x8xf32> to vector<18x8xf32>
    %406 = vector.extract_strided_slice %405 {offsets = [0, 0], sizes = [16, 8], strides = [1, 1]} : vector<18x8xf32> to vector<16x8xf32>
    %cst_293 = arith.constant dense<0.000000e+00> : vector<16x8xf32>
    %407 = tpu.matmul %406, %10, %cst_293 {dimension_numbers = #tpu.dot_dimension_numbers<[1], [0], [0], [1], [0, 0, 1, 1], [], []>} : vector<16x8xf32>, vector<8x8xf32>, vector<16x8xf32> -> vector<16x8xf32>
    %408 = arith.addf %403, %407 : vector<16x8xf32>
    %409 = vector.extract_strided_slice %405 {offsets = [1, 0], sizes = [16, 8], strides = [1, 1]} : vector<18x8xf32> to vector<16x8xf32>
    %cst_294 = arith.constant dense<0.000000e+00> : vector<16x8xf32>
    %410 = tpu.matmul %409, %12, %cst_294 {dimension_numbers = #tpu.dot_dimension_numbers<[1], [0], [0], [1], [0, 0, 1, 1], [], []>} : vector<16x8xf32>, vector<8x8xf32>, vector<16x8xf32> -> vector<16x8xf32>
    %411 = arith.addf %408, %410 : vector<16x8xf32>
    %412 = vector.extract_strided_slice %405 {offsets = [2, 0], sizes = [16, 8], strides = [1, 1]} : vector<18x8xf32> to vector<16x8xf32>
    %cst_295 = arith.constant dense<0.000000e+00> : vector<16x8xf32>
    %413 = tpu.matmul %412, %14, %cst_295 {dimension_numbers = #tpu.dot_dimension_numbers<[1], [0], [0], [1], [0, 0, 1, 1], [], []>} : vector<16x8xf32>, vector<8x8xf32>, vector<16x8xf32> -> vector<16x8xf32>
    %414 = arith.addf %411, %413 : vector<16x8xf32>
    %c5_296 = arith.constant 5 : index
    %c0_297 = arith.constant 0 : index
    %c0_298 = arith.constant 0 : index
    %415 = vector.load %arg8[%c5_296, %c0_297, %c0_298] : memref<18x18x8xf32, #tpu.memory_space<vmem>>, vector<1x18x8xf32>
    %416 = vector.shape_cast %415 : vector<1x18x8xf32> to vector<18x8xf32>
    %417 = vector.extract_strided_slice %416 {offsets = [0, 0], sizes = [16, 8], strides = [1, 1]} : vector<18x8xf32> to vector<16x8xf32>
    %cst_299 = arith.constant dense<0.000000e+00> : vector<16x8xf32>
    %418 = tpu.matmul %417, %16, %cst_299 {dimension_numbers = #tpu.dot_dimension_numbers<[1], [0], [0], [1], [0, 0, 1, 1], [], []>} : vector<16x8xf32>, vector<8x8xf32>, vector<16x8xf32> -> vector<16x8xf32>
    %419 = arith.addf %414, %418 : vector<16x8xf32>
    %420 = vector.extract_strided_slice %416 {offsets = [1, 0], sizes = [16, 8], strides = [1, 1]} : vector<18x8xf32> to vector<16x8xf32>
    %cst_300 = arith.constant dense<0.000000e+00> : vector<16x8xf32>
    %421 = tpu.matmul %420, %18, %cst_300 {dimension_numbers = #tpu.dot_dimension_numbers<[1], [0], [0], [1], [0, 0, 1, 1], [], []>} : vector<16x8xf32>, vector<8x8xf32>, vector<16x8xf32> -> vector<16x8xf32>
    %422 = arith.addf %419, %421 : vector<16x8xf32>
    %423 = vector.extract_strided_slice %416 {offsets = [2, 0], sizes = [16, 8], strides = [1, 1]} : vector<18x8xf32> to vector<16x8xf32>
    %cst_301 = arith.constant dense<0.000000e+00> : vector<16x8xf32>
    %424 = tpu.matmul %423, %20, %cst_301 {dimension_numbers = #tpu.dot_dimension_numbers<[1], [0], [0], [1], [0, 0, 1, 1], [], []>} : vector<16x8xf32>, vector<8x8xf32>, vector<16x8xf32> -> vector<16x8xf32>
    %425 = arith.addf %422, %424 : vector<16x8xf32>
    %426 = vector.broadcast %2 : vector<1x8xf32> to vector<16x8xf32>
    %427 = arith.addf %425, %426 : vector<16x8xf32>
    %c0_302 = arith.constant 0 : index
    %c3_303 = arith.constant 3 : index
    %c0_304 = arith.constant 0 : index
    %c0_305 = arith.constant 0 : index
    %428 = vector.load %arg6[%c0_302, %c3_303, %c0_304, %c0_305] : memref<1x16x16x8xf32, #tpu.memory_space<vmem>>, vector<1x1x16x8xf32>
    %429 = vector.shape_cast %428 : vector<1x1x16x8xf32> to vector<16x8xf32>
    %430 = vector.shape_cast %427 : vector<16x8xf32> to vector<1x1x16x8xf32>
    tpu.vector_store %arg6[%c0_302, %c3_303, %c0_304, %c0_305], %430 {strides = array<i32>} : memref<1x16x16x8xf32, #tpu.memory_space<vmem>>, vector<1x1x16x8xf32>,
    %cst_306 = arith.constant dense<0.000000e+00> : vector<8xf32>
    %431 = vector.multi_reduction <add>, %427, %cst_306 [0] : vector<16x8xf32> to vector<8xf32>
    %432 = vector.shape_cast %431 : vector<8xf32> to vector<1x8xf32>
    %433 = arith.addf %387, %432 : vector<1x8xf32>
    %434 = arith.mulf %427, %427 : vector<16x8xf32>
    %cst_307 = arith.constant dense<0.000000e+00> : vector<8xf32>
    %435 = vector.multi_reduction <add>, %434, %cst_307 [0] : vector<16x8xf32> to vector<8xf32>
    %436 = vector.shape_cast %435 : vector<8xf32> to vector<1x8xf32>
    %437 = arith.addf %391, %436 : vector<1x8xf32>
    %cst_308 = arith.constant 0.000000e+00 : f32
    %438 = vector.broadcast %cst_308 : f32 to vector<16x8xf32>
    %c4_309 = arith.constant 4 : index
    %c0_310 = arith.constant 0 : index
    %c0_311 = arith.constant 0 : index
    %439 = vector.load %arg8[%c4_309, %c0_310, %c0_311] : memref<18x18x8xf32, #tpu.memory_space<vmem>>, vector<1x18x8xf32>
    %440 = vector.shape_cast %439 : vector<1x18x8xf32> to vector<18x8xf32>
    %441 = vector.extract_strided_slice %440 {offsets = [0, 0], sizes = [16, 8], strides = [1, 1]} : vector<18x8xf32> to vector<16x8xf32>
    %cst_312 = arith.constant dense<0.000000e+00> : vector<16x8xf32>
    %442 = tpu.matmul %441, %4, %cst_312 {dimension_numbers = #tpu.dot_dimension_numbers<[1], [0], [0], [1], [0, 0, 1, 1], [], []>} : vector<16x8xf32>, vector<8x8xf32>, vector<16x8xf32> -> vector<16x8xf32>
    %443 = arith.addf %438, %442 : vector<16x8xf32>
    %444 = vector.extract_strided_slice %440 {offsets = [1, 0], sizes = [16, 8], strides = [1, 1]} : vector<18x8xf32> to vector<16x8xf32>
    %cst_313 = arith.constant dense<0.000000e+00> : vector<16x8xf32>
    %445 = tpu.matmul %444, %6, %cst_313 {dimension_numbers = #tpu.dot_dimension_numbers<[1], [0], [0], [1], [0, 0, 1, 1], [], []>} : vector<16x8xf32>, vector<8x8xf32>, vector<16x8xf32> -> vector<16x8xf32>
    %446 = arith.addf %443, %445 : vector<16x8xf32>
    %447 = vector.extract_strided_slice %440 {offsets = [2, 0], sizes = [16, 8], strides = [1, 1]} : vector<18x8xf32> to vector<16x8xf32>
    %cst_314 = arith.constant dense<0.000000e+00> : vector<16x8xf32>
    %448 = tpu.matmul %447, %8, %cst_314 {dimension_numbers = #tpu.dot_dimension_numbers<[1], [0], [0], [1], [0, 0, 1, 1], [], []>} : vector<16x8xf32>, vector<8x8xf32>, vector<16x8xf32> -> vector<16x8xf32>
    %449 = arith.addf %446, %448 : vector<16x8xf32>
    %c5_315 = arith.constant 5 : index
    %c0_316 = arith.constant 0 : index
    %c0_317 = arith.constant 0 : index
    %450 = vector.load %arg8[%c5_315, %c0_316, %c0_317] : memref<18x18x8xf32, #tpu.memory_space<vmem>>, vector<1x18x8xf32>
    %451 = vector.shape_cast %450 : vector<1x18x8xf32> to vector<18x8xf32>
    %452 = vector.extract_strided_slice %451 {offsets = [0, 0], sizes = [16, 8], strides = [1, 1]} : vector<18x8xf32> to vector<16x8xf32>
    %cst_318 = arith.constant dense<0.000000e+00> : vector<16x8xf32>
    %453 = tpu.matmul %452, %10, %cst_318 {dimension_numbers = #tpu.dot_dimension_numbers<[1], [0], [0], [1], [0, 0, 1, 1], [], []>} : vector<16x8xf32>, vector<8x8xf32>, vector<16x8xf32> -> vector<16x8xf32>
    %454 = arith.addf %449, %453 : vector<16x8xf32>
    %455 = vector.extract_strided_slice %451 {offsets = [1, 0], sizes = [16, 8], strides = [1, 1]} : vector<18x8xf32> to vector<16x8xf32>
    %cst_319 = arith.constant dense<0.000000e+00> : vector<16x8xf32>
    %456 = tpu.matmul %455, %12, %cst_319 {dimension_numbers = #tpu.dot_dimension_numbers<[1], [0], [0], [1], [0, 0, 1, 1], [], []>} : vector<16x8xf32>, vector<8x8xf32>, vector<16x8xf32> -> vector<16x8xf32>
    %457 = arith.addf %454, %456 : vector<16x8xf32>
    %458 = vector.extract_strided_slice %451 {offsets = [2, 0], sizes = [16, 8], strides = [1, 1]} : vector<18x8xf32> to vector<16x8xf32>
    %cst_320 = arith.constant dense<0.000000e+00> : vector<16x8xf32>
    %459 = tpu.matmul %458, %14, %cst_320 {dimension_numbers = #tpu.dot_dimension_numbers<[1], [0], [0], [1], [0, 0, 1, 1], [], []>} : vector<16x8xf32>, vector<8x8xf32>, vector<16x8xf32> -> vector<16x8xf32>
    %460 = arith.addf %457, %459 : vector<16x8xf32>
    %c6_321 = arith.constant 6 : index
    %c0_322 = arith.constant 0 : index
    %c0_323 = arith.constant 0 : index
    %461 = vector.load %arg8[%c6_321, %c0_322, %c0_323] : memref<18x18x8xf32, #tpu.memory_space<vmem>>, vector<1x18x8xf32>
    %462 = vector.shape_cast %461 : vector<1x18x8xf32> to vector<18x8xf32>
    %463 = vector.extract_strided_slice %462 {offsets = [0, 0], sizes = [16, 8], strides = [1, 1]} : vector<18x8xf32> to vector<16x8xf32>
    %cst_324 = arith.constant dense<0.000000e+00> : vector<16x8xf32>
    %464 = tpu.matmul %463, %16, %cst_324 {dimension_numbers = #tpu.dot_dimension_numbers<[1], [0], [0], [1], [0, 0, 1, 1], [], []>} : vector<16x8xf32>, vector<8x8xf32>, vector<16x8xf32> -> vector<16x8xf32>
    %465 = arith.addf %460, %464 : vector<16x8xf32>
    %466 = vector.extract_strided_slice %462 {offsets = [1, 0], sizes = [16, 8], strides = [1, 1]} : vector<18x8xf32> to vector<16x8xf32>
    %cst_325 = arith.constant dense<0.000000e+00> : vector<16x8xf32>
    %467 = tpu.matmul %466, %18, %cst_325 {dimension_numbers = #tpu.dot_dimension_numbers<[1], [0], [0], [1], [0, 0, 1, 1], [], []>} : vector<16x8xf32>, vector<8x8xf32>, vector<16x8xf32> -> vector<16x8xf32>
    %468 = arith.addf %465, %467 : vector<16x8xf32>
    %469 = vector.extract_strided_slice %462 {offsets = [2, 0], sizes = [16, 8], strides = [1, 1]} : vector<18x8xf32> to vector<16x8xf32>
    %cst_326 = arith.constant dense<0.000000e+00> : vector<16x8xf32>
    %470 = tpu.matmul %469, %20, %cst_326 {dimension_numbers = #tpu.dot_dimension_numbers<[1], [0], [0], [1], [0, 0, 1, 1], [], []>} : vector<16x8xf32>, vector<8x8xf32>, vector<16x8xf32> -> vector<16x8xf32>
    %471 = arith.addf %468, %470 : vector<16x8xf32>
    %472 = vector.broadcast %2 : vector<1x8xf32> to vector<16x8xf32>
    %473 = arith.addf %471, %472 : vector<16x8xf32>
    %c0_327 = arith.constant 0 : index
    %c4_328 = arith.constant 4 : index
    %c0_329 = arith.constant 0 : index
    %c0_330 = arith.constant 0 : index
    %474 = vector.load %arg6[%c0_327, %c4_328, %c0_329, %c0_330] : memref<1x16x16x8xf32, #tpu.memory_space<vmem>>, vector<1x1x16x8xf32>
    %475 = vector.shape_cast %474 : vector<1x1x16x8xf32> to vector<16x8xf32>
    %476 = vector.shape_cast %473 : vector<16x8xf32> to vector<1x1x16x8xf32>
    tpu.vector_store %arg6[%c0_327, %c4_328, %c0_329, %c0_330], %476 {strides = array<i32>} : memref<1x16x16x8xf32, #tpu.memory_space<vmem>>, vector<1x1x16x8xf32>,
    %cst_331 = arith.constant dense<0.000000e+00> : vector<8xf32>
    %477 = vector.multi_reduction <add>, %473, %cst_331 [0] : vector<16x8xf32> to vector<8xf32>
    %478 = vector.shape_cast %477 : vector<8xf32> to vector<1x8xf32>
    %479 = arith.addf %433, %478 : vector<1x8xf32>
    %480 = arith.mulf %473, %473 : vector<16x8xf32>
    %cst_332 = arith.constant dense<0.000000e+00> : vector<8xf32>
    %481 = vector.multi_reduction <add>, %480, %cst_332 [0] : vector<16x8xf32> to vector<8xf32>
    %482 = vector.shape_cast %481 : vector<8xf32> to vector<1x8xf32>
    %483 = arith.addf %437, %482 : vector<1x8xf32>
    %cst_333 = arith.constant 0.000000e+00 : f32
    %484 = vector.broadcast %cst_333 : f32 to vector<16x8xf32>
    %c5_334 = arith.constant 5 : index
    %c0_335 = arith.constant 0 : index
    %c0_336 = arith.constant 0 : index
    %485 = vector.load %arg8[%c5_334, %c0_335, %c0_336] : memref<18x18x8xf32, #tpu.memory_space<vmem>>, vector<1x18x8xf32>
    %486 = vector.shape_cast %485 : vector<1x18x8xf32> to vector<18x8xf32>
    %487 = vector.extract_strided_slice %486 {offsets = [0, 0], sizes = [16, 8], strides = [1, 1]} : vector<18x8xf32> to vector<16x8xf32>
    %cst_337 = arith.constant dense<0.000000e+00> : vector<16x8xf32>
    %488 = tpu.matmul %487, %4, %cst_337 {dimension_numbers = #tpu.dot_dimension_numbers<[1], [0], [0], [1], [0, 0, 1, 1], [], []>} : vector<16x8xf32>, vector<8x8xf32>, vector<16x8xf32> -> vector<16x8xf32>
    %489 = arith.addf %484, %488 : vector<16x8xf32>
    %490 = vector.extract_strided_slice %486 {offsets = [1, 0], sizes = [16, 8], strides = [1, 1]} : vector<18x8xf32> to vector<16x8xf32>
    %cst_338 = arith.constant dense<0.000000e+00> : vector<16x8xf32>
    %491 = tpu.matmul %490, %6, %cst_338 {dimension_numbers = #tpu.dot_dimension_numbers<[1], [0], [0], [1], [0, 0, 1, 1], [], []>} : vector<16x8xf32>, vector<8x8xf32>, vector<16x8xf32> -> vector<16x8xf32>
    %492 = arith.addf %489, %491 : vector<16x8xf32>
    %493 = vector.extract_strided_slice %486 {offsets = [2, 0], sizes = [16, 8], strides = [1, 1]} : vector<18x8xf32> to vector<16x8xf32>
    %cst_339 = arith.constant dense<0.000000e+00> : vector<16x8xf32>
    %494 = tpu.matmul %493, %8, %cst_339 {dimension_numbers = #tpu.dot_dimension_numbers<[1], [0], [0], [1], [0, 0, 1, 1], [], []>} : vector<16x8xf32>, vector<8x8xf32>, vector<16x8xf32> -> vector<16x8xf32>
    %495 = arith.addf %492, %494 : vector<16x8xf32>
    %c6_340 = arith.constant 6 : index
    %c0_341 = arith.constant 0 : index
    %c0_342 = arith.constant 0 : index
    %496 = vector.load %arg8[%c6_340, %c0_341, %c0_342] : memref<18x18x8xf32, #tpu.memory_space<vmem>>, vector<1x18x8xf32>
    %497 = vector.shape_cast %496 : vector<1x18x8xf32> to vector<18x8xf32>
    %498 = vector.extract_strided_slice %497 {offsets = [0, 0], sizes = [16, 8], strides = [1, 1]} : vector<18x8xf32> to vector<16x8xf32>
    %cst_343 = arith.constant dense<0.000000e+00> : vector<16x8xf32>
    %499 = tpu.matmul %498, %10, %cst_343 {dimension_numbers = #tpu.dot_dimension_numbers<[1], [0], [0], [1], [0, 0, 1, 1], [], []>} : vector<16x8xf32>, vector<8x8xf32>, vector<16x8xf32> -> vector<16x8xf32>
    %500 = arith.addf %495, %499 : vector<16x8xf32>
    %501 = vector.extract_strided_slice %497 {offsets = [1, 0], sizes = [16, 8], strides = [1, 1]} : vector<18x8xf32> to vector<16x8xf32>
    %cst_344 = arith.constant dense<0.000000e+00> : vector<16x8xf32>
    %502 = tpu.matmul %501, %12, %cst_344 {dimension_numbers = #tpu.dot_dimension_numbers<[1], [0], [0], [1], [0, 0, 1, 1], [], []>} : vector<16x8xf32>, vector<8x8xf32>, vector<16x8xf32> -> vector<16x8xf32>
    %503 = arith.addf %500, %502 : vector<16x8xf32>
    %504 = vector.extract_strided_slice %497 {offsets = [2, 0], sizes = [16, 8], strides = [1, 1]} : vector<18x8xf32> to vector<16x8xf32>
    %cst_345 = arith.constant dense<0.000000e+00> : vector<16x8xf32>
    %505 = tpu.matmul %504, %14, %cst_345 {dimension_numbers = #tpu.dot_dimension_numbers<[1], [0], [0], [1], [0, 0, 1, 1], [], []>} : vector<16x8xf32>, vector<8x8xf32>, vector<16x8xf32> -> vector<16x8xf32>
    %506 = arith.addf %503, %505 : vector<16x8xf32>
    %c7_346 = arith.constant 7 : index
    %c0_347 = arith.constant 0 : index
    %c0_348 = arith.constant 0 : index
    %507 = vector.load %arg8[%c7_346, %c0_347, %c0_348] : memref<18x18x8xf32, #tpu.memory_space<vmem>>, vector<1x18x8xf32>
    %508 = vector.shape_cast %507 : vector<1x18x8xf32> to vector<18x8xf32>
    %509 = vector.extract_strided_slice %508 {offsets = [0, 0], sizes = [16, 8], strides = [1, 1]} : vector<18x8xf32> to vector<16x8xf32>
    %cst_349 = arith.constant dense<0.000000e+00> : vector<16x8xf32>
    %510 = tpu.matmul %509, %16, %cst_349 {dimension_numbers = #tpu.dot_dimension_numbers<[1], [0], [0], [1], [0, 0, 1, 1], [], []>} : vector<16x8xf32>, vector<8x8xf32>, vector<16x8xf32> -> vector<16x8xf32>
    %511 = arith.addf %506, %510 : vector<16x8xf32>
    %512 = vector.extract_strided_slice %508 {offsets = [1, 0], sizes = [16, 8], strides = [1, 1]} : vector<18x8xf32> to vector<16x8xf32>
    %cst_350 = arith.constant dense<0.000000e+00> : vector<16x8xf32>
    %513 = tpu.matmul %512, %18, %cst_350 {dimension_numbers = #tpu.dot_dimension_numbers<[1], [0], [0], [1], [0, 0, 1, 1], [], []>} : vector<16x8xf32>, vector<8x8xf32>, vector<16x8xf32> -> vector<16x8xf32>
    %514 = arith.addf %511, %513 : vector<16x8xf32>
    %515 = vector.extract_strided_slice %508 {offsets = [2, 0], sizes = [16, 8], strides = [1, 1]} : vector<18x8xf32> to vector<16x8xf32>
    %cst_351 = arith.constant dense<0.000000e+00> : vector<16x8xf32>
    %516 = tpu.matmul %515, %20, %cst_351 {dimension_numbers = #tpu.dot_dimension_numbers<[1], [0], [0], [1], [0, 0, 1, 1], [], []>} : vector<16x8xf32>, vector<8x8xf32>, vector<16x8xf32> -> vector<16x8xf32>
    %517 = arith.addf %514, %516 : vector<16x8xf32>
    %518 = vector.broadcast %2 : vector<1x8xf32> to vector<16x8xf32>
    %519 = arith.addf %517, %518 : vector<16x8xf32>
    %c0_352 = arith.constant 0 : index
    %c5_353 = arith.constant 5 : index
    %c0_354 = arith.constant 0 : index
    %c0_355 = arith.constant 0 : index
    %520 = vector.load %arg6[%c0_352, %c5_353, %c0_354, %c0_355] : memref<1x16x16x8xf32, #tpu.memory_space<vmem>>, vector<1x1x16x8xf32>
    %521 = vector.shape_cast %520 : vector<1x1x16x8xf32> to vector<16x8xf32>
    %522 = vector.shape_cast %519 : vector<16x8xf32> to vector<1x1x16x8xf32>
    tpu.vector_store %arg6[%c0_352, %c5_353, %c0_354, %c0_355], %522 {strides = array<i32>} : memref<1x16x16x8xf32, #tpu.memory_space<vmem>>, vector<1x1x16x8xf32>,
    %cst_356 = arith.constant dense<0.000000e+00> : vector<8xf32>
    %523 = vector.multi_reduction <add>, %519, %cst_356 [0] : vector<16x8xf32> to vector<8xf32>
    %524 = vector.shape_cast %523 : vector<8xf32> to vector<1x8xf32>
    %525 = arith.addf %479, %524 : vector<1x8xf32>
    %526 = arith.mulf %519, %519 : vector<16x8xf32>
    %cst_357 = arith.constant dense<0.000000e+00> : vector<8xf32>
    %527 = vector.multi_reduction <add>, %526, %cst_357 [0] : vector<16x8xf32> to vector<8xf32>
    %528 = vector.shape_cast %527 : vector<8xf32> to vector<1x8xf32>
    %529 = arith.addf %483, %528 : vector<1x8xf32>
    %cst_358 = arith.constant 0.000000e+00 : f32
    %530 = vector.broadcast %cst_358 : f32 to vector<16x8xf32>
    %c6_359 = arith.constant 6 : index
    %c0_360 = arith.constant 0 : index
    %c0_361 = arith.constant 0 : index
    %531 = vector.load %arg8[%c6_359, %c0_360, %c0_361] : memref<18x18x8xf32, #tpu.memory_space<vmem>>, vector<1x18x8xf32>
    %532 = vector.shape_cast %531 : vector<1x18x8xf32> to vector<18x8xf32>
    %533 = vector.extract_strided_slice %532 {offsets = [0, 0], sizes = [16, 8], strides = [1, 1]} : vector<18x8xf32> to vector<16x8xf32>
    %cst_362 = arith.constant dense<0.000000e+00> : vector<16x8xf32>
    %534 = tpu.matmul %533, %4, %cst_362 {dimension_numbers = #tpu.dot_dimension_numbers<[1], [0], [0], [1], [0, 0, 1, 1], [], []>} : vector<16x8xf32>, vector<8x8xf32>, vector<16x8xf32> -> vector<16x8xf32>
    %535 = arith.addf %530, %534 : vector<16x8xf32>
    %536 = vector.extract_strided_slice %532 {offsets = [1, 0], sizes = [16, 8], strides = [1, 1]} : vector<18x8xf32> to vector<16x8xf32>
    %cst_363 = arith.constant dense<0.000000e+00> : vector<16x8xf32>
    %537 = tpu.matmul %536, %6, %cst_363 {dimension_numbers = #tpu.dot_dimension_numbers<[1], [0], [0], [1], [0, 0, 1, 1], [], []>} : vector<16x8xf32>, vector<8x8xf32>, vector<16x8xf32> -> vector<16x8xf32>
    %538 = arith.addf %535, %537 : vector<16x8xf32>
    %539 = vector.extract_strided_slice %532 {offsets = [2, 0], sizes = [16, 8], strides = [1, 1]} : vector<18x8xf32> to vector<16x8xf32>
    %cst_364 = arith.constant dense<0.000000e+00> : vector<16x8xf32>
    %540 = tpu.matmul %539, %8, %cst_364 {dimension_numbers = #tpu.dot_dimension_numbers<[1], [0], [0], [1], [0, 0, 1, 1], [], []>} : vector<16x8xf32>, vector<8x8xf32>, vector<16x8xf32> -> vector<16x8xf32>
    %541 = arith.addf %538, %540 : vector<16x8xf32>
    %c7_365 = arith.constant 7 : index
    %c0_366 = arith.constant 0 : index
    %c0_367 = arith.constant 0 : index
    %542 = vector.load %arg8[%c7_365, %c0_366, %c0_367] : memref<18x18x8xf32, #tpu.memory_space<vmem>>, vector<1x18x8xf32>
    %543 = vector.shape_cast %542 : vector<1x18x8xf32> to vector<18x8xf32>
    %544 = vector.extract_strided_slice %543 {offsets = [0, 0], sizes = [16, 8], strides = [1, 1]} : vector<18x8xf32> to vector<16x8xf32>
    %cst_368 = arith.constant dense<0.000000e+00> : vector<16x8xf32>
    %545 = tpu.matmul %544, %10, %cst_368 {dimension_numbers = #tpu.dot_dimension_numbers<[1], [0], [0], [1], [0, 0, 1, 1], [], []>} : vector<16x8xf32>, vector<8x8xf32>, vector<16x8xf32> -> vector<16x8xf32>
    %546 = arith.addf %541, %545 : vector<16x8xf32>
    %547 = vector.extract_strided_slice %543 {offsets = [1, 0], sizes = [16, 8], strides = [1, 1]} : vector<18x8xf32> to vector<16x8xf32>
    %cst_369 = arith.constant dense<0.000000e+00> : vector<16x8xf32>
    %548 = tpu.matmul %547, %12, %cst_369 {dimension_numbers = #tpu.dot_dimension_numbers<[1], [0], [0], [1], [0, 0, 1, 1], [], []>} : vector<16x8xf32>, vector<8x8xf32>, vector<16x8xf32> -> vector<16x8xf32>
    %549 = arith.addf %546, %548 : vector<16x8xf32>
    %550 = vector.extract_strided_slice %543 {offsets = [2, 0], sizes = [16, 8], strides = [1, 1]} : vector<18x8xf32> to vector<16x8xf32>
    %cst_370 = arith.constant dense<0.000000e+00> : vector<16x8xf32>
    %551 = tpu.matmul %550, %14, %cst_370 {dimension_numbers = #tpu.dot_dimension_numbers<[1], [0], [0], [1], [0, 0, 1, 1], [], []>} : vector<16x8xf32>, vector<8x8xf32>, vector<16x8xf32> -> vector<16x8xf32>
    %552 = arith.addf %549, %551 : vector<16x8xf32>
    %c8_371 = arith.constant 8 : index
    %c0_372 = arith.constant 0 : index
    %c0_373 = arith.constant 0 : index
    %553 = vector.load %arg8[%c8_371, %c0_372, %c0_373] : memref<18x18x8xf32, #tpu.memory_space<vmem>>, vector<1x18x8xf32>
    %554 = vector.shape_cast %553 : vector<1x18x8xf32> to vector<18x8xf32>
    %555 = vector.extract_strided_slice %554 {offsets = [0, 0], sizes = [16, 8], strides = [1, 1]} : vector<18x8xf32> to vector<16x8xf32>
    %cst_374 = arith.constant dense<0.000000e+00> : vector<16x8xf32>
    %556 = tpu.matmul %555, %16, %cst_374 {dimension_numbers = #tpu.dot_dimension_numbers<[1], [0], [0], [1], [0, 0, 1, 1], [], []>} : vector<16x8xf32>, vector<8x8xf32>, vector<16x8xf32> -> vector<16x8xf32>
    %557 = arith.addf %552, %556 : vector<16x8xf32>
    %558 = vector.extract_strided_slice %554 {offsets = [1, 0], sizes = [16, 8], strides = [1, 1]} : vector<18x8xf32> to vector<16x8xf32>
    %cst_375 = arith.constant dense<0.000000e+00> : vector<16x8xf32>
    %559 = tpu.matmul %558, %18, %cst_375 {dimension_numbers = #tpu.dot_dimension_numbers<[1], [0], [0], [1], [0, 0, 1, 1], [], []>} : vector<16x8xf32>, vector<8x8xf32>, vector<16x8xf32> -> vector<16x8xf32>
    %560 = arith.addf %557, %559 : vector<16x8xf32>
    %561 = vector.extract_strided_slice %554 {offsets = [2, 0], sizes = [16, 8], strides = [1, 1]} : vector<18x8xf32> to vector<16x8xf32>
    %cst_376 = arith.constant dense<0.000000e+00> : vector<16x8xf32>
    %562 = tpu.matmul %561, %20, %cst_376 {dimension_numbers = #tpu.dot_dimension_numbers<[1], [0], [0], [1], [0, 0, 1, 1], [], []>} : vector<16x8xf32>, vector<8x8xf32>, vector<16x8xf32> -> vector<16x8xf32>
    %563 = arith.addf %560, %562 : vector<16x8xf32>
    %564 = vector.broadcast %2 : vector<1x8xf32> to vector<16x8xf32>
    %565 = arith.addf %563, %564 : vector<16x8xf32>
    %c0_377 = arith.constant 0 : index
    %c6_378 = arith.constant 6 : index
    %c0_379 = arith.constant 0 : index
    %c0_380 = arith.constant 0 : index
    %566 = vector.load %arg6[%c0_377, %c6_378, %c0_379, %c0_380] : memref<1x16x16x8xf32, #tpu.memory_space<vmem>>, vector<1x1x16x8xf32>
    %567 = vector.shape_cast %566 : vector<1x1x16x8xf32> to vector<16x8xf32>
    %568 = vector.shape_cast %565 : vector<16x8xf32> to vector<1x1x16x8xf32>
    tpu.vector_store %arg6[%c0_377, %c6_378, %c0_379, %c0_380], %568 {strides = array<i32>} : memref<1x16x16x8xf32, #tpu.memory_space<vmem>>, vector<1x1x16x8xf32>,
    %cst_381 = arith.constant dense<0.000000e+00> : vector<8xf32>
    %569 = vector.multi_reduction <add>, %565, %cst_381 [0] : vector<16x8xf32> to vector<8xf32>
    %570 = vector.shape_cast %569 : vector<8xf32> to vector<1x8xf32>
    %571 = arith.addf %525, %570 : vector<1x8xf32>
    %572 = arith.mulf %565, %565 : vector<16x8xf32>
    %cst_382 = arith.constant dense<0.000000e+00> : vector<8xf32>
    %573 = vector.multi_reduction <add>, %572, %cst_382 [0] : vector<16x8xf32> to vector<8xf32>
    %574 = vector.shape_cast %573 : vector<8xf32> to vector<1x8xf32>
    %575 = arith.addf %529, %574 : vector<1x8xf32>
    %cst_383 = arith.constant 0.000000e+00 : f32
    %576 = vector.broadcast %cst_383 : f32 to vector<16x8xf32>
    %c7_384 = arith.constant 7 : index
    %c0_385 = arith.constant 0 : index
    %c0_386 = arith.constant 0 : index
    %577 = vector.load %arg8[%c7_384, %c0_385, %c0_386] : memref<18x18x8xf32, #tpu.memory_space<vmem>>, vector<1x18x8xf32>
    %578 = vector.shape_cast %577 : vector<1x18x8xf32> to vector<18x8xf32>
    %579 = vector.extract_strided_slice %578 {offsets = [0, 0], sizes = [16, 8], strides = [1, 1]} : vector<18x8xf32> to vector<16x8xf32>
    %cst_387 = arith.constant dense<0.000000e+00> : vector<16x8xf32>
    %580 = tpu.matmul %579, %4, %cst_387 {dimension_numbers = #tpu.dot_dimension_numbers<[1], [0], [0], [1], [0, 0, 1, 1], [], []>} : vector<16x8xf32>, vector<8x8xf32>, vector<16x8xf32> -> vector<16x8xf32>
    %581 = arith.addf %576, %580 : vector<16x8xf32>
    %582 = vector.extract_strided_slice %578 {offsets = [1, 0], sizes = [16, 8], strides = [1, 1]} : vector<18x8xf32> to vector<16x8xf32>
    %cst_388 = arith.constant dense<0.000000e+00> : vector<16x8xf32>
    %583 = tpu.matmul %582, %6, %cst_388 {dimension_numbers = #tpu.dot_dimension_numbers<[1], [0], [0], [1], [0, 0, 1, 1], [], []>} : vector<16x8xf32>, vector<8x8xf32>, vector<16x8xf32> -> vector<16x8xf32>
    %584 = arith.addf %581, %583 : vector<16x8xf32>
    %585 = vector.extract_strided_slice %578 {offsets = [2, 0], sizes = [16, 8], strides = [1, 1]} : vector<18x8xf32> to vector<16x8xf32>
    %cst_389 = arith.constant dense<0.000000e+00> : vector<16x8xf32>
    %586 = tpu.matmul %585, %8, %cst_389 {dimension_numbers = #tpu.dot_dimension_numbers<[1], [0], [0], [1], [0, 0, 1, 1], [], []>} : vector<16x8xf32>, vector<8x8xf32>, vector<16x8xf32> -> vector<16x8xf32>
    %587 = arith.addf %584, %586 : vector<16x8xf32>
    %c8_390 = arith.constant 8 : index
    %c0_391 = arith.constant 0 : index
    %c0_392 = arith.constant 0 : index
    %588 = vector.load %arg8[%c8_390, %c0_391, %c0_392] : memref<18x18x8xf32, #tpu.memory_space<vmem>>, vector<1x18x8xf32>
    %589 = vector.shape_cast %588 : vector<1x18x8xf32> to vector<18x8xf32>
    %590 = vector.extract_strided_slice %589 {offsets = [0, 0], sizes = [16, 8], strides = [1, 1]} : vector<18x8xf32> to vector<16x8xf32>
    %cst_393 = arith.constant dense<0.000000e+00> : vector<16x8xf32>
    %591 = tpu.matmul %590, %10, %cst_393 {dimension_numbers = #tpu.dot_dimension_numbers<[1], [0], [0], [1], [0, 0, 1, 1], [], []>} : vector<16x8xf32>, vector<8x8xf32>, vector<16x8xf32> -> vector<16x8xf32>
    %592 = arith.addf %587, %591 : vector<16x8xf32>
    %593 = vector.extract_strided_slice %589 {offsets = [1, 0], sizes = [16, 8], strides = [1, 1]} : vector<18x8xf32> to vector<16x8xf32>
    %cst_394 = arith.constant dense<0.000000e+00> : vector<16x8xf32>
    %594 = tpu.matmul %593, %12, %cst_394 {dimension_numbers = #tpu.dot_dimension_numbers<[1], [0], [0], [1], [0, 0, 1, 1], [], []>} : vector<16x8xf32>, vector<8x8xf32>, vector<16x8xf32> -> vector<16x8xf32>
    %595 = arith.addf %592, %594 : vector<16x8xf32>
    %596 = vector.extract_strided_slice %589 {offsets = [2, 0], sizes = [16, 8], strides = [1, 1]} : vector<18x8xf32> to vector<16x8xf32>
    %cst_395 = arith.constant dense<0.000000e+00> : vector<16x8xf32>
    %597 = tpu.matmul %596, %14, %cst_395 {dimension_numbers = #tpu.dot_dimension_numbers<[1], [0], [0], [1], [0, 0, 1, 1], [], []>} : vector<16x8xf32>, vector<8x8xf32>, vector<16x8xf32> -> vector<16x8xf32>
    %598 = arith.addf %595, %597 : vector<16x8xf32>
    %c9_396 = arith.constant 9 : index
    %c0_397 = arith.constant 0 : index
    %c0_398 = arith.constant 0 : index
    %599 = vector.load %arg8[%c9_396, %c0_397, %c0_398] : memref<18x18x8xf32, #tpu.memory_space<vmem>>, vector<1x18x8xf32>
    %600 = vector.shape_cast %599 : vector<1x18x8xf32> to vector<18x8xf32>
    %601 = vector.extract_strided_slice %600 {offsets = [0, 0], sizes = [16, 8], strides = [1, 1]} : vector<18x8xf32> to vector<16x8xf32>
    %cst_399 = arith.constant dense<0.000000e+00> : vector<16x8xf32>
    %602 = tpu.matmul %601, %16, %cst_399 {dimension_numbers = #tpu.dot_dimension_numbers<[1], [0], [0], [1], [0, 0, 1, 1], [], []>} : vector<16x8xf32>, vector<8x8xf32>, vector<16x8xf32> -> vector<16x8xf32>
    %603 = arith.addf %598, %602 : vector<16x8xf32>
    %604 = vector.extract_strided_slice %600 {offsets = [1, 0], sizes = [16, 8], strides = [1, 1]} : vector<18x8xf32> to vector<16x8xf32>
    %cst_400 = arith.constant dense<0.000000e+00> : vector<16x8xf32>
    %605 = tpu.matmul %604, %18, %cst_400 {dimension_numbers = #tpu.dot_dimension_numbers<[1], [0], [0], [1], [0, 0, 1, 1], [], []>} : vector<16x8xf32>, vector<8x8xf32>, vector<16x8xf32> -> vector<16x8xf32>
    %606 = arith.addf %603, %605 : vector<16x8xf32>
    %607 = vector.extract_strided_slice %600 {offsets = [2, 0], sizes = [16, 8], strides = [1, 1]} : vector<18x8xf32> to vector<16x8xf32>
    %cst_401 = arith.constant dense<0.000000e+00> : vector<16x8xf32>
    %608 = tpu.matmul %607, %20, %cst_401 {dimension_numbers = #tpu.dot_dimension_numbers<[1], [0], [0], [1], [0, 0, 1, 1], [], []>} : vector<16x8xf32>, vector<8x8xf32>, vector<16x8xf32> -> vector<16x8xf32>
    %609 = arith.addf %606, %608 : vector<16x8xf32>
    %610 = vector.broadcast %2 : vector<1x8xf32> to vector<16x8xf32>
    %611 = arith.addf %609, %610 : vector<16x8xf32>
    %c0_402 = arith.constant 0 : index
    %c7_403 = arith.constant 7 : index
    %c0_404 = arith.constant 0 : index
    %c0_405 = arith.constant 0 : index
    %612 = vector.load %arg6[%c0_402, %c7_403, %c0_404, %c0_405] : memref<1x16x16x8xf32, #tpu.memory_space<vmem>>, vector<1x1x16x8xf32>
    %613 = vector.shape_cast %612 : vector<1x1x16x8xf32> to vector<16x8xf32>
    %614 = vector.shape_cast %611 : vector<16x8xf32> to vector<1x1x16x8xf32>
    tpu.vector_store %arg6[%c0_402, %c7_403, %c0_404, %c0_405], %614 {strides = array<i32>} : memref<1x16x16x8xf32, #tpu.memory_space<vmem>>, vector<1x1x16x8xf32>,
    %cst_406 = arith.constant dense<0.000000e+00> : vector<8xf32>
    %615 = vector.multi_reduction <add>, %611, %cst_406 [0] : vector<16x8xf32> to vector<8xf32>
    %616 = vector.shape_cast %615 : vector<8xf32> to vector<1x8xf32>
    %617 = arith.addf %571, %616 : vector<1x8xf32>
    %618 = arith.mulf %611, %611 : vector<16x8xf32>
    %cst_407 = arith.constant dense<0.000000e+00> : vector<8xf32>
    %619 = vector.multi_reduction <add>, %618, %cst_407 [0] : vector<16x8xf32> to vector<8xf32>
    %620 = vector.shape_cast %619 : vector<8xf32> to vector<1x8xf32>
    %621 = arith.addf %575, %620 : vector<1x8xf32>
    %cst_408 = arith.constant 0.000000e+00 : f32
    %622 = vector.broadcast %cst_408 : f32 to vector<16x8xf32>
    %c8_409 = arith.constant 8 : index
    %c0_410 = arith.constant 0 : index
    %c0_411 = arith.constant 0 : index
    %623 = vector.load %arg8[%c8_409, %c0_410, %c0_411] : memref<18x18x8xf32, #tpu.memory_space<vmem>>, vector<1x18x8xf32>
    %624 = vector.shape_cast %623 : vector<1x18x8xf32> to vector<18x8xf32>
    %625 = vector.extract_strided_slice %624 {offsets = [0, 0], sizes = [16, 8], strides = [1, 1]} : vector<18x8xf32> to vector<16x8xf32>
    %cst_412 = arith.constant dense<0.000000e+00> : vector<16x8xf32>
    %626 = tpu.matmul %625, %4, %cst_412 {dimension_numbers = #tpu.dot_dimension_numbers<[1], [0], [0], [1], [0, 0, 1, 1], [], []>} : vector<16x8xf32>, vector<8x8xf32>, vector<16x8xf32> -> vector<16x8xf32>
    %627 = arith.addf %622, %626 : vector<16x8xf32>
    %628 = vector.extract_strided_slice %624 {offsets = [1, 0], sizes = [16, 8], strides = [1, 1]} : vector<18x8xf32> to vector<16x8xf32>
    %cst_413 = arith.constant dense<0.000000e+00> : vector<16x8xf32>
    %629 = tpu.matmul %628, %6, %cst_413 {dimension_numbers = #tpu.dot_dimension_numbers<[1], [0], [0], [1], [0, 0, 1, 1], [], []>} : vector<16x8xf32>, vector<8x8xf32>, vector<16x8xf32> -> vector<16x8xf32>
    %630 = arith.addf %627, %629 : vector<16x8xf32>
    %631 = vector.extract_strided_slice %624 {offsets = [2, 0], sizes = [16, 8], strides = [1, 1]} : vector<18x8xf32> to vector<16x8xf32>
    %cst_414 = arith.constant dense<0.000000e+00> : vector<16x8xf32>
    %632 = tpu.matmul %631, %8, %cst_414 {dimension_numbers = #tpu.dot_dimension_numbers<[1], [0], [0], [1], [0, 0, 1, 1], [], []>} : vector<16x8xf32>, vector<8x8xf32>, vector<16x8xf32> -> vector<16x8xf32>
    %633 = arith.addf %630, %632 : vector<16x8xf32>
    %c9_415 = arith.constant 9 : index
    %c0_416 = arith.constant 0 : index
    %c0_417 = arith.constant 0 : index
    %634 = vector.load %arg8[%c9_415, %c0_416, %c0_417] : memref<18x18x8xf32, #tpu.memory_space<vmem>>, vector<1x18x8xf32>
    %635 = vector.shape_cast %634 : vector<1x18x8xf32> to vector<18x8xf32>
    %636 = vector.extract_strided_slice %635 {offsets = [0, 0], sizes = [16, 8], strides = [1, 1]} : vector<18x8xf32> to vector<16x8xf32>
    %cst_418 = arith.constant dense<0.000000e+00> : vector<16x8xf32>
    %637 = tpu.matmul %636, %10, %cst_418 {dimension_numbers = #tpu.dot_dimension_numbers<[1], [0], [0], [1], [0, 0, 1, 1], [], []>} : vector<16x8xf32>, vector<8x8xf32>, vector<16x8xf32> -> vector<16x8xf32>
    %638 = arith.addf %633, %637 : vector<16x8xf32>
    %639 = vector.extract_strided_slice %635 {offsets = [1, 0], sizes = [16, 8], strides = [1, 1]} : vector<18x8xf32> to vector<16x8xf32>
    %cst_419 = arith.constant dense<0.000000e+00> : vector<16x8xf32>
    %640 = tpu.matmul %639, %12, %cst_419 {dimension_numbers = #tpu.dot_dimension_numbers<[1], [0], [0], [1], [0, 0, 1, 1], [], []>} : vector<16x8xf32>, vector<8x8xf32>, vector<16x8xf32> -> vector<16x8xf32>
    %641 = arith.addf %638, %640 : vector<16x8xf32>
    %642 = vector.extract_strided_slice %635 {offsets = [2, 0], sizes = [16, 8], strides = [1, 1]} : vector<18x8xf32> to vector<16x8xf32>
    %cst_420 = arith.constant dense<0.000000e+00> : vector<16x8xf32>
    %643 = tpu.matmul %642, %14, %cst_420 {dimension_numbers = #tpu.dot_dimension_numbers<[1], [0], [0], [1], [0, 0, 1, 1], [], []>} : vector<16x8xf32>, vector<8x8xf32>, vector<16x8xf32> -> vector<16x8xf32>
    %644 = arith.addf %641, %643 : vector<16x8xf32>
    %c10_421 = arith.constant 10 : index
    %c0_422 = arith.constant 0 : index
    %c0_423 = arith.constant 0 : index
    %645 = vector.load %arg8[%c10_421, %c0_422, %c0_423] : memref<18x18x8xf32, #tpu.memory_space<vmem>>, vector<1x18x8xf32>
    %646 = vector.shape_cast %645 : vector<1x18x8xf32> to vector<18x8xf32>
    %647 = vector.extract_strided_slice %646 {offsets = [0, 0], sizes = [16, 8], strides = [1, 1]} : vector<18x8xf32> to vector<16x8xf32>
    %cst_424 = arith.constant dense<0.000000e+00> : vector<16x8xf32>
    %648 = tpu.matmul %647, %16, %cst_424 {dimension_numbers = #tpu.dot_dimension_numbers<[1], [0], [0], [1], [0, 0, 1, 1], [], []>} : vector<16x8xf32>, vector<8x8xf32>, vector<16x8xf32> -> vector<16x8xf32>
    %649 = arith.addf %644, %648 : vector<16x8xf32>
    %650 = vector.extract_strided_slice %646 {offsets = [1, 0], sizes = [16, 8], strides = [1, 1]} : vector<18x8xf32> to vector<16x8xf32>
    %cst_425 = arith.constant dense<0.000000e+00> : vector<16x8xf32>
    %651 = tpu.matmul %650, %18, %cst_425 {dimension_numbers = #tpu.dot_dimension_numbers<[1], [0], [0], [1], [0, 0, 1, 1], [], []>} : vector<16x8xf32>, vector<8x8xf32>, vector<16x8xf32> -> vector<16x8xf32>
    %652 = arith.addf %649, %651 : vector<16x8xf32>
    %653 = vector.extract_strided_slice %646 {offsets = [2, 0], sizes = [16, 8], strides = [1, 1]} : vector<18x8xf32> to vector<16x8xf32>
    %cst_426 = arith.constant dense<0.000000e+00> : vector<16x8xf32>
    %654 = tpu.matmul %653, %20, %cst_426 {dimension_numbers = #tpu.dot_dimension_numbers<[1], [0], [0], [1], [0, 0, 1, 1], [], []>} : vector<16x8xf32>, vector<8x8xf32>, vector<16x8xf32> -> vector<16x8xf32>
    %655 = arith.addf %652, %654 : vector<16x8xf32>
    %656 = vector.broadcast %2 : vector<1x8xf32> to vector<16x8xf32>
    %657 = arith.addf %655, %656 : vector<16x8xf32>
    %c0_427 = arith.constant 0 : index
    %c8_428 = arith.constant 8 : index
    %c0_429 = arith.constant 0 : index
    %c0_430 = arith.constant 0 : index
    %658 = vector.load %arg6[%c0_427, %c8_428, %c0_429, %c0_430] : memref<1x16x16x8xf32, #tpu.memory_space<vmem>>, vector<1x1x16x8xf32>
    %659 = vector.shape_cast %658 : vector<1x1x16x8xf32> to vector<16x8xf32>
    %660 = vector.shape_cast %657 : vector<16x8xf32> to vector<1x1x16x8xf32>
    tpu.vector_store %arg6[%c0_427, %c8_428, %c0_429, %c0_430], %660 {strides = array<i32>} : memref<1x16x16x8xf32, #tpu.memory_space<vmem>>, vector<1x1x16x8xf32>,
    %cst_431 = arith.constant dense<0.000000e+00> : vector<8xf32>
    %661 = vector.multi_reduction <add>, %657, %cst_431 [0] : vector<16x8xf32> to vector<8xf32>
    %662 = vector.shape_cast %661 : vector<8xf32> to vector<1x8xf32>
    %663 = arith.addf %617, %662 : vector<1x8xf32>
    %664 = arith.mulf %657, %657 : vector<16x8xf32>
    %cst_432 = arith.constant dense<0.000000e+00> : vector<8xf32>
    %665 = vector.multi_reduction <add>, %664, %cst_432 [0] : vector<16x8xf32> to vector<8xf32>
    %666 = vector.shape_cast %665 : vector<8xf32> to vector<1x8xf32>
    %667 = arith.addf %621, %666 : vector<1x8xf32>
    %cst_433 = arith.constant 0.000000e+00 : f32
    %668 = vector.broadcast %cst_433 : f32 to vector<16x8xf32>
    %c9_434 = arith.constant 9 : index
    %c0_435 = arith.constant 0 : index
    %c0_436 = arith.constant 0 : index
    %669 = vector.load %arg8[%c9_434, %c0_435, %c0_436] : memref<18x18x8xf32, #tpu.memory_space<vmem>>, vector<1x18x8xf32>
    %670 = vector.shape_cast %669 : vector<1x18x8xf32> to vector<18x8xf32>
    %671 = vector.extract_strided_slice %670 {offsets = [0, 0], sizes = [16, 8], strides = [1, 1]} : vector<18x8xf32> to vector<16x8xf32>
    %cst_437 = arith.constant dense<0.000000e+00> : vector<16x8xf32>
    %672 = tpu.matmul %671, %4, %cst_437 {dimension_numbers = #tpu.dot_dimension_numbers<[1], [0], [0], [1], [0, 0, 1, 1], [], []>} : vector<16x8xf32>, vector<8x8xf32>, vector<16x8xf32> -> vector<16x8xf32>
    %673 = arith.addf %668, %672 : vector<16x8xf32>
    %674 = vector.extract_strided_slice %670 {offsets = [1, 0], sizes = [16, 8], strides = [1, 1]} : vector<18x8xf32> to vector<16x8xf32>
    %cst_438 = arith.constant dense<0.000000e+00> : vector<16x8xf32>
    %675 = tpu.matmul %674, %6, %cst_438 {dimension_numbers = #tpu.dot_dimension_numbers<[1], [0], [0], [1], [0, 0, 1, 1], [], []>} : vector<16x8xf32>, vector<8x8xf32>, vector<16x8xf32> -> vector<16x8xf32>
    %676 = arith.addf %673, %675 : vector<16x8xf32>
    %677 = vector.extract_strided_slice %670 {offsets = [2, 0], sizes = [16, 8], strides = [1, 1]} : vector<18x8xf32> to vector<16x8xf32>
    %cst_439 = arith.constant dense<0.000000e+00> : vector<16x8xf32>
    %678 = tpu.matmul %677, %8, %cst_439 {dimension_numbers = #tpu.dot_dimension_numbers<[1], [0], [0], [1], [0, 0, 1, 1], [], []>} : vector<16x8xf32>, vector<8x8xf32>, vector<16x8xf32> -> vector<16x8xf32>
    %679 = arith.addf %676, %678 : vector<16x8xf32>
    %c10_440 = arith.constant 10 : index
    %c0_441 = arith.constant 0 : index
    %c0_442 = arith.constant 0 : index
    %680 = vector.load %arg8[%c10_440, %c0_441, %c0_442] : memref<18x18x8xf32, #tpu.memory_space<vmem>>, vector<1x18x8xf32>
    %681 = vector.shape_cast %680 : vector<1x18x8xf32> to vector<18x8xf32>
    %682 = vector.extract_strided_slice %681 {offsets = [0, 0], sizes = [16, 8], strides = [1, 1]} : vector<18x8xf32> to vector<16x8xf32>
    %cst_443 = arith.constant dense<0.000000e+00> : vector<16x8xf32>
    %683 = tpu.matmul %682, %10, %cst_443 {dimension_numbers = #tpu.dot_dimension_numbers<[1], [0], [0], [1], [0, 0, 1, 1], [], []>} : vector<16x8xf32>, vector<8x8xf32>, vector<16x8xf32> -> vector<16x8xf32>
    %684 = arith.addf %679, %683 : vector<16x8xf32>
    %685 = vector.extract_strided_slice %681 {offsets = [1, 0], sizes = [16, 8], strides = [1, 1]} : vector<18x8xf32> to vector<16x8xf32>
    %cst_444 = arith.constant dense<0.000000e+00> : vector<16x8xf32>
    %686 = tpu.matmul %685, %12, %cst_444 {dimension_numbers = #tpu.dot_dimension_numbers<[1], [0], [0], [1], [0, 0, 1, 1], [], []>} : vector<16x8xf32>, vector<8x8xf32>, vector<16x8xf32> -> vector<16x8xf32>
    %687 = arith.addf %684, %686 : vector<16x8xf32>
    %688 = vector.extract_strided_slice %681 {offsets = [2, 0], sizes = [16, 8], strides = [1, 1]} : vector<18x8xf32> to vector<16x8xf32>
    %cst_445 = arith.constant dense<0.000000e+00> : vector<16x8xf32>
    %689 = tpu.matmul %688, %14, %cst_445 {dimension_numbers = #tpu.dot_dimension_numbers<[1], [0], [0], [1], [0, 0, 1, 1], [], []>} : vector<16x8xf32>, vector<8x8xf32>, vector<16x8xf32> -> vector<16x8xf32>
    %690 = arith.addf %687, %689 : vector<16x8xf32>
    %c11_446 = arith.constant 11 : index
    %c0_447 = arith.constant 0 : index
    %c0_448 = arith.constant 0 : index
    %691 = vector.load %arg8[%c11_446, %c0_447, %c0_448] : memref<18x18x8xf32, #tpu.memory_space<vmem>>, vector<1x18x8xf32>
    %692 = vector.shape_cast %691 : vector<1x18x8xf32> to vector<18x8xf32>
    %693 = vector.extract_strided_slice %692 {offsets = [0, 0], sizes = [16, 8], strides = [1, 1]} : vector<18x8xf32> to vector<16x8xf32>
    %cst_449 = arith.constant dense<0.000000e+00> : vector<16x8xf32>
    %694 = tpu.matmul %693, %16, %cst_449 {dimension_numbers = #tpu.dot_dimension_numbers<[1], [0], [0], [1], [0, 0, 1, 1], [], []>} : vector<16x8xf32>, vector<8x8xf32>, vector<16x8xf32> -> vector<16x8xf32>
    %695 = arith.addf %690, %694 : vector<16x8xf32>
    %696 = vector.extract_strided_slice %692 {offsets = [1, 0], sizes = [16, 8], strides = [1, 1]} : vector<18x8xf32> to vector<16x8xf32>
    %cst_450 = arith.constant dense<0.000000e+00> : vector<16x8xf32>
    %697 = tpu.matmul %696, %18, %cst_450 {dimension_numbers = #tpu.dot_dimension_numbers<[1], [0], [0], [1], [0, 0, 1, 1], [], []>} : vector<16x8xf32>, vector<8x8xf32>, vector<16x8xf32> -> vector<16x8xf32>
    %698 = arith.addf %695, %697 : vector<16x8xf32>
    %699 = vector.extract_strided_slice %692 {offsets = [2, 0], sizes = [16, 8], strides = [1, 1]} : vector<18x8xf32> to vector<16x8xf32>
    %cst_451 = arith.constant dense<0.000000e+00> : vector<16x8xf32>
    %700 = tpu.matmul %699, %20, %cst_451 {dimension_numbers = #tpu.dot_dimension_numbers<[1], [0], [0], [1], [0, 0, 1, 1], [], []>} : vector<16x8xf32>, vector<8x8xf32>, vector<16x8xf32> -> vector<16x8xf32>
    %701 = arith.addf %698, %700 : vector<16x8xf32>
    %702 = vector.broadcast %2 : vector<1x8xf32> to vector<16x8xf32>
    %703 = arith.addf %701, %702 : vector<16x8xf32>
    %c0_452 = arith.constant 0 : index
    %c9_453 = arith.constant 9 : index
    %c0_454 = arith.constant 0 : index
    %c0_455 = arith.constant 0 : index
    %704 = vector.load %arg6[%c0_452, %c9_453, %c0_454, %c0_455] : memref<1x16x16x8xf32, #tpu.memory_space<vmem>>, vector<1x1x16x8xf32>
    %705 = vector.shape_cast %704 : vector<1x1x16x8xf32> to vector<16x8xf32>
    %706 = vector.shape_cast %703 : vector<16x8xf32> to vector<1x1x16x8xf32>
    tpu.vector_store %arg6[%c0_452, %c9_453, %c0_454, %c0_455], %706 {strides = array<i32>} : memref<1x16x16x8xf32, #tpu.memory_space<vmem>>, vector<1x1x16x8xf32>,
    %cst_456 = arith.constant dense<0.000000e+00> : vector<8xf32>
    %707 = vector.multi_reduction <add>, %703, %cst_456 [0] : vector<16x8xf32> to vector<8xf32>
    %708 = vector.shape_cast %707 : vector<8xf32> to vector<1x8xf32>
    %709 = arith.addf %663, %708 : vector<1x8xf32>
    %710 = arith.mulf %703, %703 : vector<16x8xf32>
    %cst_457 = arith.constant dense<0.000000e+00> : vector<8xf32>
    %711 = vector.multi_reduction <add>, %710, %cst_457 [0] : vector<16x8xf32> to vector<8xf32>
    %712 = vector.shape_cast %711 : vector<8xf32> to vector<1x8xf32>
    %713 = arith.addf %667, %712 : vector<1x8xf32>
    %cst_458 = arith.constant 0.000000e+00 : f32
    %714 = vector.broadcast %cst_458 : f32 to vector<16x8xf32>
    %c10_459 = arith.constant 10 : index
    %c0_460 = arith.constant 0 : index
    %c0_461 = arith.constant 0 : index
    %715 = vector.load %arg8[%c10_459, %c0_460, %c0_461] : memref<18x18x8xf32, #tpu.memory_space<vmem>>, vector<1x18x8xf32>
    %716 = vector.shape_cast %715 : vector<1x18x8xf32> to vector<18x8xf32>
    %717 = vector.extract_strided_slice %716 {offsets = [0, 0], sizes = [16, 8], strides = [1, 1]} : vector<18x8xf32> to vector<16x8xf32>
    %cst_462 = arith.constant dense<0.000000e+00> : vector<16x8xf32>
    %718 = tpu.matmul %717, %4, %cst_462 {dimension_numbers = #tpu.dot_dimension_numbers<[1], [0], [0], [1], [0, 0, 1, 1], [], []>} : vector<16x8xf32>, vector<8x8xf32>, vector<16x8xf32> -> vector<16x8xf32>
    %719 = arith.addf %714, %718 : vector<16x8xf32>
    %720 = vector.extract_strided_slice %716 {offsets = [1, 0], sizes = [16, 8], strides = [1, 1]} : vector<18x8xf32> to vector<16x8xf32>
    %cst_463 = arith.constant dense<0.000000e+00> : vector<16x8xf32>
    %721 = tpu.matmul %720, %6, %cst_463 {dimension_numbers = #tpu.dot_dimension_numbers<[1], [0], [0], [1], [0, 0, 1, 1], [], []>} : vector<16x8xf32>, vector<8x8xf32>, vector<16x8xf32> -> vector<16x8xf32>
    %722 = arith.addf %719, %721 : vector<16x8xf32>
    %723 = vector.extract_strided_slice %716 {offsets = [2, 0], sizes = [16, 8], strides = [1, 1]} : vector<18x8xf32> to vector<16x8xf32>
    %cst_464 = arith.constant dense<0.000000e+00> : vector<16x8xf32>
    %724 = tpu.matmul %723, %8, %cst_464 {dimension_numbers = #tpu.dot_dimension_numbers<[1], [0], [0], [1], [0, 0, 1, 1], [], []>} : vector<16x8xf32>, vector<8x8xf32>, vector<16x8xf32> -> vector<16x8xf32>
    %725 = arith.addf %722, %724 : vector<16x8xf32>
    %c11_465 = arith.constant 11 : index
    %c0_466 = arith.constant 0 : index
    %c0_467 = arith.constant 0 : index
    %726 = vector.load %arg8[%c11_465, %c0_466, %c0_467] : memref<18x18x8xf32, #tpu.memory_space<vmem>>, vector<1x18x8xf32>
    %727 = vector.shape_cast %726 : vector<1x18x8xf32> to vector<18x8xf32>
    %728 = vector.extract_strided_slice %727 {offsets = [0, 0], sizes = [16, 8], strides = [1, 1]} : vector<18x8xf32> to vector<16x8xf32>
    %cst_468 = arith.constant dense<0.000000e+00> : vector<16x8xf32>
    %729 = tpu.matmul %728, %10, %cst_468 {dimension_numbers = #tpu.dot_dimension_numbers<[1], [0], [0], [1], [0, 0, 1, 1], [], []>} : vector<16x8xf32>, vector<8x8xf32>, vector<16x8xf32> -> vector<16x8xf32>
    %730 = arith.addf %725, %729 : vector<16x8xf32>
    %731 = vector.extract_strided_slice %727 {offsets = [1, 0], sizes = [16, 8], strides = [1, 1]} : vector<18x8xf32> to vector<16x8xf32>
    %cst_469 = arith.constant dense<0.000000e+00> : vector<16x8xf32>
    %732 = tpu.matmul %731, %12, %cst_469 {dimension_numbers = #tpu.dot_dimension_numbers<[1], [0], [0], [1], [0, 0, 1, 1], [], []>} : vector<16x8xf32>, vector<8x8xf32>, vector<16x8xf32> -> vector<16x8xf32>
    %733 = arith.addf %730, %732 : vector<16x8xf32>
    %734 = vector.extract_strided_slice %727 {offsets = [2, 0], sizes = [16, 8], strides = [1, 1]} : vector<18x8xf32> to vector<16x8xf32>
    %cst_470 = arith.constant dense<0.000000e+00> : vector<16x8xf32>
    %735 = tpu.matmul %734, %14, %cst_470 {dimension_numbers = #tpu.dot_dimension_numbers<[1], [0], [0], [1], [0, 0, 1, 1], [], []>} : vector<16x8xf32>, vector<8x8xf32>, vector<16x8xf32> -> vector<16x8xf32>
    %736 = arith.addf %733, %735 : vector<16x8xf32>
    %c12_471 = arith.constant 12 : index
    %c0_472 = arith.constant 0 : index
    %c0_473 = arith.constant 0 : index
    %737 = vector.load %arg8[%c12_471, %c0_472, %c0_473] : memref<18x18x8xf32, #tpu.memory_space<vmem>>, vector<1x18x8xf32>
    %738 = vector.shape_cast %737 : vector<1x18x8xf32> to vector<18x8xf32>
    %739 = vector.extract_strided_slice %738 {offsets = [0, 0], sizes = [16, 8], strides = [1, 1]} : vector<18x8xf32> to vector<16x8xf32>
    %cst_474 = arith.constant dense<0.000000e+00> : vector<16x8xf32>
    %740 = tpu.matmul %739, %16, %cst_474 {dimension_numbers = #tpu.dot_dimension_numbers<[1], [0], [0], [1], [0, 0, 1, 1], [], []>} : vector<16x8xf32>, vector<8x8xf32>, vector<16x8xf32> -> vector<16x8xf32>
    %741 = arith.addf %736, %740 : vector<16x8xf32>
    %742 = vector.extract_strided_slice %738 {offsets = [1, 0], sizes = [16, 8], strides = [1, 1]} : vector<18x8xf32> to vector<16x8xf32>
    %cst_475 = arith.constant dense<0.000000e+00> : vector<16x8xf32>
    %743 = tpu.matmul %742, %18, %cst_475 {dimension_numbers = #tpu.dot_dimension_numbers<[1], [0], [0], [1], [0, 0, 1, 1], [], []>} : vector<16x8xf32>, vector<8x8xf32>, vector<16x8xf32> -> vector<16x8xf32>
    %744 = arith.addf %741, %743 : vector<16x8xf32>
    %745 = vector.extract_strided_slice %738 {offsets = [2, 0], sizes = [16, 8], strides = [1, 1]} : vector<18x8xf32> to vector<16x8xf32>
    %cst_476 = arith.constant dense<0.000000e+00> : vector<16x8xf32>
    %746 = tpu.matmul %745, %20, %cst_476 {dimension_numbers = #tpu.dot_dimension_numbers<[1], [0], [0], [1], [0, 0, 1, 1], [], []>} : vector<16x8xf32>, vector<8x8xf32>, vector<16x8xf32> -> vector<16x8xf32>
    %747 = arith.addf %744, %746 : vector<16x8xf32>
    %748 = vector.broadcast %2 : vector<1x8xf32> to vector<16x8xf32>
    %749 = arith.addf %747, %748 : vector<16x8xf32>
    %c0_477 = arith.constant 0 : index
    %c10_478 = arith.constant 10 : index
    %c0_479 = arith.constant 0 : index
    %c0_480 = arith.constant 0 : index
    %750 = vector.load %arg6[%c0_477, %c10_478, %c0_479, %c0_480] : memref<1x16x16x8xf32, #tpu.memory_space<vmem>>, vector<1x1x16x8xf32>
    %751 = vector.shape_cast %750 : vector<1x1x16x8xf32> to vector<16x8xf32>
    %752 = vector.shape_cast %749 : vector<16x8xf32> to vector<1x1x16x8xf32>
    tpu.vector_store %arg6[%c0_477, %c10_478, %c0_479, %c0_480], %752 {strides = array<i32>} : memref<1x16x16x8xf32, #tpu.memory_space<vmem>>, vector<1x1x16x8xf32>,
    %cst_481 = arith.constant dense<0.000000e+00> : vector<8xf32>
    %753 = vector.multi_reduction <add>, %749, %cst_481 [0] : vector<16x8xf32> to vector<8xf32>
    %754 = vector.shape_cast %753 : vector<8xf32> to vector<1x8xf32>
    %755 = arith.addf %709, %754 : vector<1x8xf32>
    %756 = arith.mulf %749, %749 : vector<16x8xf32>
    %cst_482 = arith.constant dense<0.000000e+00> : vector<8xf32>
    %757 = vector.multi_reduction <add>, %756, %cst_482 [0] : vector<16x8xf32> to vector<8xf32>
    %758 = vector.shape_cast %757 : vector<8xf32> to vector<1x8xf32>
    %759 = arith.addf %713, %758 : vector<1x8xf32>
    %cst_483 = arith.constant 0.000000e+00 : f32
    %760 = vector.broadcast %cst_483 : f32 to vector<16x8xf32>
    %c11_484 = arith.constant 11 : index
    %c0_485 = arith.constant 0 : index
    %c0_486 = arith.constant 0 : index
    %761 = vector.load %arg8[%c11_484, %c0_485, %c0_486] : memref<18x18x8xf32, #tpu.memory_space<vmem>>, vector<1x18x8xf32>
    %762 = vector.shape_cast %761 : vector<1x18x8xf32> to vector<18x8xf32>
    %763 = vector.extract_strided_slice %762 {offsets = [0, 0], sizes = [16, 8], strides = [1, 1]} : vector<18x8xf32> to vector<16x8xf32>
    %cst_487 = arith.constant dense<0.000000e+00> : vector<16x8xf32>
    %764 = tpu.matmul %763, %4, %cst_487 {dimension_numbers = #tpu.dot_dimension_numbers<[1], [0], [0], [1], [0, 0, 1, 1], [], []>} : vector<16x8xf32>, vector<8x8xf32>, vector<16x8xf32> -> vector<16x8xf32>
    %765 = arith.addf %760, %764 : vector<16x8xf32>
    %766 = vector.extract_strided_slice %762 {offsets = [1, 0], sizes = [16, 8], strides = [1, 1]} : vector<18x8xf32> to vector<16x8xf32>
    %cst_488 = arith.constant dense<0.000000e+00> : vector<16x8xf32>
    %767 = tpu.matmul %766, %6, %cst_488 {dimension_numbers = #tpu.dot_dimension_numbers<[1], [0], [0], [1], [0, 0, 1, 1], [], []>} : vector<16x8xf32>, vector<8x8xf32>, vector<16x8xf32> -> vector<16x8xf32>
    %768 = arith.addf %765, %767 : vector<16x8xf32>
    %769 = vector.extract_strided_slice %762 {offsets = [2, 0], sizes = [16, 8], strides = [1, 1]} : vector<18x8xf32> to vector<16x8xf32>
    %cst_489 = arith.constant dense<0.000000e+00> : vector<16x8xf32>
    %770 = tpu.matmul %769, %8, %cst_489 {dimension_numbers = #tpu.dot_dimension_numbers<[1], [0], [0], [1], [0, 0, 1, 1], [], []>} : vector<16x8xf32>, vector<8x8xf32>, vector<16x8xf32> -> vector<16x8xf32>
    %771 = arith.addf %768, %770 : vector<16x8xf32>
    %c12_490 = arith.constant 12 : index
    %c0_491 = arith.constant 0 : index
    %c0_492 = arith.constant 0 : index
    %772 = vector.load %arg8[%c12_490, %c0_491, %c0_492] : memref<18x18x8xf32, #tpu.memory_space<vmem>>, vector<1x18x8xf32>
    %773 = vector.shape_cast %772 : vector<1x18x8xf32> to vector<18x8xf32>
    %774 = vector.extract_strided_slice %773 {offsets = [0, 0], sizes = [16, 8], strides = [1, 1]} : vector<18x8xf32> to vector<16x8xf32>
    %cst_493 = arith.constant dense<0.000000e+00> : vector<16x8xf32>
    %775 = tpu.matmul %774, %10, %cst_493 {dimension_numbers = #tpu.dot_dimension_numbers<[1], [0], [0], [1], [0, 0, 1, 1], [], []>} : vector<16x8xf32>, vector<8x8xf32>, vector<16x8xf32> -> vector<16x8xf32>
    %776 = arith.addf %771, %775 : vector<16x8xf32>
    %777 = vector.extract_strided_slice %773 {offsets = [1, 0], sizes = [16, 8], strides = [1, 1]} : vector<18x8xf32> to vector<16x8xf32>
    %cst_494 = arith.constant dense<0.000000e+00> : vector<16x8xf32>
    %778 = tpu.matmul %777, %12, %cst_494 {dimension_numbers = #tpu.dot_dimension_numbers<[1], [0], [0], [1], [0, 0, 1, 1], [], []>} : vector<16x8xf32>, vector<8x8xf32>, vector<16x8xf32> -> vector<16x8xf32>
    %779 = arith.addf %776, %778 : vector<16x8xf32>
    %780 = vector.extract_strided_slice %773 {offsets = [2, 0], sizes = [16, 8], strides = [1, 1]} : vector<18x8xf32> to vector<16x8xf32>
    %cst_495 = arith.constant dense<0.000000e+00> : vector<16x8xf32>
    %781 = tpu.matmul %780, %14, %cst_495 {dimension_numbers = #tpu.dot_dimension_numbers<[1], [0], [0], [1], [0, 0, 1, 1], [], []>} : vector<16x8xf32>, vector<8x8xf32>, vector<16x8xf32> -> vector<16x8xf32>
    %782 = arith.addf %779, %781 : vector<16x8xf32>
    %c13_496 = arith.constant 13 : index
    %c0_497 = arith.constant 0 : index
    %c0_498 = arith.constant 0 : index
    %783 = vector.load %arg8[%c13_496, %c0_497, %c0_498] : memref<18x18x8xf32, #tpu.memory_space<vmem>>, vector<1x18x8xf32>
    %784 = vector.shape_cast %783 : vector<1x18x8xf32> to vector<18x8xf32>
    %785 = vector.extract_strided_slice %784 {offsets = [0, 0], sizes = [16, 8], strides = [1, 1]} : vector<18x8xf32> to vector<16x8xf32>
    %cst_499 = arith.constant dense<0.000000e+00> : vector<16x8xf32>
    %786 = tpu.matmul %785, %16, %cst_499 {dimension_numbers = #tpu.dot_dimension_numbers<[1], [0], [0], [1], [0, 0, 1, 1], [], []>} : vector<16x8xf32>, vector<8x8xf32>, vector<16x8xf32> -> vector<16x8xf32>
    %787 = arith.addf %782, %786 : vector<16x8xf32>
    %788 = vector.extract_strided_slice %784 {offsets = [1, 0], sizes = [16, 8], strides = [1, 1]} : vector<18x8xf32> to vector<16x8xf32>
    %cst_500 = arith.constant dense<0.000000e+00> : vector<16x8xf32>
    %789 = tpu.matmul %788, %18, %cst_500 {dimension_numbers = #tpu.dot_dimension_numbers<[1], [0], [0], [1], [0, 0, 1, 1], [], []>} : vector<16x8xf32>, vector<8x8xf32>, vector<16x8xf32> -> vector<16x8xf32>
    %790 = arith.addf %787, %789 : vector<16x8xf32>
    %791 = vector.extract_strided_slice %784 {offsets = [2, 0], sizes = [16, 8], strides = [1, 1]} : vector<18x8xf32> to vector<16x8xf32>
    %cst_501 = arith.constant dense<0.000000e+00> : vector<16x8xf32>
    %792 = tpu.matmul %791, %20, %cst_501 {dimension_numbers = #tpu.dot_dimension_numbers<[1], [0], [0], [1], [0, 0, 1, 1], [], []>} : vector<16x8xf32>, vector<8x8xf32>, vector<16x8xf32> -> vector<16x8xf32>
    %793 = arith.addf %790, %792 : vector<16x8xf32>
    %794 = vector.broadcast %2 : vector<1x8xf32> to vector<16x8xf32>
    %795 = arith.addf %793, %794 : vector<16x8xf32>
    %c0_502 = arith.constant 0 : index
    %c11_503 = arith.constant 11 : index
    %c0_504 = arith.constant 0 : index
    %c0_505 = arith.constant 0 : index
    %796 = vector.load %arg6[%c0_502, %c11_503, %c0_504, %c0_505] : memref<1x16x16x8xf32, #tpu.memory_space<vmem>>, vector<1x1x16x8xf32>
    %797 = vector.shape_cast %796 : vector<1x1x16x8xf32> to vector<16x8xf32>
    %798 = vector.shape_cast %795 : vector<16x8xf32> to vector<1x1x16x8xf32>
    tpu.vector_store %arg6[%c0_502, %c11_503, %c0_504, %c0_505], %798 {strides = array<i32>} : memref<1x16x16x8xf32, #tpu.memory_space<vmem>>, vector<1x1x16x8xf32>,
    %cst_506 = arith.constant dense<0.000000e+00> : vector<8xf32>
    %799 = vector.multi_reduction <add>, %795, %cst_506 [0] : vector<16x8xf32> to vector<8xf32>
    %800 = vector.shape_cast %799 : vector<8xf32> to vector<1x8xf32>
    %801 = arith.addf %755, %800 : vector<1x8xf32>
    %802 = arith.mulf %795, %795 : vector<16x8xf32>
    %cst_507 = arith.constant dense<0.000000e+00> : vector<8xf32>
    %803 = vector.multi_reduction <add>, %802, %cst_507 [0] : vector<16x8xf32> to vector<8xf32>
    %804 = vector.shape_cast %803 : vector<8xf32> to vector<1x8xf32>
    %805 = arith.addf %759, %804 : vector<1x8xf32>
    %cst_508 = arith.constant 0.000000e+00 : f32
    %806 = vector.broadcast %cst_508 : f32 to vector<16x8xf32>
    %c12_509 = arith.constant 12 : index
    %c0_510 = arith.constant 0 : index
    %c0_511 = arith.constant 0 : index
    %807 = vector.load %arg8[%c12_509, %c0_510, %c0_511] : memref<18x18x8xf32, #tpu.memory_space<vmem>>, vector<1x18x8xf32>
    %808 = vector.shape_cast %807 : vector<1x18x8xf32> to vector<18x8xf32>
    %809 = vector.extract_strided_slice %808 {offsets = [0, 0], sizes = [16, 8], strides = [1, 1]} : vector<18x8xf32> to vector<16x8xf32>
    %cst_512 = arith.constant dense<0.000000e+00> : vector<16x8xf32>
    %810 = tpu.matmul %809, %4, %cst_512 {dimension_numbers = #tpu.dot_dimension_numbers<[1], [0], [0], [1], [0, 0, 1, 1], [], []>} : vector<16x8xf32>, vector<8x8xf32>, vector<16x8xf32> -> vector<16x8xf32>
    %811 = arith.addf %806, %810 : vector<16x8xf32>
    %812 = vector.extract_strided_slice %808 {offsets = [1, 0], sizes = [16, 8], strides = [1, 1]} : vector<18x8xf32> to vector<16x8xf32>
    %cst_513 = arith.constant dense<0.000000e+00> : vector<16x8xf32>
    %813 = tpu.matmul %812, %6, %cst_513 {dimension_numbers = #tpu.dot_dimension_numbers<[1], [0], [0], [1], [0, 0, 1, 1], [], []>} : vector<16x8xf32>, vector<8x8xf32>, vector<16x8xf32> -> vector<16x8xf32>
    %814 = arith.addf %811, %813 : vector<16x8xf32>
    %815 = vector.extract_strided_slice %808 {offsets = [2, 0], sizes = [16, 8], strides = [1, 1]} : vector<18x8xf32> to vector<16x8xf32>
    %cst_514 = arith.constant dense<0.000000e+00> : vector<16x8xf32>
    %816 = tpu.matmul %815, %8, %cst_514 {dimension_numbers = #tpu.dot_dimension_numbers<[1], [0], [0], [1], [0, 0, 1, 1], [], []>} : vector<16x8xf32>, vector<8x8xf32>, vector<16x8xf32> -> vector<16x8xf32>
    %817 = arith.addf %814, %816 : vector<16x8xf32>
    %c13_515 = arith.constant 13 : index
    %c0_516 = arith.constant 0 : index
    %c0_517 = arith.constant 0 : index
    %818 = vector.load %arg8[%c13_515, %c0_516, %c0_517] : memref<18x18x8xf32, #tpu.memory_space<vmem>>, vector<1x18x8xf32>
    %819 = vector.shape_cast %818 : vector<1x18x8xf32> to vector<18x8xf32>
    %820 = vector.extract_strided_slice %819 {offsets = [0, 0], sizes = [16, 8], strides = [1, 1]} : vector<18x8xf32> to vector<16x8xf32>
    %cst_518 = arith.constant dense<0.000000e+00> : vector<16x8xf32>
    %821 = tpu.matmul %820, %10, %cst_518 {dimension_numbers = #tpu.dot_dimension_numbers<[1], [0], [0], [1], [0, 0, 1, 1], [], []>} : vector<16x8xf32>, vector<8x8xf32>, vector<16x8xf32> -> vector<16x8xf32>
    %822 = arith.addf %817, %821 : vector<16x8xf32>
    %823 = vector.extract_strided_slice %819 {offsets = [1, 0], sizes = [16, 8], strides = [1, 1]} : vector<18x8xf32> to vector<16x8xf32>
    %cst_519 = arith.constant dense<0.000000e+00> : vector<16x8xf32>
    %824 = tpu.matmul %823, %12, %cst_519 {dimension_numbers = #tpu.dot_dimension_numbers<[1], [0], [0], [1], [0, 0, 1, 1], [], []>} : vector<16x8xf32>, vector<8x8xf32>, vector<16x8xf32> -> vector<16x8xf32>
    %825 = arith.addf %822, %824 : vector<16x8xf32>
    %826 = vector.extract_strided_slice %819 {offsets = [2, 0], sizes = [16, 8], strides = [1, 1]} : vector<18x8xf32> to vector<16x8xf32>
    %cst_520 = arith.constant dense<0.000000e+00> : vector<16x8xf32>
    %827 = tpu.matmul %826, %14, %cst_520 {dimension_numbers = #tpu.dot_dimension_numbers<[1], [0], [0], [1], [0, 0, 1, 1], [], []>} : vector<16x8xf32>, vector<8x8xf32>, vector<16x8xf32> -> vector<16x8xf32>
    %828 = arith.addf %825, %827 : vector<16x8xf32>
    %c14_521 = arith.constant 14 : index
    %c0_522 = arith.constant 0 : index
    %c0_523 = arith.constant 0 : index
    %829 = vector.load %arg8[%c14_521, %c0_522, %c0_523] : memref<18x18x8xf32, #tpu.memory_space<vmem>>, vector<1x18x8xf32>
    %830 = vector.shape_cast %829 : vector<1x18x8xf32> to vector<18x8xf32>
    %831 = vector.extract_strided_slice %830 {offsets = [0, 0], sizes = [16, 8], strides = [1, 1]} : vector<18x8xf32> to vector<16x8xf32>
    %cst_524 = arith.constant dense<0.000000e+00> : vector<16x8xf32>
    %832 = tpu.matmul %831, %16, %cst_524 {dimension_numbers = #tpu.dot_dimension_numbers<[1], [0], [0], [1], [0, 0, 1, 1], [], []>} : vector<16x8xf32>, vector<8x8xf32>, vector<16x8xf32> -> vector<16x8xf32>
    %833 = arith.addf %828, %832 : vector<16x8xf32>
    %834 = vector.extract_strided_slice %830 {offsets = [1, 0], sizes = [16, 8], strides = [1, 1]} : vector<18x8xf32> to vector<16x8xf32>
    %cst_525 = arith.constant dense<0.000000e+00> : vector<16x8xf32>
    %835 = tpu.matmul %834, %18, %cst_525 {dimension_numbers = #tpu.dot_dimension_numbers<[1], [0], [0], [1], [0, 0, 1, 1], [], []>} : vector<16x8xf32>, vector<8x8xf32>, vector<16x8xf32> -> vector<16x8xf32>
    %836 = arith.addf %833, %835 : vector<16x8xf32>
    %837 = vector.extract_strided_slice %830 {offsets = [2, 0], sizes = [16, 8], strides = [1, 1]} : vector<18x8xf32> to vector<16x8xf32>
    %cst_526 = arith.constant dense<0.000000e+00> : vector<16x8xf32>
    %838 = tpu.matmul %837, %20, %cst_526 {dimension_numbers = #tpu.dot_dimension_numbers<[1], [0], [0], [1], [0, 0, 1, 1], [], []>} : vector<16x8xf32>, vector<8x8xf32>, vector<16x8xf32> -> vector<16x8xf32>
    %839 = arith.addf %836, %838 : vector<16x8xf32>
    %840 = vector.broadcast %2 : vector<1x8xf32> to vector<16x8xf32>
    %841 = arith.addf %839, %840 : vector<16x8xf32>
    %c0_527 = arith.constant 0 : index
    %c12_528 = arith.constant 12 : index
    %c0_529 = arith.constant 0 : index
    %c0_530 = arith.constant 0 : index
    %842 = vector.load %arg6[%c0_527, %c12_528, %c0_529, %c0_530] : memref<1x16x16x8xf32, #tpu.memory_space<vmem>>, vector<1x1x16x8xf32>
    %843 = vector.shape_cast %842 : vector<1x1x16x8xf32> to vector<16x8xf32>
    %844 = vector.shape_cast %841 : vector<16x8xf32> to vector<1x1x16x8xf32>
    tpu.vector_store %arg6[%c0_527, %c12_528, %c0_529, %c0_530], %844 {strides = array<i32>} : memref<1x16x16x8xf32, #tpu.memory_space<vmem>>, vector<1x1x16x8xf32>,
    %cst_531 = arith.constant dense<0.000000e+00> : vector<8xf32>
    %845 = vector.multi_reduction <add>, %841, %cst_531 [0] : vector<16x8xf32> to vector<8xf32>
    %846 = vector.shape_cast %845 : vector<8xf32> to vector<1x8xf32>
    %847 = arith.addf %801, %846 : vector<1x8xf32>
    %848 = arith.mulf %841, %841 : vector<16x8xf32>
    %cst_532 = arith.constant dense<0.000000e+00> : vector<8xf32>
    %849 = vector.multi_reduction <add>, %848, %cst_532 [0] : vector<16x8xf32> to vector<8xf32>
    %850 = vector.shape_cast %849 : vector<8xf32> to vector<1x8xf32>
    %851 = arith.addf %805, %850 : vector<1x8xf32>
    %cst_533 = arith.constant 0.000000e+00 : f32
    %852 = vector.broadcast %cst_533 : f32 to vector<16x8xf32>
    %c13_534 = arith.constant 13 : index
    %c0_535 = arith.constant 0 : index
    %c0_536 = arith.constant 0 : index
    %853 = vector.load %arg8[%c13_534, %c0_535, %c0_536] : memref<18x18x8xf32, #tpu.memory_space<vmem>>, vector<1x18x8xf32>
    %854 = vector.shape_cast %853 : vector<1x18x8xf32> to vector<18x8xf32>
    %855 = vector.extract_strided_slice %854 {offsets = [0, 0], sizes = [16, 8], strides = [1, 1]} : vector<18x8xf32> to vector<16x8xf32>
    %cst_537 = arith.constant dense<0.000000e+00> : vector<16x8xf32>
    %856 = tpu.matmul %855, %4, %cst_537 {dimension_numbers = #tpu.dot_dimension_numbers<[1], [0], [0], [1], [0, 0, 1, 1], [], []>} : vector<16x8xf32>, vector<8x8xf32>, vector<16x8xf32> -> vector<16x8xf32>
    %857 = arith.addf %852, %856 : vector<16x8xf32>
    %858 = vector.extract_strided_slice %854 {offsets = [1, 0], sizes = [16, 8], strides = [1, 1]} : vector<18x8xf32> to vector<16x8xf32>
    %cst_538 = arith.constant dense<0.000000e+00> : vector<16x8xf32>
    %859 = tpu.matmul %858, %6, %cst_538 {dimension_numbers = #tpu.dot_dimension_numbers<[1], [0], [0], [1], [0, 0, 1, 1], [], []>} : vector<16x8xf32>, vector<8x8xf32>, vector<16x8xf32> -> vector<16x8xf32>
    %860 = arith.addf %857, %859 : vector<16x8xf32>
    %861 = vector.extract_strided_slice %854 {offsets = [2, 0], sizes = [16, 8], strides = [1, 1]} : vector<18x8xf32> to vector<16x8xf32>
    %cst_539 = arith.constant dense<0.000000e+00> : vector<16x8xf32>
    %862 = tpu.matmul %861, %8, %cst_539 {dimension_numbers = #tpu.dot_dimension_numbers<[1], [0], [0], [1], [0, 0, 1, 1], [], []>} : vector<16x8xf32>, vector<8x8xf32>, vector<16x8xf32> -> vector<16x8xf32>
    %863 = arith.addf %860, %862 : vector<16x8xf32>
    %c14_540 = arith.constant 14 : index
    %c0_541 = arith.constant 0 : index
    %c0_542 = arith.constant 0 : index
    %864 = vector.load %arg8[%c14_540, %c0_541, %c0_542] : memref<18x18x8xf32, #tpu.memory_space<vmem>>, vector<1x18x8xf32>
    %865 = vector.shape_cast %864 : vector<1x18x8xf32> to vector<18x8xf32>
    %866 = vector.extract_strided_slice %865 {offsets = [0, 0], sizes = [16, 8], strides = [1, 1]} : vector<18x8xf32> to vector<16x8xf32>
    %cst_543 = arith.constant dense<0.000000e+00> : vector<16x8xf32>
    %867 = tpu.matmul %866, %10, %cst_543 {dimension_numbers = #tpu.dot_dimension_numbers<[1], [0], [0], [1], [0, 0, 1, 1], [], []>} : vector<16x8xf32>, vector<8x8xf32>, vector<16x8xf32> -> vector<16x8xf32>
    %868 = arith.addf %863, %867 : vector<16x8xf32>
    %869 = vector.extract_strided_slice %865 {offsets = [1, 0], sizes = [16, 8], strides = [1, 1]} : vector<18x8xf32> to vector<16x8xf32>
    %cst_544 = arith.constant dense<0.000000e+00> : vector<16x8xf32>
    %870 = tpu.matmul %869, %12, %cst_544 {dimension_numbers = #tpu.dot_dimension_numbers<[1], [0], [0], [1], [0, 0, 1, 1], [], []>} : vector<16x8xf32>, vector<8x8xf32>, vector<16x8xf32> -> vector<16x8xf32>
    %871 = arith.addf %868, %870 : vector<16x8xf32>
    %872 = vector.extract_strided_slice %865 {offsets = [2, 0], sizes = [16, 8], strides = [1, 1]} : vector<18x8xf32> to vector<16x8xf32>
    %cst_545 = arith.constant dense<0.000000e+00> : vector<16x8xf32>
    %873 = tpu.matmul %872, %14, %cst_545 {dimension_numbers = #tpu.dot_dimension_numbers<[1], [0], [0], [1], [0, 0, 1, 1], [], []>} : vector<16x8xf32>, vector<8x8xf32>, vector<16x8xf32> -> vector<16x8xf32>
    %874 = arith.addf %871, %873 : vector<16x8xf32>
    %c15_546 = arith.constant 15 : index
    %c0_547 = arith.constant 0 : index
    %c0_548 = arith.constant 0 : index
    %875 = vector.load %arg8[%c15_546, %c0_547, %c0_548] : memref<18x18x8xf32, #tpu.memory_space<vmem>>, vector<1x18x8xf32>
    %876 = vector.shape_cast %875 : vector<1x18x8xf32> to vector<18x8xf32>
    %877 = vector.extract_strided_slice %876 {offsets = [0, 0], sizes = [16, 8], strides = [1, 1]} : vector<18x8xf32> to vector<16x8xf32>
    %cst_549 = arith.constant dense<0.000000e+00> : vector<16x8xf32>
    %878 = tpu.matmul %877, %16, %cst_549 {dimension_numbers = #tpu.dot_dimension_numbers<[1], [0], [0], [1], [0, 0, 1, 1], [], []>} : vector<16x8xf32>, vector<8x8xf32>, vector<16x8xf32> -> vector<16x8xf32>
    %879 = arith.addf %874, %878 : vector<16x8xf32>
    %880 = vector.extract_strided_slice %876 {offsets = [1, 0], sizes = [16, 8], strides = [1, 1]} : vector<18x8xf32> to vector<16x8xf32>
    %cst_550 = arith.constant dense<0.000000e+00> : vector<16x8xf32>
    %881 = tpu.matmul %880, %18, %cst_550 {dimension_numbers = #tpu.dot_dimension_numbers<[1], [0], [0], [1], [0, 0, 1, 1], [], []>} : vector<16x8xf32>, vector<8x8xf32>, vector<16x8xf32> -> vector<16x8xf32>
    %882 = arith.addf %879, %881 : vector<16x8xf32>
    %883 = vector.extract_strided_slice %876 {offsets = [2, 0], sizes = [16, 8], strides = [1, 1]} : vector<18x8xf32> to vector<16x8xf32>
    %cst_551 = arith.constant dense<0.000000e+00> : vector<16x8xf32>
    %884 = tpu.matmul %883, %20, %cst_551 {dimension_numbers = #tpu.dot_dimension_numbers<[1], [0], [0], [1], [0, 0, 1, 1], [], []>} : vector<16x8xf32>, vector<8x8xf32>, vector<16x8xf32> -> vector<16x8xf32>
    %885 = arith.addf %882, %884 : vector<16x8xf32>
    %886 = vector.broadcast %2 : vector<1x8xf32> to vector<16x8xf32>
    %887 = arith.addf %885, %886 : vector<16x8xf32>
    %c0_552 = arith.constant 0 : index
    %c13_553 = arith.constant 13 : index
    %c0_554 = arith.constant 0 : index
    %c0_555 = arith.constant 0 : index
    %888 = vector.load %arg6[%c0_552, %c13_553, %c0_554, %c0_555] : memref<1x16x16x8xf32, #tpu.memory_space<vmem>>, vector<1x1x16x8xf32>
    %889 = vector.shape_cast %888 : vector<1x1x16x8xf32> to vector<16x8xf32>
    %890 = vector.shape_cast %887 : vector<16x8xf32> to vector<1x1x16x8xf32>
    tpu.vector_store %arg6[%c0_552, %c13_553, %c0_554, %c0_555], %890 {strides = array<i32>} : memref<1x16x16x8xf32, #tpu.memory_space<vmem>>, vector<1x1x16x8xf32>,
    %cst_556 = arith.constant dense<0.000000e+00> : vector<8xf32>
    %891 = vector.multi_reduction <add>, %887, %cst_556 [0] : vector<16x8xf32> to vector<8xf32>
    %892 = vector.shape_cast %891 : vector<8xf32> to vector<1x8xf32>
    %893 = arith.addf %847, %892 : vector<1x8xf32>
    %894 = arith.mulf %887, %887 : vector<16x8xf32>
    %cst_557 = arith.constant dense<0.000000e+00> : vector<8xf32>
    %895 = vector.multi_reduction <add>, %894, %cst_557 [0] : vector<16x8xf32> to vector<8xf32>
    %896 = vector.shape_cast %895 : vector<8xf32> to vector<1x8xf32>
    %897 = arith.addf %851, %896 : vector<1x8xf32>
    %cst_558 = arith.constant 0.000000e+00 : f32
    %898 = vector.broadcast %cst_558 : f32 to vector<16x8xf32>
    %c14_559 = arith.constant 14 : index
    %c0_560 = arith.constant 0 : index
    %c0_561 = arith.constant 0 : index
    %899 = vector.load %arg8[%c14_559, %c0_560, %c0_561] : memref<18x18x8xf32, #tpu.memory_space<vmem>>, vector<1x18x8xf32>
    %900 = vector.shape_cast %899 : vector<1x18x8xf32> to vector<18x8xf32>
    %901 = vector.extract_strided_slice %900 {offsets = [0, 0], sizes = [16, 8], strides = [1, 1]} : vector<18x8xf32> to vector<16x8xf32>
    %cst_562 = arith.constant dense<0.000000e+00> : vector<16x8xf32>
    %902 = tpu.matmul %901, %4, %cst_562 {dimension_numbers = #tpu.dot_dimension_numbers<[1], [0], [0], [1], [0, 0, 1, 1], [], []>} : vector<16x8xf32>, vector<8x8xf32>, vector<16x8xf32> -> vector<16x8xf32>
    %903 = arith.addf %898, %902 : vector<16x8xf32>
    %904 = vector.extract_strided_slice %900 {offsets = [1, 0], sizes = [16, 8], strides = [1, 1]} : vector<18x8xf32> to vector<16x8xf32>
    %cst_563 = arith.constant dense<0.000000e+00> : vector<16x8xf32>
    %905 = tpu.matmul %904, %6, %cst_563 {dimension_numbers = #tpu.dot_dimension_numbers<[1], [0], [0], [1], [0, 0, 1, 1], [], []>} : vector<16x8xf32>, vector<8x8xf32>, vector<16x8xf32> -> vector<16x8xf32>
    %906 = arith.addf %903, %905 : vector<16x8xf32>
    %907 = vector.extract_strided_slice %900 {offsets = [2, 0], sizes = [16, 8], strides = [1, 1]} : vector<18x8xf32> to vector<16x8xf32>
    %cst_564 = arith.constant dense<0.000000e+00> : vector<16x8xf32>
    %908 = tpu.matmul %907, %8, %cst_564 {dimension_numbers = #tpu.dot_dimension_numbers<[1], [0], [0], [1], [0, 0, 1, 1], [], []>} : vector<16x8xf32>, vector<8x8xf32>, vector<16x8xf32> -> vector<16x8xf32>
    %909 = arith.addf %906, %908 : vector<16x8xf32>
    %c15_565 = arith.constant 15 : index
    %c0_566 = arith.constant 0 : index
    %c0_567 = arith.constant 0 : index
    %910 = vector.load %arg8[%c15_565, %c0_566, %c0_567] : memref<18x18x8xf32, #tpu.memory_space<vmem>>, vector<1x18x8xf32>
    %911 = vector.shape_cast %910 : vector<1x18x8xf32> to vector<18x8xf32>
    %912 = vector.extract_strided_slice %911 {offsets = [0, 0], sizes = [16, 8], strides = [1, 1]} : vector<18x8xf32> to vector<16x8xf32>
    %cst_568 = arith.constant dense<0.000000e+00> : vector<16x8xf32>
    %913 = tpu.matmul %912, %10, %cst_568 {dimension_numbers = #tpu.dot_dimension_numbers<[1], [0], [0], [1], [0, 0, 1, 1], [], []>} : vector<16x8xf32>, vector<8x8xf32>, vector<16x8xf32> -> vector<16x8xf32>
    %914 = arith.addf %909, %913 : vector<16x8xf32>
    %915 = vector.extract_strided_slice %911 {offsets = [1, 0], sizes = [16, 8], strides = [1, 1]} : vector<18x8xf32> to vector<16x8xf32>
    %cst_569 = arith.constant dense<0.000000e+00> : vector<16x8xf32>
    %916 = tpu.matmul %915, %12, %cst_569 {dimension_numbers = #tpu.dot_dimension_numbers<[1], [0], [0], [1], [0, 0, 1, 1], [], []>} : vector<16x8xf32>, vector<8x8xf32>, vector<16x8xf32> -> vector<16x8xf32>
    %917 = arith.addf %914, %916 : vector<16x8xf32>
    %918 = vector.extract_strided_slice %911 {offsets = [2, 0], sizes = [16, 8], strides = [1, 1]} : vector<18x8xf32> to vector<16x8xf32>
    %cst_570 = arith.constant dense<0.000000e+00> : vector<16x8xf32>
    %919 = tpu.matmul %918, %14, %cst_570 {dimension_numbers = #tpu.dot_dimension_numbers<[1], [0], [0], [1], [0, 0, 1, 1], [], []>} : vector<16x8xf32>, vector<8x8xf32>, vector<16x8xf32> -> vector<16x8xf32>
    %920 = arith.addf %917, %919 : vector<16x8xf32>
    %c16_571 = arith.constant 16 : index
    %c0_572 = arith.constant 0 : index
    %c0_573 = arith.constant 0 : index
    %921 = vector.load %arg8[%c16_571, %c0_572, %c0_573] : memref<18x18x8xf32, #tpu.memory_space<vmem>>, vector<1x18x8xf32>
    %922 = vector.shape_cast %921 : vector<1x18x8xf32> to vector<18x8xf32>
    %923 = vector.extract_strided_slice %922 {offsets = [0, 0], sizes = [16, 8], strides = [1, 1]} : vector<18x8xf32> to vector<16x8xf32>
    %cst_574 = arith.constant dense<0.000000e+00> : vector<16x8xf32>
    %924 = tpu.matmul %923, %16, %cst_574 {dimension_numbers = #tpu.dot_dimension_numbers<[1], [0], [0], [1], [0, 0, 1, 1], [], []>} : vector<16x8xf32>, vector<8x8xf32>, vector<16x8xf32> -> vector<16x8xf32>
    %925 = arith.addf %920, %924 : vector<16x8xf32>
    %926 = vector.extract_strided_slice %922 {offsets = [1, 0], sizes = [16, 8], strides = [1, 1]} : vector<18x8xf32> to vector<16x8xf32>
    %cst_575 = arith.constant dense<0.000000e+00> : vector<16x8xf32>
    %927 = tpu.matmul %926, %18, %cst_575 {dimension_numbers = #tpu.dot_dimension_numbers<[1], [0], [0], [1], [0, 0, 1, 1], [], []>} : vector<16x8xf32>, vector<8x8xf32>, vector<16x8xf32> -> vector<16x8xf32>
    %928 = arith.addf %925, %927 : vector<16x8xf32>
    %929 = vector.extract_strided_slice %922 {offsets = [2, 0], sizes = [16, 8], strides = [1, 1]} : vector<18x8xf32> to vector<16x8xf32>
    %cst_576 = arith.constant dense<0.000000e+00> : vector<16x8xf32>
    %930 = tpu.matmul %929, %20, %cst_576 {dimension_numbers = #tpu.dot_dimension_numbers<[1], [0], [0], [1], [0, 0, 1, 1], [], []>} : vector<16x8xf32>, vector<8x8xf32>, vector<16x8xf32> -> vector<16x8xf32>
    %931 = arith.addf %928, %930 : vector<16x8xf32>
    %932 = vector.broadcast %2 : vector<1x8xf32> to vector<16x8xf32>
    %933 = arith.addf %931, %932 : vector<16x8xf32>
    %c0_577 = arith.constant 0 : index
    %c14_578 = arith.constant 14 : index
    %c0_579 = arith.constant 0 : index
    %c0_580 = arith.constant 0 : index
    %934 = vector.load %arg6[%c0_577, %c14_578, %c0_579, %c0_580] : memref<1x16x16x8xf32, #tpu.memory_space<vmem>>, vector<1x1x16x8xf32>
    %935 = vector.shape_cast %934 : vector<1x1x16x8xf32> to vector<16x8xf32>
    %936 = vector.shape_cast %933 : vector<16x8xf32> to vector<1x1x16x8xf32>
    tpu.vector_store %arg6[%c0_577, %c14_578, %c0_579, %c0_580], %936 {strides = array<i32>} : memref<1x16x16x8xf32, #tpu.memory_space<vmem>>, vector<1x1x16x8xf32>,
    %cst_581 = arith.constant dense<0.000000e+00> : vector<8xf32>
    %937 = vector.multi_reduction <add>, %933, %cst_581 [0] : vector<16x8xf32> to vector<8xf32>
    %938 = vector.shape_cast %937 : vector<8xf32> to vector<1x8xf32>
    %939 = arith.addf %893, %938 : vector<1x8xf32>
    %940 = arith.mulf %933, %933 : vector<16x8xf32>
    %cst_582 = arith.constant dense<0.000000e+00> : vector<8xf32>
    %941 = vector.multi_reduction <add>, %940, %cst_582 [0] : vector<16x8xf32> to vector<8xf32>
    %942 = vector.shape_cast %941 : vector<8xf32> to vector<1x8xf32>
    %943 = arith.addf %897, %942 : vector<1x8xf32>
    %cst_583 = arith.constant 0.000000e+00 : f32
    %944 = vector.broadcast %cst_583 : f32 to vector<16x8xf32>
    %c15_584 = arith.constant 15 : index
    %c0_585 = arith.constant 0 : index
    %c0_586 = arith.constant 0 : index
    %945 = vector.load %arg8[%c15_584, %c0_585, %c0_586] : memref<18x18x8xf32, #tpu.memory_space<vmem>>, vector<1x18x8xf32>
    %946 = vector.shape_cast %945 : vector<1x18x8xf32> to vector<18x8xf32>
    %947 = vector.extract_strided_slice %946 {offsets = [0, 0], sizes = [16, 8], strides = [1, 1]} : vector<18x8xf32> to vector<16x8xf32>
    %cst_587 = arith.constant dense<0.000000e+00> : vector<16x8xf32>
    %948 = tpu.matmul %947, %4, %cst_587 {dimension_numbers = #tpu.dot_dimension_numbers<[1], [0], [0], [1], [0, 0, 1, 1], [], []>} : vector<16x8xf32>, vector<8x8xf32>, vector<16x8xf32> -> vector<16x8xf32>
    %949 = arith.addf %944, %948 : vector<16x8xf32>
    %950 = vector.extract_strided_slice %946 {offsets = [1, 0], sizes = [16, 8], strides = [1, 1]} : vector<18x8xf32> to vector<16x8xf32>
    %cst_588 = arith.constant dense<0.000000e+00> : vector<16x8xf32>
    %951 = tpu.matmul %950, %6, %cst_588 {dimension_numbers = #tpu.dot_dimension_numbers<[1], [0], [0], [1], [0, 0, 1, 1], [], []>} : vector<16x8xf32>, vector<8x8xf32>, vector<16x8xf32> -> vector<16x8xf32>
    %952 = arith.addf %949, %951 : vector<16x8xf32>
    %953 = vector.extract_strided_slice %946 {offsets = [2, 0], sizes = [16, 8], strides = [1, 1]} : vector<18x8xf32> to vector<16x8xf32>
    %cst_589 = arith.constant dense<0.000000e+00> : vector<16x8xf32>
    %954 = tpu.matmul %953, %8, %cst_589 {dimension_numbers = #tpu.dot_dimension_numbers<[1], [0], [0], [1], [0, 0, 1, 1], [], []>} : vector<16x8xf32>, vector<8x8xf32>, vector<16x8xf32> -> vector<16x8xf32>
    %955 = arith.addf %952, %954 : vector<16x8xf32>
    %c16_590 = arith.constant 16 : index
    %c0_591 = arith.constant 0 : index
    %c0_592 = arith.constant 0 : index
    %956 = vector.load %arg8[%c16_590, %c0_591, %c0_592] : memref<18x18x8xf32, #tpu.memory_space<vmem>>, vector<1x18x8xf32>
    %957 = vector.shape_cast %956 : vector<1x18x8xf32> to vector<18x8xf32>
    %958 = vector.extract_strided_slice %957 {offsets = [0, 0], sizes = [16, 8], strides = [1, 1]} : vector<18x8xf32> to vector<16x8xf32>
    %cst_593 = arith.constant dense<0.000000e+00> : vector<16x8xf32>
    %959 = tpu.matmul %958, %10, %cst_593 {dimension_numbers = #tpu.dot_dimension_numbers<[1], [0], [0], [1], [0, 0, 1, 1], [], []>} : vector<16x8xf32>, vector<8x8xf32>, vector<16x8xf32> -> vector<16x8xf32>
    %960 = arith.addf %955, %959 : vector<16x8xf32>
    %961 = vector.extract_strided_slice %957 {offsets = [1, 0], sizes = [16, 8], strides = [1, 1]} : vector<18x8xf32> to vector<16x8xf32>
    %cst_594 = arith.constant dense<0.000000e+00> : vector<16x8xf32>
    %962 = tpu.matmul %961, %12, %cst_594 {dimension_numbers = #tpu.dot_dimension_numbers<[1], [0], [0], [1], [0, 0, 1, 1], [], []>} : vector<16x8xf32>, vector<8x8xf32>, vector<16x8xf32> -> vector<16x8xf32>
    %963 = arith.addf %960, %962 : vector<16x8xf32>
    %964 = vector.extract_strided_slice %957 {offsets = [2, 0], sizes = [16, 8], strides = [1, 1]} : vector<18x8xf32> to vector<16x8xf32>
    %cst_595 = arith.constant dense<0.000000e+00> : vector<16x8xf32>
    %965 = tpu.matmul %964, %14, %cst_595 {dimension_numbers = #tpu.dot_dimension_numbers<[1], [0], [0], [1], [0, 0, 1, 1], [], []>} : vector<16x8xf32>, vector<8x8xf32>, vector<16x8xf32> -> vector<16x8xf32>
    %966 = arith.addf %963, %965 : vector<16x8xf32>
    %c17_596 = arith.constant 17 : index
    %c0_597 = arith.constant 0 : index
    %c0_598 = arith.constant 0 : index
    %967 = vector.load %arg8[%c17_596, %c0_597, %c0_598] : memref<18x18x8xf32, #tpu.memory_space<vmem>>, vector<1x18x8xf32>
    %968 = vector.shape_cast %967 : vector<1x18x8xf32> to vector<18x8xf32>
    %969 = vector.extract_strided_slice %968 {offsets = [0, 0], sizes = [16, 8], strides = [1, 1]} : vector<18x8xf32> to vector<16x8xf32>
    %cst_599 = arith.constant dense<0.000000e+00> : vector<16x8xf32>
    %970 = tpu.matmul %969, %16, %cst_599 {dimension_numbers = #tpu.dot_dimension_numbers<[1], [0], [0], [1], [0, 0, 1, 1], [], []>} : vector<16x8xf32>, vector<8x8xf32>, vector<16x8xf32> -> vector<16x8xf32>
    %971 = arith.addf %966, %970 : vector<16x8xf32>
    %972 = vector.extract_strided_slice %968 {offsets = [1, 0], sizes = [16, 8], strides = [1, 1]} : vector<18x8xf32> to vector<16x8xf32>
    %cst_600 = arith.constant dense<0.000000e+00> : vector<16x8xf32>
    %973 = tpu.matmul %972, %18, %cst_600 {dimension_numbers = #tpu.dot_dimension_numbers<[1], [0], [0], [1], [0, 0, 1, 1], [], []>} : vector<16x8xf32>, vector<8x8xf32>, vector<16x8xf32> -> vector<16x8xf32>
    %974 = arith.addf %971, %973 : vector<16x8xf32>
    %975 = vector.extract_strided_slice %968 {offsets = [2, 0], sizes = [16, 8], strides = [1, 1]} : vector<18x8xf32> to vector<16x8xf32>
    %cst_601 = arith.constant dense<0.000000e+00> : vector<16x8xf32>
    %976 = tpu.matmul %975, %20, %cst_601 {dimension_numbers = #tpu.dot_dimension_numbers<[1], [0], [0], [1], [0, 0, 1, 1], [], []>} : vector<16x8xf32>, vector<8x8xf32>, vector<16x8xf32> -> vector<16x8xf32>
    %977 = arith.addf %974, %976 : vector<16x8xf32>
    %978 = vector.broadcast %2 : vector<1x8xf32> to vector<16x8xf32>
    %979 = arith.addf %977, %978 : vector<16x8xf32>
    %c0_602 = arith.constant 0 : index
    %c15_603 = arith.constant 15 : index
    %c0_604 = arith.constant 0 : index
    %c0_605 = arith.constant 0 : index
    %980 = vector.load %arg6[%c0_602, %c15_603, %c0_604, %c0_605] : memref<1x16x16x8xf32, #tpu.memory_space<vmem>>, vector<1x1x16x8xf32>
    %981 = vector.shape_cast %980 : vector<1x1x16x8xf32> to vector<16x8xf32>
    %982 = vector.shape_cast %979 : vector<16x8xf32> to vector<1x1x16x8xf32>
    tpu.vector_store %arg6[%c0_602, %c15_603, %c0_604, %c0_605], %982 {strides = array<i32>} : memref<1x16x16x8xf32, #tpu.memory_space<vmem>>, vector<1x1x16x8xf32>,
    %cst_606 = arith.constant dense<0.000000e+00> : vector<8xf32>
    %983 = vector.multi_reduction <add>, %979, %cst_606 [0] : vector<16x8xf32> to vector<8xf32>
    %984 = vector.shape_cast %983 : vector<8xf32> to vector<1x8xf32>
    %985 = arith.addf %939, %984 : vector<1x8xf32>
    %986 = arith.mulf %979, %979 : vector<16x8xf32>
    %cst_607 = arith.constant dense<0.000000e+00> : vector<8xf32>
    %987 = vector.multi_reduction <add>, %986, %cst_607 [0] : vector<16x8xf32> to vector<8xf32>
    %988 = vector.shape_cast %987 : vector<8xf32> to vector<1x8xf32>
    %989 = arith.addf %943, %988 : vector<1x8xf32>
    %990 = tpu.iota {dimensions = array<i32: 0>} : vector<8x8xi32>
    %c0_i32 = arith.constant 0 : i32
    %991 = vector.broadcast %c0_i32 : i32 to vector<8x8xi32>
    %992 = arith.cmpi eq, %990, %991 : vector<8x8xi32>
    %cst_608 = arith.constant 0.000000e+00 : f32
    %993 = vector.shape_cast %985 : vector<1x8xf32> to vector<1x8xf32>
    %994 = vector.broadcast %993 : vector<1x8xf32> to vector<8x8xf32>
    %995 = vector.broadcast %cst_608 : f32 to vector<8x8xf32>
    %996 = arith.select %992, %994, %995 : vector<8x8xi1>, vector<8x8xf32>
    %c1_i32 = arith.constant 1 : i32
    %997 = vector.broadcast %c1_i32 : i32 to vector<8x8xi32>
    %998 = arith.cmpi eq, %990, %997 : vector<8x8xi32>
    %cst_609 = arith.constant 0.000000e+00 : f32
    %999 = vector.shape_cast %989 : vector<1x8xf32> to vector<1x8xf32>
    %1000 = vector.broadcast %999 : vector<1x8xf32> to vector<8x8xf32>
    %1001 = vector.broadcast %cst_609 : f32 to vector<8x8xf32>
    %1002 = arith.select %998, %1000, %1001 : vector<8x8xi1>, vector<8x8xf32>
    %1003 = arith.addf %996, %1002 : vector<8x8xf32>
    %c0_610 = arith.constant 0 : index
    %c0_611 = arith.constant 0 : index
    %c0_612 = arith.constant 0 : index
    %1004 = vector.load %arg7[%c0_610, %c0_611, %c0_612] : memref<1x8x8xf32, #tpu.memory_space<vmem>>, vector<1x8x8xf32>
    %1005 = vector.shape_cast %1004 : vector<1x8x8xf32> to vector<8x8xf32>
    %1006 = vector.shape_cast %1003 : vector<8x8xf32> to vector<1x8x8xf32>
    tpu.vector_store %arg7[%c0_610, %c0_611, %c0_612], %1006 {strides = array<i32>} : memref<1x8x8xf32, #tpu.memory_space<vmem>>, vector<1x8x8xf32>,
    return
  }
  func.func @transform_0(%arg0: i32) -> (i32, i32, i32, i32) {
    %c0_i32 = arith.constant 0 : i32
    %c0_i32_0 = arith.constant 0 : i32
    %c0_i32_1 = arith.constant 0 : i32
    %c0_i32_2 = arith.constant 0 : i32
    return %arg0, %c0_i32, %c0_i32_0, %c0_i32_1 : i32, i32, i32, i32
  }
  func.func @transform_1(%arg0: i32) -> (i32, i32) {
    %c0_i32 = arith.constant 0 : i32
    %c0_i32_0 = arith.constant 0 : i32
    %c0_i32_1 = arith.constant 0 : i32
    return %c0_i32, %c0_i32_0 : i32, i32
  }
  func.func @transform_2(%arg0: i32) -> (i32, i32) {
    %c0_i32 = arith.constant 0 : i32
    %c0_i32_0 = arith.constant 0 : i32
    %c0_i32_1 = arith.constant 0 : i32
    return %c0_i32, %c0_i32_0 : i32, i32
  }
  func.func @transform_3(%arg0: i32) -> (i32, i32, i32, i32) {
    %c0_i32 = arith.constant 0 : i32
    %c0_i32_0 = arith.constant 0 : i32
    %c0_i32_1 = arith.constant 0 : i32
    %c0_i32_2 = arith.constant 0 : i32
    %c0_i32_3 = arith.constant 0 : i32
    return %c0_i32, %c0_i32_0, %c0_i32_1, %c0_i32_2 : i32, i32, i32, i32
  }
  func.func @transform_4(%arg0: i32) -> (i32, i32) {
    %c0_i32 = arith.constant 0 : i32
    %c0_i32_0 = arith.constant 0 : i32
    %c0_i32_1 = arith.constant 0 : i32
    return %c0_i32, %c0_i32_0 : i32, i32
  }
  func.func @transform_5(%arg0: i32) -> (i32, i32, i32, i32) {
    %c0_i32 = arith.constant 0 : i32
    %c0_i32_0 = arith.constant 0 : i32
    %c0_i32_1 = arith.constant 0 : i32
    %c0_i32_2 = arith.constant 0 : i32
    return %arg0, %c0_i32, %c0_i32_0, %c0_i32_1 : i32, i32, i32, i32
  }
  func.func @transform_6(%arg0: i32) -> (i32, i32, i32) {
    %c0_i32 = arith.constant 0 : i32
    %c0_i32_0 = arith.constant 0 : i32
    %c0_i32_1 = arith.constant 0 : i32
    return %arg0, %c0_i32, %c0_i32_0 : i32, i32, i32
  }
}

module attributes {stable_mosaic.version = 11 : i64} {
  func.func @_bn_residual_relu_kernel(%arg0: i32, %arg1: memref<512x4xf32, #tpu.memory_space<vmem>>, %arg2: memref<1x4xf32, #tpu.memory_space<vmem>>, %arg3: memref<1x4xf32, #tpu.memory_space<vmem>>, %arg4: memref<512x4xf32, #tpu.memory_space<vmem>>, %arg5: memref<512x4xf32, #tpu.memory_space<vmem>>) attributes {dimension_semantics = [#tpu.dimension_semantics<parallel>], iteration_bounds = array<i64: 1>, scalar_prefetch = 0 : i64, scratch_operands = 0 : i64, tpu.core_type = #tpu.core_type<tc>, window_params = [{transform_indices = @transform_0, window_bounds = array<i64: 512, 4>}, {pipeline_mode = #tpu.pipeline_mode<synchronous>, transform_indices = @transform_1, window_bounds = array<i64: 1, 4>}, {pipeline_mode = #tpu.pipeline_mode<synchronous>, transform_indices = @transform_2, window_bounds = array<i64: 1, 4>}, {transform_indices = @transform_3, window_bounds = array<i64: 512, 4>}, {transform_indices = @transform_4, window_bounds = array<i64: 512, 4>}]} {
    %c0 = arith.constant 0 : index
    %c0_0 = arith.constant 0 : index
    %0 = vector.load %arg1[%c0, %c0_0] : memref<512x4xf32, #tpu.memory_space<vmem>>, vector<512x4xf32>
    %c0_1 = arith.constant 0 : index
    %c0_2 = arith.constant 0 : index
    %1 = vector.load %arg2[%c0_1, %c0_2] : memref<1x4xf32, #tpu.memory_space<vmem>>, vector<1x4xf32>
    %2 = vector.broadcast %1 : vector<1x4xf32> to vector<512x4xf32>
    %3 = arith.mulf %0, %2 : vector<512x4xf32>
    %c0_3 = arith.constant 0 : index
    %c0_4 = arith.constant 0 : index
    %4 = vector.load %arg3[%c0_3, %c0_4] : memref<1x4xf32, #tpu.memory_space<vmem>>, vector<1x4xf32>
    %5 = vector.broadcast %4 : vector<1x4xf32> to vector<512x4xf32>
    %6 = arith.addf %3, %5 : vector<512x4xf32>
    %c0_5 = arith.constant 0 : index
    %c0_6 = arith.constant 0 : index
    %7 = vector.load %arg4[%c0_5, %c0_6] : memref<512x4xf32, #tpu.memory_space<vmem>>, vector<512x4xf32>
    %8 = arith.addf %6, %7 : vector<512x4xf32>
    %cst = arith.constant 0.000000e+00 : f32
    %9 = vector.broadcast %cst : f32 to vector<512x4xf32>
    %10 = arith.maximumf %8, %9 : vector<512x4xf32>
    %c0_7 = arith.constant 0 : index
    %c0_8 = arith.constant 0 : index
    %11 = vector.load %arg5[%c0_7, %c0_8] : memref<512x4xf32, #tpu.memory_space<vmem>>, vector<512x4xf32>
    tpu.vector_store %arg5[%c0_7, %c0_8], %10 {strides = array<i32>} : memref<512x4xf32, #tpu.memory_space<vmem>>, vector<512x4xf32>,
    return
  }
  func.func @transform_0(%arg0: i32) -> (i32, i32) {
    %c0_i32 = arith.constant 0 : i32
    %c0_i32_0 = arith.constant 0 : i32
    return %arg0, %c0_i32 : i32, i32
  }
  func.func @transform_1(%arg0: i32) -> (i32, i32) {
    %c0_i32 = arith.constant 0 : i32
    %c0_i32_0 = arith.constant 0 : i32
    %c0_i32_1 = arith.constant 0 : i32
    return %c0_i32, %c0_i32_0 : i32, i32
  }
  func.func @transform_2(%arg0: i32) -> (i32, i32) {
    %c0_i32 = arith.constant 0 : i32
    %c0_i32_0 = arith.constant 0 : i32
    %c0_i32_1 = arith.constant 0 : i32
    return %c0_i32, %c0_i32_0 : i32, i32
  }
  func.func @transform_3(%arg0: i32) -> (i32, i32) {
    %c0_i32 = arith.constant 0 : i32
    %c0_i32_0 = arith.constant 0 : i32
    return %arg0, %c0_i32 : i32, i32
  }
  func.func @transform_4(%arg0: i32) -> (i32, i32) {
    %c0_i32 = arith.constant 0 : i32
    %c0_i32_0 = arith.constant 0 : i32
    return %arg0, %c0_i32 : i32, i32
  }
}

</mosaic_0001>

<bundles_post_ra>
// kernel: bottleneck2_forward.7
= control target key start
LH: loop header
LB: loop body
LE: loop exit
PB: predicated region body
PF: predicated region fallthrough
CT: control target
= control target key end

     0   :  { %vm415_vm0 = vcmask 31744   ;;  %s1289_s0 = inlined_call_operand.vmem [shape: f32[512,4], index: 0, kind: input, shape index: {}]   ;;  %s1290_s1 = inlined_call_operand.vmem [shape: f32[1,4], index: 1, kind: input, shape index: {}]   ;;  %s1291_s2 = inlined_call_operand.vmem [shape: f32[1,4], index: 2, kind: input, shape index: {}]   ;;  %s1292_s3 = inlined_call_operand.vmem [shape: f32[512,4], index: 3, kind: input, shape index: {}]   ;;  %s1293_s4 = inlined_call_operand.vmem [shape: f32[512,4], index: 4, kind: output, shape index: {}]  }
   0x1   :  { %v17_v0 = vld [vmem:[%s1289_s0] sm:$0xff]  ;;  %v18_v4 = vld [vmem:[%s1289_s0 + $0x8] sm:$0xff]  ;;  %v19_v7 = vld [vmem:[%s1289_s0 + $0x10] sm:$0xff] }
   0x2   :  { %v517_v1 = vld [vmem:[%s1290_s1] ss:$0 sm:$0xff]  ;;  %v20_v8 = vld [vmem:[%s1289_s0 + $0x18] sm:$0xff]  ;;  %v224_v10 = vld [vmem:[%s1292_s3 + $0x8] sm:$0xff] }
   0x3   :  { %v522_v2 = vld [vmem:[%s1291_s2] ss:$0 sm:$0xff]  ;;  %v88_v3 = vmul.f32 %v517_v1, %v17_v0  ;;  %v89_v6 = vmul.f32 %v517_v1, %v18_v4  ;;  %v90_v11 = vmul.f32 %v517_v1, %v19_v7  ;;  %v225_v12 = vld [vmem:[%s1292_s3 + $0x10] sm:$0xff]  ;;  %v91_v13 = vmul.f32 %v517_v1, %v20_v8  ;;  %v226_v16 = vld [vmem:[%s1292_s3 + $0x18] sm:$0xff] }
   0x4   :  { %v223_v5 = vld [vmem:[%s1292_s3] sm:$0xff]  ;;  %v22_v18 = vld [vmem:[%s1289_s0 + $0x28] sm:$0xff]  ;;  %v23_v19 = vld [vmem:[%s1289_s0 + $0x30] sm:$0xff] }
   0x5   :  { %v159_v9 = vadd.f32 %v522_v2, %v88_v3  ;;  %v21_v14 = vld [vmem:[%s1289_s0 + $0x20] sm:$0xff]  ;;  %v160_v15 = vadd.f32 %v522_v2, %v89_v6  ;;  %v161_v21 = vadd.f32 %v522_v2, %v90_v11  ;;  %v162_v22 = vadd.f32 %v522_v2, %v91_v13  ;;  %v24_v25 = vld [vmem:[%s1289_s0 + $0x38] sm:$0xff]  ;;  %v228_v28 = vld [vmem:[%s1292_s3 + $0x28] sm:$0xff] }
   0x6   :  { %v92_v17 = vmul.f32 %v517_v1, %v21_v14  ;;  %v227_v23 = vld [vmem:[%s1292_s3 + $0x20] sm:$0xff]  ;;  %v93_v24 = vmul.f32 %v517_v1, %v22_v18  ;;  %v94_v29 = vmul.f32 %v517_v1, %v23_v19  ;;  %v95_v30 = vmul.f32 %v517_v1, %v24_v25  ;;  %v229_v36 = vld [vmem:[%s1292_s3 + $0x30] sm:$0xff]  ;;  %v230_v37 = vld [vmem:[%s1292_s3 + $0x38] sm:$0xff] }
   0x7   :  { %v287_v20 = vadd.f32 %v223_v5, %v159_v9  ;;  %v288_v26 = vadd.f32 %v224_v10, %v160_v15  ;;  %v25_v31 = vld [vmem:[%s1289_s0 + $0x40] sm:$0xff]  ;;  %v289_v33 = vadd.f32 %v225_v12, %v161_v21  ;;  %v290_v34 = vadd.f32 %v226_v16, %v162_v22  ;;  %v26_v38 = vld [vmem:[%s1289_s0 + $0x48] sm:$0xff]  ;;  %v27_v43 = vld [vmem:[%s1289_s0 + $0x50] sm:$0xff] }
   0x8   :  { %v163_v27 = vadd.f32 %v522_v2, %v92_v17  ;;  %v164_v35 = vadd.f32 %v522_v2, %v93_v24  ;;  %v165_v41 = vadd.f32 %v522_v2, %v94_v29  ;;  %v166_v42 = vadd.f32 %v522_v2, %v95_v30  ;;  %v28_v44 = vld [vmem:[%s1289_s0 + $0x58] sm:$0xff]  ;;  %v29_v49 = vld [vmem:[%s1289_s0 + $0x60] sm:$0xff]  ;;  %v30_v55 = vld [vmem:[%s1289_s0 + $0x68] sm:$0xff] }
   0x9   :  { %v351_v32 = vmax.f32 %v287_v20, 0.0  ;;  %v352_v39 = vmax.f32 %v288_v26, 0.0  ;;  %v353_v45 = vmax.f32 %v289_v33, 0.0  ;;  %v354_v46 = vmax.f32 %v290_v34, 0.0  ;;  %v231_v53 = vld [vmem:[%s1292_s3 + $0x40] sm:$0xff]  ;;  %v232_v58 = vld [vmem:[%s1292_s3 + $0x48] sm:$0xff] }
   0xa   :  { %v291_v40 = vadd.f32 %v227_v23, %v163_v27  ;;  %v292_v47 = vadd.f32 %v228_v28, %v164_v35  ;;  %v96_v48 = vmul.f32 %v517_v1, %v25_v31  ;;  %v293_v51 = vadd.f32 %v229_v36, %v165_v41  ;;  %v31_v61 = vld [vmem:[%s1289_s0 + $0x70] sm:$0xff]  ;;  %v32_v62 = vld [vmem:[%s1289_s0 + $0x78] sm:$0xff]  ;;  %v235_v10 = vld [vmem:[%s1292_s3 + $0x60] sm:$0xff] }
   0xb   :  { %416 = vst.msk [vmem:[%s1293_s4] sm:$0xff] %vm415_vm0, %v351_v32  ;;  %417 = vst.msk [vmem:[%s1293_s4 + $0x8] sm:$0xff] %vm415_vm0, %v352_v39  ;;  %v294_v52 = vadd.f32 %v230_v37, %v166_v42  ;;  %v97_v54 = vmul.f32 %v517_v1, %v26_v38  ;;  %v98_v59 = vmul.f32 %v517_v1, %v27_v43  ;;  %v233_v4 = vld [vmem:[%s1292_s3 + $0x50] sm:$0xff]  ;;  %v234_v5 = vld [vmem:[%s1292_s3 + $0x58] sm:$0xff] }
   0xc   :  { %v355_v50 = vmax.f32 %v291_v40, 0.0  ;;  %418 = vst.msk [vmem:[%s1293_s4 + $0x10] sm:$0xff] %vm415_vm0, %v353_v45  ;;  %419 = vst.msk [vmem:[%s1293_s4 + $0x18] sm:$0xff] %vm415_vm0, %v354_v46  ;;  %v356_v56 = vmax.f32 %v292_v47, 0.0  ;;  %v167_v57 = vadd.f32 %v522_v2, %v96_v48  ;;  %v99_v60 = vmul.f32 %v517_v1, %v28_v44  ;;  %v236_v14 = vld [vmem:[%s1292_s3 + $0x68] sm:$0xff]  ;;  %v33_v17 = vld [vmem:[%s1289_s0 + $0x80] sm:$0xff] }
   0xd   :  { %v357_v63 = vmax.f32 %v293_v51, 0.0  ;;  %v358_v0 = vmax.f32 %v294_v52, 0.0  ;;  %v168_v3 = vadd.f32 %v522_v2, %v97_v54  ;;  %v100_v6 = vmul.f32 %v517_v1, %v29_v49  ;;  %v237_v22 = vld [vmem:[%s1292_s3 + $0x70] sm:$0xff]  ;;  %v238_v23 = vld [vmem:[%s1292_s3 + $0x78] sm:$0xff]  ;;  %v34_v24 = vld [vmem:[%s1289_s0 + $0x88] sm:$0xff] }
   0xe   :  { %420 = vst.msk [vmem:[%s1293_s4 + $0x20] sm:$0xff] %vm415_vm0, %v355_v50  ;;  %421 = vst.msk [vmem:[%s1293_s4 + $0x28] sm:$0xff] %vm415_vm0, %v356_v56  ;;  %v295_v7 = vadd.f32 %v231_v53, %v167_v57  ;;  %v169_v8 = vadd.f32 %v522_v2, %v98_v59  ;;  %v170_v9 = vadd.f32 %v522_v2, %v99_v60  ;;  %v35_v29 = vld [vmem:[%s1289_s0 + $0x90] sm:$0xff]  ;;  %v36_v30 = vld [vmem:[%s1289_s0 + $0x98] sm:$0xff] }
   0xf   :  { %v101_v11 = vmul.f32 %v517_v1, %v30_v55  ;;  %422 = vst.msk [vmem:[%s1293_s4 + $0x30] sm:$0xff] %vm415_vm0, %v357_v63  ;;  %423 = vst.msk [vmem:[%s1293_s4 + $0x38] sm:$0xff] %vm415_vm0, %v358_v0  ;;  %v296_v12 = vadd.f32 %v232_v58, %v168_v3  ;;  %v171_v13 = vadd.f32 %v522_v2, %v100_v6  ;;  %v37_v35 = vld [vmem:[%s1289_s0 + $0xa0] sm:$0xff]  ;;  %v38_v41 = vld [vmem:[%s1289_s0 + $0xa8] sm:$0xff] }
  0x10   :  { %v102_v15 = vmul.f32 %v517_v1, %v31_v61  ;;  %v103_v16 = vmul.f32 %v517_v1, %v32_v62  ;;  %v359_v18 = vmax.f32 %v295_v7, 0.0  ;;  %v297_v19 = vadd.f32 %v233_v4, %v169_v8  ;;  %v239_v39 = vld [vmem:[%s1292_s3 + $0x80] sm:$0xff]  ;;  %v240_v44 = vld [vmem:[%s1292_s3 + $0x88] sm:$0xff]  ;;  %v39_v47 = vld [vmem:[%s1289_s0 + $0xb0] sm:$0xff] }
  0x11   :  { %v298_v20 = vadd.f32 %v234_v5, %v170_v9  ;;  %v172_v21 = vadd.f32 %v522_v2, %v101_v11  ;;  %v360_v25 = vmax.f32 %v296_v12, 0.0  ;;  %v299_v26 = vadd.f32 %v235_v10, %v171_v13  ;;  %v40_v48 = vld [vmem:[%s1289_s0 + $0xb8] sm:$0xff]  ;;  %v241_v52 = vld [vmem:[%s1292_s3 + $0x90] sm:$0xff]  ;;  %v243_v58 = vld [vmem:[%s1292_s3 + $0xa0] sm:$0xff] }
  0x12   :  { %v173_v27 = vadd.f32 %v522_v2, %v102_v15  ;;  %v174_v28 = vadd.f32 %v522_v2, %v103_v16  ;;  %424 = vst.msk [vmem:[%s1293_s4 + $0x40] sm:$0xff] %vm415_vm0, %v359_v18  ;;  %v361_v31 = vmax.f32 %v297_v19, 0.0  ;;  %v104_v34 = vmul.f32 %v517_v1, %v33_v17  ;;  %v242_v53 = vld [vmem:[%s1292_s3 + $0x98] sm:$0xff]  ;;  %v244_v62 = vld [vmem:[%s1292_s3 + $0xa8] sm:$0xff]  ;;  %v41_v3 = vld [vmem:[%s1289_s0 + $0xc0] sm:$0xff] }
  0x13   :  { %v362_v32 = vmax.f32 %v298_v20, 0.0  ;;  %v300_v33 = vadd.f32 %v236_v14, %v172_v21  ;;  %425 = vst.msk [vmem:[%s1293_s4 + $0x48] sm:$0xff] %vm415_vm0, %v360_v25  ;;  %v363_v36 = vmax.f32 %v299_v26, 0.0  ;;  %v105_v40 = vmul.f32 %v517_v1, %v34_v24  ;;  %v245_v8 = vld [vmem:[%s1292_s3 + $0xb0] sm:$0xff]  ;;  %v246_v9 = vld [vmem:[%s1292_s3 + $0xb8] sm:$0xff]  ;;  %v42_v10 = vld [vmem:[%s1289_s0 + $0xc8] sm:$0xff] }
  0x14   :  { %v301_v37 = vadd.f32 %v237_v22, %v173_v27  ;;  %v302_v38 = vadd.f32 %v238_v23, %v174_v28  ;;  %426 = vst.msk [vmem:[%s1293_s4 + $0x50] sm:$0xff] %vm415_vm0, %v361_v31  ;;  %v175_v43 = vadd.f32 %v522_v2, %v104_v34  ;;  %v106_v45 = vmul.f32 %v517_v1, %v35_v29  ;;  %v43_v15 = vld [vmem:[%s1289_s0 + $0xd0] sm:$0xff]  ;;  %v44_v16 = vld [vmem:[%s1289_s0 + $0xd8] sm:$0xff]  ;;  %v45_v21 = vld [vmem:[%s1289_s0 + $0xe0] sm:$0xff] }
  0x15   :  { %427 = vst.msk [vmem:[%s1293_s4 + $0x58] sm:$0xff] %vm415_vm0, %v362_v32  ;;  %v364_v42 = vmax.f32 %v300_v33, 0.0  ;;  %v107_v46 = vmul.f32 %v517_v1, %v36_v30  ;;  %428 = vst.msk [vmem:[%s1293_s4 + $0x60] sm:$0xff] %vm415_vm0, %v363_v36  ;;  %v176_v51 = vadd.f32 %v522_v2, %v105_v40  ;;  %v108_v54 = vmul.f32 %v517_v1, %v37_v35  ;;  %v247_v25 = vld [vmem:[%s1292_s3 + $0xc0] sm:$0xff]  ;;  %v46_v27 = vld [vmem:[%s1289_s0 + $0xe8] sm:$0xff] }
  0x16   :  { %v365_v49 = vmax.f32 %v301_v37, 0.0  ;;  %v366_v50 = vmax.f32 %v302_v38, 0.0  ;;  %v303_v55 = vadd.f32 %v239_v39, %v175_v43  ;;  %v177_v56 = vadd.f32 %v522_v2, %v106_v45  ;;  %v248_v30 = vld [vmem:[%s1292_s3 + $0xc8] sm:$0xff]  ;;  %v47_v33 = vld [vmem:[%s1289_s0 + $0xf0] sm:$0xff]  ;;  %v48_v34 = vld [vmem:[%s1289_s0 + $0xf8] sm:$0xff] }
  0x17   :  { %429 = vst.msk [vmem:[%s1293_s4 + $0x68] sm:$0xff] %vm415_vm0, %v364_v42  ;;  %v178_v57 = vadd.f32 %v522_v2, %v107_v46  ;;  %v109_v59 = vmul.f32 %v517_v1, %v38_v41  ;;  %v304_v60 = vadd.f32 %v240_v44, %v176_v51  ;;  %v179_v61 = vadd.f32 %v522_v2, %v108_v54  ;;  %v249_v38 = vld [vmem:[%s1292_s3 + $0xd0] sm:$0xff]  ;;  %v250_v39 = vld [vmem:[%s1292_s3 + $0xd8] sm:$0xff]  ;;  %v251_v44 = vld [vmem:[%s1292_s3 + $0xe0] sm:$0xff] }
  0x18   :  { %430 = vst.msk [vmem:[%s1293_s4 + $0x70] sm:$0xff] %vm415_vm0, %v365_v49  ;;  %431 = vst.msk [vmem:[%s1293_s4 + $0x78] sm:$0xff] %vm415_vm0, %v366_v50  ;;  %v110_v63 = vmul.f32 %v517_v1, %v39_v47  ;;  %v111_v0 = vmul.f32 %v517_v1, %v40_v48  ;;  %v367_v4 = vmax.f32 %v303_v55, 0.0  ;;  %v305_v5 = vadd.f32 %v241_v52, %v177_v56  ;;  %v252_v48 = vld [vmem:[%s1292_s3 + $0xe8] sm:$0xff]  ;;  %v49_v51 = vld [vmem:[%s1289_s0 + $0x100] sm:$0xff] }
  0x19   :  { %v306_v6 = vadd.f32 %v242_v53, %v178_v57  ;;  %v180_v7 = vadd.f32 %v522_v2, %v109_v59  ;;  %v368_v11 = vmax.f32 %v304_v60, 0.0  ;;  %v307_v12 = vadd.f32 %v243_v58, %v179_v61  ;;  %v253_v56 = vld [vmem:[%s1292_s3 + $0xf0] sm:$0xff]  ;;  %v254_v57 = vld [vmem:[%s1292_s3 + $0xf8] sm:$0xff]  ;;  %v50_v58 = vld [vmem:[%s1289_s0 + $0x108] sm:$0xff] }
  0x1a   :  { %v181_v13 = vadd.f32 %v522_v2, %v110_v63  ;;  %v182_v14 = vadd.f32 %v522_v2, %v111_v0  ;;  %432 = vst.msk [vmem:[%s1293_s4 + $0x80] sm:$0xff] %vm415_vm0, %v367_v4  ;;  %v369_v17 = vmax.f32 %v305_v5, 0.0  ;;  %v112_v20 = vmul.f32 %v517_v1, %v41_v3  ;;  %v51_v63 = vld [vmem:[%s1289_s0 + $0x110] sm:$0xff]  ;;  %v52_v0 = vld [vmem:[%s1289_s0 + $0x118] sm:$0xff] }
  0x1b   :  { %v370_v18 = vmax.f32 %v306_v6, 0.0  ;;  %v308_v19 = vadd.f32 %v244_v62, %v180_v7  ;;  %433 = vst.msk [vmem:[%s1293_s4 + $0x88] sm:$0xff] %vm415_vm0, %v368_v11  ;;  %v371_v22 = vmax.f32 %v307_v12, 0.0  ;;  %v113_v26 = vmul.f32 %v517_v1, %v42_v10  ;;  %v53_v7 = vld [vmem:[%s1289_s0 + $0x120] sm:$0xff] }
  0x1c   :  { %v309_v23 = vadd.f32 %v245_v8, %v181_v13  ;;  %v310_v24 = vadd.f32 %v246_v9, %v182_v14  ;;  %434 = vst.msk [vmem:[%s1293_s4 + $0x90] sm:$0xff] %vm415_vm0, %v369_v17  ;;  %v183_v29 = vadd.f32 %v522_v2, %v112_v20  ;;  %v114_v31 = vmul.f32 %v517_v1, %v43_v15  ;;  %v255_v11 = vld [vmem:[%s1292_s3 + $0x100] sm:$0xff]  ;;  %v54_v13 = vld [vmem:[%s1289_s0 + $0x128] sm:$0xff]  ;;  %v56_v20 = vld [vmem:[%s1289_s0 + $0x138] sm:$0xff] }
  0x1d   :  { %435 = vst.msk [vmem:[%s1293_s4 + $0x98] sm:$0xff] %vm415_vm0, %v370_v18  ;;  %v372_v28 = vmax.f32 %v308_v19, 0.0  ;;  %v115_v32 = vmul.f32 %v517_v1, %v44_v16  ;;  %436 = vst.msk [vmem:[%s1293_s4 + $0xa0] sm:$0xff] %vm415_vm0, %v371_v22  ;;  %v184_v37 = vadd.f32 %v522_v2, %v113_v26  ;;  %v116_v40 = vmul.f32 %v517_v1, %v45_v21  ;;  %v256_v16 = vld [vmem:[%s1292_s3 + $0x108] sm:$0xff]  ;;  %v55_v19 = vld [vmem:[%s1289_s0 + $0x130] sm:$0xff] }
  0x1e   :  { %v373_v35 = vmax.f32 %v309_v23, 0.0  ;;  %v374_v36 = vmax.f32 %v310_v24, 0.0  ;;  %v311_v41 = vadd.f32 %v247_v25, %v183_v29  ;;  %v185_v42 = vadd.f32 %v522_v2, %v114_v31  ;;  %v257_v24 = vld [vmem:[%s1292_s3 + $0x110] sm:$0xff]  ;;  %v258_v25 = vld [vmem:[%s1292_s3 + $0x118] sm:$0xff] }
  0x1f   :  { %437 = vst.msk [vmem:[%s1293_s4 + $0xa8] sm:$0xff] %vm415_vm0, %v372_v28  ;;  %v186_v43 = vadd.f32 %v522_v2, %v115_v32  ;;  %v117_v45 = vmul.f32 %v517_v1, %v46_v27  ;;  %v312_v46 = vadd.f32 %v248_v30, %v184_v37  ;;  %v187_v47 = vadd.f32 %v522_v2, %v116_v40  ;;  %v259_v30 = vld [vmem:[%s1292_s3 + $0x120] sm:$0xff] }
  0x20   :  { %438 = vst.msk [vmem:[%s1293_s4 + $0xb0] sm:$0xff] %vm415_vm0, %v373_v35  ;;  %439 = vst.msk [vmem:[%s1293_s4 + $0xb8] sm:$0xff] %vm415_vm0, %v374_v36  ;;  %v118_v49 = vmul.f32 %v517_v1, %v47_v33  ;;  %v119_v50 = vmul.f32 %v517_v1, %v48_v34  ;;  %v375_v52 = vmax.f32 %v311_v41, 0.0  ;;  %v313_v53 = vadd.f32 %v249_v38, %v185_v42  ;;  %v260_v34 = vld [vmem:[%s1292_s3 + $0x128] sm:$0xff]  ;;  %v57_v37 = vld [vmem:[%s1289_s0 + $0x140] sm:$0xff] }
  0x21   :  { %v314_v54 = vadd.f32 %v250_v39, %v186_v43  ;;  %v188_v55 = vadd.f32 %v522_v2, %v117_v45  ;;  %v376_v59 = vmax.f32 %v312_v46, 0.0  ;;  %v315_v60 = vadd.f32 %v251_v44, %v187_v47  ;;  %v261_v42 = vld [vmem:[%s1292_s3 + $0x130] sm:$0xff]  ;;  %v262_v43 = vld [vmem:[%s1292_s3 + $0x138] sm:$0xff]  ;;  %v58_v44 = vld [vmem:[%s1289_s0 + $0x148] sm:$0xff] }
  0x22   :  { %v189_v61 = vadd.f32 %v522_v2, %v118_v49  ;;  %v190_v62 = vadd.f32 %v522_v2, %v119_v50  ;;  %440 = vst.msk [vmem:[%s1293_s4 + $0xc0] sm:$0xff] %vm415_vm0, %v375_v52  ;;  %v377_v3 = vmax.f32 %v313_v53, 0.0  ;;  %v120_v6 = vmul.f32 %v517_v1, %v49_v51  ;;  %v59_v49 = vld [vmem:[%s1289_s0 + $0x150] sm:$0xff]  ;;  %v60_v50 = vld [vmem:[%s1289_s0 + $0x158] sm:$0xff] }
  0x23   :  { %v378_v4 = vmax.f32 %v314_v54, 0.0  ;;  %v316_v5 = vadd.f32 %v252_v48, %v188_v55  ;;  %441 = vst.msk [vmem:[%s1293_s4 + $0xc8] sm:$0xff] %vm415_vm0, %v376_v59  ;;  %v379_v8 = vmax.f32 %v315_v60, 0.0  ;;  %v121_v12 = vmul.f32 %v517_v1, %v50_v58  ;;  %v61_v55 = vld [vmem:[%s1289_s0 + $0x160] sm:$0xff] }
  0x24   :  { %v317_v9 = vadd.f32 %v253_v56, %v189_v61  ;;  %v318_v10 = vadd.f32 %v254_v57, %v190_v62  ;;  %442 = vst.msk [vmem:[%s1293_s4 + $0xd0] sm:$0xff] %vm415_vm0, %v377_v3  ;;  %v191_v15 = vadd.f32 %v522_v2, %v120_v6  ;;  %v122_v17 = vmul.f32 %v517_v1, %v51_v63  ;;  %v263_v59 = vld [vmem:[%s1292_s3 + $0x140] sm:$0xff]  ;;  %v62_v61 = vld [vmem:[%s1289_s0 + $0x168] sm:$0xff]  ;;  %v64_v6 = vld [vmem:[%s1289_s0 + $0x178] sm:$0xff] }
  0x25   :  { %443 = vst.msk [vmem:[%s1293_s4 + $0xd8] sm:$0xff] %vm415_vm0, %v378_v4  ;;  %v380_v14 = vmax.f32 %v316_v5, 0.0  ;;  %v123_v18 = vmul.f32 %v517_v1, %v52_v0  ;;  %444 = vst.msk [vmem:[%s1293_s4 + $0xe0] sm:$0xff] %vm415_vm0, %v379_v8  ;;  %v192_v23 = vadd.f32 %v522_v2, %v121_v12  ;;  %v124_v26 = vmul.f32 %v517_v1, %v53_v7  ;;  %v264_v0 = vld [vmem:[%s1292_s3 + $0x148] sm:$0xff]  ;;  %v63_v5 = vld [vmem:[%s1289_s0 + $0x170] sm:$0xff] }
  0x26   :  { %v381_v21 = vmax.f32 %v317_v9, 0.0  ;;  %v382_v22 = vmax.f32 %v318_v10, 0.0  ;;  %v319_v27 = vadd.f32 %v255_v11, %v191_v15  ;;  %v193_v28 = vadd.f32 %v522_v2, %v122_v17  ;;  %v265_v10 = vld [vmem:[%s1292_s3 + $0x150] sm:$0xff]  ;;  %v266_v11 = vld [vmem:[%s1292_s3 + $0x158] sm:$0xff] }
  0x27   :  { %445 = vst.msk [vmem:[%s1293_s4 + $0xe8] sm:$0xff] %vm415_vm0, %v380_v14  ;;  %v194_v29 = vadd.f32 %v522_v2, %v123_v18  ;;  %v125_v31 = vmul.f32 %v517_v1, %v54_v13  ;;  %v320_v32 = vadd.f32 %v256_v16, %v192_v23  ;;  %v195_v33 = vadd.f32 %v522_v2, %v124_v26  ;;  %v267_v16 = vld [vmem:[%s1292_s3 + $0x160] sm:$0xff] }
  0x28   :  { %446 = vst.msk [vmem:[%s1293_s4 + $0xf0] sm:$0xff] %vm415_vm0, %v381_v21  ;;  %447 = vst.msk [vmem:[%s1293_s4 + $0xf8] sm:$0xff] %vm415_vm0, %v382_v22  ;;  %v126_v35 = vmul.f32 %v517_v1, %v55_v19  ;;  %v127_v36 = vmul.f32 %v517_v1, %v56_v20  ;;  %v383_v38 = vmax.f32 %v319_v27, 0.0  ;;  %v321_v39 = vadd.f32 %v257_v24, %v193_v28  ;;  %v268_v20 = vld [vmem:[%s1292_s3 + $0x168] sm:$0xff]  ;;  %v65_v23 = vld [vmem:[%s1289_s0 + $0x180] sm:$0xff] }
  0x29   :  { %v322_v40 = vadd.f32 %v258_v25, %v194_v29  ;;  %v196_v41 = vadd.f32 %v522_v2, %v125_v31  ;;  %v384_v45 = vmax.f32 %v320_v32, 0.0  ;;  %v323_v46 = vadd.f32 %v259_v30, %v195_v33  ;;  %v269_v28 = vld [vmem:[%s1292_s3 + $0x170] sm:$0xff]  ;;  %v270_v29 = vld [vmem:[%s1292_s3 + $0x178] sm:$0xff]  ;;  %v66_v30 = vld [vmem:[%s1289_s0 + $0x188] sm:$0xff] }
  0x2a   :  { %v197_v47 = vadd.f32 %v522_v2, %v126_v35  ;;  %v198_v48 = vadd.f32 %v522_v2, %v127_v36  ;;  %448 = vst.msk [vmem:[%s1293_s4 + $0x100] sm:$0xff] %vm415_vm0, %v383_v38  ;;  %v385_v51 = vmax.f32 %v321_v39, 0.0  ;;  %v128_v54 = vmul.f32 %v517_v1, %v57_v37  ;;  %v67_v35 = vld [vmem:[%s1289_s0 + $0x190] sm:$0xff]  ;;  %v68_v36 = vld [vmem:[%s1289_s0 + $0x198] sm:$0xff] }
  0x2b   :  { %v386_v52 = vmax.f32 %v322_v40, 0.0  ;;  %v324_v53 = vadd.f32 %v260_v34, %v196_v41  ;;  %449 = vst.msk [vmem:[%s1293_s4 + $0x108] sm:$0xff] %vm415_vm0, %v384_v45  ;;  %v387_v56 = vmax.f32 %v323_v46, 0.0  ;;  %v129_v60 = vmul.f32 %v517_v1, %v58_v44  ;;  %v69_v41 = vld [vmem:[%s1289_s0 + $0x1a0] sm:$0xff] }
  0x2c   :  { %v325_v57 = vadd.f32 %v261_v42, %v197_v47  ;;  %v326_v58 = vadd.f32 %v262_v43, %v198_v48  ;;  %450 = vst.msk [vmem:[%s1293_s4 + $0x110] sm:$0xff] %vm415_vm0, %v385_v51  ;;  %v199_v63 = vadd.f32 %v522_v2, %v128_v54  ;;  %v130_v3 = vmul.f32 %v517_v1, %v59_v49  ;;  %v271_v45 = vld [vmem:[%s1292_s3 + $0x180] sm:$0xff]  ;;  %v70_v47 = vld [vmem:[%s1289_s0 + $0x1a8] sm:$0xff]  ;;  %v72_v54 = vld [vmem:[%s1289_s0 + $0x1b8] sm:$0xff] }
  0x2d   :  { %451 = vst.msk [vmem:[%s1293_s4 + $0x118] sm:$0xff] %vm415_vm0, %v386_v52  ;;  %v388_v62 = vmax.f32 %v324_v53, 0.0  ;;  %v131_v4 = vmul.f32 %v517_v1, %v60_v50  ;;  %452 = vst.msk [vmem:[%s1293_s4 + $0x120] sm:$0xff] %vm415_vm0, %v387_v56  ;;  %v200_v9 = vadd.f32 %v522_v2, %v129_v60  ;;  %v132_v12 = vmul.f32 %v517_v1, %v61_v55  ;;  %v272_v50 = vld [vmem:[%s1292_s3 + $0x188] sm:$0xff]  ;;  %v71_v53 = vld [vmem:[%s1289_s0 + $0x1b0] sm:$0xff] }
  0x2e   :  { %v389_v7 = vmax.f32 %v325_v57, 0.0  ;;  %v390_v8 = vmax.f32 %v326_v58, 0.0  ;;  %v327_v13 = vadd.f32 %v263_v59, %v199_v63  ;;  %v201_v14 = vadd.f32 %v522_v2, %v130_v3  ;;  %v273_v58 = vld [vmem:[%s1292_s3 + $0x190] sm:$0xff]  ;;  %v274_v59 = vld [vmem:[%s1292_s3 + $0x198] sm:$0xff] }
  0x2f   :  { %453 = vst.msk [vmem:[%s1293_s4 + $0x128] sm:$0xff] %vm415_vm0, %v388_v62  ;;  %v202_v15 = vadd.f32 %v522_v2, %v131_v4  ;;  %v133_v17 = vmul.f32 %v517_v1, %v62_v61  ;;  %v328_v18 = vadd.f32 %v264_v0, %v200_v9  ;;  %v203_v19 = vadd.f32 %v522_v2, %v132_v12  ;;  %v275_v0 = vld [vmem:[%s1292_s3 + $0x1a0] sm:$0xff] }
  0x30   :  { %454 = vst.msk [vmem:[%s1293_s4 + $0x130] sm:$0xff] %vm415_vm0, %v389_v7  ;;  %455 = vst.msk [vmem:[%s1293_s4 + $0x138] sm:$0xff] %vm415_vm0, %v390_v8  ;;  %v134_v21 = vmul.f32 %v517_v1, %v63_v5  ;;  %v135_v22 = vmul.f32 %v517_v1, %v64_v6  ;;  %v391_v24 = vmax.f32 %v327_v13, 0.0  ;;  %v329_v25 = vadd.f32 %v265_v10, %v201_v14  ;;  %v276_v6 = vld [vmem:[%s1292_s3 + $0x1a8] sm:$0xff]  ;;  %v73_v9 = vld [vmem:[%s1289_s0 + $0x1c0] sm:$0xff] }
  0x31   :  { %v330_v26 = vadd.f32 %v266_v11, %v202_v15  ;;  %v204_v27 = vadd.f32 %v522_v2, %v133_v17  ;;  %v392_v31 = vmax.f32 %v328_v18, 0.0  ;;  %v331_v32 = vadd.f32 %v267_v16, %v203_v19  ;;  %v277_v14 = vld [vmem:[%s1292_s3 + $0x1b0] sm:$0xff]  ;;  %v278_v15 = vld [vmem:[%s1292_s3 + $0x1b8] sm:$0xff]  ;;  %v74_v16 = vld [vmem:[%s1289_s0 + $0x1c8] sm:$0xff] }
  0x32   :  { %v205_v33 = vadd.f32 %v522_v2, %v134_v21  ;;  %v206_v34 = vadd.f32 %v522_v2, %v135_v22  ;;  %456 = vst.msk [vmem:[%s1293_s4 + $0x140] sm:$0xff] %vm415_vm0, %v391_v24  ;;  %v393_v37 = vmax.f32 %v329_v25, 0.0  ;;  %v136_v40 = vmul.f32 %v517_v1, %v65_v23  ;;  %v75_v21 = vld [vmem:[%s1289_s0 + $0x1d0] sm:$0xff]  ;;  %v76_v22 = vld [vmem:[%s1289_s0 + $0x1d8] sm:$0xff] }
  0x33   :  { %v394_v38 = vmax.f32 %v330_v26, 0.0  ;;  %v332_v39 = vadd.f32 %v268_v20, %v204_v27  ;;  %457 = vst.msk [vmem:[%s1293_s4 + $0x148] sm:$0xff] %vm415_vm0, %v392_v31  ;;  %v395_v42 = vmax.f32 %v331_v32, 0.0  ;;  %v137_v46 = vmul.f32 %v517_v1, %v66_v30  ;;  %v77_v27 = vld [vmem:[%s1289_s0 + $0x1e0] sm:$0xff] }
  0x34   :  { %v333_v43 = vadd.f32 %v269_v28, %v205_v33  ;;  %v334_v44 = vadd.f32 %v270_v29, %v206_v34  ;;  %458 = vst.msk [vmem:[%s1293_s4 + $0x150] sm:$0xff] %vm415_vm0, %v393_v37  ;;  %v207_v49 = vadd.f32 %v522_v2, %v136_v40  ;;  %v138_v51 = vmul.f32 %v517_v1, %v67_v35  ;;  %v279_v31 = vld [vmem:[%s1292_s3 + $0x1c0] sm:$0xff]  ;;  %v78_v33 = vld [vmem:[%s1289_s0 + $0x1e8] sm:$0xff]  ;;  %v80_v40 = vld [vmem:[%s1289_s0 + $0x1f8] sm:$0xff] }
  0x35   :  { %459 = vst.msk [vmem:[%s1293_s4 + $0x158] sm:$0xff] %vm415_vm0, %v394_v38  ;;  %v396_v48 = vmax.f32 %v332_v39, 0.0  ;;  %v139_v52 = vmul.f32 %v517_v1, %v68_v36  ;;  %460 = vst.msk [vmem:[%s1293_s4 + $0x160] sm:$0xff] %vm415_vm0, %v395_v42  ;;  %v208_v57 = vadd.f32 %v522_v2, %v137_v46  ;;  %v140_v60 = vmul.f32 %v517_v1, %v69_v41  ;;  %v280_v36 = vld [vmem:[%s1292_s3 + $0x1c8] sm:$0xff]  ;;  %v79_v39 = vld [vmem:[%s1289_s0 + $0x1f0] sm:$0xff] }
  0x36   :  { %v397_v55 = vmax.f32 %v333_v43, 0.0  ;;  %v398_v56 = vmax.f32 %v334_v44, 0.0  ;;  %v335_v61 = vadd.f32 %v271_v45, %v207_v49  ;;  %v209_v62 = vadd.f32 %v522_v2, %v138_v51  ;;  %v281_v44 = vld [vmem:[%s1292_s3 + $0x1d0] sm:$0xff]  ;;  %v282_v45 = vld [vmem:[%s1292_s3 + $0x1d8] sm:$0xff] }
  0x37   :  { %461 = vst.msk [vmem:[%s1293_s4 + $0x168] sm:$0xff] %vm415_vm0, %v396_v48  ;;  %v210_v63 = vadd.f32 %v522_v2, %v139_v52  ;;  %v141_v3 = vmul.f32 %v517_v1, %v70_v47  ;;  %v336_v4 = vadd.f32 %v272_v50, %v208_v57  ;;  %v211_v5 = vadd.f32 %v522_v2, %v140_v60  ;;  %v283_v50 = vld [vmem:[%s1292_s3 + $0x1e0] sm:$0xff] }
  0x38   :  { %462 = vst.msk [vmem:[%s1293_s4 + $0x170] sm:$0xff] %vm415_vm0, %v397_v55  ;;  %463 = vst.msk [vmem:[%s1293_s4 + $0x178] sm:$0xff] %vm415_vm0, %v398_v56  ;;  %v142_v7 = vmul.f32 %v517_v1, %v71_v53  ;;  %v143_v8 = vmul.f32 %v517_v1, %v72_v54  ;;  %v399_v10 = vmax.f32 %v335_v61, 0.0  ;;  %v337_v11 = vadd.f32 %v273_v58, %v209_v62  ;;  %v284_v54 = vld [vmem:[%s1292_s3 + $0x1e8] sm:$0xff]  ;;  %v285_v61 = vld [vmem:[%s1292_s3 + $0x1f0] sm:$0xff] }
  0x39   :  { %v338_v12 = vadd.f32 %v274_v59, %v210_v63  ;;  %v212_v13 = vadd.f32 %v522_v2, %v141_v3  ;;  %v400_v17 = vmax.f32 %v336_v4, 0.0  ;;  %v339_v18 = vadd.f32 %v275_v0, %v211_v5  ;;  %v286_v62 = vld [vmem:[%s1292_s3 + $0x1f8] sm:$0xff] }
  0x3a   :  { %v213_v19 = vadd.f32 %v522_v2, %v142_v7  ;;  %v214_v20 = vadd.f32 %v522_v2, %v143_v8  ;;  %464 = vst.msk [vmem:[%s1293_s4 + $0x180] sm:$0xff] %vm415_vm0, %v399_v10  ;;  %v401_v23 = vmax.f32 %v337_v11, 0.0  ;;  %v144_v26 = vmul.f32 %v517_v1, %v73_v9 }
  0x3b   :  { %v402_v24 = vmax.f32 %v338_v12, 0.0  ;;  %v340_v25 = vadd.f32 %v276_v6, %v212_v13  ;;  %465 = vst.msk [vmem:[%s1293_s4 + $0x188] sm:$0xff] %vm415_vm0, %v400_v17  ;;  %v403_v28 = vmax.f32 %v339_v18, 0.0  ;;  %v145_v32 = vmul.f32 %v517_v1, %v74_v16 }
  0x3c   :  { %v341_v29 = vadd.f32 %v277_v14, %v213_v19  ;;  %v342_v30 = vadd.f32 %v278_v15, %v214_v20  ;;  %466 = vst.msk [vmem:[%s1293_s4 + $0x190] sm:$0xff] %vm415_vm0, %v401_v23  ;;  %v215_v35 = vadd.f32 %v522_v2, %v144_v26  ;;  %v146_v37 = vmul.f32 %v517_v1, %v75_v21 }
  0x3d   :  { %467 = vst.msk [vmem:[%s1293_s4 + $0x198] sm:$0xff] %vm415_vm0, %v402_v24  ;;  %v404_v34 = vmax.f32 %v340_v25, 0.0  ;;  %v147_v38 = vmul.f32 %v517_v1, %v76_v22  ;;  %468 = vst.msk [vmem:[%s1293_s4 + $0x1a0] sm:$0xff] %vm415_vm0, %v403_v28  ;;  %v216_v43 = vadd.f32 %v522_v2, %v145_v32  ;;  %v148_v46 = vmul.f32 %v517_v1, %v77_v27 }
  0x3e   :  { %v405_v41 = vmax.f32 %v341_v29, 0.0  ;;  %v406_v42 = vmax.f32 %v342_v30, 0.0  ;;  %v343_v47 = vadd.f32 %v279_v31, %v215_v35  ;;  %v217_v48 = vadd.f32 %v522_v2, %v146_v37 }
  0x3f   :  { %469 = vst.msk [vmem:[%s1293_s4 + $0x1a8] sm:$0xff] %vm415_vm0, %v404_v34  ;;  %v218_v49 = vadd.f32 %v522_v2, %v147_v38  ;;  %v149_v51 = vmul.f32 %v517_v1, %v78_v33  ;;  %v344_v52 = vadd.f32 %v280_v36, %v216_v43  ;;  %v219_v53 = vadd.f32 %v522_v2, %v148_v46 }
  0x40   :  { %470 = vst.msk [vmem:[%s1293_s4 + $0x1b0] sm:$0xff] %vm415_vm0, %v405_v41  ;;  %471 = vst.msk [vmem:[%s1293_s4 + $0x1b8] sm:$0xff] %vm415_vm0, %v406_v42  ;;  %v150_v55 = vmul.f32 %v517_v1, %v79_v39  ;;  %v151_v56 = vmul.f32 %v517_v1, %v80_v40  ;;  %v407_v57 = vmax.f32 %v343_v47, 0.0  ;;  %v345_v58 = vadd.f32 %v281_v44, %v217_v48 }
  0x41   :  { %v346_v59 = vadd.f32 %v282_v45, %v218_v49  ;;  %v220_v60 = vadd.f32 %v522_v2, %v149_v51  ;;  %v408_v63 = vmax.f32 %v344_v52, 0.0  ;;  %v347_v0 = vadd.f32 %v283_v50, %v219_v53 }
  0x42   :  { %v221_v3 = vadd.f32 %v522_v2, %v150_v55  ;;  %v222_v4 = vadd.f32 %v522_v2, %v151_v56  ;;  %472 = vst.msk [vmem:[%s1293_s4 + $0x1c0] sm:$0xff] %vm415_vm0, %v407_v57  ;;  %v409_v1 = vmax.f32 %v345_v58, 0.0 }
  0x43   :  { %v410_v5 = vmax.f32 %v346_v59, 0.0  ;;  %v348_v6 = vadd.f32 %v284_v54, %v220_v60  ;;  %473 = vst.msk [vmem:[%s1293_s4 + $0x1c8] sm:$0xff] %vm415_vm0, %v408_v63  ;;  %v411_v7 = vmax.f32 %v347_v0, 0.0 }
  0x44   :  { %v349_v8 = vadd.f32 %v285_v61, %v221_v3  ;;  %v350_v9 = vadd.f32 %v286_v62, %v222_v4  ;;  %474 = vst.msk [vmem:[%s1293_s4 + $0x1d0] sm:$0xff] %vm415_vm0, %v409_v1 }
  0x45   :  { %475 = vst.msk [vmem:[%s1293_s4 + $0x1d8] sm:$0xff] %vm415_vm0, %v410_v5  ;;  %v412_v2 = vmax.f32 %v348_v6, 0.0  ;;  %476 = vst.msk [vmem:[%s1293_s4 + $0x1e0] sm:$0xff] %vm415_vm0, %v411_v7 }
  0x46   :  { %v413_v10 = vmax.f32 %v349_v8, 0.0  ;;  %v414_v11 = vmax.f32 %v350_v9, 0.0 }
  0x47   :  { %477 = vst.msk [vmem:[%s1293_s4 + $0x1e8] sm:$0xff] %vm415_vm0, %v412_v2 }
  0x48   :  { %478 = vst.msk [vmem:[%s1293_s4 + $0x1f0] sm:$0xff] %vm415_vm0, %v413_v10  ;;  %479 = vst.msk [vmem:[%s1293_s4 + $0x1f8] sm:$0xff] %vm415_vm0, %v414_v11 }

// kernel: bottleneck2_forward.6
= control target key start
LH: loop header
LB: loop body
LE: loop exit
PB: predicated region body
PF: predicated region fallthrough
CT: control target
= control target key end

     0   :  { %vm300_vm0 = vcmask 64512   ;;  %vm878_vm1 = vcmask 31744   ;;  %s2725_s3 = inlined_call_operand.vmem [shape: f32[8,4], index: 3, kind: input, shape index: {}]   ;;  %s2726_s0 = inlined_call_operand.vmem [shape: f32[512,8], index: 0, kind: input, shape index: {}]   ;;  %s2727_s1 = inlined_call_operand.vmem [shape: f32[1,8], index: 1, kind: input, shape index: {}]   ;;  %s2728_s2 = inlined_call_operand.vmem [shape: f32[1,8], index: 2, kind: input, shape index: {}]   ;;  %s2729_s4 = inlined_call_operand.vmem [shape: f32[1,4], index: 4, kind: input, shape index: {}]   ;;  %s2730_s5 = inlined_call_operand.vmem [shape: f32[512,4], index: 5, kind: output, shape index: {0}]   ;;  %s2731_s6 = inlined_call_operand.vmem [shape: f32[1,8,4], index: 6, kind: output, shape index: {1}]  }
   0x1   :  { %v292_v0 = vld [vmem:[%s2725_s3] sm:$0xff]  ;;  %v23_v5 = vld [vmem:[%s2726_s0 + $0x8] sm:$0xff]  ;;  %v24_v6 = vld [vmem:[%s2726_s0 + $0x10] sm:$0xff] }
   0x2   :  { %v22_v1 = vld [vmem:[%s2726_s0] sm:$0xff]  ;;  %1421 = vmatprep.subr.mxu0 %v292_v0  ;;  %1519 = vmatprep.subr.mxu1 %v292_v0  ;;  %v25_v9 = vld [vmem:[%s2726_s0 + $0x18] sm:$0xff]  ;;  %v27_v11 = vld [vmem:[%s2726_s0 + $0x28] sm:$0xff] }
   0x3   :  { %v1565_v2 = vld [vmem:[%s2727_s1] ss:$0 sm:$0xff]  ;;  %1422 = vmatpush3.msra.mxu0 %v292_v0  ;;  %1520 = vmatpush3.msra.mxu1 %v292_v0  ;;  %v28_v15 = vld [vmem:[%s2726_s0 + $0x30] sm:$0xff]  ;;  %v29_v19 = vld [vmem:[%s2726_s0 + $0x38] sm:$0xff] }
   0x4   :  { %v93_v3 = vmul.f32 %v1565_v2, %v22_v1  ;;  %v1571_v4 = vld [vmem:[%s2728_s2] ss:$0 sm:$0xff]  ;;  %v94_v7 = vmul.f32 %v1565_v2, %v23_v5  ;;  %v95_v8 = vmul.f32 %v1565_v2, %v24_v6  ;;  %v96_v13 = vmul.f32 %v1565_v2, %v25_v9  ;;  %v31_v33 = vld [vmem:[%s2726_s0 + $0x48] sm:$0xff]  ;;  %v32_v34 = vld [vmem:[%s2726_s0 + $0x50] sm:$0xff] }
   0x5   :  { %v26_v10 = vld [vmem:[%s2726_s0 + $0x20] sm:$0xff]  ;;  %v98_v18 = vmul.f32 %v1565_v2, %v27_v11  ;;  %v99_v23 = vmul.f32 %v1565_v2, %v28_v15  ;;  %v100_v27 = vmul.f32 %v1565_v2, %v29_v19  ;;  %v102_v37 = vmul.f32 %v1565_v2, %v31_v33  ;;  %v33_v41 = vld [vmem:[%s2726_s0 + $0x58] sm:$0xff]  ;;  %v35_v43 = vld [vmem:[%s2726_s0 + $0x68] sm:$0xff] }
   0x6   :  { %v164_v12 = vadd.f32 %v1571_v4, %v93_v3  ;;  %v97_v14 = vmul.f32 %v1565_v2, %v26_v10  ;;  %v165_v16 = vadd.f32 %v1571_v4, %v94_v7  ;;  %v166_v17 = vadd.f32 %v1571_v4, %v95_v8  ;;  %v30_v26 = vld [vmem:[%s2726_s0 + $0x40] sm:$0xff]  ;;  %v36_v44 = vld [vmem:[%s2726_s0 + $0x70] sm:$0xff]  ;;  %v37_v50 = vld [vmem:[%s2726_s0 + $0x78] sm:$0xff] }
   0x7   :  { %v167_v21 = vadd.f32 %v1571_v4, %v96_v13  ;;  %v169_v29 = vadd.f32 %v1571_v4, %v98_v18  ;;  %v170_v31 = vadd.f32 %v1571_v4, %v99_v23  ;;  %v101_v32 = vmul.f32 %v1565_v2, %v30_v26  ;;  %v34_v42 = vld [vmem:[%s2726_s0 + $0x60] sm:$0xff]  ;;  %v39_v63 = vld [vmem:[%s2726_s0 + $0x88] sm:$0xff]  ;;  %v40_v0 = vld [vmem:[%s2726_s0 + $0x90] sm:$0xff] }
   0x8   :  { %v228_v20 = vmax.f32 %v164_v12, 0.0  ;;  %v168_v22 = vadd.f32 %v1571_v4, %v97_v14  ;;  %v229_v24 = vmax.f32 %v165_v16, 0.0  ;;  %v230_v25 = vmax.f32 %v166_v17, 0.0  ;;  %v38_v55 = vld [vmem:[%s2726_s0 + $0x80] sm:$0xff]  ;;  %v41_v3 = vld [vmem:[%s2726_s0 + $0x98] sm:$0xff]  ;;  %v55_v5 = vld [vmem:[%s2726_s0 + $0x108] sm:$0xff] }
   0x9   :  { %v231_v28 = vmax.f32 %v167_v21, 0.0  ;;  %v171_v35 = vadd.f32 %v1571_v4, %v100_v27  ;;  %v233_v36 = vmax.f32 %v169_v29, 0.0  ;;  %v234_v38 = vmax.f32 %v170_v31, 0.0  ;;  %v54_v1 = vld [vmem:[%s2726_s0 + $0x100] sm:$0xff]  ;;  %v56_v6 = vld [vmem:[%s2726_s0 + $0x110] sm:$0xff]  ;;  %v57_v12 = vld [vmem:[%s2726_s0 + $0x118] sm:$0xff] }
   0xa   :  { %1423 = vmatprep.mubr.msk.f32.mxu0 %vm300_vm0, %v228_v20  ;;  %v232_v30 = vmax.f32 %v168_v22, 0.0  ;;  %v172_v39 = vadd.f32 %v1571_v4, %v101_v32  ;;  %v103_v40 = vmul.f32 %v1565_v2, %v32_v34  ;;  %v173_v46 = vadd.f32 %v1571_v4, %v102_v37  ;;  %v42_v11 = vld [vmem:[%s2726_s0 + $0xa0] sm:$0xff]  ;;  %v43_v17 = vld [vmem:[%s2726_s0 + $0xa8] sm:$0xff]  ;;  %v44_v26 = vld [vmem:[%s2726_s0 + $0xb0] sm:$0xff] }
   0xb   :  { %1424 = vmatmul.mubr.msk.f32.vlgmr.msra.gmra.mxu0 %vm300_vm0, %v229_v24  ;;  %v235_v45 = vmax.f32 %v171_v35, 0.0  ;;  %v104_v47 = vmul.f32 %v1565_v2, %v33_v41  ;;  %v105_v48 = vmul.f32 %v1565_v2, %v34_v42  ;;  %v106_v49 = vmul.f32 %v1565_v2, %v35_v43  ;;  %v58_v13 = vld [vmem:[%s2726_s0 + $0x120] sm:$0xff]  ;;  %v59_v19 = vld [vmem:[%s2726_s0 + $0x128] sm:$0xff]  ;;  %v60_v24 = vld [vmem:[%s2726_s0 + $0x130] sm:$0xff] }
   0xc   :  { %1426 = vmatprep.mubr.msk.f32.mxu0 %vm300_vm0, %v230_v25  ;;  %v236_v51 = vmax.f32 %v172_v39, 0.0  ;;  %v174_v52 = vadd.f32 %v1571_v4, %v103_v40  ;;  %v107_v53 = vmul.f32 %v1565_v2, %v36_v44  ;;  %v108_v54 = vmul.f32 %v1565_v2, %v37_v50  ;;  %v45_v27 = vld [vmem:[%s2726_s0 + $0xb8] sm:$0xff]  ;;  %v62_v44 = vld [vmem:[%s2726_s0 + $0x140] sm:$0xff] }
   0xd   :  { %v237_v56 = vmax.f32 %v173_v46, 0.0  ;;  %v175_v57 = vadd.f32 %v1571_v4, %v104_v47  ;;  %v176_v58 = vadd.f32 %v1571_v4, %v105_v48  ;;  %v177_v59 = vadd.f32 %v1571_v4, %v106_v49  ;;  %v61_v39 = vld [vmem:[%s2726_s0 + $0x138] sm:$0xff]  ;;  %v46_v49 = vld [vmem:[%s2726_s0 + $0xc0] sm:$0xff] }
   0xe   :  { %v238_v60 = vmax.f32 %v174_v52, 0.0  ;;  %v1660_v61 = vadd.f32 %v1571_v4, %v107_v53  ;;  %v109_v62 = vmul.f32 %v1565_v2, %v38_v55  ;;  %v1683_v10 = vadd.f32 %v1571_v4, %v108_v54  ;;  %v47_v55 = vld [vmem:[%s2726_s0 + $0xc8] sm:$0xff] }
   0xf   :  { %1427 = vmatmul.mubr.msk.f32.gmra.mxu0 %vm300_vm0, %v231_v28  ;;  %v239_v7 = vmax.f32 %v175_v57, 0.0  ;;  %v240_v8 = vmax.f32 %v176_v58, 0.0  ;;  %v241_v9 = vmax.f32 %v177_v59, 0.0  ;;  %v110_v15 = vmul.f32 %v1565_v2, %v39_v63  ;;  %v63_v59 = vld [vmem:[%s2726_s0 + $0x148] sm:$0xff] }
  0x10   :  { %1429 = vmatprep.mubr.msk.f32.mxu0 %vm300_vm0, %v232_v30  ;;  %v242_v14 = vmax.f32 %v1660_v61, 0.0  ;;  %v111_v16 = vmul.f32 %v1565_v2, %v40_v0  ;;  %v125_v18 = vmul.f32 %v1565_v2, %v54_v1  ;;  %v1706_v20 = vadd.f32 %v1571_v4, %v109_v62  ;;  %v48_v0 = vld [vmem:[%s2726_s0 + $0xd0] sm:$0xff] }
  0x11   :  { %v112_v21 = vmul.f32 %v1565_v2, %v41_v3  ;;  %v126_v22 = vmul.f32 %v1565_v2, %v55_v5  ;;  %v127_v23 = vmul.f32 %v1565_v2, %v56_v6  ;;  %v113_v25 = vmul.f32 %v1565_v2, %v42_v11  ;;  %v64_v1 = vld [vmem:[%s2726_s0 + $0x150] sm:$0xff] }
  0x12   :  { %v196_v28 = vadd.f32 %v1571_v4, %v125_v18  ;;  %v128_v29 = vmul.f32 %v1565_v2, %v57_v12  ;;  %v129_v30 = vmul.f32 %v1565_v2, %v58_v13  ;;  %v114_v31 = vmul.f32 %v1565_v2, %v43_v17 }
  0x13   :  { %1430 = vmatmul.mubr.msk.f32.gmra.mxu0 %vm300_vm0, %v233_v36  ;;  %v197_v32 = vadd.f32 %v1571_v4, %v126_v22  ;;  %v198_v33 = vadd.f32 %v1571_v4, %v127_v23  ;;  %v130_v34 = vmul.f32 %v1565_v2, %v59_v19  ;;  %v115_v40 = vmul.f32 %v1565_v2, %v44_v26 }
  0x14   :  { %1432 = vmatprep.mubr.msk.f32.mxu0 %vm300_vm0, %v234_v38  ;;  %v260_v35 = vmax.f32 %v196_v28, 0.0  ;;  %v199_v36 = vadd.f32 %v1571_v4, %v128_v29  ;;  %v200_v37 = vadd.f32 %v1571_v4, %v129_v30  ;;  %v131_v38 = vmul.f32 %v1565_v2, %v60_v24  ;;  %v67_v30 = vld [vmem:[%s2726_s0 + $0x168] sm:$0xff] }
  0x15   :  { %v116_v41 = vmul.f32 %v1565_v2, %v45_v27  ;;  %v261_v42 = vmax.f32 %v197_v32, 0.0  ;;  %v262_v43 = vmax.f32 %v198_v33, 0.0  ;;  %v1743_v46 = vadd.f32 %v1571_v4, %v111_v16  ;;  %v77_v32 = vld [vmem:[%s2726_s0 + $0x1b8] sm:$0xff] }
  0x16   :  { %v1746_v47 = vadd.f32 %v1571_v4, %v112_v21  ;;  %v1749_v48 = vadd.f32 %v1571_v4, %v113_v25  ;;  %1471 = vmatprep.mubr.msk.f32.mxu1 %vm300_vm0, %v260_v35  ;;  %v243_v50 = vmax.f32 %v1683_v10, 0.0  ;;  %v201_v52 = vadd.f32 %v1571_v4, %v130_v34  ;;  %v50_v10 = vld [vmem:[%s2726_s0 + $0xe0] sm:$0xff]  ;;  %v76_v25 = vld [vmem:[%s2726_s0 + $0x1b0] sm:$0xff] }
  0x17   :  { %1433 = vmatmul.mubr.msk.f32.gmra.mxu0 %vm300_vm0, %v235_v45  ;;  %v181_v45 = vadd.f32 %v1571_v4, %v110_v15  ;;  %1472 = vmatmul.mubr.msk.f32.vlgmr.msra.gmra.mxu1 %vm300_vm0, %v261_v42  ;;  %v132_v53 = vmul.f32 %v1565_v2, %v61_v39  ;;  %v244_v54 = vmax.f32 %v1706_v20, 0.0  ;;  %v202_v57 = vadd.f32 %v1571_v4, %v131_v38  ;;  %v66_v15 = vld [vmem:[%s2726_s0 + $0x160] sm:$0xff]  ;;  %v75_v20 = vld [vmem:[%s2726_s0 + $0x1a8] sm:$0xff] }
  0x18   :  { %1435 = vmatprep.mubr.msk.f32.mxu0 %vm300_vm0, %v236_v51  ;;  %v263_v51 = vmax.f32 %v199_v36, 0.0  ;;  %1474 = vmatprep.mubr.msk.f32.mxu1 %vm300_vm0, %v262_v43  ;;  %v133_v58 = vmul.f32 %v1565_v2, %v62_v44  ;;  %v1775_v61 = vadd.f32 %v1571_v4, %v115_v40  ;;  %v1778_v62 = vadd.f32 %v1571_v4, %v116_v41  ;;  %v79_v42 = vld [vmem:[%s2726_s0 + $0x1c8] sm:$0xff]  ;;  %v80_v43 = vld [vmem:[%s2726_s0 + $0x1d0] sm:$0xff] }
  0x19   :  { %v117_v63 = vmul.f32 %v1565_v2, %v46_v49  ;;  %v245_v3 = vmax.f32 %v181_v45, 0.0  ;;  %v246_v5 = vmax.f32 %v1743_v46, 0.0  ;;  %v247_v6 = vmax.f32 %v1746_v47, 0.0  ;;  %v81_v49 = vld [vmem:[%s2726_s0 + $0x1d8] sm:$0xff] }
  0x1a   :  { %v265_v11 = vmax.f32 %v201_v52, 0.0  ;;  %v203_v12 = vadd.f32 %v1571_v4, %v132_v53  ;;  %v134_v13 = vmul.f32 %v1565_v2, %v63_v59  ;;  %v119_v16 = vmul.f32 %v1565_v2, %v48_v0 }
  0x1b   :  { %1436 = vmatmul.mubr.msk.f32.gmra.mxu0 %vm300_vm0, %v237_v56  ;;  %v264_v56 = vmax.f32 %v200_v37, 0.0  ;;  %1475 = vmatmul.mubr.msk.f32.gmra.mxu1 %vm300_vm0, %v263_v51  ;;  %v266_v17 = vmax.f32 %v202_v57, 0.0  ;;  %v204_v18 = vadd.f32 %v1571_v4, %v133_v58  ;;  %v135_v19 = vmul.f32 %v1565_v2, %v64_v1  ;;  %v78_v37 = vld [vmem:[%s2726_s0 + $0x1c0] sm:$0xff]  ;;  %v69_v57 = vld [vmem:[%s2726_s0 + $0x178] sm:$0xff] }
  0x1c   :  { %1438 = vmatprep.mubr.msk.f32.mxu0 %vm300_vm0, %v238_v60  ;;  %v1772_v60 = vadd.f32 %v1571_v4, %v114_v31  ;;  %v250_v22 = vmax.f32 %v1775_v61, 0.0  ;;  %v251_v23 = vmax.f32 %v1778_v62, 0.0  ;;  %v1819_v24 = vadd.f32 %v1571_v4, %v117_v63  ;;  %v68_v31 = vld [vmem:[%s2726_s0 + $0x170] sm:$0xff] }
  0x1d   :  { %1477 = vmatprep.mubr.msk.f32.mxu1 %vm300_vm0, %v264_v56  ;;  %v1828_v27 = vmul.f32 %v1565_v2, %v50_v10  ;;  %v137_v29 = vmul.f32 %v1565_v2, %v66_v15  ;;  %v267_v34 = vmax.f32 %v203_v12, 0.0  ;;  %v205_v35 = vadd.f32 %v1571_v4, %v134_v13  ;;  %v84_v63 = vld [vmem:[%s2726_s0 + $0x1f0] sm:$0xff]  ;;  %v51_v15 = vld [vmem:[%s2726_s0 + $0xe8] sm:$0xff] }
  0x1e   :  { %v249_v21 = vmax.f32 %v1772_v60, 0.0  ;;  %v146_v36 = vmul.f32 %v1565_v2, %v75_v20  ;;  %v1853_v38 = vadd.f32 %v1571_v4, %v119_v16  ;;  %v268_v39 = vmax.f32 %v204_v18, 0.0  ;;  %v52_v16 = vld [vmem:[%s2726_s0 + $0xf0] sm:$0xff] }
  0x1f   :  { %1439 = vmatmul.mubr.msk.f32.gmra.mxu0 %vm300_vm0, %v239_v7  ;;  %v248_v7 = vmax.f32 %v1749_v48, 0.0  ;;  %1478 = vmatmul.mubr.msk.f32.gmra.mxu1 %vm300_vm0, %v265_v11  ;;  %v206_v40 = vadd.f32 %v1571_v4, %v135_v19  ;;  %v147_v41 = vmul.f32 %v1565_v2, %v76_v25  ;;  %v138_v44 = vmul.f32 %v1565_v2, %v67_v30  ;;  %v70_v48 = vld [vmem:[%s2726_s0 + $0x180] sm:$0xff]  ;;  %v72_v61 = vld [vmem:[%s2726_s0 + $0x190] sm:$0xff] }
  0x20   :  { %1441 = vmatprep.mubr.msk.f32.mxu0 %vm300_vm0, %v240_v8  ;;  %v49_v8 = vld [vmem:[%s2726_s0 + $0xd8] sm:$0xff]  ;;  %1480 = vmatprep.mubr.msk.f32.mxu1 %vm300_vm0, %v266_v17  ;;  %v139_v45 = vmul.f32 %v1565_v2, %v68_v31  ;;  %v1867_v46 = vadd.f32 %v1571_v4, %v146_v36  ;;  %v148_v47 = vmul.f32 %v1565_v2, %v77_v32  ;;  %v269_v56 = vmax.f32 %v205_v35, 0.0 }
  0x21   :  { %v1825_v26 = vmul.f32 %v1565_v2, %v49_v8  ;;  %v208_v52 = vadd.f32 %v1571_v4, %v137_v29  ;;  %v1879_v53 = vadd.f32 %v1571_v4, %v147_v41  ;;  %v150_v59 = vmul.f32 %v1565_v2, %v79_v42  ;;  %v53_v36 = vld [vmem:[%s2726_s0 + $0xf8] sm:$0xff]  ;;  %v74_v41 = vld [vmem:[%s2726_s0 + $0x1a0] sm:$0xff] }
  0x22   :  { %v1891_v58 = vadd.f32 %v1571_v4, %v148_v47  ;;  %v151_v60 = vmul.f32 %v1565_v2, %v80_v43  ;;  %v270_v0 = vmax.f32 %v206_v40, 0.0  ;;  %v252_v8 = vmax.f32 %v1819_v24, 0.0  ;;  %v73_v40 = vld [vmem:[%s2726_s0 + $0x198] sm:$0xff] }
  0x23   :  { %1442 = vmatmul.mubr.msk.f32.gmra.mxu0 %vm300_vm0, %v241_v9  ;;  %v118_v9 = vmul.f32 %v1565_v2, %v47_v55  ;;  %v83_v55 = vld [vmem:[%s2726_s0 + $0x1e8] sm:$0xff]  ;;  %1481 = vmatmul.mubr.msk.f32.gmra.mxu1 %vm300_vm0, %v267_v34  ;;  %v140_v11 = vmul.f32 %v1565_v2, %v69_v57  ;;  %v209_v18 = vadd.f32 %v1571_v4, %v138_v44 }
  0x24   :  { %1444 = vmatprep.mubr.msk.f32.mxu0 %vm300_vm0, %v242_v14  ;;  %v65_v14 = vld [vmem:[%s2726_s0 + $0x158] sm:$0xff]  ;;  %1483 = vmatprep.mubr.msk.f32.mxu1 %vm300_vm0, %v268_v39  ;;  %v154_v10 = vmul.f32 %v1565_v2, %v83_v55  ;;  %v210_v24 = vadd.f32 %v1571_v4, %v139_v45  ;;  %v141_v25 = vmul.f32 %v1565_v2, %v70_v48  ;;  %v254_v39 = vmax.f32 %v1853_v38, 0.0 }
  0x25   :  { %v136_v28 = vmul.f32 %v1565_v2, %v65_v14  ;;  %v1843_v33 = vadd.f32 %v1571_v4, %v118_v9  ;;  %v1918_v9 = vadd.f32 %v1571_v4, %v151_v60  ;;  %v155_v14 = vmul.f32 %v1565_v2, %v84_v63 }
  0x26   :  { %v1939_v19 = vadd.f32 %v1571_v4, %v154_v10  ;;  %v191_v30 = vadd.f32 %v1571_v4, %v1825_v26  ;;  %v192_v31 = vadd.f32 %v1571_v4, %v1828_v27  ;;  %v122_v32 = vmul.f32 %v1565_v2, %v51_v15 }
  0x27   :  { %1445 = vmatmul.mubr.msk.f32.gmra.mxu0 %vm300_vm0, %v243_v50  ;;  %v82_v50 = vld [vmem:[%s2726_s0 + $0x1e0] sm:$0xff]  ;;  %v207_v51 = vadd.f32 %v1571_v4, %v136_v28  ;;  %1484 = vmatmul.mubr.msk.f32.gmra.mxu1 %vm300_vm0, %v269_v56  ;;  %v71_v28 = vld [vmem:[%s2726_s0 + $0x188] sm:$0xff]  ;;  %v1952_v29 = vadd.f32 %v1571_v4, %v155_v14  ;;  %v123_v34 = vmul.f32 %v1565_v2, %v52_v16  ;;  %v253_v35 = vmax.f32 %v1843_v33, 0.0 }
  0x28   :  { %1447 = vmatprep.mubr.msk.f32.mxu0 %vm300_vm0, %v244_v54  ;;  %v149_v54 = vmul.f32 %v1565_v2, %v78_v37  ;;  %1486 = vmatprep.mubr.msk.f32.mxu1 %vm300_vm0, %v270_v0  ;;  %v273_v26 = vmax.f32 %v209_v18, 0.0  ;;  %v211_v37 = vadd.f32 %v1571_v4, %v140_v11  ;;  %v142_v27 = vmul.f32 %v1565_v2, %v71_v28  ;;  %v2037_v11 = vld [vmem:[%s2729_s4] ss:$0 sm:$0xff] }
  0x29   :  { %v271_v17 = vmax.f32 %v207_v51, 0.0  ;;  %v274_v62 = vmax.f32 %v210_v24, 0.0  ;;  %v143_v33 = vmul.f32 %v1565_v2, %v72_v61  ;;  %v193_v42 = vadd.f32 %v1571_v4, %v122_v32 }
  0x2a   :  { %v1903_v1 = vadd.f32 %v1571_v4, %v149_v54  ;;  %v194_v43 = vadd.f32 %v1571_v4, %v123_v34  ;;  %v124_v38 = vmul.f32 %v1565_v2, %v53_v36  ;;  %v255_v44 = vmax.f32 %v191_v30, 0.0 }
  0x2b   :  { %1448 = vmatmul.mubr.msk.f32.gmra.mxu0 %vm300_vm0, %v245_v3  ;;  %v152_v3 = vmul.f32 %v1565_v2, %v81_v49  ;;  %1487 = vmatmul.mubr.msk.f32.gmra.mxu1 %vm300_vm0, %v271_v17  ;;  %v275_v45 = vmax.f32 %v211_v37, 0.0  ;;  %v213_v47 = vadd.f32 %v1571_v4, %v142_v27  ;;  %v144_v49 = vmul.f32 %v1565_v2, %v73_v40 }
  0x2c   :  { %1450 = vmatprep.mubr.msk.f32.mxu0 %vm300_vm0, %v246_v5  ;;  %v153_v5 = vmul.f32 %v1565_v2, %v82_v50  ;;  %v256_v50 = vmax.f32 %v192_v31, 0.0  ;;  %v145_v54 = vmul.f32 %v1565_v2, %v74_v41  ;;  %v257_v55 = vmax.f32 %v193_v42, 0.0 }
  0x2d   :  { %v1923_v12 = vadd.f32 %v1571_v4, %v152_v3  ;;  %v195_v56 = vadd.f32 %v1571_v4, %v124_v38  ;;  %v277_v57 = vmax.f32 %v213_v47, 0.0  ;;  %v258_v60 = vmax.f32 %v194_v43, 0.0 }
  0x2e   :  { %v1926_v13 = vadd.f32 %v1571_v4, %v153_v5  ;;  %v216_v0 = vadd.f32 %v1571_v4, %v145_v54  ;;  %v284_v48 = vmax.f32 %v1903_v1, 0.0  ;;  %v289_v1 = vmax.f32 %v1939_v19, 0.0 }
  0x2f   :  { %1451 = vmatmul.mubr.msk.f32.gmra.mxu0 %vm300_vm0, %v247_v6  ;;  %v85_v6 = vld [vmem:[%s2726_s0 + $0x1f8] sm:$0xff] }
  0x30   :  { %1453 = vmatprep.mubr.msk.f32.mxu0 %vm300_vm0, %v248_v7  ;;  %v1915_v7 = vadd.f32 %v1571_v4, %v150_v59  ;;  %v156_v20 = vmul.f32 %v1565_v2, %v85_v6  ;;  %v215_v59 = vadd.f32 %v1571_v4, %v144_v49  ;;  %v259_v2 = vmax.f32 %v195_v56, 0.0 }
  0x31   :  { %v280_v5 = vmax.f32 %v216_v0, 0.0  ;;  %v281_v6 = vmax.f32 %v1867_v46, 0.0  ;;  %v286_v46 = vmax.f32 %v1918_v9, 0.0 }
  0x32   :  { %v279_v3 = vmax.f32 %v215_v59, 0.0  ;;  %v285_v10 = vmax.f32 %v1915_v7, 0.0  ;;  %v290_v7 = vmax.f32 %v1952_v29, 0.0 }
  0x33   :  { %1454 = vmatmul.mubr.msk.f32.gmra.mxu0 %vm300_vm0, %v249_v21  ;;  %v272_v21 = vmax.f32 %v208_v52, 0.0  ;;  %v214_v52 = vadd.f32 %v1571_v4, %v143_v33 }
  0x34   :  { %1456 = vmatprep.mubr.msk.f32.mxu0 %vm300_vm0, %v250_v22  ;;  %v1958_v22 = vadd.f32 %v1571_v4, %v156_v20 }
  0x35   :  { %1489 = vmatprep.mubr.msk.f32.mxu1 %vm300_vm0, %v272_v21  ;;  %v278_v63 = vmax.f32 %v214_v52, 0.0 }
  0x36   :  { %1490 = vmatmul.mubr.msk.f32.gmra.mxu1 %vm300_vm0, %v273_v26  ;;  %v291_v9 = vmax.f32 %v1958_v22, 0.0 }
  0x37   :  { %1457 = vmatmul.mubr.msk.f32.gmra.mxu0 %vm300_vm0, %v251_v23  ;;  %v212_v23 = vadd.f32 %v1571_v4, %v141_v25  ;;  %1492 = vmatprep.mubr.msk.f32.mxu1 %vm300_vm0, %v274_v62  ;;  %v282_v4 = vmax.f32 %v1879_v53, 0.0  ;;  %v287_v53 = vmax.f32 %v1923_v12, 0.0 }
  0x38   :  { %1459 = vmatprep.mubr.msk.f32.mxu0 %vm300_vm0, %v252_v8  ;;  %v283_v8 = vmax.f32 %v1891_v58, 0.0  ;;  %v288_v58 = vmax.f32 %v1926_v13, 0.0 }
  0x39   :  { %v276_v51 = vmax.f32 %v212_v23, 0.0 }
  0x3a   :  { %1493 = vmatmul.mubr.msk.f32.gmra.mxu1 %vm300_vm0, %v275_v45 }
  0x3b   :  { %1460 = vmatmul.mubr.msk.f32.gmra.mxu0 %vm300_vm0, %v253_v35  ;;  %1495 = vmatprep.mubr.msk.f32.mxu1 %vm300_vm0, %v276_v51 }
  0x3c   :  { %1462 = vmatprep.mubr.msk.f32.mxu0 %vm300_vm0, %v254_v39 }
  0x3e   :  { %1496 = vmatmul.mubr.msk.f32.gmra.mxu1 %vm300_vm0, %v277_v57 }
  0x3f   :  { %1463 = vmatmul.mubr.msk.f32.gmra.mxu0 %vm300_vm0, %v255_v44  ;;  %1498 = vmatprep.mubr.msk.f32.mxu1 %vm300_vm0, %v278_v63 }
  0x40   :  { %1465 = vmatprep.mubr.msk.f32.mxu0 %vm300_vm0, %v256_v50 }
  0x42   :  { %1499 = vmatmul.mubr.msk.f32.gmra.mxu1 %vm300_vm0, %v279_v3 }
  0x43   :  { %1466 = vmatmul.mubr.msk.f32.gmra.mxu0 %vm300_vm0, %v257_v55  ;;  %1501 = vmatprep.mubr.msk.f32.mxu1 %vm300_vm0, %v280_v5 }
  0x44   :  { %1468 = vmatprep.mubr.msk.f32.mxu0 %vm300_vm0, %v258_v60 }
  0x46   :  { %1502 = vmatmul.mubr.msk.f32.gmra.mxu1 %vm300_vm0, %v281_v6 }
  0x47   :  { %1469 = vmatmul.mubr.msk.f32.gmra.mxu0 %vm300_vm0, %v259_v2  ;;  %1504 = vmatprep.mubr.msk.f32.mxu1 %vm300_vm0, %v282_v4 }
  0x4a   :  { %1505 = vmatmul.mubr.msk.f32.gmra.mxu1 %vm300_vm0, %v283_v8 }
  0x4b   :  { %1507 = vmatprep.mubr.msk.f32.mxu1 %vm300_vm0, %v284_v48 }
  0x4e   :  { %1508 = vmatmul.mubr.msk.f32.gmra.mxu1 %vm300_vm0, %v285_v10 }
  0x4f   :  { %1510 = vmatprep.mubr.msk.f32.mxu1 %vm300_vm0, %v286_v46 }
  0x52   :  { %1511 = vmatmul.mubr.msk.f32.gmra.mxu1 %vm300_vm0, %v287_v53 }
  0x53   :  { %1513 = vmatprep.mubr.msk.f32.mxu1 %vm300_vm0, %v288_v58 }
  0x56   :  { %1514 = vmatmul.mubr.msk.f32.gmra.mxu1 %vm300_vm0, %v289_v1 }
  0x57   :  { %1516 = vmatprep.mubr.msk.f32.mxu1 %vm300_vm0, %v290_v7 }
  0x5a   :  { %1517 = vmatmul.mubr.msk.f32.gmra.mxu1 %vm300_vm0, %v291_v9 }
  0xcb   :  { %v1425_v12 = vpop.f32.mrf.mxu0 }
  0xcc   :  { %v565_v13 = vadd.f32 %v1425_v12, %v2037_v11 }
  0xcd   :  { %v559_v14 = vpop.f32.mrf.mxu0 }
  0xce   :  { %880 = vst.msk [vmem:[%s2730_s5 + $0x8] sm:$0xff] %vm878_vm1, %v565_v13  ;;  %v560_v15 = vadd.f32 %v2037_v11, %v559_v14  ;;  %v1077_v16 = vmul.f32 %v565_v13, %v565_v13  ;;  %v944_v24 = vsel %vm878_vm1, %v565_v13, 0.0 }
  0xcf   :  { %v1428_v17 = vpop.f32.mrf.mxu0 }
  0xd0   :  { %879 = vst.msk [vmem:[%s2730_s5] sm:$0xff] %vm878_vm1, %v560_v15  ;;  %v943_v18 = vsel %vm878_vm1, %v560_v15, 0.0  ;;  %v1076_v19 = vmul.f32 %v560_v15, %v560_v15  ;;  %v575_v20 = vadd.f32 %v1428_v17, %v2037_v11  ;;  %v1141_v29 = vsel %vm878_vm1, %v1077_v16, 0.0 }
  0xd1   :  { %v569_v21 = vpop.f32.mrf.mxu0  ;;  %v945_v61 = vadd.f32 %v944_v24, %v943_v18 }
  0xd2   :  { %v1140_v25 = vsel %vm878_vm1, %v1076_v19, 0.0  ;;  %882 = vst.msk [vmem:[%s2730_s5 + $0x18] sm:$0xff] %vm878_vm1, %v575_v20  ;;  %v570_v28 = vadd.f32 %v2037_v11, %v569_v21  ;;  %v1079_v30 = vmul.f32 %v575_v20, %v575_v20  ;;  %v948_v37 = vsel %vm878_vm1, %v575_v20, 0.0 }
  0xd3   :  { %v1431_v22 = vpop.f32.mrf.mxu0  ;;  %v1142_v35 = vadd.f32 %v1141_v29, %v1140_v25 }
  0xd4   :  { %881 = vst.msk [vmem:[%s2730_s5 + $0x10] sm:$0xff] %vm878_vm1, %v570_v28  ;;  %v946_v31 = vsel %vm878_vm1, %v570_v28, 0.0  ;;  %v1078_v32 = vmul.f32 %v570_v28, %v570_v28  ;;  %v585_v34 = vadd.f32 %v1431_v22, %v2037_v11  ;;  %v1145_v41 = vsel %vm878_vm1, %v1079_v30, 0.0 }
  0xd5   :  { %v947_v36 = vadd.f32 %v946_v31, %v945_v61  ;;  %v579_v26 = vpop.f32.mrf.mxu0 }
  0xd6   :  { %v1143_v27 = vsel %vm878_vm1, %v1078_v32, 0.0  ;;  %884 = vst.msk [vmem:[%s2730_s5 + $0x28] sm:$0xff] %vm878_vm1, %v585_v34  ;;  %v580_v39 = vadd.f32 %v2037_v11, %v579_v26  ;;  %v1081_v23 = vmul.f32 %v585_v34, %v585_v34  ;;  %v952_v49 = vsel %vm878_vm1, %v585_v34, 0.0 }
  0xd7   :  { %v1144_v62 = vadd.f32 %v1143_v27, %v1142_v35  ;;  %v949_v33 = vadd.f32 %v948_v37, %v947_v36  ;;  %v1434_v40 = vpop.f32.mrf.mxu0  ;;  %v1473_v21 = vpop.f32.mrf.mxu1 }
  0xd8   :  { %883 = vst.msk [vmem:[%s2730_s5 + $0x20] sm:$0xff] %vm878_vm1, %v580_v39  ;;  %v950_v42 = vsel %vm878_vm1, %v580_v39, 0.0  ;;  %v1080_v43 = vmul.f32 %v580_v39, %v580_v39  ;;  %v595_v38 = vadd.f32 %v1434_v40, %v2037_v11  ;;  %v1149_v52 = vsel %vm878_vm1, %v1081_v23, 0.0 }
  0xd9   :  { %v951_v44 = vadd.f32 %v950_v42, %v949_v33  ;;  %v1146_v45 = vadd.f32 %v1145_v41, %v1144_v62  ;;  %v589_v47 = vpop.f32.mrf.mxu0  ;;  %v2122_v31 = vadd.f32 %v1473_v21, %v2037_v11  ;;  %v719_v32 = vpop.f32.mrf.mxu1 }
  0xda   :  { %v1147_v50 = vsel %vm878_vm1, %v1080_v43, 0.0  ;;  %886 = vst.msk [vmem:[%s2730_s5 + $0x38] sm:$0xff] %vm878_vm1, %v595_v38  ;;  %v590_v51 = vadd.f32 %v2037_v11, %v589_v47  ;;  %v1083_v57 = vmul.f32 %v595_v38, %v595_v38  ;;  %v956_v5 = vsel %vm878_vm1, %v595_v38, 0.0 }
  0xdb   :  { %v1148_v54 = vadd.f32 %v1147_v50, %v1146_v45  ;;  %v953_v55 = vadd.f32 %v952_v49, %v951_v44  ;;  %v1437_v56 = vpop.f32.mrf.mxu0  ;;  %912 = vst.msk [vmem:[%s2730_s5 + $0x108] sm:$0xff] %vm878_vm1, %v2122_v31  ;;  %v1476_v62 = vpop.f32.mrf.mxu1  ;;  %v2144_v44 = vadd.f32 %v2037_v11, %v719_v32 }
  0xdc   :  { %885 = vst.msk [vmem:[%s2730_s5 + $0x30] sm:$0xff] %vm878_vm1, %v590_v51  ;;  %v954_v59 = vsel %vm878_vm1, %v590_v51, 0.0  ;;  %v1082_v60 = vmul.f32 %v590_v51, %v590_v51  ;;  %v605_v63 = vadd.f32 %v1437_v56, %v2037_v11  ;;  %v1153_v53 = vsel %vm878_vm1, %v1083_v57, 0.0 }
  0xdd   :  { %v955_v0 = vadd.f32 %v954_v59, %v953_v55  ;;  %v1150_v2 = vadd.f32 %v1149_v52, %v1148_v54  ;;  %v599_v3 = vpop.f32.mrf.mxu0  ;;  %v729_v45 = vpop.f32.mrf.mxu1  ;;  %911 = vst.msk [vmem:[%s2730_s5 + $0x100] sm:$0xff] %vm878_vm1, %v2144_v44 }
  0xde   :  { %v1151_v6 = vsel %vm878_vm1, %v1082_v60, 0.0  ;;  %888 = vst.msk [vmem:[%s2730_s5 + $0x48] sm:$0xff] %vm878_vm1, %v605_v63  ;;  %v600_v4 = vadd.f32 %v2037_v11, %v599_v3  ;;  %v1085_v48 = vmul.f32 %v605_v63, %v605_v63  ;;  %v960_v14 = vsel %vm878_vm1, %v605_v63, 0.0 }
  0xdf   :  { %v1152_v8 = vadd.f32 %v1151_v6, %v1150_v2  ;;  %v957_v10 = vadd.f32 %v956_v5, %v955_v0  ;;  %v1440_v46 = vpop.f32.mrf.mxu0  ;;  %v1479_v56 = vpop.f32.mrf.mxu1  ;;  %v2166_v5 = vadd.f32 %v1476_v62, %v2037_v11 }
  0xe0   :  { %887 = vst.msk [vmem:[%s2730_s5 + $0x40] sm:$0xff] %vm878_vm1, %v600_v4  ;;  %v958_v58 = vsel %vm878_vm1, %v600_v4, 0.0  ;;  %v1084_v1 = vmul.f32 %v600_v4, %v600_v4  ;;  %v615_v7 = vadd.f32 %v1440_v46, %v2037_v11  ;;  %v1157_v17 = vsel %vm878_vm1, %v1085_v48, 0.0 }
  0xe1   :  { %v959_v9 = vadd.f32 %v958_v58, %v957_v10  ;;  %v1154_v12 = vadd.f32 %v1153_v53, %v1152_v8  ;;  %v609_v13 = vpop.f32.mrf.mxu0  ;;  %v739_v6 = vpop.f32.mrf.mxu1  ;;  %914 = vst.msk [vmem:[%s2730_s5 + $0x118] sm:$0xff] %vm878_vm1, %v2166_v5 }
  0xe2   :  { %v1155_v15 = vsel %vm878_vm1, %v1084_v1, 0.0  ;;  %890 = vst.msk [vmem:[%s2730_s5 + $0x58] sm:$0xff] %vm878_vm1, %v615_v7  ;;  %v610_v16 = vadd.f32 %v2037_v11, %v609_v13  ;;  %v1087_v24 = vmul.f32 %v615_v7, %v615_v7  ;;  %v964_v34 = vsel %vm878_vm1, %v615_v7, 0.0 }
  0xe3   :  { %v1156_v18 = vadd.f32 %v1155_v15, %v1154_v12  ;;  %v961_v19 = vadd.f32 %v960_v14, %v959_v9  ;;  %v1443_v20 = vpop.f32.mrf.mxu0  ;;  %v2180_v1 = vpop.f32.mrf.mxu1 }
  0xe4   :  { %889 = vst.msk [vmem:[%s2730_s5 + $0x50] sm:$0xff] %vm878_vm1, %v610_v16  ;;  %v962_v25 = vsel %vm878_vm1, %v610_v16, 0.0  ;;  %v1086_v28 = vmul.f32 %v610_v16, %v610_v16  ;;  %v625_v29 = vadd.f32 %v1443_v20, %v2037_v11  ;;  %v1161_v23 = vsel %vm878_vm1, %v1087_v24, 0.0 }
  0xe5   :  { %v963_v61 = vadd.f32 %v962_v25, %v961_v19  ;;  %v1158_v22 = vadd.f32 %v1157_v17, %v1156_v18  ;;  %v619_v30 = vpop.f32.mrf.mxu0  ;;  %v2190_v17 = vadd.f32 %v2037_v11, %v729_v45  ;;  %v2192_v18 = vpop.f32.mrf.mxu1 }
  0xe6   :  { %v1159_v35 = vsel %vm878_vm1, %v1086_v28, 0.0  ;;  %892 = vst.msk [vmem:[%s2730_s5 + $0x68] sm:$0xff] %vm878_vm1, %v625_v29  ;;  %v620_v36 = vadd.f32 %v2037_v11, %v619_v30  ;;  %v1089_v37 = vmul.f32 %v625_v29, %v625_v29  ;;  %v968_v47 = vsel %vm878_vm1, %v625_v29, 0.0 }
  0xe7   :  { %v1160_v26 = vadd.f32 %v1159_v35, %v1158_v22  ;;  %v965_v27 = vadd.f32 %v964_v34, %v963_v61  ;;  %v1446_v39 = vpop.f32.mrf.mxu0  ;;  %913 = vst.msk [vmem:[%s2730_s5 + $0x110] sm:$0xff] %vm878_vm1, %v2190_v17  ;;  %v2207_v61 = vpop.f32.mrf.mxu1 }
  0xe8   :  { %891 = vst.msk [vmem:[%s2730_s5 + $0x60] sm:$0xff] %vm878_vm1, %v620_v36  ;;  %v966_v33 = vsel %vm878_vm1, %v620_v36, 0.0  ;;  %v1088_v40 = vmul.f32 %v620_v36, %v620_v36  ;;  %v635_v41 = vadd.f32 %v1446_v39, %v2037_v11  ;;  %v1165_v51 = vsel %vm878_vm1, %v1089_v37, 0.0 }
  0xe9   :  { %v967_v42 = vadd.f32 %v966_v33, %v965_v27  ;;  %v1162_v43 = vadd.f32 %v1161_v23, %v1160_v26  ;;  %v629_v38 = vpop.f32.mrf.mxu0  ;;  %v2216_v37 = vadd.f32 %v1479_v56, %v2037_v11  ;;  %v2218_v27 = vpop.f32.mrf.mxu1 }
  0xea   :  { %v1163_v49 = vsel %vm878_vm1, %v1088_v40, 0.0  ;;  %894 = vst.msk [vmem:[%s2730_s5 + $0x78] sm:$0xff] %vm878_vm1, %v635_v41  ;;  %v630_v50 = vadd.f32 %v2037_v11, %v629_v38  ;;  %v1091_v57 = vmul.f32 %v635_v41, %v635_v41  ;;  %v972_v4 = vsel %vm878_vm1, %v635_v41, 0.0 }
  0xeb   :  { %v1164_v52 = vadd.f32 %v1163_v49, %v1162_v43  ;;  %v969_v54 = vadd.f32 %v968_v47, %v967_v42  ;;  %v1449_v55 = vpop.f32.mrf.mxu0  ;;  %916 = vst.msk [vmem:[%s2730_s5 + $0x128] sm:$0xff] %vm878_vm1, %v2216_v37  ;;  %v2232_v43 = vpop.f32.mrf.mxu1 }
  0xec   :  { %893 = vst.msk [vmem:[%s2730_s5 + $0x70] sm:$0xff] %vm878_vm1, %v630_v50  ;;  %v970_v59 = vsel %vm878_vm1, %v630_v50, 0.0  ;;  %v1090_v60 = vmul.f32 %v630_v50, %v630_v50  ;;  %v645_v63 = vadd.f32 %v1449_v55, %v2037_v11  ;;  %v1169_v7 = vsel %vm878_vm1, %v1091_v57, 0.0 }
  0xed   :  { %v971_v0 = vadd.f32 %v970_v59, %v969_v54  ;;  %v1166_v2 = vadd.f32 %v1165_v51, %v1164_v52  ;;  %v639_v3 = vpop.f32.mrf.mxu0  ;;  %v2242_v54 = vadd.f32 %v2037_v11, %v739_v6  ;;  %v2244_v55 = vpop.f32.mrf.mxu1 }
  0xee   :  { %v1167_v8 = vsel %vm878_vm1, %v1090_v60, 0.0  ;;  %896 = vst.msk [vmem:[%s2730_s5 + $0x88] sm:$0xff] %vm878_vm1, %v645_v63  ;;  %v640_v48 = vadd.f32 %v2037_v11, %v639_v3  ;;  %v1093_v46 = vmul.f32 %v645_v63, %v645_v63  ;;  %v976_v19 = vsel %vm878_vm1, %v645_v63, 0.0 }
  0xef   :  { %v1168_v10 = vadd.f32 %v1167_v8, %v1166_v2  ;;  %v973_v53 = vadd.f32 %v972_v4, %v971_v0  ;;  %v1452_v58 = vpop.f32.mrf.mxu0  ;;  %915 = vst.msk [vmem:[%s2730_s5 + $0x120] sm:$0xff] %vm878_vm1, %v2242_v54 }
  0xf0   :  { %895 = vst.msk [vmem:[%s2730_s5 + $0x80] sm:$0xff] %vm878_vm1, %v640_v48  ;;  %v974_v9 = vsel %vm878_vm1, %v640_v48, 0.0  ;;  %v1092_v12 = vmul.f32 %v640_v48, %v640_v48  ;;  %v655_v13 = vadd.f32 %v1452_v58, %v2037_v11  ;;  %v1173_v24 = vsel %vm878_vm1, %v1093_v46, 0.0 }
  0xf1   :  { %v975_v14 = vadd.f32 %v974_v9, %v973_v53  ;;  %v1170_v15 = vadd.f32 %v1169_v7, %v1168_v10  ;;  %v649_v16 = vpop.f32.mrf.mxu0  ;;  %v2269_v58 = vadd.f32 %v2180_v1, %v2037_v11 }
  0xf2   :  { %v1171_v20 = vsel %vm878_vm1, %v1092_v12, 0.0  ;;  %898 = vst.msk [vmem:[%s2730_s5 + $0x98] sm:$0xff] %vm878_vm1, %v655_v13  ;;  %v650_v21 = vadd.f32 %v2037_v11, %v649_v16  ;;  %v1095_v22 = vmul.f32 %v655_v13, %v655_v13  ;;  %v980_v39 = vsel %vm878_vm1, %v655_v13, 0.0 }
  0xf3   :  { %v1172_v25 = vadd.f32 %v1171_v20, %v1170_v15  ;;  %v977_v28 = vadd.f32 %v976_v19, %v975_v14  ;;  %v1455_v29 = vpop.f32.mrf.mxu0  ;;  %918 = vst.msk [vmem:[%s2730_s5 + $0x138] sm:$0xff] %vm878_vm1, %v2269_v58 }
  0xf4   :  { %897 = vst.msk [vmem:[%s2730_s5 + $0x90] sm:$0xff] %vm878_vm1, %v650_v21  ;;  %v978_v30 = vsel %vm878_vm1, %v650_v21, 0.0  ;;  %v1094_v32 = vmul.f32 %v650_v21, %v650_v21  ;;  %v665_v34 = vadd.f32 %v1455_v29, %v2037_v11  ;;  %v1177_v38 = vsel %vm878_vm1, %v1095_v22, 0.0 }
  0xf5   :  { %v979_v35 = vadd.f32 %v978_v30, %v977_v28  ;;  %v1174_v36 = vadd.f32 %v1173_v24, %v1172_v25  ;;  %v659_v26 = vpop.f32.mrf.mxu0  ;;  %v2296_v30 = vadd.f32 %v2037_v11, %v2192_v18 }
  0xf6   :  { %v1175_v62 = vsel %vm878_vm1, %v1094_v32, 0.0  ;;  %900 = vst.msk [vmem:[%s2730_s5 + $0xa8] sm:$0xff] %vm878_vm1, %v665_v34  ;;  %v660_v23 = vadd.f32 %v2037_v11, %v659_v26  ;;  %v1097_v40 = vmul.f32 %v665_v34, %v665_v34  ;;  %v984_v56 = vsel %vm878_vm1, %v665_v34, 0.0  ;;  %v2259_v3 = vpop.f32.mrf.mxu1 }
  0xf7   :  { %v1176_v33 = vadd.f32 %v1175_v62, %v1174_v36  ;;  %v981_v41 = vadd.f32 %v980_v39, %v979_v35  ;;  %v1458_v42 = vpop.f32.mrf.mxu0  ;;  %917 = vst.msk [vmem:[%s2730_s5 + $0x130] sm:$0xff] %vm878_vm1, %v2296_v30 }
  0xf8   :  { %899 = vst.msk [vmem:[%s2730_s5 + $0xa0] sm:$0xff] %vm878_vm1, %v660_v23  ;;  %v982_v45 = vsel %vm878_vm1, %v660_v23, 0.0  ;;  %v1096_v47 = vmul.f32 %v660_v23, %v660_v23  ;;  %v675_v49 = vadd.f32 %v1458_v42, %v2037_v11  ;;  %v1181_v60 = vsel %vm878_vm1, %v1097_v40, 0.0  ;;  %v2271_v7 = vpop.f32.mrf.mxu1 }
  0xf9   :  { %v983_v50 = vadd.f32 %v982_v45, %v981_v41  ;;  %v1178_v51 = vadd.f32 %v1177_v38, %v1176_v33  ;;  %v669_v52 = vpop.f32.mrf.mxu0 }
  0xfa   :  { %v1179_v57 = vsel %vm878_vm1, %v1096_v47, 0.0  ;;  %902 = vst.msk [vmem:[%s2730_s5 + $0xb8] sm:$0xff] %vm878_vm1, %v675_v49  ;;  %v670_v59 = vadd.f32 %v2037_v11, %v669_v52  ;;  %v1099_v6 = vmul.f32 %v675_v49, %v675_v49  ;;  %v988_v9 = vsel %vm878_vm1, %v675_v49, 0.0  ;;  %v2285_v1 = vpop.f32.mrf.mxu1 }
  0xfb   :  { %v1180_v63 = vadd.f32 %v1179_v57, %v1178_v51  ;;  %v985_v0 = vadd.f32 %v984_v56, %v983_v50  ;;  %v1461_v2 = vpop.f32.mrf.mxu0  ;;  %v2323_v49 = vadd.f32 %v2207_v61, %v2037_v11 }
  0xfc   :  { %901 = vst.msk [vmem:[%s2730_s5 + $0xb0] sm:$0xff] %vm878_vm1, %v670_v59  ;;  %v986_v4 = vsel %vm878_vm1, %v670_v59, 0.0  ;;  %v1098_v8 = vmul.f32 %v670_v59, %v670_v59  ;;  %v685_v48 = vadd.f32 %v1461_v2, %v2037_v11  ;;  %v1185_v20 = vsel %vm878_vm1, %v1099_v6, 0.0  ;;  %v2298_v32 = vpop.f32.mrf.mxu1 }
  0xfd   :  { %v987_v10 = vadd.f32 %v986_v4, %v985_v0  ;;  %v1182_v46 = vadd.f32 %v1181_v60, %v1180_v63  ;;  %v679_v53 = vpop.f32.mrf.mxu0  ;;  %920 = vst.msk [vmem:[%s2730_s5 + $0x148] sm:$0xff] %vm878_vm1, %v2323_v49 }
  0xfe   :  { %v1183_v12 = vsel %vm878_vm1, %v1098_v8, 0.0  ;;  %904 = vst.msk [vmem:[%s2730_s5 + $0xc8] sm:$0xff] %vm878_vm1, %v685_v48  ;;  %v680_v13 = vadd.f32 %v2037_v11, %v679_v53  ;;  %v1101_v15 = vmul.f32 %v685_v48, %v685_v48  ;;  %v992_v34 = vsel %vm878_vm1, %v685_v48, 0.0  ;;  %v2313_v18 = vpop.f32.mrf.mxu1 }
  0xff   :  { %v1184_v14 = vadd.f32 %v1183_v12, %v1182_v46  ;;  %v989_v16 = vadd.f32 %v988_v9, %v987_v10  ;;  %v1464_v19 = vpop.f32.mrf.mxu0  ;;  %v2350_v46 = vadd.f32 %v2037_v11, %v2218_v27 }
 0x100   :  { %903 = vst.msk [vmem:[%s2730_s5 + $0xc0] sm:$0xff] %vm878_vm1, %v680_v13  ;;  %v990_v21 = vsel %vm878_vm1, %v680_v13, 0.0  ;;  %v1100_v24 = vmul.f32 %v680_v13, %v680_v13  ;;  %v695_v25 = vadd.f32 %v1464_v19, %v2037_v11  ;;  %v1189_v26 = vsel %vm878_vm1, %v1101_v15, 0.0  ;;  %v2325_v50 = vpop.f32.mrf.mxu1 }
 0x101   :  { %v991_v28 = vadd.f32 %v990_v21, %v989_v16  ;;  %v1186_v29 = vadd.f32 %v1185_v20, %v1184_v14  ;;  %v689_v22 = vpop.f32.mrf.mxu0  ;;  %919 = vst.msk [vmem:[%s2730_s5 + $0x140] sm:$0xff] %vm878_vm1, %v2350_v46 }
 0x102   :  { %v1187_v35 = vsel %vm878_vm1, %v1100_v24, 0.0  ;;  %906 = vst.msk [vmem:[%s2730_s5 + $0xd8] sm:$0xff] %vm878_vm1, %v695_v25  ;;  %v690_v36 = vadd.f32 %v2037_v11, %v689_v22  ;;  %v1103_v33 = vmul.f32 %v695_v25, %v695_v25  ;;  %v996_v51 = vsel %vm878_vm1, %v695_v25, 0.0  ;;  %v2339_v61 = vpop.f32.mrf.mxu1 }
 0x103   :  { %v1188_v39 = vadd.f32 %v1187_v35, %v1186_v29  ;;  %v993_v62 = vadd.f32 %v992_v34, %v991_v28  ;;  %v1467_v23 = vpop.f32.mrf.mxu0  ;;  %v2374_v24 = vadd.f32 %v2232_v43, %v2037_v11  ;;  %v2378_v29 = vadd.f32 %v2037_v11, %v2244_v55 }
 0x104   :  { %905 = vst.msk [vmem:[%s2730_s5 + $0xd0] sm:$0xff] %vm878_vm1, %v690_v36  ;;  %v994_v40 = vsel %vm878_vm1, %v690_v36, 0.0  ;;  %v1102_v41 = vmul.f32 %v690_v36, %v690_v36  ;;  %v705_v42 = vadd.f32 %v1467_v23, %v2037_v11  ;;  %v1193_v0 = vsel %vm878_vm1, %v1103_v33, 0.0  ;;  %v2352_v53 = vpop.f32.mrf.mxu1 }
 0x105   :  { %v995_v38 = vadd.f32 %v994_v40, %v993_v62  ;;  %v1190_v45 = vadd.f32 %v1189_v26, %v1188_v39  ;;  %v699_v47 = vpop.f32.mrf.mxu0  ;;  %v1108_v36 = vmul.f32 %v2144_v44, %v2144_v44  ;;  %922 = vst.msk [vmem:[%s2730_s5 + $0x158] sm:$0xff] %vm878_vm1, %v2374_v24  ;;  %v2391_v43 = vadd.f32 %v2259_v3, %v2037_v11 }
 0x106   :  { %v1191_v52 = vsel %vm878_vm1, %v1102_v41, 0.0  ;;  %908 = vst.msk [vmem:[%s2730_s5 + $0xe8] sm:$0xff] %vm878_vm1, %v705_v42  ;;  %v700_v56 = vadd.f32 %v2037_v11, %v699_v47  ;;  %v1105_v59 = vmul.f32 %v705_v42, %v705_v42  ;;  %v1000_v9 = vsel %vm878_vm1, %v705_v42, 0.0  ;;  %v1503_v27 = vpop.f32.mrf.mxu1  ;;  %921 = vst.msk [vmem:[%s2730_s5 + $0x150] sm:$0xff] %vm878_vm1, %v2378_v29 }
 0x107   :  { %v1192_v57 = vadd.f32 %v1191_v52, %v1190_v45  ;;  %v997_v60 = vadd.f32 %v996_v51, %v995_v38  ;;  %v1470_v63 = vpop.f32.mrf.mxu0  ;;  %v1109_v23 = vmul.f32 %v2122_v31, %v2122_v31  ;;  %v1006_v33 = vsel %vm878_vm1, %v2144_v44, 0.0  ;;  %924 = vst.msk [vmem:[%s2730_s5 + $0x168] sm:$0xff] %vm878_vm1, %v2391_v43 }
 0x108   :  { %907 = vst.msk [vmem:[%s2730_s5 + $0xe0] sm:$0xff] %vm878_vm1, %v700_v56  ;;  %v998_v2 = vsel %vm878_vm1, %v700_v56, 0.0  ;;  %v1104_v6 = vmul.f32 %v700_v56, %v700_v56  ;;  %v715_v4 = vadd.f32 %v1470_v63, %v2037_v11  ;;  %v1197_v14 = vsel %vm878_vm1, %v1105_v59, 0.0  ;;  %v819_v22 = vpop.f32.mrf.mxu1 }
 0x109   :  { %v999_v8 = vadd.f32 %v998_v2, %v997_v60  ;;  %v1194_v48 = vadd.f32 %v1193_v0, %v1192_v57  ;;  %v709_v10 = vpop.f32.mrf.mxu0  ;;  %v2410_v3 = vadd.f32 %v2037_v11, %v2271_v7  ;;  %v2414_v42 = vadd.f32 %v2285_v1, %v2037_v11 }
 0x10a   :  { %v1195_v12 = vsel %vm878_vm1, %v1104_v6, 0.0  ;;  %910 = vst.msk [vmem:[%s2730_s5 + $0xf8] sm:$0xff] %vm878_vm1, %v715_v4  ;;  %v710_v13 = vadd.f32 %v2037_v11, %v709_v10  ;;  %v1107_v19 = vmul.f32 %v715_v4, %v715_v4  ;;  %v1004_v34 = vsel %vm878_vm1, %v715_v4, 0.0  ;;  %v1506_v39 = vpop.f32.mrf.mxu1 }
 0x10b   :  { %v1196_v15 = vadd.f32 %v1195_v12, %v1194_v48  ;;  %v1001_v16 = vadd.f32 %v1000_v9, %v999_v8  ;;  %v1008_v44 = vsel %vm878_vm1, %v2122_v31, 0.0  ;;  %v1203_v45 = vsel %vm878_vm1, %v1108_v36, 0.0  ;;  %923 = vst.msk [vmem:[%s2730_s5 + $0x160] sm:$0xff] %vm878_vm1, %v2410_v3  ;;  %926 = vst.msk [vmem:[%s2730_s5 + $0x178] sm:$0xff] %vm878_vm1, %v2414_v42 }
 0x10c   :  { %909 = vst.msk [vmem:[%s2730_s5 + $0xf0] sm:$0xff] %vm878_vm1, %v710_v13  ;;  %v1002_v20 = vsel %vm878_vm1, %v710_v13, 0.0  ;;  %v1106_v21 = vmul.f32 %v710_v13, %v710_v13  ;;  %v1201_v62 = vsel %vm878_vm1, %v1107_v19, 0.0  ;;  %v829_v38 = vpop.f32.mrf.mxu1  ;;  %v1110_v47 = vmul.f32 %v2190_v17, %v2190_v17 }
 0x10d   :  { %v1003_v25 = vadd.f32 %v1002_v20, %v1001_v16  ;;  %v1198_v28 = vadd.f32 %v1197_v14, %v1196_v15  ;;  %v2428_v7 = vadd.f32 %v2037_v11, %v2298_v32  ;;  %v1205_v52 = vsel %vm878_vm1, %v1109_v23, 0.0 }
 0x10e   :  { %v1199_v35 = vsel %vm878_vm1, %v1106_v21, 0.0  ;;  %v1509_v31 = vpop.f32.mrf.mxu1  ;;  %v1111_v56 = vmul.f32 %v2166_v5, %v2166_v5  ;;  %v1010_v57 = vsel %vm878_vm1, %v2190_v17, 0.0  ;;  %v2447_v32 = vadd.f32 %v2313_v18, %v2037_v11 }
 0x10f   :  { %v1200_v55 = vadd.f32 %v1199_v35, %v1198_v28  ;;  %v1005_v26 = vadd.f32 %v1004_v34, %v1003_v25  ;;  %925 = vst.msk [vmem:[%s2730_s5 + $0x170] sm:$0xff] %vm878_vm1, %v2428_v7  ;;  %v2451_v63 = vadd.f32 %v2037_v11, %v2325_v50  ;;  %v1012_v17 = vsel %vm878_vm1, %v2166_v5, 0.0 }
 0x110   :  { %v839_v0 = vpop.f32.mrf.mxu1  ;;  %v1207_v2 = vsel %vm878_vm1, %v1110_v47, 0.0  ;;  %v1112_v6 = vmul.f32 %v2242_v54, %v2242_v54  ;;  %928 = vst.msk [vmem:[%s2730_s5 + $0x188] sm:$0xff] %vm878_vm1, %v2447_v32  ;;  %v2465_v18 = vadd.f32 %v2339_v61, %v2037_v11  ;;  %v1209_v8 = vsel %vm878_vm1, %v1111_v56, 0.0 }
 0x111   :  { %v1007_v40 = vadd.f32 %v1006_v33, %v1005_v26  ;;  %v1202_v41 = vadd.f32 %v1201_v62, %v1200_v55  ;;  %927 = vst.msk [vmem:[%s2730_s5 + $0x180] sm:$0xff] %vm878_vm1, %v2451_v63  ;;  %v1113_v48 = vmul.f32 %v2216_v37, %v2216_v37  ;;  %v1014_v10 = vsel %vm878_vm1, %v2242_v54, 0.0 }
 0x112   :  { %v1512_v5 = vpop.f32.mrf.mxu1  ;;  %930 = vst.msk [vmem:[%s2730_s5 + $0x198] sm:$0xff] %vm878_vm1, %v2465_v18  ;;  %v2484_v61 = vadd.f32 %v2037_v11, %v2352_v53  ;;  %v2487_v13 = vadd.f32 %v1503_v27, %v2037_v11  ;;  %v1016_v15 = vsel %vm878_vm1, %v2216_v37, 0.0  ;;  %v1211_v54 = vsel %vm878_vm1, %v1112_v6, 0.0 }
 0x113   :  { %v1204_v1 = vadd.f32 %v1203_v45, %v1202_v41  ;;  %v1009_v51 = vadd.f32 %v1008_v44, %v1007_v40  ;;  %v1114_v16 = vmul.f32 %v2296_v30, %v2296_v30  ;;  %v2500_v53 = vadd.f32 %v2037_v11, %v819_v22 }
 0x114   :  { %v849_v14 = vpop.f32.mrf.mxu1  ;;  %929 = vst.msk [vmem:[%s2730_s5 + $0x190] sm:$0xff] %vm878_vm1, %v2484_v61  ;;  %932 = vst.msk [vmem:[%s2730_s5 + $0x1a8] sm:$0xff] %vm878_vm1, %v2487_v13  ;;  %v1213_v20 = vsel %vm878_vm1, %v1113_v48, 0.0  ;;  %v1115_v21 = vmul.f32 %v2269_v58, %v2269_v58  ;;  %v1018_v25 = vsel %vm878_vm1, %v2296_v30, 0.0  ;;  %v2518_v28 = vadd.f32 %v1506_v39, %v2037_v11 }
 0x115   :  { %v1011_v59 = vadd.f32 %v1010_v57, %v1009_v51  ;;  %v1206_v60 = vadd.f32 %v1205_v52, %v1204_v1  ;;  %931 = vst.msk [vmem:[%s2730_s5 + $0x1a0] sm:$0xff] %vm878_vm1, %v2500_v53  ;;  %v2521_v35 = vadd.f32 %v2037_v11, %v829_v38  ;;  %v1020_v55 = vsel %vm878_vm1, %v2269_v58, 0.0 }
 0x116   :  { %v1515_v37 = vpop.f32.mrf.mxu1  ;;  %v1215_v30 = vsel %vm878_vm1, %v1114_v16, 0.0  ;;  %v1116_v26 = vmul.f32 %v2350_v46, %v2350_v46  ;;  %934 = vst.msk [vmem:[%s2730_s5 + $0x1b8] sm:$0xff] %vm878_vm1, %v2518_v28  ;;  %v2534_v39 = vadd.f32 %v1509_v31, %v2037_v11  ;;  %v1217_v58 = vsel %vm878_vm1, %v1115_v21, 0.0 }
 0x117   :  { %v1208_v50 = vadd.f32 %v1207_v2, %v1206_v60  ;;  %v1013_v4 = vadd.f32 %v1012_v17, %v1011_v59  ;;  %933 = vst.msk [vmem:[%s2730_s5 + $0x1b0] sm:$0xff] %vm878_vm1, %v2521_v35  ;;  %v1117_v33 = vmul.f32 %v2323_v49, %v2323_v49  ;;  %v1022_v40 = vsel %vm878_vm1, %v2350_v46, 0.0 }
 0x118   :  { %v859_v36 = vpop.f32.mrf.mxu1  ;;  %936 = vst.msk [vmem:[%s2730_s5 + $0x1c8] sm:$0xff] %vm878_vm1, %v2534_v39  ;;  %v2552_v41 = vadd.f32 %v2037_v11, %v839_v0  ;;  %v2555_v45 = vadd.f32 %v1512_v5, %v2037_v11  ;;  %v1024_v1 = vsel %vm878_vm1, %v2323_v49, 0.0  ;;  %v1219_v46 = vsel %vm878_vm1, %v1116_v26, 0.0 }
 0x119   :  { %v1015_v9 = vadd.f32 %v1014_v10, %v1013_v4  ;;  %v1210_v12 = vadd.f32 %v1209_v8, %v1208_v50  ;;  %v1118_v51 = vmul.f32 %v2378_v29, %v2378_v29  ;;  %v2568_v31 = vadd.f32 %v2037_v11, %v849_v14 }
 0x11a   :  { %v1518_v47 = vpop.f32.mrf.mxu1  ;;  %935 = vst.msk [vmem:[%s2730_s5 + $0x1c0] sm:$0xff] %vm878_vm1, %v2552_v41  ;;  %938 = vst.msk [vmem:[%s2730_s5 + $0x1d8] sm:$0xff] %vm878_vm1, %v2555_v45  ;;  %v1221_v49 = vsel %vm878_vm1, %v1117_v33, 0.0  ;;  %v1119_v57 = vmul.f32 %v2374_v24, %v2374_v24  ;;  %v1026_v59 = vsel %vm878_vm1, %v2378_v29, 0.0  ;;  %v2586_v60 = vadd.f32 %v1515_v37, %v2037_v11 }
 0x11b   :  { %v1212_v27 = vadd.f32 %v1211_v54, %v1210_v12  ;;  %v1017_v19 = vadd.f32 %v1016_v15, %v1015_v9  ;;  %937 = vst.msk [vmem:[%s2730_s5 + $0x1d0] sm:$0xff] %vm878_vm1, %v2568_v31  ;;  %v2589_v2 = vadd.f32 %v2037_v11, %v859_v36  ;;  %v1028_v50 = vsel %vm878_vm1, %v2374_v24, 0.0 }
 0x11c   :  { %v869_v6 = vpop.f32.mrf.mxu1  ;;  %v1223_v29 = vsel %vm878_vm1, %v1118_v51, 0.0  ;;  %v1120_v4 = vmul.f32 %v2410_v3, %v2410_v3  ;;  %940 = vst.msk [vmem:[%s2730_s5 + $0x1e8] sm:$0xff] %vm878_vm1, %v2586_v60  ;;  %v2602_v5 = vadd.f32 %v1518_v47, %v2037_v11  ;;  %v1225_v24 = vsel %vm878_vm1, %v1119_v57, 0.0 }
 0x11d   :  { %v1019_v22 = vadd.f32 %v1018_v25, %v1017_v19  ;;  %v1214_v34 = vadd.f32 %v1213_v20, %v1212_v27  ;;  %939 = vst.msk [vmem:[%s2730_s5 + $0x1e0] sm:$0xff] %vm878_vm1, %v2589_v2  ;;  %v1121_v10 = vmul.f32 %v2391_v43, %v2391_v43  ;;  %v1030_v9 = vsel %vm878_vm1, %v2410_v3, 0.0 }
 0x11e   :  { %942 = vst.msk [vmem:[%s2730_s5 + $0x1f8] sm:$0xff] %vm878_vm1, %v2602_v5  ;;  %v2620_v12 = vadd.f32 %v2037_v11, %v869_v6  ;;  %v1032_v54 = vsel %vm878_vm1, %v2391_v43, 0.0  ;;  %v1227_v16 = vsel %vm878_vm1, %v1120_v4, 0.0  ;;  %v1122_v27 = vmul.f32 %v2428_v7, %v2428_v7 }
 0x11f   :  { %v1216_v62 = vadd.f32 %v1215_v30, %v1214_v34  ;;  %v1021_v23 = vadd.f32 %v1020_v55, %v1019_v22  ;;  %v1229_v11 = vsel %vm878_vm1, %v1121_v10, 0.0  ;;  %v1123_v37 = vmul.f32 %v2414_v42, %v2414_v42 }
 0x120   :  { %941 = vst.msk [vmem:[%s2730_s5 + $0x1f0] sm:$0xff] %vm878_vm1, %v2620_v12  ;;  %v1034_v43 = vsel %vm878_vm1, %v2428_v7, 0.0  ;;  %v1036_v25 = vsel %vm878_vm1, %v2414_v42, 0.0  ;;  %v1231_v22 = vsel %vm878_vm1, %v1122_v27, 0.0  ;;  %v1124_v34 = vmul.f32 %v2451_v63, %v2451_v63 }
 0x121   :  { %v1023_v38 = vadd.f32 %v1022_v40, %v1021_v23  ;;  %v1218_v44 = vadd.f32 %v1217_v58, %v1216_v62  ;;  %v1233_v30 = vsel %vm878_vm1, %v1123_v37, 0.0  ;;  %v1125_v26 = vmul.f32 %v2447_v32, %v2447_v32 }
 0x122   :  { %v1038_v7 = vsel %vm878_vm1, %v2451_v63, 0.0  ;;  %v1040_v42 = vsel %vm878_vm1, %v2447_v32, 0.0  ;;  %v1235_v58 = vsel %vm878_vm1, %v1124_v34, 0.0  ;;  %v1126_v33 = vmul.f32 %v2484_v61, %v2484_v61 }
 0x123   :  { %v1220_v52 = vadd.f32 %v1219_v46, %v1218_v44  ;;  %v1025_v56 = vadd.f32 %v1024_v1, %v1023_v38  ;;  %v1237_v44 = vsel %vm878_vm1, %v1125_v26, 0.0  ;;  %v1127_v47 = vmul.f32 %v2465_v18, %v2465_v18 }
 0x124   :  { %v1042_v63 = vsel %vm878_vm1, %v2484_v61, 0.0  ;;  %v1044_v32 = vsel %vm878_vm1, %v2465_v18, 0.0  ;;  %v1239_v51 = vsel %vm878_vm1, %v1126_v33, 0.0  ;;  %v1046_v61 = vsel %vm878_vm1, %v2500_v53, 0.0 }
 0x125   :  { %v1027_v0 = vadd.f32 %v1026_v59, %v1025_v56  ;;  %v1222_v17 = vadd.f32 %v1221_v49, %v1220_v52  ;;  %v1128_v52 = vmul.f32 %v2500_v53, %v2500_v53  ;;  %v1241_v57 = vsel %vm878_vm1, %v1127_v47, 0.0 }
 0x126   :  { %v1129_v59 = vmul.f32 %v2487_v13, %v2487_v13  ;;  %v1048_v18 = vsel %vm878_vm1, %v2487_v13, 0.0  ;;  %v1050_v53 = vsel %vm878_vm1, %v2521_v35, 0.0  ;;  %v1052_v13 = vsel %vm878_vm1, %v2518_v28, 0.0 }
 0x127   :  { %v1224_v8 = vadd.f32 %v1223_v29, %v1222_v17  ;;  %v1029_v48 = vadd.f32 %v1028_v50, %v1027_v0  ;;  %v1243_v6 = vsel %vm878_vm1, %v1128_v52, 0.0  ;;  %v1130_v50 = vmul.f32 %v2521_v35, %v2521_v35 }
 0x128   :  { %v1133_v27 = vmul.f32 %v2534_v39, %v2534_v39  ;;  %v1054_v35 = vsel %vm878_vm1, %v2552_v41, 0.0  ;;  %v1134_v37 = vmul.f32 %v2568_v31, %v2568_v31  ;;  %v1138_v33 = vmul.f32 %v2620_v12, %v2620_v12 }
 0x129   :  { %v1031_v14 = vadd.f32 %v1030_v9, %v1029_v48  ;;  %v1226_v15 = vadd.f32 %v1225_v24, %v1224_v8  ;;  %v1245_v8 = vsel %vm878_vm1, %v1129_v59, 0.0  ;;  %v1131_v48 = vmul.f32 %v2518_v28, %v2518_v28 }
 0x12a   :  { %v1247_v9 = vsel %vm878_vm1, %v1130_v50, 0.0  ;;  %v1056_v28 = vsel %vm878_vm1, %v2534_v39, 0.0  ;;  %v1060_v39 = vsel %vm878_vm1, %v2555_v45, 0.0  ;;  %v1139_v47 = vmul.f32 %v2602_v5, %v2602_v5 }
 0x12b   :  { %v1228_v3 = vadd.f32 %v1227_v16, %v1226_v15  ;;  %v1033_v19 = vadd.f32 %v1032_v54, %v1031_v14  ;;  %v1132_v14 = vmul.f32 %v2552_v41, %v2552_v41  ;;  %v1249_v16 = vsel %vm878_vm1, %v1131_v48, 0.0 }
 0x12c   :  { %v1058_v41 = vsel %vm878_vm1, %v2568_v31, 0.0  ;;  %v1062_v31 = vsel %vm878_vm1, %v2589_v2, 0.0  ;;  %v1265_v52 = vsel %vm878_vm1, %v1139_v47, 0.0 }
 0x12d   :  { %v1035_v20 = vadd.f32 %v1034_v43, %v1033_v19  ;;  %v1230_v21 = vadd.f32 %v1229_v11, %v1228_v3  ;;  %v1251_v11 = vsel %vm878_vm1, %v1132_v14, 0.0 }
 0x12f   :  { %v1232_v36 = vadd.f32 %v1231_v22, %v1230_v21  ;;  %v1037_v55 = vadd.f32 %v1036_v25, %v1035_v20  ;;  %v1253_v21 = vsel %vm878_vm1, %v1133_v27, 0.0  ;;  %v1135_v25 = vmul.f32 %v2555_v45, %v2555_v45 }
 0x130   :  { %v1064_v45 = vsel %vm878_vm1, %v2586_v60, 0.0 }
 0x131   :  { %v1039_v62 = vadd.f32 %v1038_v7, %v1037_v55  ;;  %v1234_v23 = vadd.f32 %v1233_v30, %v1232_v36  ;;  %v1255_v36 = vsel %vm878_vm1, %v1134_v37, 0.0  ;;  %v1136_v55 = vmul.f32 %v2589_v2, %v2589_v2 }
 0x132   :  { %v1257_v7 = vsel %vm878_vm1, %v1135_v25, 0.0  ;;  %v1066_v2 = vsel %vm878_vm1, %v2620_v12, 0.0 }
 0x133   :  { %v1236_v40 = vadd.f32 %v1235_v58, %v1234_v23  ;;  %v1041_v38 = vadd.f32 %v1040_v42, %v1039_v62  ;;  %v1137_v62 = vmul.f32 %v2586_v60, %v2586_v60  ;;  %v1259_v58 = vsel %vm878_vm1, %v1136_v55, 0.0 }
 0x134   :  { %v1068_v60 = vsel %vm878_vm1, %v2602_v5, 0.0 }
 0x135   :  { %v1043_v1 = vadd.f32 %v1042_v63, %v1041_v38  ;;  %v1238_v46 = vadd.f32 %v1237_v44, %v1236_v40  ;;  %v1261_v44 = vsel %vm878_vm1, %v1137_v62, 0.0 }
 0x137   :  { %v1240_v56 = vadd.f32 %v1239_v51, %v1238_v46  ;;  %v1045_v49 = vadd.f32 %v1044_v32, %v1043_v1  ;;  %v1263_v46 = vsel %vm878_vm1, %v1138_v33, 0.0 }
 0x139   :  { %v1047_v0 = vadd.f32 %v1046_v61, %v1045_v49  ;;  %v1242_v17 = vadd.f32 %v1241_v57, %v1240_v56  ;;  %v1273_v61 = vlaneseq }
 0x13b   :  { %v1244_v29 = vadd.f32 %v1243_v6, %v1242_v17  ;;  %v1049_v4 = vadd.f32 %v1048_v18, %v1047_v0  ;;  %v1274_v6 = vshrl.u32 %v1273_v61, 7 }
 0x13d   :  { %v1051_v24 = vadd.f32 %v1050_v53, %v1049_v4  ;;  %v1246_v10 = vadd.f32 %v1245_v8, %v1244_v29  ;;  %vm1275_vm2 = vcmp.eq.s32.totalorder %v1274_v6, 0  ;;  %vm1277_vm3 = vcmp.eq.s32.totalorder %v1274_v6, 1 }
 0x13f   :  { %v1248_v15 = vadd.f32 %v1247_v9, %v1246_v10  ;;  %v1053_v54 = vadd.f32 %v1052_v13, %v1051_v24 }
 0x141   :  { %v1055_v3 = vadd.f32 %v1054_v35, %v1053_v54  ;;  %v1250_v19 = vadd.f32 %v1249_v16, %v1248_v15 }
 0x143   :  { %v1252_v43 = vadd.f32 %v1251_v11, %v1250_v19  ;;  %v1057_v20 = vadd.f32 %v1056_v28, %v1055_v3 }
 0x145   :  { %v1059_v22 = vadd.f32 %v1058_v41, %v1057_v20  ;;  %v1254_v34 = vadd.f32 %v1253_v21, %v1252_v43 }
 0x147   :  { %v1256_v30 = vadd.f32 %v1255_v36, %v1254_v34  ;;  %v1061_v26 = vadd.f32 %v1060_v39, %v1059_v22 }
 0x149   :  { %v1063_v23 = vadd.f32 %v1062_v31, %v1061_v26  ;;  %v1258_v42 = vadd.f32 %v1257_v7, %v1256_v30 }
 0x14b   :  { %v1260_v40 = vadd.f32 %v1259_v58, %v1258_v42  ;;  %v1065_v38 = vadd.f32 %v1064_v45, %v1063_v23 }
 0x14d   :  { %v1067_v63 = vadd.f32 %v1066_v2, %v1065_v38  ;;  %v1262_v1 = vadd.f32 %v1261_v44, %v1260_v40 }
 0x14f   :  { %v1069_v32 = vadd.f32 %v1068_v60, %v1067_v63  ;;  %v1264_v51 = vadd.f32 %v1263_v46, %v1262_v1 }
 0x151   :  { %v1070_v56 = vrot.slane %v1069_v32, 4  ;;  %v1266_v49 = vadd.f32 %v1265_v52, %v1264_v51 }
 0x153   :  { %v1071_v57 = vadd.f32 %v1070_v56, %v1069_v32  ;;  %v1267_v59 = vrot.slane %v1266_v49, 4 }
 0x155   :  { %v1072_v0 = vrot.slane %v1071_v57, 2  ;;  %v1268_v17 = vadd.f32 %v1267_v59, %v1266_v49 }
 0x157   :  { %v1073_v18 = vadd.f32 %v1072_v0, %v1071_v57  ;;  %v1269_v12 = vrot.slane %v1268_v17, 2 }
 0x159   :  { %v1074_v50 = vrot.slane %v1073_v18, 1  ;;  %v1270_v29 = vadd.f32 %v1269_v12, %v1268_v17 }
 0x15b   :  { %v1075_v4 = vadd.f32 %v1074_v50, %v1073_v18  ;;  %v1271_v5 = vrot.slane %v1270_v29, 1 }
 0x15d   :  { %v1272_v8 = vadd.f32 %v1271_v5, %v1270_v29  ;;  %v1276_v48 = vsel %vm1275_vm2, %v1075_v4, 0.0 }
 0x15f   :  { %v1278_v53 = vsel %vm1277_vm3, %v1272_v8, 0.0 }
 0x160   :  { %v1279_v24 = vadd.f32 %v1278_v53, %v1276_v48 }
 0x162   :  { %1280 = vst.msk [vmem:[%s2731_s6] sm:$0xff] %vm878_vm1, %v1279_v24 }

// kernel: bottleneck2_forward.4
= control target key start
LH: loop header
LB: loop body
LE: loop exit
PB: predicated region body
PF: predicated region fallthrough
CT: control target
= control target key end

     0   :  { %vm281_vm0 = vcmask 1043456   ;;  %vm88_vm1 = vcmask 31744   ;;  %vm670_vm2 = vcmask 64512   ;;  %s2308_s1 = inlined_call_operand.vmem [shape: f32[4,8], index: 1, kind: input, shape index: {}]   ;;  %s2309_s0 = inlined_call_operand.vmem [shape: f32[512,4], index: 0, kind: input, shape index: {}]   ;;  %s2310_s2 = inlined_call_operand.vmem [shape: f32[1,8], index: 2, kind: input, shape index: {}]   ;;  %s2311_s3 = inlined_call_operand.vmem [shape: f32[512,8], index: 3, kind: output, shape index: {0}]   ;;  %s2312_s4 = inlined_call_operand.vmem [shape: f32[1,8,8], index: 4, kind: output, shape index: {1}]  }
   0x1   :  { %v80_v0 = vld [vmem:[%s2308_s1] sm:$0xf]  ;;  %v17_v2 = vld [vmem:[%s2309_s0 + $0x8] sm:$0xff]  ;;  %v18_v3 = vld [vmem:[%s2309_s0 + $0x10] sm:$0xff] }
   0x2   :  { %v16_v1 = vld [vmem:[%s2309_s0] sm:$0xff]  ;;  %1212 = vmatprep.subr.msk.mxu0 %vm281_vm0, %v80_v0  ;;  %1310 = vmatprep.subr.msk.mxu1 %vm281_vm0, %v80_v0  ;;  %v19_v4 = vld [vmem:[%s2309_s0 + $0x18] sm:$0xff]  ;;  %v21_v6 = vld [vmem:[%s2309_s0 + $0x28] sm:$0xff] }
   0x3   :  { %1214 = vmatprep.mubr.msk.f32.mxu0 %vm88_vm1, %v16_v1  ;;  %1213 = vmatpush3.msk.msra.mxu0 %vm281_vm0, %v80_v0  ;;  %v20_v5 = vld [vmem:[%s2309_s0 + $0x20] sm:$0xff]  ;;  %v22_v7 = vld [vmem:[%s2309_s0 + $0x30] sm:$0xff]  ;;  %v49_v9 = vld [vmem:[%s2309_s0 + $0x108] sm:$0xff] }
   0x4   :  { %1215 = vmatmul.mubr.msk.f32.vlgmr.msra.gmra.mxu0 %vm88_vm1, %v17_v2  ;;  %1311 = vmatpush3.msk.msra.mxu1 %vm281_vm0, %v80_v0  ;;  %v48_v8 = vld [vmem:[%s2309_s0 + $0x100] sm:$0xff]  ;;  %v50_v10 = vld [vmem:[%s2309_s0 + $0x110] sm:$0xff]  ;;  %v23_v11 = vld [vmem:[%s2309_s0 + $0x38] sm:$0xff] }
   0x5   :  { %1217 = vmatprep.mubr.msk.f32.mxu0 %vm88_vm1, %v18_v3  ;;  %1262 = vmatprep.mubr.msk.f32.mxu1 %vm88_vm1, %v48_v8  ;;  %v24_v12 = vld [vmem:[%s2309_s0 + $0x40] sm:$0xff]  ;;  %v51_v13 = vld [vmem:[%s2309_s0 + $0x118] sm:$0xff]  ;;  %v25_v15 = vld [vmem:[%s2309_s0 + $0x48] sm:$0xff] }
   0x6   :  { %1263 = vmatmul.mubr.msk.f32.vlgmr.msra.gmra.mxu1 %vm88_vm1, %v49_v9  ;;  %v52_v14 = vld [vmem:[%s2309_s0 + $0x120] sm:$0xff]  ;;  %v26_v16 = vld [vmem:[%s2309_s0 + $0x50] sm:$0xff]  ;;  %v53_v17 = vld [vmem:[%s2309_s0 + $0x128] sm:$0xff] }
   0x7   :  { %1265 = vmatprep.mubr.msk.f32.mxu1 %vm88_vm1, %v50_v10  ;;  %v54_v18 = vld [vmem:[%s2309_s0 + $0x130] sm:$0xff]  ;;  %v27_v19 = vld [vmem:[%s2309_s0 + $0x58] sm:$0xff]  ;;  %v28_v20 = vld [vmem:[%s2309_s0 + $0x60] sm:$0xff] }
   0x8   :  { %1218 = vmatmul.mubr.msk.f32.gmra.mxu0 %vm88_vm1, %v19_v4  ;;  %v55_v21 = vld [vmem:[%s2309_s0 + $0x138] sm:$0xff]  ;;  %v56_v22 = vld [vmem:[%s2309_s0 + $0x140] sm:$0xff]  ;;  %v29_v23 = vld [vmem:[%s2309_s0 + $0x68] sm:$0xff] }
   0x9   :  { %1220 = vmatprep.mubr.msk.f32.mxu0 %vm88_vm1, %v20_v5  ;;  %v30_v24 = vld [vmem:[%s2309_s0 + $0x70] sm:$0xff]  ;;  %v57_v25 = vld [vmem:[%s2309_s0 + $0x148] sm:$0xff]  ;;  %v31_v27 = vld [vmem:[%s2309_s0 + $0x78] sm:$0xff] }
   0xa   :  { %1266 = vmatmul.mubr.msk.f32.gmra.mxu1 %vm88_vm1, %v51_v13  ;;  %v58_v26 = vld [vmem:[%s2309_s0 + $0x150] sm:$0xff]  ;;  %v32_v28 = vld [vmem:[%s2309_s0 + $0x80] sm:$0xff]  ;;  %v59_v29 = vld [vmem:[%s2309_s0 + $0x158] sm:$0xff] }
   0xb   :  { %1268 = vmatprep.mubr.msk.f32.mxu1 %vm88_vm1, %v52_v14  ;;  %v60_v30 = vld [vmem:[%s2309_s0 + $0x160] sm:$0xff]  ;;  %v33_v31 = vld [vmem:[%s2309_s0 + $0x88] sm:$0xff]  ;;  %v34_v32 = vld [vmem:[%s2309_s0 + $0x90] sm:$0xff] }
   0xc   :  { %1221 = vmatmul.mubr.msk.f32.gmra.mxu0 %vm88_vm1, %v21_v6  ;;  %v61_v33 = vld [vmem:[%s2309_s0 + $0x168] sm:$0xff]  ;;  %v62_v34 = vld [vmem:[%s2309_s0 + $0x170] sm:$0xff]  ;;  %v35_v35 = vld [vmem:[%s2309_s0 + $0x98] sm:$0xff] }
   0xd   :  { %1223 = vmatprep.mubr.msk.f32.mxu0 %vm88_vm1, %v22_v7  ;;  %v36_v36 = vld [vmem:[%s2309_s0 + $0xa0] sm:$0xff]  ;;  %v63_v37 = vld [vmem:[%s2309_s0 + $0x178] sm:$0xff]  ;;  %v37_v39 = vld [vmem:[%s2309_s0 + $0xa8] sm:$0xff] }
   0xe   :  { %1269 = vmatmul.mubr.msk.f32.gmra.mxu1 %vm88_vm1, %v53_v17  ;;  %v64_v38 = vld [vmem:[%s2309_s0 + $0x180] sm:$0xff]  ;;  %v38_v40 = vld [vmem:[%s2309_s0 + $0xb0] sm:$0xff]  ;;  %v65_v41 = vld [vmem:[%s2309_s0 + $0x188] sm:$0xff] }
   0xf   :  { %1271 = vmatprep.mubr.msk.f32.mxu1 %vm88_vm1, %v54_v18  ;;  %v66_v42 = vld [vmem:[%s2309_s0 + $0x190] sm:$0xff]  ;;  %v39_v43 = vld [vmem:[%s2309_s0 + $0xb8] sm:$0xff]  ;;  %v40_v44 = vld [vmem:[%s2309_s0 + $0xc0] sm:$0xff] }
  0x10   :  { %1224 = vmatmul.mubr.msk.f32.gmra.mxu0 %vm88_vm1, %v23_v11  ;;  %v67_v45 = vld [vmem:[%s2309_s0 + $0x198] sm:$0xff]  ;;  %v68_v46 = vld [vmem:[%s2309_s0 + $0x1a0] sm:$0xff]  ;;  %v41_v47 = vld [vmem:[%s2309_s0 + $0xc8] sm:$0xff] }
  0x11   :  { %1226 = vmatprep.mubr.msk.f32.mxu0 %vm88_vm1, %v24_v12  ;;  %v42_v48 = vld [vmem:[%s2309_s0 + $0xd0] sm:$0xff]  ;;  %v69_v49 = vld [vmem:[%s2309_s0 + $0x1a8] sm:$0xff]  ;;  %v43_v51 = vld [vmem:[%s2309_s0 + $0xd8] sm:$0xff] }
  0x12   :  { %1272 = vmatmul.mubr.msk.f32.gmra.mxu1 %vm88_vm1, %v55_v21  ;;  %v70_v50 = vld [vmem:[%s2309_s0 + $0x1b0] sm:$0xff]  ;;  %v44_v52 = vld [vmem:[%s2309_s0 + $0xe0] sm:$0xff]  ;;  %v71_v53 = vld [vmem:[%s2309_s0 + $0x1b8] sm:$0xff] }
  0x13   :  { %1274 = vmatprep.mubr.msk.f32.mxu1 %vm88_vm1, %v56_v22  ;;  %v72_v54 = vld [vmem:[%s2309_s0 + $0x1c0] sm:$0xff]  ;;  %v45_v55 = vld [vmem:[%s2309_s0 + $0xe8] sm:$0xff]  ;;  %v46_v56 = vld [vmem:[%s2309_s0 + $0xf0] sm:$0xff] }
  0x14   :  { %1227 = vmatmul.mubr.msk.f32.gmra.mxu0 %vm88_vm1, %v25_v15  ;;  %v73_v57 = vld [vmem:[%s2309_s0 + $0x1c8] sm:$0xff]  ;;  %v74_v58 = vld [vmem:[%s2309_s0 + $0x1d0] sm:$0xff]  ;;  %v47_v59 = vld [vmem:[%s2309_s0 + $0xf8] sm:$0xff] }
  0x15   :  { %1229 = vmatprep.mubr.msk.f32.mxu0 %vm88_vm1, %v26_v16  ;;  %v75_v60 = vld [vmem:[%s2309_s0 + $0x1d8] sm:$0xff]  ;;  %v76_v61 = vld [vmem:[%s2309_s0 + $0x1e0] sm:$0xff]  ;;  %v77_v62 = vld [vmem:[%s2309_s0 + $0x1e8] sm:$0xff] }
  0x16   :  { %1275 = vmatmul.mubr.msk.f32.gmra.mxu1 %vm88_vm1, %v57_v25  ;;  %v78_v63 = vld [vmem:[%s2309_s0 + $0x1f0] sm:$0xff]  ;;  %v79_v0 = vld [vmem:[%s2309_s0 + $0x1f8] sm:$0xff]  ;;  %v1599_v1 = vld [vmem:[%s2310_s2] ss:$0 sm:$0xff] }
  0x17   :  { %1277 = vmatprep.mubr.msk.f32.mxu1 %vm88_vm1, %v58_v26 }
  0x18   :  { %1230 = vmatmul.mubr.msk.f32.gmra.mxu0 %vm88_vm1, %v27_v19 }
  0x19   :  { %1232 = vmatprep.mubr.msk.f32.mxu0 %vm88_vm1, %v28_v20 }
  0x1a   :  { %1278 = vmatmul.mubr.msk.f32.gmra.mxu1 %vm88_vm1, %v59_v29 }
  0x1b   :  { %1280 = vmatprep.mubr.msk.f32.mxu1 %vm88_vm1, %v60_v30 }
  0x1c   :  { %1233 = vmatmul.mubr.msk.f32.gmra.mxu0 %vm88_vm1, %v29_v23 }
  0x1d   :  { %1235 = vmatprep.mubr.msk.f32.mxu0 %vm88_vm1, %v30_v24 }
  0x1e   :  { %1281 = vmatmul.mubr.msk.f32.gmra.mxu1 %vm88_vm1, %v61_v33 }
  0x1f   :  { %1283 = vmatprep.mubr.msk.f32.mxu1 %vm88_vm1, %v62_v34 }
  0x20   :  { %1236 = vmatmul.mubr.msk.f32.gmra.mxu0 %vm88_vm1, %v31_v27 }
  0x21   :  { %1238 = vmatprep.mubr.msk.f32.mxu0 %vm88_vm1, %v32_v28 }
  0x22   :  { %1284 = vmatmul.mubr.msk.f32.gmra.mxu1 %vm88_vm1, %v63_v37 }
  0x23   :  { %1286 = vmatprep.mubr.msk.f32.mxu1 %vm88_vm1, %v64_v38 }
  0x24   :  { %1239 = vmatmul.mubr.msk.f32.gmra.mxu0 %vm88_vm1, %v33_v31 }
  0x25   :  { %1241 = vmatprep.mubr.msk.f32.mxu0 %vm88_vm1, %v34_v32 }
  0x26   :  { %1287 = vmatmul.mubr.msk.f32.gmra.mxu1 %vm88_vm1, %v65_v41 }
  0x27   :  { %1289 = vmatprep.mubr.msk.f32.mxu1 %vm88_vm1, %v66_v42 }
  0x28   :  { %1242 = vmatmul.mubr.msk.f32.gmra.mxu0 %vm88_vm1, %v35_v35 }
  0x29   :  { %1244 = vmatprep.mubr.msk.f32.mxu0 %vm88_vm1, %v36_v36 }
  0x2a   :  { %1290 = vmatmul.mubr.msk.f32.gmra.mxu1 %vm88_vm1, %v67_v45 }
  0x2b   :  { %1292 = vmatprep.mubr.msk.f32.mxu1 %vm88_vm1, %v68_v46 }
  0x2c   :  { %1245 = vmatmul.mubr.msk.f32.gmra.mxu0 %vm88_vm1, %v37_v39 }
  0x2d   :  { %1247 = vmatprep.mubr.msk.f32.mxu0 %vm88_vm1, %v38_v40 }
  0x2e   :  { %1293 = vmatmul.mubr.msk.f32.gmra.mxu1 %vm88_vm1, %v69_v49 }
  0x2f   :  { %1295 = vmatprep.mubr.msk.f32.mxu1 %vm88_vm1, %v70_v50 }
  0x30   :  { %1248 = vmatmul.mubr.msk.f32.gmra.mxu0 %vm88_vm1, %v39_v43 }
  0x31   :  { %1250 = vmatprep.mubr.msk.f32.mxu0 %vm88_vm1, %v40_v44 }
  0x32   :  { %1296 = vmatmul.mubr.msk.f32.gmra.mxu1 %vm88_vm1, %v71_v53 }
  0x33   :  { %1298 = vmatprep.mubr.msk.f32.mxu1 %vm88_vm1, %v72_v54 }
  0x34   :  { %1251 = vmatmul.mubr.msk.f32.gmra.mxu0 %vm88_vm1, %v41_v47 }
  0x35   :  { %1253 = vmatprep.mubr.msk.f32.mxu0 %vm88_vm1, %v42_v48 }
  0x36   :  { %1299 = vmatmul.mubr.msk.f32.gmra.mxu1 %vm88_vm1, %v73_v57 }
  0x37   :  { %1301 = vmatprep.mubr.msk.f32.mxu1 %vm88_vm1, %v74_v58 }
  0x38   :  { %1254 = vmatmul.mubr.msk.f32.gmra.mxu0 %vm88_vm1, %v43_v51 }
  0x39   :  { %1256 = vmatprep.mubr.msk.f32.mxu0 %vm88_vm1, %v44_v52 }
  0x3a   :  { %1302 = vmatmul.mubr.msk.f32.gmra.mxu1 %vm88_vm1, %v75_v60 }
  0x3b   :  { %1304 = vmatprep.mubr.msk.f32.mxu1 %vm88_vm1, %v76_v61 }
  0x3c   :  { %1257 = vmatmul.mubr.msk.f32.gmra.mxu0 %vm88_vm1, %v45_v55 }
  0x3d   :  { %1259 = vmatprep.mubr.msk.f32.mxu0 %vm88_vm1, %v46_v56 }
  0x3e   :  { %1305 = vmatmul.mubr.msk.f32.gmra.mxu1 %vm88_vm1, %v77_v62 }
  0x3f   :  { %1307 = vmatprep.mubr.msk.f32.mxu1 %vm88_vm1, %v78_v63 }
  0x40   :  { %1260 = vmatmul.mubr.msk.f32.gmra.mxu0 %vm88_vm1, %v47_v59 }
  0x42   :  { %1308 = vmatmul.mubr.msk.f32.gmra.mxu1 %vm88_vm1, %v79_v0 }
  0xc4   :  { %v1216_v2 = vpop.f32.mrf.mxu0 }
  0xc5   :  { %v357_v3 = vadd.f32 %v1216_v2, %v1599_v1 }
  0xc6   :  { %v351_v4 = vpop.f32.mrf.mxu0  ;;  %v1264_v25 = vpop.f32.mrf.mxu1 }
  0xc7   :  { %672 = vst.msk [vmem:[%s2311_s3 + $0x8] sm:$0xff] %vm670_vm2, %v357_v3  ;;  %v352_v5 = vadd.f32 %v1599_v1, %v351_v4  ;;  %v869_v6 = vmul.f32 %v357_v3, %v357_v3  ;;  %v736_v12 = vsel %vm670_vm2, %v357_v3, 0.0  ;;  %v1635_v33 = vadd.f32 %v1264_v25, %v1599_v1 }
  0xc8   :  { %v1219_v7 = vpop.f32.mrf.mxu0  ;;  %v511_v34 = vpop.f32.mrf.mxu1 }
  0xc9   :  { %671 = vst.msk [vmem:[%s2311_s3] sm:$0xff] %vm670_vm2, %v352_v5  ;;  %v735_v8 = vsel %vm670_vm2, %v352_v5, 0.0  ;;  %v868_v9 = vmul.f32 %v352_v5, %v352_v5  ;;  %v367_v10 = vadd.f32 %v1219_v7, %v1599_v1  ;;  %v933_v15 = vsel %vm670_vm2, %v869_v6, 0.0  ;;  %704 = vst.msk [vmem:[%s2311_s3 + $0x108] sm:$0xff] %vm670_vm2, %v1635_v33 }
  0xca   :  { %v361_v11 = vpop.f32.mrf.mxu0  ;;  %v737_v16 = vadd.f32 %v736_v12, %v735_v8  ;;  %v1267_v42 = vpop.f32.mrf.mxu1  ;;  %v1658_v50 = vadd.f32 %v1599_v1, %v511_v34 }
  0xcb   :  { %v932_v13 = vsel %vm670_vm2, %v868_v9, 0.0  ;;  %674 = vst.msk [vmem:[%s2311_s3 + $0x18] sm:$0xff] %vm670_vm2, %v367_v10  ;;  %v362_v14 = vadd.f32 %v1599_v1, %v361_v11  ;;  %v871_v18 = vmul.f32 %v367_v10, %v367_v10  ;;  %v740_v26 = vsel %vm670_vm2, %v367_v10, 0.0 }
  0xcc   :  { %v1222_v17 = vpop.f32.mrf.mxu0  ;;  %v934_v22 = vadd.f32 %v933_v15, %v932_v13  ;;  %v521_v51 = vpop.f32.mrf.mxu1  ;;  %703 = vst.msk [vmem:[%s2311_s3 + $0x100] sm:$0xff] %vm670_vm2, %v1658_v50  ;;  %v1679_v4 = vadd.f32 %v1267_v42, %v1599_v1 }
  0xcd   :  { %673 = vst.msk [vmem:[%s2311_s3 + $0x10] sm:$0xff] %vm670_vm2, %v362_v14  ;;  %v738_v19 = vsel %vm670_vm2, %v362_v14, 0.0  ;;  %v870_v20 = vmul.f32 %v362_v14, %v362_v14  ;;  %v377_v21 = vadd.f32 %v1222_v17, %v1599_v1  ;;  %v937_v35 = vsel %vm670_vm2, %v871_v18, 0.0 }
  0xce   :  { %v739_v23 = vadd.f32 %v738_v19, %v737_v16  ;;  %v371_v24 = vpop.f32.mrf.mxu0  ;;  %v1270_v59 = vpop.f32.mrf.mxu1  ;;  %706 = vst.msk [vmem:[%s2311_s3 + $0x118] sm:$0xff] %vm670_vm2, %v1679_v4 }
  0xcf   :  { %v935_v27 = vsel %vm670_vm2, %v870_v20, 0.0  ;;  %676 = vst.msk [vmem:[%s2311_s3 + $0x28] sm:$0xff] %vm670_vm2, %v377_v21  ;;  %v372_v28 = vadd.f32 %v1599_v1, %v371_v24  ;;  %v873_v30 = vmul.f32 %v377_v21, %v377_v21  ;;  %v744_v43 = vsel %vm670_vm2, %v377_v21, 0.0 }
  0xd0   :  { %v936_v29 = vadd.f32 %v935_v27, %v934_v22  ;;  %v741_v31 = vadd.f32 %v740_v26, %v739_v23  ;;  %v1225_v32 = vpop.f32.mrf.mxu0  ;;  %v531_v5 = vpop.f32.mrf.mxu1  ;;  %v1704_v21 = vadd.f32 %v1599_v1, %v521_v51 }
  0xd1   :  { %675 = vst.msk [vmem:[%s2311_s3 + $0x20] sm:$0xff] %vm670_vm2, %v372_v28  ;;  %v742_v36 = vsel %vm670_vm2, %v372_v28, 0.0  ;;  %v872_v37 = vmul.f32 %v372_v28, %v372_v28  ;;  %v387_v38 = vadd.f32 %v1225_v32, %v1599_v1  ;;  %v941_v46 = vsel %vm670_vm2, %v873_v30, 0.0 }
  0xd2   :  { %v743_v39 = vadd.f32 %v742_v36, %v741_v31  ;;  %v938_v40 = vadd.f32 %v937_v35, %v936_v29  ;;  %v381_v41 = vpop.f32.mrf.mxu0  ;;  %v1693_v13 = vpop.f32.mrf.mxu1  ;;  %705 = vst.msk [vmem:[%s2311_s3 + $0x110] sm:$0xff] %vm670_vm2, %v1704_v21 }
  0xd3   :  { %v939_v44 = vsel %vm670_vm2, %v872_v37, 0.0  ;;  %678 = vst.msk [vmem:[%s2311_s3 + $0x38] sm:$0xff] %vm670_vm2, %v387_v38  ;;  %v382_v45 = vadd.f32 %v1599_v1, %v381_v41  ;;  %v875_v52 = vmul.f32 %v387_v38, %v387_v38  ;;  %v748_v60 = vsel %vm670_vm2, %v387_v38, 0.0 }
  0xd4   :  { %v940_v47 = vadd.f32 %v939_v44, %v938_v40  ;;  %v745_v48 = vadd.f32 %v744_v43, %v743_v39  ;;  %v1228_v49 = vpop.f32.mrf.mxu0  ;;  %v1706_v22 = vpop.f32.mrf.mxu1  ;;  %v1729_v39 = vadd.f32 %v1270_v59, %v1599_v1 }
  0xd5   :  { %677 = vst.msk [vmem:[%s2311_s3 + $0x30] sm:$0xff] %vm670_vm2, %v382_v45  ;;  %v746_v53 = vsel %vm670_vm2, %v382_v45, 0.0  ;;  %v874_v54 = vmul.f32 %v382_v45, %v382_v45  ;;  %v397_v55 = vadd.f32 %v1228_v49, %v1599_v1  ;;  %v945_v6 = vsel %vm670_vm2, %v875_v52, 0.0 }
  0xd6   :  { %v747_v56 = vadd.f32 %v746_v53, %v745_v48  ;;  %v942_v57 = vadd.f32 %v941_v46, %v940_v47  ;;  %v391_v58 = vpop.f32.mrf.mxu0  ;;  %v1719_v30 = vpop.f32.mrf.mxu1  ;;  %708 = vst.msk [vmem:[%s2311_s3 + $0x128] sm:$0xff] %vm670_vm2, %v1729_v39 }
  0xd7   :  { %v943_v61 = vsel %vm670_vm2, %v874_v54, 0.0  ;;  %680 = vst.msk [vmem:[%s2311_s3 + $0x48] sm:$0xff] %vm670_vm2, %v397_v55  ;;  %v392_v62 = vadd.f32 %v1599_v1, %v391_v58  ;;  %v877_v0 = vmul.f32 %v397_v55, %v397_v55  ;;  %v752_v14 = vsel %vm670_vm2, %v397_v55, 0.0 }
  0xd8   :  { %v944_v63 = vadd.f32 %v943_v61, %v942_v57  ;;  %v749_v2 = vadd.f32 %v748_v60, %v747_v56  ;;  %v1231_v3 = vpop.f32.mrf.mxu0  ;;  %v1731_v40 = vpop.f32.mrf.mxu1  ;;  %v1756_v57 = vadd.f32 %v1599_v1, %v531_v5 }
  0xd9   :  { %679 = vst.msk [vmem:[%s2311_s3 + $0x40] sm:$0xff] %vm670_vm2, %v392_v62  ;;  %v750_v7 = vsel %vm670_vm2, %v392_v62, 0.0  ;;  %v876_v8 = vmul.f32 %v392_v62, %v392_v62  ;;  %v407_v9 = vadd.f32 %v1231_v3, %v1599_v1  ;;  %v949_v17 = vsel %vm670_vm2, %v877_v0, 0.0 }
  0xda   :  { %v751_v10 = vadd.f32 %v750_v7, %v749_v2  ;;  %v946_v11 = vadd.f32 %v945_v6, %v944_v63  ;;  %v401_v12 = vpop.f32.mrf.mxu0  ;;  %v1745_v48 = vpop.f32.mrf.mxu1  ;;  %707 = vst.msk [vmem:[%s2311_s3 + $0x120] sm:$0xff] %vm670_vm2, %v1756_v57 }
  0xdb   :  { %v947_v15 = vsel %vm670_vm2, %v876_v8, 0.0  ;;  %682 = vst.msk [vmem:[%s2311_s3 + $0x58] sm:$0xff] %vm670_vm2, %v407_v9  ;;  %v402_v16 = vadd.f32 %v1599_v1, %v401_v12  ;;  %v879_v23 = vmul.f32 %v407_v9, %v407_v9  ;;  %v756_v31 = vsel %vm670_vm2, %v407_v9, 0.0 }
  0xdc   :  { %v948_v18 = vadd.f32 %v947_v15, %v946_v11  ;;  %v753_v19 = vadd.f32 %v752_v14, %v751_v10  ;;  %v1234_v20 = vpop.f32.mrf.mxu0  ;;  %v1758_v58 = vpop.f32.mrf.mxu1  ;;  %v1782_v12 = vadd.f32 %v1693_v13, %v1599_v1 }
  0xdd   :  { %681 = vst.msk [vmem:[%s2311_s3 + $0x50] sm:$0xff] %vm670_vm2, %v402_v16  ;;  %v754_v24 = vsel %vm670_vm2, %v402_v16, 0.0  ;;  %v878_v25 = vmul.f32 %v402_v16, %v402_v16  ;;  %v417_v26 = vadd.f32 %v1234_v20, %v1599_v1  ;;  %v953_v41 = vsel %vm670_vm2, %v879_v23, 0.0 }
  0xde   :  { %v755_v27 = vadd.f32 %v754_v24, %v753_v19  ;;  %v950_v28 = vadd.f32 %v949_v17, %v948_v18  ;;  %v411_v29 = vpop.f32.mrf.mxu0  ;;  %v1771_v3 = vpop.f32.mrf.mxu1  ;;  %710 = vst.msk [vmem:[%s2311_s3 + $0x138] sm:$0xff] %vm670_vm2, %v1782_v12 }
  0xdf   :  { %v951_v32 = vsel %vm670_vm2, %v878_v25, 0.0  ;;  %684 = vst.msk [vmem:[%s2311_s3 + $0x68] sm:$0xff] %vm670_vm2, %v417_v26  ;;  %v412_v34 = vadd.f32 %v1599_v1, %v411_v29  ;;  %v881_v36 = vmul.f32 %v417_v26, %v417_v26  ;;  %v760_v49 = vsel %vm670_vm2, %v417_v26, 0.0 }
  0xe0   :  { %v952_v35 = vadd.f32 %v951_v32, %v950_v28  ;;  %v757_v37 = vadd.f32 %v756_v31, %v755_v27  ;;  %v1237_v38 = vpop.f32.mrf.mxu0  ;;  %v1784_v14 = vpop.f32.mrf.mxu1  ;;  %v1810_v32 = vadd.f32 %v1599_v1, %v1706_v22 }
  0xe1   :  { %683 = vst.msk [vmem:[%s2311_s3 + $0x60] sm:$0xff] %vm670_vm2, %v412_v34  ;;  %v758_v42 = vsel %vm670_vm2, %v412_v34, 0.0  ;;  %v880_v43 = vmul.f32 %v412_v34, %v412_v34  ;;  %v427_v44 = vadd.f32 %v1237_v38, %v1599_v1  ;;  %v957_v53 = vsel %vm670_vm2, %v881_v36, 0.0 }
  0xe2   :  { %v759_v45 = vadd.f32 %v758_v42, %v757_v37  ;;  %v954_v46 = vadd.f32 %v953_v41, %v952_v35  ;;  %v421_v47 = vpop.f32.mrf.mxu0  ;;  %v1798_v13 = vpop.f32.mrf.mxu1  ;;  %709 = vst.msk [vmem:[%s2311_s3 + $0x130] sm:$0xff] %vm670_vm2, %v1810_v32 }
  0xe3   :  { %v955_v51 = vsel %vm670_vm2, %v880_v43, 0.0  ;;  %686 = vst.msk [vmem:[%s2311_s3 + $0x78] sm:$0xff] %vm670_vm2, %v427_v44  ;;  %v422_v52 = vadd.f32 %v1599_v1, %v421_v47  ;;  %v883_v59 = vmul.f32 %v427_v44, %v427_v44  ;;  %v764_v5 = vsel %vm670_vm2, %v427_v44, 0.0 }
  0xe4   :  { %v956_v54 = vadd.f32 %v955_v51, %v954_v46  ;;  %v761_v55 = vadd.f32 %v760_v49, %v759_v45  ;;  %v1240_v56 = vpop.f32.mrf.mxu0  ;;  %v1812_v34 = vpop.f32.mrf.mxu1 }
  0xe5   :  { %685 = vst.msk [vmem:[%s2311_s3 + $0x70] sm:$0xff] %vm670_vm2, %v422_v52  ;;  %v762_v60 = vsel %vm670_vm2, %v422_v52, 0.0  ;;  %v882_v61 = vmul.f32 %v422_v52, %v422_v52  ;;  %v437_v62 = vadd.f32 %v1240_v56, %v1599_v1  ;;  %v961_v15 = vsel %vm670_vm2, %v883_v59, 0.0 }
  0xe6   :  { %v763_v63 = vadd.f32 %v762_v60, %v761_v55  ;;  %v958_v0 = vadd.f32 %v957_v53, %v956_v54  ;;  %v431_v2 = vpop.f32.mrf.mxu0  ;;  %v1825_v22 = vpop.f32.mrf.mxu1  ;;  %v1836_v53 = vadd.f32 %v1719_v30, %v1599_v1 }
  0xe7   :  { %v959_v6 = vsel %vm670_vm2, %v882_v61, 0.0  ;;  %688 = vst.msk [vmem:[%s2311_s3 + $0x88] sm:$0xff] %vm670_vm2, %v437_v62  ;;  %v432_v7 = vadd.f32 %v1599_v1, %v431_v2  ;;  %v885_v9 = vmul.f32 %v437_v62, %v437_v62  ;;  %v768_v24 = vsel %vm670_vm2, %v437_v62, 0.0 }
  0xe8   :  { %v960_v8 = vadd.f32 %v959_v6, %v958_v0  ;;  %v765_v10 = vadd.f32 %v764_v5, %v763_v63  ;;  %v1243_v11 = vpop.f32.mrf.mxu0  ;;  %v1838_v54 = vpop.f32.mrf.mxu1  ;;  %712 = vst.msk [vmem:[%s2311_s3 + $0x148] sm:$0xff] %vm670_vm2, %v1836_v53 }
  0xe9   :  { %687 = vst.msk [vmem:[%s2311_s3 + $0x80] sm:$0xff] %vm670_vm2, %v432_v7  ;;  %v766_v16 = vsel %vm670_vm2, %v432_v7, 0.0  ;;  %v884_v17 = vmul.f32 %v432_v7, %v432_v7  ;;  %v447_v18 = vadd.f32 %v1243_v11, %v1599_v1  ;;  %v965_v27 = vsel %vm670_vm2, %v885_v9, 0.0 }
  0xea   :  { %v767_v19 = vadd.f32 %v766_v16, %v765_v10  ;;  %v962_v20 = vadd.f32 %v961_v15, %v960_v8  ;;  %v441_v23 = vpop.f32.mrf.mxu0  ;;  %v1852_v30 = vpop.f32.mrf.mxu1  ;;  %v1864_v10 = vadd.f32 %v1599_v1, %v1731_v40 }
  0xeb   :  { %v963_v25 = vsel %vm670_vm2, %v884_v17, 0.0  ;;  %690 = vst.msk [vmem:[%s2311_s3 + $0x98] sm:$0xff] %vm670_vm2, %v447_v18  ;;  %v442_v26 = vadd.f32 %v1599_v1, %v441_v23  ;;  %v887_v35 = vmul.f32 %v447_v18, %v447_v18  ;;  %v772_v44 = vsel %vm670_vm2, %v447_v18, 0.0 }
  0xec   :  { %v964_v28 = vadd.f32 %v963_v25, %v962_v20  ;;  %v769_v29 = vadd.f32 %v768_v24, %v767_v19  ;;  %v1246_v31 = vpop.f32.mrf.mxu0  ;;  %v1866_v11 = vpop.f32.mrf.mxu1  ;;  %711 = vst.msk [vmem:[%s2311_s3 + $0x140] sm:$0xff] %vm670_vm2, %v1864_v10 }
  0xed   :  { %689 = vst.msk [vmem:[%s2311_s3 + $0x90] sm:$0xff] %vm670_vm2, %v442_v26  ;;  %v770_v36 = vsel %vm670_vm2, %v442_v26, 0.0  ;;  %v886_v37 = vmul.f32 %v442_v26, %v442_v26  ;;  %v457_v38 = vadd.f32 %v1246_v31, %v1599_v1  ;;  %v969_v55 = vsel %vm670_vm2, %v887_v35, 0.0 }
  0xee   :  { %v771_v41 = vadd.f32 %v770_v36, %v769_v29  ;;  %v966_v42 = vadd.f32 %v965_v27, %v964_v28  ;;  %v451_v43 = vpop.f32.mrf.mxu0  ;;  %v1879_v40 = vpop.f32.mrf.mxu1  ;;  %v1890_v35 = vadd.f32 %v1745_v48, %v1599_v1 }
  0xef   :  { %v967_v45 = vsel %vm670_vm2, %v886_v37, 0.0  ;;  %692 = vst.msk [vmem:[%s2311_s3 + $0xa8] sm:$0xff] %vm670_vm2, %v457_v38  ;;  %v452_v46 = vadd.f32 %v1599_v1, %v451_v43  ;;  %v889_v49 = vmul.f32 %v457_v38, %v457_v38  ;;  %v776_v0 = vsel %vm670_vm2, %v457_v38, 0.0 }
  0xf0   :  { %v968_v47 = vadd.f32 %v967_v45, %v966_v42  ;;  %v773_v51 = vadd.f32 %v772_v44, %v771_v41  ;;  %v1249_v52 = vpop.f32.mrf.mxu0  ;;  %v1892_v36 = vpop.f32.mrf.mxu1  ;;  %714 = vst.msk [vmem:[%s2311_s3 + $0x158] sm:$0xff] %vm670_vm2, %v1890_v35 }
  0xf1   :  { %691 = vst.msk [vmem:[%s2311_s3 + $0xa0] sm:$0xff] %vm670_vm2, %v452_v46  ;;  %v774_v56 = vsel %vm670_vm2, %v452_v46, 0.0  ;;  %v888_v59 = vmul.f32 %v452_v46, %v452_v46  ;;  %v467_v60 = vadd.f32 %v1249_v52, %v1599_v1  ;;  %v973_v6 = vsel %vm670_vm2, %v889_v49, 0.0 }
  0xf2   :  { %v775_v61 = vadd.f32 %v774_v56, %v773_v51  ;;  %v970_v62 = vadd.f32 %v969_v55, %v968_v47  ;;  %v461_v63 = vpop.f32.mrf.mxu0  ;;  %v1906_v48 = vpop.f32.mrf.mxu1 }
  0xf3   :  { %v971_v2 = vsel %vm670_vm2, %v888_v59, 0.0  ;;  %694 = vst.msk [vmem:[%s2311_s3 + $0xb8] sm:$0xff] %vm670_vm2, %v467_v60  ;;  %v462_v5 = vadd.f32 %v1599_v1, %v461_v63  ;;  %v891_v15 = vmul.f32 %v467_v60, %v467_v60  ;;  %v780_v24 = vsel %vm670_vm2, %v467_v60, 0.0 }
  0xf4   :  { %v972_v7 = vadd.f32 %v971_v2, %v970_v62  ;;  %v777_v8 = vadd.f32 %v776_v0, %v775_v61  ;;  %v1252_v9 = vpop.f32.mrf.mxu0  ;;  %v1918_v59 = vadd.f32 %v1599_v1, %v1758_v58  ;;  %v1920_v60 = vpop.f32.mrf.mxu1 }
  0xf5   :  { %693 = vst.msk [vmem:[%s2311_s3 + $0xb0] sm:$0xff] %vm670_vm2, %v462_v5  ;;  %v778_v16 = vsel %vm670_vm2, %v462_v5, 0.0  ;;  %v890_v17 = vmul.f32 %v462_v5, %v462_v5  ;;  %v477_v18 = vadd.f32 %v1252_v9, %v1599_v1  ;;  %v977_v37 = vsel %vm670_vm2, %v891_v15, 0.0 }
  0xf6   :  { %v779_v19 = vadd.f32 %v778_v16, %v777_v8  ;;  %v974_v20 = vadd.f32 %v973_v6, %v972_v7  ;;  %v471_v23 = vpop.f32.mrf.mxu0  ;;  %713 = vst.msk [vmem:[%s2311_s3 + $0x150] sm:$0xff] %vm670_vm2, %v1918_v59  ;;  %v1933_v58 = vpop.f32.mrf.mxu1 }
  0xf7   :  { %v975_v25 = vsel %vm670_vm2, %v890_v17, 0.0  ;;  %696 = vst.msk [vmem:[%s2311_s3 + $0xc8] sm:$0xff] %vm670_vm2, %v477_v18  ;;  %v472_v26 = vadd.f32 %v1599_v1, %v471_v23  ;;  %v893_v28 = vmul.f32 %v477_v18, %v477_v18  ;;  %v784_v46 = vsel %vm670_vm2, %v477_v18, 0.0 }
  0xf8   :  { %v976_v27 = vadd.f32 %v975_v25, %v974_v20  ;;  %v781_v29 = vadd.f32 %v780_v24, %v779_v19  ;;  %v1255_v31 = vpop.f32.mrf.mxu0  ;;  %v1944_v19 = vadd.f32 %v1771_v3, %v1599_v1 }
  0xf9   :  { %695 = vst.msk [vmem:[%s2311_s3 + $0xc0] sm:$0xff] %vm670_vm2, %v472_v26  ;;  %v782_v38 = vsel %vm670_vm2, %v472_v26, 0.0  ;;  %v892_v41 = vmul.f32 %v472_v26, %v472_v26  ;;  %v487_v42 = vadd.f32 %v1255_v31, %v1599_v1  ;;  %v981_v51 = vsel %vm670_vm2, %v893_v28, 0.0  ;;  %v1953_v26 = vpop.f32.mrf.mxu1 }
  0xfa   :  { %v783_v43 = vadd.f32 %v782_v38, %v781_v29  ;;  %v978_v44 = vadd.f32 %v977_v37, %v976_v27  ;;  %v481_v45 = vpop.f32.mrf.mxu0  ;;  %716 = vst.msk [vmem:[%s2311_s3 + $0x168] sm:$0xff] %vm670_vm2, %v1944_v19 }
  0xfb   :  { %v979_v47 = vsel %vm670_vm2, %v892_v41, 0.0  ;;  %698 = vst.msk [vmem:[%s2311_s3 + $0xd8] sm:$0xff] %vm670_vm2, %v487_v42  ;;  %v482_v49 = vadd.f32 %v1599_v1, %v481_v45  ;;  %v895_v61 = vmul.f32 %v487_v42, %v487_v42  ;;  %v788_v7 = vsel %vm670_vm2, %v487_v42, 0.0 }
  0xfc   :  { %v980_v52 = vadd.f32 %v979_v47, %v978_v44  ;;  %v785_v55 = vadd.f32 %v784_v46, %v783_v43  ;;  %v1258_v56 = vpop.f32.mrf.mxu0  ;;  %v1970_v43 = vadd.f32 %v1599_v1, %v1784_v14  ;;  %v1979_v47 = vadd.f32 %v1798_v13, %v1599_v1 }
  0xfd   :  { %697 = vst.msk [vmem:[%s2311_s3 + $0xd0] sm:$0xff] %vm670_vm2, %v482_v49  ;;  %v786_v62 = vsel %vm670_vm2, %v482_v49, 0.0  ;;  %v894_v63 = vmul.f32 %v482_v49, %v482_v49  ;;  %v497_v0 = vadd.f32 %v1258_v56, %v1599_v1  ;;  %v985_v20 = vsel %vm670_vm2, %v895_v61, 0.0  ;;  %v1981_v49 = vpop.f32.mrf.mxu1 }
  0xfe   :  { %v787_v2 = vadd.f32 %v786_v62, %v785_v55  ;;  %v982_v5 = vadd.f32 %v981_v51, %v980_v52  ;;  %v491_v6 = vpop.f32.mrf.mxu0  ;;  %715 = vst.msk [vmem:[%s2311_s3 + $0x160] sm:$0xff] %vm670_vm2, %v1970_v43  ;;  %v900_v56 = vmul.f32 %v1658_v50, %v1658_v50  ;;  %718 = vst.msk [vmem:[%s2311_s3 + $0x178] sm:$0xff] %vm670_vm2, %v1979_v47 }
  0xff   :  { %v983_v8 = vsel %vm670_vm2, %v894_v63, 0.0  ;;  %700 = vst.msk [vmem:[%s2311_s3 + $0xe8] sm:$0xff] %vm670_vm2, %v497_v0  ;;  %v492_v9 = vadd.f32 %v1599_v1, %v491_v6  ;;  %v897_v16 = vmul.f32 %v497_v0, %v497_v0  ;;  %v792_v3 = vsel %vm670_vm2, %v497_v0, 0.0 }
 0x100   :  { %v984_v15 = vadd.f32 %v983_v8, %v982_v5  ;;  %v789_v17 = vadd.f32 %v788_v7, %v787_v2  ;;  %v1261_v18 = vpop.f32.mrf.mxu0  ;;  %v1999_v13 = vadd.f32 %v1599_v1, %v1812_v34  ;;  %v2003_v63 = vadd.f32 %v1825_v22, %v1599_v1  ;;  %v641_v22 = vpop.f32.mrf.mxu1 }
 0x101   :  { %699 = vst.msk [vmem:[%s2311_s3 + $0xe0] sm:$0xff] %vm670_vm2, %v492_v9  ;;  %v790_v23 = vsel %vm670_vm2, %v492_v9, 0.0  ;;  %v896_v24 = vmul.f32 %v492_v9, %v492_v9  ;;  %v507_v25 = vadd.f32 %v1261_v18, %v1599_v1  ;;  %v989_v38 = vsel %vm670_vm2, %v897_v16, 0.0 }
 0x102   :  { %v791_v27 = vadd.f32 %v790_v23, %v789_v17  ;;  %v986_v28 = vadd.f32 %v985_v20, %v984_v15  ;;  %v501_v29 = vpop.f32.mrf.mxu0  ;;  %v901_v2 = vmul.f32 %v1635_v33, %v1635_v33  ;;  %v798_v5 = vsel %vm670_vm2, %v1658_v50, 0.0  ;;  %717 = vst.msk [vmem:[%s2311_s3 + $0x170] sm:$0xff] %vm670_vm2, %v1999_v13  ;;  %720 = vst.msk [vmem:[%s2311_s3 + $0x188] sm:$0xff] %vm670_vm2, %v2003_v63 }
 0x103   :  { %v987_v31 = vsel %vm670_vm2, %v896_v24, 0.0  ;;  %702 = vst.msk [vmem:[%s2311_s3 + $0xf8] sm:$0xff] %vm670_vm2, %v507_v25  ;;  %v502_v37 = vadd.f32 %v1599_v1, %v501_v29  ;;  %v899_v44 = vmul.f32 %v507_v25, %v507_v25  ;;  %v796_v14 = vsel %vm670_vm2, %v507_v25, 0.0 }
 0x104   :  { %v988_v41 = vadd.f32 %v987_v31, %v986_v28  ;;  %v793_v42 = vadd.f32 %v792_v3, %v791_v27  ;;  %v2017_v34 = vadd.f32 %v1599_v1, %v1838_v54  ;;  %v800_v50 = vsel %vm670_vm2, %v1635_v33, 0.0 }
 0x105   :  { %701 = vst.msk [vmem:[%s2311_s3 + $0xf0] sm:$0xff] %vm670_vm2, %v502_v37  ;;  %v794_v45 = vsel %vm670_vm2, %v502_v37, 0.0  ;;  %v898_v46 = vmul.f32 %v502_v37, %v502_v37  ;;  %v993_v0 = vsel %vm670_vm2, %v899_v44, 0.0  ;;  %v995_v8 = vsel %vm670_vm2, %v900_v56, 0.0 }
 0x106   :  { %v795_v51 = vadd.f32 %v794_v45, %v793_v42  ;;  %v990_v52 = vadd.f32 %v989_v38, %v988_v41  ;;  %v902_v9 = vmul.f32 %v1704_v21, %v1704_v21  ;;  %719 = vst.msk [vmem:[%s2311_s3 + $0x180] sm:$0xff] %vm670_vm2, %v2017_v34  ;;  %v2036_v54 = vadd.f32 %v1852_v30, %v1599_v1 }
 0x107   :  { %v991_v55 = vsel %vm670_vm2, %v898_v46, 0.0  ;;  %v2040_v33 = vadd.f32 %v1599_v1, %v1866_v11  ;;  %v997_v17 = vsel %vm670_vm2, %v901_v2, 0.0  ;;  %v903_v18 = vmul.f32 %v1679_v4, %v1679_v4  ;;  %v1306_v11 = vpop.f32.mrf.mxu1 }
 0x108   :  { %v992_v61 = vadd.f32 %v991_v55, %v990_v52  ;;  %v797_v62 = vadd.f32 %v796_v14, %v795_v51  ;;  %v802_v20 = vsel %vm670_vm2, %v1704_v21, 0.0  ;;  %722 = vst.msk [vmem:[%s2311_s3 + $0x198] sm:$0xff] %vm670_vm2, %v2036_v54  ;;  %v2054_v30 = vadd.f32 %v1879_v40, %v1599_v1 }
 0x109   :  { %721 = vst.msk [vmem:[%s2311_s3 + $0x190] sm:$0xff] %vm670_vm2, %v2040_v33  ;;  %v804_v21 = vsel %vm670_vm2, %v1679_v4, 0.0  ;;  %v999_v25 = vsel %vm670_vm2, %v902_v9, 0.0  ;;  %v904_v27 = vmul.f32 %v1756_v57, %v1756_v57  ;;  %v2073_v40 = vadd.f32 %v1599_v1, %v1892_v36 }
 0x10a   :  { %v799_v6 = vadd.f32 %v798_v5, %v797_v62  ;;  %v994_v7 = vadd.f32 %v993_v0, %v992_v61  ;;  %724 = vst.msk [vmem:[%s2311_s3 + $0x1a8] sm:$0xff] %vm670_vm2, %v2054_v30  ;;  %v2077_v4 = vadd.f32 %v1906_v48, %v1599_v1  ;;  %v1001_v3 = vsel %vm670_vm2, %v903_v18, 0.0  ;;  %v651_v48 = vpop.f32.mrf.mxu1 }
 0x10b   :  { %v905_v31 = vmul.f32 %v1729_v39, %v1729_v39  ;;  %v806_v37 = vsel %vm670_vm2, %v1756_v57, 0.0  ;;  %723 = vst.msk [vmem:[%s2311_s3 + $0x1a0] sm:$0xff] %vm670_vm2, %v2073_v40  ;;  %v2091_v36 = vadd.f32 %v1599_v1, %v1920_v60  ;;  %v808_v57 = vsel %vm670_vm2, %v1729_v39, 0.0 }
 0x10c   :  { %v996_v15 = vadd.f32 %v995_v8, %v994_v7  ;;  %v801_v16 = vadd.f32 %v800_v50, %v799_v6  ;;  %726 = vst.msk [vmem:[%s2311_s3 + $0x1b8] sm:$0xff] %vm670_vm2, %v2077_v4  ;;  %v1003_v42 = vsel %vm670_vm2, %v904_v27, 0.0  ;;  %v906_v44 = vmul.f32 %v1810_v32, %v1810_v32 }
 0x10d   :  { %725 = vst.msk [vmem:[%s2311_s3 + $0x1b0] sm:$0xff] %vm670_vm2, %v2091_v36  ;;  %v2110_v60 = vadd.f32 %v1933_v58, %v1599_v1  ;;  %v2114_v39 = vadd.f32 %v1599_v1, %v1953_v26  ;;  %v1005_v51 = vsel %vm670_vm2, %v905_v31, 0.0  ;;  %v907_v52 = vmul.f32 %v1782_v12, %v1782_v12  ;;  %v1309_v26 = vpop.f32.mrf.mxu1 }
 0x10e   :  { %v803_v23 = vadd.f32 %v802_v20, %v801_v16  ;;  %v998_v24 = vadd.f32 %v997_v17, %v996_v15  ;;  %v810_v14 = vsel %vm670_vm2, %v1810_v32, 0.0  ;;  %v2128_v58 = vadd.f32 %v1981_v49, %v1599_v1 }
 0x10f   :  { %728 = vst.msk [vmem:[%s2311_s3 + $0x1c8] sm:$0xff] %vm670_vm2, %v2110_v60  ;;  %727 = vst.msk [vmem:[%s2311_s3 + $0x1c0] sm:$0xff] %vm670_vm2, %v2114_v39  ;;  %v812_v32 = vsel %vm670_vm2, %v1782_v12, 0.0  ;;  %v1007_v61 = vsel %vm670_vm2, %v906_v44, 0.0  ;;  %v908_v62 = vmul.f32 %v1864_v10, %v1864_v10  ;;  %v2146_v49 = vadd.f32 %v1599_v1, %v641_v22  ;;  %v661_v50 = vpop.f32.mrf.mxu1 }
 0x110   :  { %v1000_v28 = vadd.f32 %v999_v25, %v998_v24  ;;  %v805_v29 = vadd.f32 %v804_v21, %v803_v23  ;;  %730 = vst.msk [vmem:[%s2311_s3 + $0x1d8] sm:$0xff] %vm670_vm2, %v2128_v58  ;;  %v2149_v5 = vadd.f32 %v1306_v11, %v1599_v1  ;;  %v1009_v12 = vsel %vm670_vm2, %v907_v52, 0.0 }
 0x111   :  { %v909_v6 = vmul.f32 %v1836_v53, %v1836_v53  ;;  %v814_v7 = vsel %vm670_vm2, %v1864_v10, 0.0  ;;  %729 = vst.msk [vmem:[%s2311_s3 + $0x1d0] sm:$0xff] %vm670_vm2, %v2146_v49  ;;  %v2162_v22 = vadd.f32 %v1599_v1, %v651_v48  ;;  %v816_v10 = vsel %vm670_vm2, %v1836_v53, 0.0 }
 0x112   :  { %v807_v38 = vadd.f32 %v806_v37, %v805_v29  ;;  %v1002_v41 = vadd.f32 %v1001_v3, %v1000_v28  ;;  %732 = vst.msk [vmem:[%s2311_s3 + $0x1e8] sm:$0xff] %vm670_vm2, %v2149_v5  ;;  %v1011_v15 = vsel %vm670_vm2, %v908_v62, 0.0  ;;  %v910_v16 = vmul.f32 %v1918_v59, %v1918_v59 }
 0x113   :  { %731 = vst.msk [vmem:[%s2311_s3 + $0x1e0] sm:$0xff] %vm670_vm2, %v2162_v22  ;;  %v2180_v17 = vadd.f32 %v1309_v26, %v1599_v1  ;;  %v2183_v11 = vadd.f32 %v1599_v1, %v661_v50  ;;  %v1013_v53 = vsel %vm670_vm2, %v909_v6, 0.0  ;;  %v911_v23 = vmul.f32 %v1890_v35, %v1890_v35 }
 0x114   :  { %v1004_v45 = vadd.f32 %v1003_v42, %v1002_v41  ;;  %v809_v46 = vadd.f32 %v808_v57, %v807_v38  ;;  %v818_v24 = vsel %vm670_vm2, %v1918_v59, 0.0  ;;  %v820_v1 = vsel %vm670_vm2, %v1890_v35, 0.0 }
 0x115   :  { %734 = vst.msk [vmem:[%s2311_s3 + $0x1f8] sm:$0xff] %vm670_vm2, %v2180_v17  ;;  %733 = vst.msk [vmem:[%s2311_s3 + $0x1f0] sm:$0xff] %vm670_vm2, %v2183_v11  ;;  %v1015_v27 = vsel %vm670_vm2, %v910_v16, 0.0  ;;  %v912_v59 = vmul.f32 %v1970_v43, %v1970_v43  ;;  %v1017_v3 = vsel %vm670_vm2, %v911_v23, 0.0  ;;  %v913_v31 = vmul.f32 %v1944_v19, %v1944_v19 }
 0x116   :  { %v811_v55 = vadd.f32 %v810_v14, %v809_v46  ;;  %v1006_v56 = vadd.f32 %v1005_v51, %v1004_v45  ;;  %v822_v37 = vsel %vm670_vm2, %v1970_v43, 0.0  ;;  %v824_v35 = vsel %vm670_vm2, %v1944_v19, 0.0 }
 0x117   :  { %v1019_v41 = vsel %vm670_vm2, %v912_v59, 0.0  ;;  %v914_v57 = vmul.f32 %v1999_v13, %v1999_v13  ;;  %v1021_v45 = vsel %vm670_vm2, %v913_v31, 0.0  ;;  %v915_v46 = vmul.f32 %v1979_v47, %v1979_v47 }
 0x118   :  { %v1008_v0 = vadd.f32 %v1007_v61, %v1006_v56  ;;  %v813_v2 = vadd.f32 %v812_v32, %v811_v55  ;;  %v826_v43 = vsel %vm670_vm2, %v1999_v13, 0.0  ;;  %v828_v19 = vsel %vm670_vm2, %v1979_v47, 0.0 }
 0x119   :  { %v1023_v14 = vsel %vm670_vm2, %v914_v57, 0.0  ;;  %v916_v26 = vmul.f32 %v2017_v34, %v2017_v34  ;;  %v1025_v32 = vsel %vm670_vm2, %v915_v46, 0.0  ;;  %v917_v61 = vmul.f32 %v2003_v63, %v2003_v63 }
 0x11a   :  { %v815_v8 = vadd.f32 %v814_v7, %v813_v2  ;;  %v1010_v9 = vadd.f32 %v1009_v12, %v1008_v0  ;;  %v830_v13 = vsel %vm670_vm2, %v2017_v34, 0.0  ;;  %v832_v47 = vsel %vm670_vm2, %v2003_v63, 0.0 }
 0x11b   :  { %v1027_v2 = vsel %vm670_vm2, %v916_v26, 0.0  ;;  %v918_v12 = vmul.f32 %v2040_v33, %v2040_v33  ;;  %v1029_v50 = vsel %vm670_vm2, %v917_v61, 0.0  ;;  %v834_v34 = vsel %vm670_vm2, %v2040_v33, 0.0 }
 0x11c   :  { %v1012_v18 = vadd.f32 %v1011_v15, %v1010_v9  ;;  %v817_v20 = vadd.f32 %v816_v10, %v815_v8  ;;  %v919_v8 = vmul.f32 %v2036_v54, %v2036_v54  ;;  %v836_v63 = vsel %vm670_vm2, %v2036_v54, 0.0 }
 0x11d   :  { %v1031_v15 = vsel %vm670_vm2, %v918_v12, 0.0  ;;  %v920_v16 = vmul.f32 %v2073_v40, %v2073_v40  ;;  %v921_v23 = vmul.f32 %v2054_v30, %v2054_v30  ;;  %v838_v33 = vsel %vm670_vm2, %v2073_v40, 0.0 }
 0x11e   :  { %v819_v21 = vadd.f32 %v818_v24, %v817_v20  ;;  %v1014_v25 = vadd.f32 %v1013_v53, %v1012_v18  ;;  %v1033_v53 = vsel %vm670_vm2, %v919_v8, 0.0  ;;  %v840_v54 = vsel %vm670_vm2, %v2054_v30, 0.0 }
 0x11f   :  { %v842_v40 = vsel %vm670_vm2, %v2091_v36, 0.0  ;;  %v844_v30 = vsel %vm670_vm2, %v2077_v4, 0.0  ;;  %v925_v57 = vmul.f32 %v2110_v60, %v2110_v60  ;;  %v926_v46 = vmul.f32 %v2146_v49, %v2146_v49 }
 0x120   :  { %v1016_v28 = vadd.f32 %v1015_v27, %v1014_v25  ;;  %v821_v29 = vadd.f32 %v820_v1, %v819_v21  ;;  %v1035_v25 = vsel %vm670_vm2, %v920_v16, 0.0  ;;  %v922_v1 = vmul.f32 %v2091_v36, %v2091_v36 }
 0x121   :  { %v846_v36 = vsel %vm670_vm2, %v2114_v39, 0.0  ;;  %v930_v12 = vmul.f32 %v2183_v11, %v2183_v11  ;;  %v931_v8 = vmul.f32 %v2180_v17, %v2180_v17 }
 0x122   :  { %v823_v48 = vadd.f32 %v822_v37, %v821_v29  ;;  %v1018_v38 = vadd.f32 %v1017_v3, %v1016_v28  ;;  %v1037_v28 = vsel %vm670_vm2, %v921_v23, 0.0  ;;  %v923_v29 = vmul.f32 %v2077_v4, %v2077_v4 }
 0x123   :  { %v1039_v37 = vsel %vm670_vm2, %v922_v1, 0.0  ;;  %v848_v4 = vsel %vm670_vm2, %v2110_v60, 0.0  ;;  %v852_v60 = vsel %vm670_vm2, %v2128_v58, 0.0  ;;  %v1057_v16 = vsel %vm670_vm2, %v931_v8, 0.0 }
 0x124   :  { %v1020_v42 = vadd.f32 %v1019_v41, %v1018_v38  ;;  %v825_v44 = vadd.f32 %v824_v35, %v823_v48  ;;  %v924_v48 = vmul.f32 %v2114_v39, %v2114_v39  ;;  %v1041_v41 = vsel %vm670_vm2, %v923_v29, 0.0 }
 0x125   :  { %v850_v39 = vsel %vm670_vm2, %v2146_v49, 0.0  ;;  %v854_v49 = vsel %vm670_vm2, %v2162_v22, 0.0 }
 0x126   :  { %v827_v51 = vadd.f32 %v826_v43, %v825_v44  ;;  %v1022_v52 = vadd.f32 %v1021_v45, %v1020_v42  ;;  %v1043_v45 = vsel %vm670_vm2, %v924_v48, 0.0 }
 0x128   :  { %v1024_v55 = vadd.f32 %v1023_v14, %v1022_v52  ;;  %v829_v56 = vadd.f32 %v828_v19, %v827_v51  ;;  %v1045_v52 = vsel %vm670_vm2, %v925_v57, 0.0  ;;  %v927_v19 = vmul.f32 %v2128_v58, %v2128_v58 }
 0x129   :  { %v856_v58 = vsel %vm670_vm2, %v2149_v5, 0.0 }
 0x12a   :  { %v831_v62 = vadd.f32 %v830_v13, %v829_v56  ;;  %v1026_v0 = vadd.f32 %v1025_v32, %v1024_v55  ;;  %v1047_v55 = vsel %vm670_vm2, %v926_v46, 0.0  ;;  %v928_v56 = vmul.f32 %v2162_v22, %v2162_v22 }
 0x12b   :  { %v1049_v13 = vsel %vm670_vm2, %v927_v19, 0.0  ;;  %v858_v22 = vsel %vm670_vm2, %v2183_v11, 0.0 }
 0x12c   :  { %v1028_v6 = vadd.f32 %v1027_v2, %v1026_v0  ;;  %v833_v7 = vadd.f32 %v832_v47, %v831_v62  ;;  %v929_v62 = vmul.f32 %v2149_v5, %v2149_v5  ;;  %v1051_v2 = vsel %vm670_vm2, %v928_v56, 0.0 }
 0x12d   :  { %v860_v5 = vsel %vm670_vm2, %v2180_v17, 0.0 }
 0x12e   :  { %v835_v9 = vadd.f32 %v834_v34, %v833_v7  ;;  %v1030_v10 = vadd.f32 %v1029_v50, %v1028_v6  ;;  %v1053_v50 = vsel %vm670_vm2, %v929_v62, 0.0 }
 0x130   :  { %v1032_v18 = vadd.f32 %v1031_v15, %v1030_v10  ;;  %v837_v20 = vadd.f32 %v836_v63, %v835_v9  ;;  %v1055_v10 = vsel %vm670_vm2, %v930_v12, 0.0 }
 0x132   :  { %v839_v24 = vadd.f32 %v838_v33, %v837_v20  ;;  %v1034_v21 = vadd.f32 %v1033_v53, %v1032_v18  ;;  %v1065_v33 = vlaneseq }
 0x134   :  { %v1036_v27 = vadd.f32 %v1035_v25, %v1034_v21  ;;  %v841_v59 = vadd.f32 %v840_v54, %v839_v24  ;;  %v1066_v25 = vshrl.u32 %v1065_v33, 7 }
 0x136   :  { %v843_v3 = vadd.f32 %v842_v40, %v841_v59  ;;  %v1038_v31 = vadd.f32 %v1037_v28, %v1036_v27  ;;  %vm1067_vm3 = vcmp.eq.s32.totalorder %v1066_v25, 0  ;;  %vm1069_vm4 = vcmp.eq.s32.totalorder %v1066_v25, 1 }
 0x138   :  { %v1040_v38 = vadd.f32 %v1039_v37, %v1038_v31  ;;  %v845_v35 = vadd.f32 %v844_v30, %v843_v3 }
 0x13a   :  { %v847_v42 = vadd.f32 %v846_v36, %v845_v35  ;;  %v1042_v44 = vadd.f32 %v1041_v41, %v1040_v38 }
 0x13c   :  { %v1044_v43 = vadd.f32 %v1043_v45, %v1042_v44  ;;  %v849_v51 = vadd.f32 %v848_v4, %v847_v42 }
 0x13e   :  { %v851_v14 = vadd.f32 %v850_v39, %v849_v51  ;;  %v1046_v26 = vadd.f32 %v1045_v52, %v1044_v43 }
 0x140   :  { %v1048_v32 = vadd.f32 %v1047_v55, %v1046_v26  ;;  %v853_v61 = vadd.f32 %v852_v60, %v851_v14 }
 0x142   :  { %v855_v0 = vadd.f32 %v854_v49, %v853_v61  ;;  %v1050_v47 = vadd.f32 %v1049_v13, %v1048_v32 }
 0x144   :  { %v1052_v6 = vadd.f32 %v1051_v2, %v1050_v47  ;;  %v857_v7 = vadd.f32 %v856_v58, %v855_v0 }
 0x146   :  { %v859_v34 = vadd.f32 %v858_v22, %v857_v7  ;;  %v1054_v9 = vadd.f32 %v1053_v50, %v1052_v6 }
 0x148   :  { %v861_v63 = vadd.f32 %v860_v5, %v859_v34  ;;  %v1056_v15 = vadd.f32 %v1055_v10, %v1054_v9 }
 0x14a   :  { %v862_v18 = vrot.slane %v861_v63, 4  ;;  %v1058_v20 = vadd.f32 %v1057_v16, %v1056_v15 }
 0x14c   :  { %v863_v53 = vadd.f32 %v862_v18, %v861_v63  ;;  %v1059_v23 = vrot.slane %v1058_v20, 4 }
 0x14e   :  { %v864_v24 = vrot.slane %v863_v53, 2  ;;  %v1060_v21 = vadd.f32 %v1059_v23, %v1058_v20 }
 0x150   :  { %v865_v54 = vadd.f32 %v864_v24, %v863_v53  ;;  %v1061_v11 = vrot.slane %v1060_v21, 2 }
 0x152   :  { %v866_v1 = vrot.slane %v865_v54, 1  ;;  %v1062_v27 = vadd.f32 %v1061_v11, %v1060_v21 }
 0x154   :  { %v867_v59 = vadd.f32 %v866_v1, %v865_v54  ;;  %v1063_v17 = vrot.slane %v1062_v27, 1 }
 0x156   :  { %v1064_v28 = vadd.f32 %v1063_v17, %v1062_v27  ;;  %v1068_v29 = vsel %vm1067_vm3, %v867_v59, 0.0 }
 0x158   :  { %v1070_v40 = vsel %vm1069_vm4, %v1064_v28, 0.0 }
 0x159   :  { %v1071_v3 = vadd.f32 %v1070_v40, %v1068_v29 }
 0x15b   :  { %1072 = vst.msk [vmem:[%s2312_s4] sm:$0xff] %vm670_vm2, %v1071_v3 }

// kernel: bottleneck2_forward.5
= control target key start
LH: loop header
LB: loop body
LE: loop exit
PB: predicated region body
PF: predicated region fallthrough
CT: control target
= control target key end

     0   :  { %s15044_s21 = smov 0   ;;  %s16936_s0 = inlined_call_operand.vmem [shape: f32[2,16,16,8], index: 0, kind: input, shape index: {}]   ;;  %s16937_s1 = inlined_call_operand.vmem [shape: f32[1,8], index: 1, kind: input, shape index: {}]   ;;  %s16938_s2 = inlined_call_operand.vmem [shape: f32[1,8], index: 2, kind: input, shape index: {}]   ;;  %s16939_s3 = inlined_call_operand.vmem [shape: f32[3,3,8,8], index: 3, kind: input, shape index: {}]   ;;  %s16940_s4 = inlined_call_operand.vmem [shape: f32[1,8], index: 4, kind: input, shape index: {}]   ;;  %s16941_s5 = inlined_call_operand.vmem [shape: f32[2,16,16,8], index: 5, kind: output, shape index: {0}]   ;;  %s16942_s6 = inlined_call_operand.vmem [shape: f32[2,8,8], index: 6, kind: output, shape index: {1}]  }
   0x1 LB: > { %s13444_s22 = sadd.s32 4294967295, %s15006_s21   ;;  %p13448_p0 = scmp.ge.s32.totalorder %s15006_s21, 1  ;;  %s15006_s21 = sphi %s15044_s21, %s17_s21  }
   0x2   : > { %p215_p1 = scmp.lt.s32.totalorder %s15006_s21, 3 }
   0x4   : > { %p216_p2 = pnand %p13448_p0, %p215_p1 }
   0x5   : > { %p249_p3 = scmp.lt.s32.totalorder (!%p216_p2), %s13444_s22, 1 }
   0x6   : > { %219 = sbr.rel (%p216_p2) target bundleno = 552 (0x228), region = 40 }
   0xb   : > { %v15055_v0 = vld [vmem:[%s16939_s3 + $0x8] sm:$0xff]  ;;  %vm283_vm0 = vcmask 64512   ;;  %vm286_vm1 = vcmask 58368   ;;  %v15060_v1 = vld [vmem:[%s16939_s3] sm:$0xff]  ;;  %v15008_v2 = vmov 0.0   ;;  %v15121_v3 = vld [vmem:[%s16939_s3 + $0x10] sm:$0xff] }
   0xc   : > { %14249 = vmatprep.subr.mxu0 %v15055_v0  ;;  %284 = vst.msk [vmem:[#allocation2] sm:$0xff] %vm283_vm0, %v15008_v2  ;;  %285 = vst.msk [vmem:[#allocation2 + $0x8] sm:$0xff] %vm283_vm0, %v15008_v2  ;;  %14254 = vmatprep.subr.mxu1 %v15060_v1  ;;  %v15126_v4 = vld [vmem:[%s16939_s3 + $0x18] sm:$0xff]  ;;  %s16944_s22 = smov (!%p249_p3, %s13444_s22), 1  ;;  %v15142_v5 = vld [vmem:[%s16937_s1] ss:$0 sm:$0xff] }
   0xd   : > { %289 = vst.msk [vmem:[#allocation2 + $0x198] sm:$0xff] %vm283_vm0, %v15008_v2  ;;  %290 = vst.msk [vmem:[#allocation2 + $0x1a0] sm:$0xff] %vm283_vm0, %v15008_v2  ;;  %14250 = vmatpush3.msra.mxu0 %v15055_v0  ;;  %14255 = vmatpush3.msra.mxu1 %v15060_v1  ;;  %s13815_s7 = sshll.u32 %s16944_s22, 8  ;;  %v15154_v6 = vld [vmem:[%s16938_s2] ss:$0 sm:$0xff]  ;;  %vm549_vm2 = vcmask 1046528  }
   0xe   : > { %313 = vst.msk [vmem:[#allocation2 + $0x18] sm:$0xff] %vm283_vm0, %v15008_v2  ;;  %314 = vst.msk [vmem:[#allocation2 + $0x20] sm:$0xff] %vm283_vm0, %v15008_v2  ;;  %14259 = vmatprep.subr.mxu0 %v15121_v3  ;;  %14264 = vmatprep.subr.mxu1 %v15126_v4  ;;  %s15149_s12 = scalar_lea.vmem %s16936_s0, %s13815_s7  ;;  %vm713_vm3 = vcmask 1045504   ;;  %v15166_v20 = vld [vmem:[%s16939_s3 + $0x28] sm:$0xff]  ;;  %v15188_v37 = vld [vmem:[%s16939_s3 + $0x20] sm:$0xff]  ;;  %s16324_s9 = scalar_lea.vmem %s16941_s5, %s13815_s7 }
   0xf   : > { %328 = vst.msk [vmem:[#allocation2 + $0x30] sm:$0xff] %vm283_vm0, %v15008_v2  ;;  %329 = vst.msk [vmem:[#allocation2 + $0x38] sm:$0xff] %vm283_vm0, %v15008_v2  ;;  %v292_v7 = vld [vmem:[%s15149_s12] sm:$0xff]  ;;  %v293_v8 = vld [vmem:[%s15149_s12 + $0x8] sm:$0xff] }
  0x10   : > { %343 = vst.msk [vmem:[#allocation2 + $0x48] sm:$0xff] %vm283_vm0, %v15008_v2  ;;  %344 = vst.msk [vmem:[#allocation2 + $0x50] sm:$0xff] %vm283_vm0, %v15008_v2  ;;  %v13464_v9 = vld [vmem:[%s15149_s12 + $0x10] sm:$0xff]  ;;  %v300_v13 = vmul.f32 %v15142_v5, %v292_v7  ;;  %v301_v14 = vmul.f32 %v15142_v5, %v293_v8  ;;  %v13465_v21 = vld [vmem:[%s15149_s12 + $0x18] sm:$0xff] }
  0x11   : > { %358 = vst.msk [vmem:[#allocation2 + $0x60] sm:$0xff] %vm283_vm0, %v15008_v2  ;;  %359 = vst.msk [vmem:[#allocation2 + $0x68] sm:$0xff] %vm283_vm0, %v15008_v2  ;;  %v321_v15 = vmul.f32 %v13464_v9, %v15142_v5  ;;  %v13466_v26 = vld [vmem:[%s15149_s12 + $0x20] sm:$0xff]  ;;  %v13467_v27 = vld [vmem:[%s15149_s12 + $0x28] sm:$0xff]  ;;  %v322_v31 = vmul.f32 %v13465_v21, %v15142_v5 }
  0x12   : > { %373 = vst.msk [vmem:[#allocation2 + $0x78] sm:$0xff] %vm283_vm0, %v15008_v2  ;;  %374 = vst.msk [vmem:[#allocation2 + $0x80] sm:$0xff] %vm283_vm0, %v15008_v2  ;;  %v308_v24 = vadd.f32 %v15154_v6, %v300_v13  ;;  %v309_v25 = vadd.f32 %v15154_v6, %v301_v14  ;;  %v13468_v32 = vld [vmem:[%s15149_s12 + $0x30] sm:$0xff]  ;;  %v13469_v33 = vld [vmem:[%s15149_s12 + $0x38] sm:$0xff]  ;;  %v336_v43 = vmul.f32 %v13466_v26, %v15142_v5 }
  0x13   : > { %388 = vst.msk [vmem:[#allocation2 + $0x90] sm:$0xff] %vm283_vm0, %v15008_v2  ;;  %389 = vst.msk [vmem:[#allocation2 + $0x98] sm:$0xff] %vm283_vm0, %v15008_v2  ;;  %v543_v10 = vld [vmem:[#allocation2] sm:$0xff]  ;;  %v544_v11 = vld [vmem:[#allocation2 + $0x8] sm:$0xff]  ;;  %v323_v30 = vadd.f32 %v15154_v6, %v321_v15  ;;  %v324_v42 = vadd.f32 %v15154_v6, %v322_v31  ;;  %v337_v44 = vmul.f32 %v13467_v27, %v15142_v5 }
  0x14   : > { %403 = vst.msk [vmem:[#allocation2 + $0xa8] sm:$0xff] %vm283_vm0, %v15008_v2  ;;  %404 = vst.msk [vmem:[#allocation2 + $0xb0] sm:$0xff] %vm283_vm0, %v15008_v2  ;;  %v550_v16 = vrot.slane %v543_v10, 1  ;;  %v551_v17 = vrot.slane %v544_v11, 1  ;;  %14256 = vmatprep.mubr.msk.f32.mxu1 %vm283_vm0, %v543_v10  ;;  %v714_v22 = vrot.slane %v543_v10, 2  ;;  %v715_v23 = vrot.slane %v544_v11, 2 }
  0x15   : > { %418 = vst.msk [vmem:[#allocation2 + $0xc0] sm:$0xff] %vm283_vm0, %v15008_v2  ;;  %419 = vst.msk [vmem:[#allocation2 + $0xc8] sm:$0xff] %vm283_vm0, %v15008_v2  ;;  %14257 = vmatmul.mubr.msk.f32.vlgmr.msra.gmra.mxu1 %vm283_vm0, %v544_v11  ;;  %v13470_v34 = vld [vmem:[%s15149_s12 + $0x40] sm:$0xff]  ;;  %v310_v38 = vmax.f32 %v308_v24, 0.0  ;;  %v311_v39 = vmax.f32 %v309_v25, 0.0  ;;  %v13471_v40 = vld [vmem:[%s15149_s12 + $0x48] sm:$0xff]  ;;  %v351_v46 = vmul.f32 %v13468_v32, %v15142_v5  ;;  %v352_v47 = vmul.f32 %v13469_v33, %v15142_v5 }
  0x16   : > { %433 = vst.msk [vmem:[#allocation2 + $0xd8] sm:$0xff] %vm283_vm0, %v15008_v2  ;;  %434 = vst.msk [vmem:[#allocation2 + $0xe0] sm:$0xff] %vm283_vm0, %v15008_v2  ;;  %v552_v28 = vsel %vm549_vm2, %v550_v16, %v551_v17  ;;  %14265 = vmatpush3.msra.mxu1 %v15126_v4  ;;  %v716_v35 = vsel %vm713_vm3, %v714_v22, %v715_v23  ;;  %v325_v41 = vmax.f32 %v323_v30, 0.0  ;;  %v13472_v45 = vld [vmem:[%s15149_s12 + $0x50] sm:$0xff]  ;;  %v13473_v49 = vld [vmem:[%s15149_s12 + $0x58] sm:$0xff]  ;;  %v326_v50 = vmax.f32 %v324_v42, 0.0 }
  0x17   : > { %448 = vst.msk [vmem:[#allocation2 + $0xf0] sm:$0xff] %vm283_vm0, %v15008_v2  ;;  %449 = vst.msk [vmem:[#allocation2 + $0xf8] sm:$0xff] %vm283_vm0, %v15008_v2  ;;  %14251 = vmatprep.mubr.msk.f32.mxu0 %vm283_vm0, %v552_v28  ;;  %14274 = vmatprep.subr.mxu1 %v15166_v20  ;;  %v366_v48 = vmul.f32 %v13470_v34, %v15142_v5  ;;  %v338_v51 = vadd.f32 %v15154_v6, %v336_v43  ;;  %v15213_v54 = vld [vmem:[%s16939_s3 + $0x30] sm:$0xff]  ;;  %v15245_v21 = vld [vmem:[%s16939_s3 + $0x38] sm:$0xff] }
  0x18   : > { %463 = vst.msk [vmem:[#allocation2 + $0x108] sm:$0xff] %vm283_vm0, %v15008_v2  ;;  %464 = vst.msk [vmem:[#allocation2 + $0x110] sm:$0xff] %vm283_vm0, %v15008_v2  ;;  %v339_v52 = vadd.f32 %v15154_v6, %v337_v44  ;;  %v367_v53 = vmul.f32 %v13471_v40, %v15142_v5  ;;  %v353_v55 = vadd.f32 %v15154_v6, %v351_v46 }
  0x19   : > { %478 = vst.msk [vmem:[#allocation2 + $0x120] sm:$0xff] %vm283_vm0, %v15008_v2  ;;  %479 = vst.msk [vmem:[#allocation2 + $0x128] sm:$0xff] %vm283_vm0, %v15008_v2  ;;  %v354_v56 = vadd.f32 %v15154_v6, %v352_v47  ;;  %v368_v57 = vadd.f32 %v15154_v6, %v366_v48  ;;  %v381_v58 = vmul.f32 %v13472_v45, %v15142_v5  ;;  %v340_v59 = vmax.f32 %v338_v51, 0.0  ;;  %v13474_v48 = vld [vmem:[%s15149_s12 + $0x60] sm:$0xff] }
  0x1a   : > { %493 = vst.msk [vmem:[#allocation2 + $0x138] sm:$0xff] %vm283_vm0, %v15008_v2  ;;  %494 = vst.msk [vmem:[#allocation2 + $0x140] sm:$0xff] %vm283_vm0, %v15008_v2  ;;  %v341_v60 = vmax.f32 %v339_v52, 0.0  ;;  %v369_v61 = vadd.f32 %v15154_v6, %v367_v53  ;;  %v382_v62 = vmul.f32 %v13473_v49, %v15142_v5  ;;  %v355_v63 = vmax.f32 %v353_v55, 0.0  ;;  %v13475_v49 = vld [vmem:[%s15149_s12 + $0x68] sm:$0xff] }
  0x1b   : > { %508 = vst.msk [vmem:[#allocation2 + $0x150] sm:$0xff] %vm283_vm0, %v15008_v2  ;;  %509 = vst.msk [vmem:[#allocation2 + $0x158] sm:$0xff] %vm283_vm0, %v15008_v2  ;;  %v370_v7 = vmax.f32 %v368_v57, 0.0  ;;  %v383_v8 = vadd.f32 %v15154_v6, %v381_v58  ;;  %v396_v52 = vmul.f32 %v13474_v48, %v15142_v5 }
  0x1c   : > { %523 = vst.msk [vmem:[#allocation2 + $0x168] sm:$0xff] %vm283_vm0, %v15008_v2  ;;  %524 = vst.msk [vmem:[#allocation2 + $0x170] sm:$0xff] %vm283_vm0, %v15008_v2  ;;  %v371_v9 = vmax.f32 %v369_v61, 0.0  ;;  %v384_v10 = vadd.f32 %v15154_v6, %v382_v62 }
  0x1d   : > { %538 = vst.msk [vmem:[#allocation2 + $0x180] sm:$0xff] %vm283_vm0, %v15008_v2  ;;  %539 = vst.msk [vmem:[#allocation2 + $0x188] sm:$0xff] %vm283_vm0, %v15008_v2  ;;  %v385_v11 = vmax.f32 %v383_v8, 0.0  ;;  %v398_v62 = vadd.f32 %v15154_v6, %v396_v52 }
  0x1e   : > { %287 = vst.msk [vmem:[#allocation2 + $0x10] sm:$0x3] %vm286_vm1, %v15008_v2  ;;  %291 = vst.msk [vmem:[#allocation2 + $0x1a8] sm:$0x3] %vm286_vm1, %v15008_v2  ;;  %v386_v15 = vmax.f32 %v384_v10, 0.0 }
  0x1f   : > { %315 = vst.msk [vmem:[#allocation2 + $0x28] sm:$0x3] %vm286_vm1, %v15008_v2  ;;  %330 = vst.msk [vmem:[#allocation2 + $0x40] sm:$0x3] %vm286_vm1, %v15008_v2 }
  0x20   : > { %345 = vst.msk [vmem:[#allocation2 + $0x58] sm:$0x3] %vm286_vm1, %v15008_v2  ;;  %360 = vst.msk [vmem:[#allocation2 + $0x70] sm:$0x3] %vm286_vm1, %v15008_v2 }
  0x21   : > { %375 = vst.msk [vmem:[#allocation2 + $0x88] sm:$0x3] %vm286_vm1, %v15008_v2  ;;  %390 = vst.msk [vmem:[#allocation2 + $0xa0] sm:$0x3] %vm286_vm1, %v15008_v2 }
  0x22   : > { %405 = vst.msk [vmem:[#allocation2 + $0xb8] sm:$0x3] %vm286_vm1, %v15008_v2  ;;  %420 = vst.msk [vmem:[#allocation2 + $0xd0] sm:$0x3] %vm286_vm1, %v15008_v2 }
  0x23   : > { %435 = vst.msk [vmem:[#allocation2 + $0xe8] sm:$0x3] %vm286_vm1, %v15008_v2  ;;  %450 = vst.msk [vmem:[#allocation2 + $0x100] sm:$0x3] %vm286_vm1, %v15008_v2 }
  0x24   : > { %465 = vst.msk [vmem:[#allocation2 + $0x118] sm:$0x3] %vm286_vm1, %v15008_v2  ;;  %480 = vst.msk [vmem:[#allocation2 + $0x130] sm:$0x3] %vm286_vm1, %v15008_v2 }
  0x25   : > { %495 = vst.msk [vmem:[#allocation2 + $0x148] sm:$0x3] %vm286_vm1, %v15008_v2  ;;  %510 = vst.msk [vmem:[#allocation2 + $0x160] sm:$0x3] %vm286_vm1, %v15008_v2  ;;  %v545_v12 = vld [vmem:[#allocation2 + $0x10] sm:$0x3] }
  0x26   : > { %525 = vst.msk [vmem:[#allocation2 + $0x178] sm:$0x3] %vm286_vm1, %v15008_v2  ;;  %540 = vst.msk [vmem:[#allocation2 + $0x190] sm:$0x3] %vm286_vm1, %v15008_v2  ;;  %v553_v18 = vrot.slane %v545_v12, 1  ;;  %v717_v19 = vrot.slane %v545_v12, 2 }
  0x27   : > { %316 = vst.msk [vmem:[#allocation2 + $0x19] sm:$0xff] %vm283_vm0, %v310_v38  ;;  %317 = vst.msk [vmem:[#allocation2 + $0x21] sm:$0xff] %vm283_vm0, %v311_v39  ;;  %v356_v2 = vmax.f32 %v354_v56, 0.0  ;;  %v397_v56 = vmul.f32 %v13475_v49, %v15142_v5 }
  0x28   : > { %v554_v29 = vsel %vm549_vm2, %v551_v17, %v553_v18  ;;  %v718_v36 = vsel %vm713_vm3, %v715_v23, %v717_v19  ;;  %331 = vst.msk [vmem:[#allocation2 + $0x31] sm:$0xff] %vm283_vm0, %v325_v41  ;;  %332 = vst.msk [vmem:[#allocation2 + $0x39] sm:$0xff] %vm283_vm0, %v326_v50 }
  0x29   : > { %14252 = vmatmul.mubr.msk.f32.vlgmr.msra.gmra.mxu0 %vm283_vm0, %v554_v29  ;;  %346 = vst.msk [vmem:[#allocation2 + $0x49] sm:$0xff] %vm283_vm0, %v340_v59  ;;  %347 = vst.msk [vmem:[#allocation2 + $0x51] sm:$0xff] %vm283_vm0, %v341_v60 }
  0x2a   : > { %14260 = vmatpush3.msra.mxu0 %v15121_v3  ;;  %14261 = vmatprep.mubr.msk.f32.mxu0 %vm283_vm0, %v716_v35  ;;  %361 = vst.msk [vmem:[#allocation2 + $0x61] sm:$0xff] %vm283_vm0, %v355_v63  ;;  %362 = vst.msk [vmem:[#allocation2 + $0x69] sm:$0xff] %vm283_vm0, %v356_v2  ;;  %v13476_v63 = vld [vmem:[%s15149_s12 + $0x70] sm:$0xff]  ;;  %v13477_v2 = vld [vmem:[%s15149_s12 + $0x78] sm:$0xff] }
  0x2b   : > { %14269 = vmatprep.subr.mxu0 %v15188_v37  ;;  %376 = vst.msk [vmem:[#allocation2 + $0x79] sm:$0xff] %vm283_vm0, %v370_v7  ;;  %377 = vst.msk [vmem:[#allocation2 + $0x81] sm:$0xff] %vm283_vm0, %v371_v9  ;;  %v13478_v7 = vld [vmem:[%s15149_s12 + $0x80] sm:$0xff] }
  0x2c   : > { %391 = vst.msk [vmem:[#allocation2 + $0x91] sm:$0xff] %vm283_vm0, %v385_v11  ;;  %392 = vst.msk [vmem:[#allocation2 + $0x99] sm:$0xff] %vm283_vm0, %v386_v15  ;;  %v399_v11 = vadd.f32 %v15154_v6, %v397_v56 }
  0x2d   : > { %14262 = vmatmul.mubr.msk.f32.vlgmr.msra.gmra.mxu0 %vm283_vm0, %v718_v36  ;;  %v15273_v36 = vld [vmem:[%s16939_s3 + $0x40] sm:$0xff] }
  0x2e   : > { %14270 = vmatpush3.msra.mxu0 %v15188_v37  ;;  %v15232_v12 = vld [vmem:[#allocation2 + $0x18] sm:$0xff]  ;;  %v15234_v13 = vld [vmem:[#allocation2 + $0x20] sm:$0xff]  ;;  %v802_v14 = vld [vmem:[#allocation2 + $0x28] sm:$0x3] }
  0x2f   : > { %14279 = vmatprep.subr.mxu0 %v15213_v54  ;;  %14266 = vmatprep.mubr.msk.f32.mxu1 %vm283_vm0, %v15232_v12  ;;  %v887_v16 = vrot.slane %v15232_v12, 1  ;;  %v973_v17 = vrot.slane %v15232_v12, 2  ;;  %v888_v18 = vrot.slane %v15234_v13, 1  ;;  %v890_v19 = vrot.slane %v802_v14, 1  ;;  %v15247_v22 = vld [vmem:[#allocation2 + $0x30] sm:$0xff]  ;;  %v15259_v29 = vld [vmem:[#allocation2 + $0x38] sm:$0xff] }
  0x30   : > { %14267 = vmatmul.mubr.msk.f32.vlgmr.msra.gmra.mxu1 %vm283_vm0, %v15234_v13  ;;  %v974_v23 = vrot.slane %v15234_v13, 2  ;;  %v976_v24 = vrot.slane %v802_v14, 2  ;;  %v1146_v25 = vrot.slane %v15247_v22, 1  ;;  %v1232_v28 = vrot.slane %v15247_v22, 2  ;;  %v1061_v30 = vld [vmem:[#allocation2 + $0x40] sm:$0x3] }
  0x31   : > { %14275 = vmatpush3.msra.mxu1 %v15166_v20  ;;  %v889_v26 = vsel %vm549_vm2, %v887_v16, %v888_v18  ;;  %v891_v27 = vsel %vm549_vm2, %v888_v18, %v890_v19  ;;  %v15266_v33 = vrot.slane %v15259_v29, 1  ;;  %v1149_v34 = vrot.slane %v1061_v30, 1  ;;  %v1352_v35 = vld [vmem:[#allocation2 + $0x28] sm:$0x3]  ;;  %v1607_v47 = vld [vmem:[#allocation2 + $0x40] sm:$0x3] }
  0x32   : > { %14271 = vmatprep.mubr.msk.f32.mxu0 %vm283_vm0, %v889_v26  ;;  %v975_v31 = vsel %vm713_vm3, %v973_v17, %v974_v23  ;;  %v977_v32 = vsel %vm713_vm3, %v974_v23, %v976_v24  ;;  %14284 = vmatprep.subr.mxu1 %v15245_v21  ;;  %v15276_v38 = vrot.slane %v15259_v29, 2  ;;  %v1235_v40 = vrot.slane %v1061_v30, 2  ;;  %v15325_v53 = vld [vmem:[#allocation2 + $0x48] sm:$0xff]  ;;  %v15327_v55 = vld [vmem:[#allocation2 + $0x50] sm:$0xff]  ;;  %v1866_v59 = vld [vmem:[#allocation2 + $0x58] sm:$0x3] }
  0x33   : > { %14272 = vmatmul.mubr.msk.f32.vlgmr.msra.gmra.mxu0 %vm283_vm0, %v891_v27  ;;  %14276 = vmatprep.mubr.msk.f32.mxu1 %vm283_vm0, %v975_v31  ;;  %v15282_v39 = vsel %vm549_vm2, %v1146_v25, %v15266_v33  ;;  %v1150_v41 = vsel %vm549_vm2, %v15266_v33, %v1149_v34  ;;  %v1359_v42 = vrot.slane %v1352_v35, 1  ;;  %v1522_v46 = vrot.slane %v1352_v35, 2  ;;  %v15355_v10 = vld [vmem:[#allocation2 + $0x40] sm:$0x3] }
  0x34   : > { %14280 = vmatpush3.msra.mxu0 %v15213_v54  ;;  %14277 = vmatmul.mubr.msk.f32.vlgmr.msra.gmra.mxu1 %vm283_vm0, %v977_v32  ;;  %v15294_v43 = vsel %vm713_vm3, %v1232_v28, %v15276_v38  ;;  %v1236_v44 = vsel %vm713_vm3, %v15276_v38, %v1235_v40  ;;  %v1695_v51 = vrot.slane %v1607_v47, 1  ;;  %v1781_v57 = vrot.slane %v1607_v47, 2  ;;  %v13481_v40 = vld [vmem:[%s15149_s12 + $0x98] sm:$0xff] }
  0x35   : > { %14285 = vmatpush3.msra.mxu1 %v15245_v21  ;;  %14281 = vmatprep.mubr.msk.f32.mxu0 %vm283_vm0, %v15247_v22  ;;  %v1360_v45 = vsel %vm549_vm2, %v888_v18, %v1359_v42  ;;  %v1523_v50 = vsel %vm713_vm3, %v974_v23, %v1522_v46  ;;  %v1951_v60 = vrot.slane %v15325_v53, 1  ;;  %v15342_v61 = vrot.slane %v15327_v55, 1  ;;  %v13483_v42 = vld [vmem:[%s15149_s12 + $0xa8] sm:$0xff] }
  0x36   : > { %14289 = vmatprep.subr.mxu0 %v15273_v36  ;;  %14286 = vmatprep.mubr.msk.f32.mxu1 %vm283_vm0, %v15282_v39  ;;  %v1696_v58 = vsel %vm549_vm2, %v15266_v33, %v1695_v51  ;;  %v2037_v8 = vrot.slane %v15325_v53, 2  ;;  %v15353_v9 = vrot.slane %v15327_v55, 2  ;;  %v1954_v14 = vrot.slane %v1866_v59, 1 }
  0x37   : > { %14282 = vmatmul.mubr.msk.f32.vlgmr.msra.gmra.mxu0 %vm283_vm0, %v15259_v29  ;;  %14294 = vmatprep.subr.mxu1 %v15055_v0  ;;  %v2040_v15 = vrot.slane %v1866_v59, 2  ;;  %v411_v16 = vmul.f32 %v13476_v63, %v15142_v5  ;;  %v412_v17 = vmul.f32 %v13477_v2, %v15142_v5  ;;  %v426_v18 = vmul.f32 %v13478_v7, %v15142_v5  ;;  %v15439_v2 = vld [vmem:[#allocation2 + $0x60] sm:$0xff]  ;;  %v15441_v7 = vld [vmem:[#allocation2 + $0x68] sm:$0xff] }
  0x38   : > { %14290 = vmatpush3.msra.mxu0 %v15273_v36  ;;  %14287 = vmatmul.mubr.msk.f32.vlgmr.msra.gmra.mxu1 %vm283_vm0, %v1150_v41  ;;  %v15374_v19 = vsel %vm549_vm2, %v1951_v60, %v15342_v61  ;;  %v2159_v23 = vrot.slane %v15355_v10, 1  ;;  %v400_v24 = vmax.f32 %v398_v62, 0.0  ;;  %v401_v27 = vmax.f32 %v399_v11, 0.0  ;;  %v13482_v41 = vld [vmem:[%s15149_s12 + $0xa0] sm:$0xff] }
  0x39   : > { %14295 = vmatpush3.msra.mxu1 %v15055_v0  ;;  %14291 = vmatprep.mubr.msk.f32.mxu0 %vm283_vm0, %v15294_v43  ;;  %v1955_v28 = vsel %vm549_vm2, %v15342_v61, %v1954_v14  ;;  %v2041_v30 = vsel %vm713_vm3, %v15353_v9, %v2040_v15  ;;  %v413_v32 = vadd.f32 %v15154_v6, %v411_v16  ;;  %v2837_v16 = vrot.slane %v15439_v2, 2 }
  0x3a   : > { %14299 = vmatprep.subr.mxu0 %v15060_v1  ;;  %14296 = vmatprep.mubr.msk.f32.mxu1 %vm283_vm0, %v889_v26  ;;  %v15382_v26 = vsel %vm713_vm3, %v2037_v8, %v15353_v9  ;;  %406 = vst.msk [vmem:[#allocation2 + $0xa9] sm:$0xff] %vm283_vm0, %v400_v24  ;;  %407 = vst.msk [vmem:[#allocation2 + $0xb1] sm:$0xff] %vm283_vm0, %v401_v27  ;;  %v414_v34 = vadd.f32 %v15154_v6, %v412_v17  ;;  %v15474_v17 = vrot.slane %v15441_v7, 2 }
  0x3b   : > { %14292 = vmatmul.mubr.msk.f32.vlgmr.msra.gmra.mxu0 %vm283_vm0, %v1236_v44  ;;  %14304 = vmatprep.subr.mxu1 %v15121_v3  ;;  %v428_v35 = vadd.f32 %v15154_v6, %v426_v18  ;;  %v2160_v44 = vsel %vm549_vm2, %v15266_v33, %v2159_v23  ;;  %v415_v47 = vmax.f32 %v413_v32, 0.0  ;;  %v442_v33 = vmul.f32 %v13481_v40, %v15142_v5  ;;  %v2952_v18 = vld [vmem:[#allocation2 + $0x58] sm:$0x3] }
  0x3c   : > { %14300 = vmatpush3.msra.mxu0 %v15060_v1  ;;  %14297 = vmatmul.mubr.msk.f32.vlgmr.msra.gmra.mxu1 %vm283_vm0, %v1360_v45  ;;  %v2322_v45 = vrot.slane %v15355_v10, 2  ;;  %v416_v48 = vmax.f32 %v414_v34, 0.0  ;;  %v456_v52 = vmul.f32 %v13482_v41, %v15142_v5  ;;  %v457_v56 = vmul.f32 %v13483_v42, %v15142_v5  ;;  %v3207_v34 = vld [vmem:[#allocation2 + $0x70] sm:$0x3]  ;;  %v15527_v40 = vld [vmem:[#allocation2 + $0x78] sm:$0xff]  ;;  %v15529_v41 = vld [vmem:[#allocation2 + $0x80] sm:$0xff] }
  0x3d   : > { %14305 = vmatpush3.msra.mxu1 %v15121_v3  ;;  %14301 = vmatprep.mubr.msk.f32.mxu0 %vm283_vm0, %v15232_v12  ;;  %v13479_v12 = vld [vmem:[%s15149_s12 + $0x88] sm:$0xff]  ;;  %v430_v49 = vmax.f32 %v428_v35, 0.0  ;;  %421 = vst.msk [vmem:[#allocation2 + $0xc1] sm:$0xff] %vm283_vm0, %v415_v47  ;;  %v444_v59 = vadd.f32 %v15154_v6, %v442_v33  ;;  %v2959_v27 = vrot.slane %v2952_v18, 1  ;;  %v3122_v32 = vrot.slane %v2952_v18, 2  ;;  %v13485_v42 = vld [vmem:[%s15149_s12 + $0xb8] sm:$0xff] }
  0x3e   : > { %14309 = vmatprep.subr.mxu0 %v15126_v4  ;;  %14306 = vmatprep.mubr.msk.f32.mxu1 %vm283_vm0, %v975_v31  ;;  %v427_v25 = vmul.f32 %v13479_v12, %v15142_v5  ;;  %v13480_v31 = vld [vmem:[%s15149_s12 + $0x90] sm:$0xff]  ;;  %422 = vst.msk [vmem:[#allocation2 + $0xc9] sm:$0xff] %vm283_vm0, %v416_v48  ;;  %v459_v60 = vadd.f32 %v15154_v6, %v457_v56  ;;  %v2751_v12 = vrot.slane %v15439_v2, 1  ;;  %v3295_v35 = vrot.slane %v3207_v34, 1 }
  0x3f   : > { %14302 = vmatmul.mubr.msk.f32.vlgmr.msra.gmra.mxu0 %vm283_vm0, %v15234_v13  ;;  %14314 = vmatprep.subr.mxu1 %v15188_v37  ;;  %v1782_v13 = vsel %vm713_vm3, %v15276_v38, %v1781_v57  ;;  %v2407_v57 = vld [vmem:[#allocation2 + $0x58] sm:$0x3]  ;;  %436 = vst.msk [vmem:[#allocation2 + $0xd9] sm:$0xff] %vm283_vm0, %v430_v49  ;;  %v446_v8 = vmax.f32 %v444_v59, 0.0  ;;  %v3637_v47 = vrot.slane %v15527_v40, 2  ;;  %v15553_v48 = vrot.slane %v15529_v41, 2 }
  0x40   : > { %14310 = vmatpush3.msra.mxu0 %v15126_v4  ;;  %14307 = vmatmul.mubr.msk.f32.vlgmr.msra.gmra.mxu1 %vm283_vm0, %v1523_v50  ;;  %v429_v46 = vadd.f32 %v15154_v6, %v427_v25  ;;  %v441_v50 = vmul.f32 %v13480_v31, %v15142_v5  ;;  %v2495_v63 = vrot.slane %v2407_v57, 1  ;;  %v2581_v10 = vrot.slane %v2407_v57, 2  ;;  %v3752_v56 = vld [vmem:[#allocation2 + $0x70] sm:$0x3] }
  0x41   : > { %14315 = vmatpush3.msra.mxu1 %v15188_v37  ;;  %14311 = vmatprep.mubr.msk.f32.mxu0 %vm283_vm0, %v15247_v22  ;;  %452 = vst.msk [vmem:[#allocation2 + $0xf9] sm:$0xff] %vm283_vm0, %v446_v8  ;;  %v461_v11 = vmax.f32 %v459_v60, 0.0  ;;  %v2960_v31 = vsel %vm549_vm2, %v15342_v61, %v2959_v27  ;;  %v472_v49 = vmul.f32 %v13485_v42, %v15142_v5  ;;  %v15679_v42 = vld [vmem:[%s16939_s3 + $0x8] sm:$0xff] }
  0x42   : > { %14319 = vmatprep.subr.mxu0 %v15166_v20  ;;  %14316 = vmatprep.mubr.msk.f32.mxu1 %vm283_vm0, %v15282_v39  ;;  %v431_v51 = vmax.f32 %v429_v46, 0.0  ;;  %v2582_v14 = vsel %vm713_vm3, %v15353_v9, %v2581_v10  ;;  %v15576_v59 = vsel %vm713_vm3, %v3637_v47, %v15553_v48 }
  0x43   : > { %14312 = vmatmul.mubr.msk.f32.vlgmr.msra.gmra.mxu0 %vm283_vm0, %v15259_v29  ;;  %14324 = vmatprep.subr.mxu1 %v15213_v54  ;;  %467 = vst.msk [vmem:[#allocation2 + $0x111] sm:$0xff] %vm283_vm0, %v461_v11  ;;  %v474_v57 = vadd.f32 %v15154_v6, %v472_v49 }
  0x44   : > { %14320 = vmatpush3.msra.mxu0 %v15166_v20  ;;  %14317 = vmatmul.mubr.msk.f32.vlgmr.msra.gmra.mxu1 %vm283_vm0, %v1696_v58  ;;  %v443_v58 = vadd.f32 %v15154_v6, %v441_v50  ;;  %437 = vst.msk [vmem:[#allocation2 + $0xe1] sm:$0xff] %vm283_vm0, %v431_v51 }
  0x45   : > { %14325 = vmatpush3.msra.mxu1 %v15213_v54  ;;  %14321 = vmatprep.mubr.msk.f32.mxu0 %vm283_vm0, %v15294_v43 }
  0x46   : > { %14329 = vmatprep.subr.mxu0 %v15245_v21  ;;  %14326 = vmatprep.mubr.msk.f32.mxu1 %vm283_vm0, %v15325_v53  ;;  %v445_v62 = vmax.f32 %v443_v58, 0.0 }
  0x47   : > { %14322 = vmatmul.mubr.msk.f32.vlgmr.msra.gmra.mxu0 %vm283_vm0, %v1782_v13  ;;  %14334 = vmatprep.subr.mxu1 %v15273_v36  ;;  %v2496_v13 = vsel %vm549_vm2, %v15342_v61, %v2495_v63  ;;  %v3123_v61 = vsel %vm713_vm3, %v15353_v9, %v3122_v32  ;;  %v13487_v63 = vld [vmem:[%s15149_s12 + $0xc8] sm:$0xff] }
  0x48   : > { %14330 = vmatpush3.msra.mxu0 %v15245_v21  ;;  %14327 = vmatmul.mubr.msk.f32.vlgmr.msra.gmra.mxu1 %vm283_vm0, %v15327_v55  ;;  %451 = vst.msk [vmem:[#allocation2 + $0xf1] sm:$0xff] %vm283_vm0, %v445_v62  ;;  %v3759_v62 = vrot.slane %v3752_v56, 1 }
  0x49   : > { %14335 = vmatpush3.msra.mxu1 %v15273_v36  ;;  %14331 = vmatprep.mubr.msk.f32.mxu0 %vm283_vm0, %v15374_v19 }
  0x4a   : > { %14339 = vmatprep.subr.mxu0 %v15055_v0  ;;  %14336 = vmatprep.mubr.msk.f32.mxu1 %vm283_vm0, %v15382_v26 }
  0x4b   : > { %14332 = vmatmul.mubr.msk.f32.vlgmr.msra.gmra.mxu0 %vm283_vm0, %v1955_v28  ;;  %14344 = vmatprep.subr.mxu1 %v15060_v1  ;;  %v15494_v28 = vsel %vm713_vm3, %v2837_v16, %v15474_v17 }
  0x4c   : > { %14340 = vmatpush3.msra.mxu0 %v15055_v0  ;;  %14337 = vmatmul.mubr.msk.f32.vlgmr.msra.gmra.mxu1 %vm283_vm0, %v2041_v30 }
  0x4d   : > { %14345 = vmatpush3.msra.mxu1 %v15060_v1  ;;  %14341 = vmatprep.mubr.msk.f32.mxu0 %vm283_vm0, %v15282_v39  ;;  %v458_v39 = vadd.f32 %v15154_v6, %v456_v52 }
  0x4e   : > { %14349 = vmatprep.subr.mxu0 %v15121_v3  ;;  %14346 = vmatprep.mubr.msk.f32.mxu1 %vm283_vm0, %v15247_v22  ;;  %v2323_v22 = vsel %vm713_vm3, %v15276_v38, %v2322_v45  ;;  %v15545_v45 = vrot.slane %v15529_v41, 1 }
  0x4f   : > { %14342 = vmatmul.mubr.msk.f32.vlgmr.msra.gmra.mxu0 %vm283_vm0, %v2160_v44  ;;  %14354 = vmatprep.subr.mxu1 %v15126_v4  ;;  %v460_v38 = vmax.f32 %v458_v39, 0.0  ;;  %v3551_v44 = vrot.slane %v15527_v40, 1  ;;  %v476_v39 = vmax.f32 %v474_v57, 0.0 }
  0x50   : > { %14350 = vmatpush3.msra.mxu0 %v15121_v3  ;;  %14347 = vmatmul.mubr.msk.f32.vlgmr.msra.gmra.mxu1 %vm283_vm0, %v15259_v29  ;;  %v2666_v29 = vld [vmem:[#allocation2 + $0x70] sm:$0x3] }
  0x51   : > { %14355 = vmatpush3.msra.mxu1 %v15126_v4  ;;  %14351 = vmatprep.mubr.msk.f32.mxu0 %vm283_vm0, %v15294_v43  ;;  %v15455_v43 = vrot.slane %v15441_v7, 1  ;;  %466 = vst.msk [vmem:[#allocation2 + $0x109] sm:$0xff] %vm283_vm0, %v460_v38  ;;  %v2754_v15 = vrot.slane %v2666_v29, 1  ;;  %v2840_v24 = vrot.slane %v2666_v29, 2  ;;  %v15569_v58 = vsel %vm549_vm2, %v3551_v44, %v15545_v45  ;;  %482 = vst.msk [vmem:[#allocation2 + $0x129] sm:$0xff] %vm283_vm0, %v476_v39 }
  0x52   : > { %14359 = vmatprep.subr.mxu0 %v15188_v37  ;;  %14356 = vmatprep.mubr.msk.f32.mxu1 %vm283_vm0, %v15325_v53  ;;  %v487_v29 = vmul.f32 %v13487_v63, %v15142_v5 }
  0x53   : > { %14352 = vmatmul.mubr.msk.f32.vlgmr.msra.gmra.mxu0 %vm283_vm0, %v2323_v22  ;;  %14364 = vmatprep.subr.mxu1 %v15166_v20  ;;  %v15480_v23 = vsel %vm549_vm2, %v2751_v12, %v15455_v43  ;;  %v2755_v25 = vsel %vm549_vm2, %v15455_v43, %v2754_v15  ;;  %v2841_v30 = vsel %vm713_vm3, %v15474_v17, %v2840_v24  ;;  %v13486_v22 = vld [vmem:[%s15149_s12 + $0xc0] sm:$0xff] }
  0x54   : > { %14360 = vmatpush3.msra.mxu0 %v15188_v37  ;;  %14357 = vmatmul.mubr.msk.f32.vlgmr.msra.gmra.mxu1 %vm283_vm0, %v15327_v55  ;;  %v486_v10 = vmul.f32 %v13486_v22, %v15142_v5  ;;  %v489_v11 = vadd.f32 %v15154_v6, %v487_v29  ;;  %v3760_v12 = vsel %vm549_vm2, %v15455_v43, %v3759_v62  ;;  %v5352_v22 = vld [vmem:[#allocation2 + $0xa0] sm:$0x3] }
  0x55   : > { %14365 = vmatpush3.msra.mxu1 %v15166_v20  ;;  %14361 = vmatprep.mubr.msk.f32.mxu0 %vm283_vm0, %v15374_v19 }
  0x56   : > { %14369 = vmatprep.subr.mxu0 %v15213_v54  ;;  %14366 = vmatprep.mubr.msk.f32.mxu1 %vm283_vm0, %v15382_v26  ;;  %v488_v38 = vadd.f32 %v15154_v6, %v486_v10  ;;  %v491_v16 = vmax.f32 %v489_v11, 0.0  ;;  %v5359_v10 = vrot.slane %v5352_v22, 1  ;;  %v13491_v11 = vld [vmem:[%s15149_s12 + $0xe8] sm:$0xff] }
  0x57   : > { %14362 = vmatmul.mubr.msk.f32.vlgmr.msra.gmra.mxu0 %vm283_vm0, %v2496_v13  ;;  %14374 = vmatprep.subr.mxu1 %v15245_v21  ;;  %v3922_v13 = vrot.slane %v3752_v56, 2 }
  0x58   : > { %14370 = vmatpush3.msra.mxu0 %v15213_v54  ;;  %14367 = vmatmul.mubr.msk.f32.vlgmr.msra.gmra.mxu1 %vm283_vm0, %v2582_v14  ;;  %v4007_v14 = vld [vmem:[#allocation2 + $0x88] sm:$0x3]  ;;  %v490_v15 = vmax.f32 %v488_v38, 0.0  ;;  %497 = vst.msk [vmem:[#allocation2 + $0x141] sm:$0xff] %vm283_vm0, %v491_v16  ;;  %v13490_v38 = vld [vmem:[%s15149_s12 + $0xe0] sm:$0xff]  ;;  %v5522_v16 = vrot.slane %v5352_v22, 2 }
  0x59   : > { %14375 = vmatpush3.msra.mxu1 %v15245_v21  ;;  %14371 = vmatprep.mubr.msk.f32.mxu0 %vm283_vm0, %v15439_v2  ;;  %v4181_v18 = vrot.slane %v4007_v14, 2 }
  0x5a   : > { %14379 = vmatprep.subr.mxu0 %v15273_v36  ;;  %14376 = vmatprep.mubr.msk.f32.mxu1 %vm283_vm0, %v15480_v23  ;;  %496 = vst.msk [vmem:[#allocation2 + $0x139] sm:$0xff] %vm283_vm0, %v490_v15 }
  0x5b   : > { %14372 = vmatmul.mubr.msk.f32.vlgmr.msra.gmra.mxu0 %vm283_vm0, %v15441_v7  ;;  %14384 = vmatprep.subr.mxu1 %v15055_v0 }
  0x5c   : > { %14380 = vmatpush3.msra.mxu0 %v15273_v36  ;;  %14377 = vmatmul.mubr.msk.f32.vlgmr.msra.gmra.mxu1 %vm283_vm0, %v2755_v25  ;;  %v4182_v25 = vsel %vm713_vm3, %v15553_v48, %v4181_v18 }
  0x5d   : > { %14385 = vmatpush3.msra.mxu1 %v15055_v0  ;;  %14381 = vmatprep.mubr.msk.f32.mxu0 %vm283_vm0, %v15494_v28 }
  0x5e   : > { %14389 = vmatprep.subr.mxu0 %v15060_v1  ;;  %14386 = vmatprep.mubr.msk.f32.mxu1 %vm283_vm0, %v15374_v19  ;;  %v13484_v19 = vld [vmem:[%s15149_s12 + $0xb0] sm:$0xff] }
  0x5f   : > { %14382 = vmatmul.mubr.msk.f32.vlgmr.msra.gmra.mxu0 %vm283_vm0, %v2841_v30  ;;  %14394 = vmatprep.subr.mxu1 %v15121_v3  ;;  %v471_v9 = vmul.f32 %v13484_v19, %v15142_v5 }
  0x60   : > { %14390 = vmatpush3.msra.mxu0 %v15060_v1  ;;  %14387 = vmatmul.mubr.msk.f32.vlgmr.msra.gmra.mxu1 %vm283_vm0, %v2960_v31  ;;  %v4552_v31 = vld [vmem:[#allocation2 + $0x88] sm:$0x3] }
  0x61   : > { %14395 = vmatpush3.msra.mxu1 %v15121_v3  ;;  %14391 = vmatprep.mubr.msk.f32.mxu0 %vm283_vm0, %v15325_v53  ;;  %v3381_v53 = vrot.slane %v3207_v34, 2  ;;  %v473_v46 = vadd.f32 %v15154_v6, %v471_v9  ;;  %v13489_v9 = vld [vmem:[%s15149_s12 + $0xd8] sm:$0xff]  ;;  %v4722_v47 = vrot.slane %v4552_v31, 2 }
  0x62   : > { %14399 = vmatprep.subr.mxu0 %v15126_v4  ;;  %14396 = vmatprep.mubr.msk.f32.mxu1 %vm283_vm0, %v15382_v26  ;;  %v3466_v26 = vld [vmem:[#allocation2 + $0x88] sm:$0x3] }
  0x63   : > { %14392 = vmatmul.mubr.msk.f32.vlgmr.msra.gmra.mxu0 %vm283_vm0, %v15327_v55  ;;  %14404 = vmatprep.subr.mxu1 %v15188_v37  ;;  %v3296_v55 = vsel %vm549_vm2, %v15455_v43, %v3295_v35  ;;  %v3382_v50 = vsel %vm713_vm3, %v15474_v17, %v3381_v53  ;;  %v3554_v51 = vrot.slane %v3466_v26, 1  ;;  %v475_v33 = vmax.f32 %v473_v46, 0.0  ;;  %v15619_v43 = vld [vmem:[#allocation2 + $0x90] sm:$0xff] }
  0x64   : > { %14400 = vmatpush3.msra.mxu0 %v15126_v4  ;;  %14397 = vmatmul.mubr.msk.f32.vlgmr.msra.gmra.mxu1 %vm283_vm0, %v3123_v61  ;;  %v3640_v52 = vrot.slane %v3466_v26, 2  ;;  %v4559_v35 = vrot.slane %v4552_v31, 1  ;;  %v13488_v53 = vld [vmem:[%s15149_s12 + $0xd0] sm:$0xff]  ;;  %v502_v26 = vmul.f32 %v13489_v9, %v15142_v5  ;;  %v15825_v31 = vld [vmem:[#allocation2 + $0xc8] sm:$0xff] }
  0x65   : > { %14405 = vmatpush3.msra.mxu1 %v15188_v37  ;;  %14401 = vmatprep.mubr.msk.f32.mxu0 %vm283_vm0, %v15439_v2  ;;  %481 = vst.msk [vmem:[#allocation2 + $0x121] sm:$0xff] %vm283_vm0, %v475_v33  ;;  %v3555_v60 = vsel %vm549_vm2, %v15545_v45, %v3554_v51  ;;  %v4807_v51 = vld [vmem:[#allocation2 + $0xa0] sm:$0x3] }
  0x66   : > { %14409 = vmatprep.subr.mxu0 %v15166_v20  ;;  %14406 = vmatprep.mubr.msk.f32.mxu1 %vm283_vm0, %v15480_v23  ;;  %v3641_v8 = vsel %vm713_vm3, %v15553_v48, %v3640_v52  ;;  %v4560_v46 = vsel %vm549_vm2, %v15545_v45, %v4559_v35  ;;  %v4895_v52 = vrot.slane %v4807_v51, 1 }
  0x67   : > { %14402 = vmatmul.mubr.msk.f32.vlgmr.msra.gmra.mxu0 %vm283_vm0, %v15441_v7  ;;  %14414 = vmatprep.subr.mxu1 %v15213_v54 }
  0x68   : > { %14410 = vmatpush3.msra.mxu0 %v15166_v20  ;;  %14407 = vmatmul.mubr.msk.f32.vlgmr.msra.gmra.mxu1 %vm283_vm0, %v3296_v55  ;;  %v501_v55 = vmul.f32 %v13488_v53, %v15142_v5  ;;  %v504_v5 = vadd.f32 %v15154_v6, %v502_v26  ;;  %v6152_v26 = vld [vmem:[#allocation2 + $0xb8] sm:$0x3] }
  0x69   : > { %14415 = vmatpush3.msra.mxu1 %v15213_v54  ;;  %14411 = vmatprep.mubr.msk.f32.mxu0 %vm283_vm0, %v15494_v28 }
  0x6a   : > { %14419 = vmatprep.subr.mxu0 %v15245_v21  ;;  %14416 = vmatprep.mubr.msk.f32.mxu1 %vm283_vm0, %v15527_v40  ;;  %v503_v49 = vadd.f32 %v15154_v6, %v501_v55  ;;  %v506_v33 = vmax.f32 %v504_v5, 0.0  ;;  %v4723_v6 = vsel %vm713_vm3, %v15553_v48, %v4722_v47  ;;  %v4981_v48 = vrot.slane %v4807_v51, 2  ;;  %v13492_v5 = vld [vmem:[%s15149_s12 + $0xf0] sm:$0xff]  ;;  %v13493_v51 = vld [vmem:[%s15149_s12 + $0xf8] sm:$0xff] }
  0x6b   : > { %14412 = vmatmul.mubr.msk.f32.vlgmr.msra.gmra.mxu0 %vm283_vm0, %v3382_v50  ;;  %14424 = vmatprep.subr.mxu1 %v15273_v36  ;;  %v15698_v50 = vld [vmem:[%s16939_s3] sm:$0xff]  ;;  %v15866_v55 = vrot.slane %v15825_v31, 2 }
  0x6c   : > { %14420 = vmatpush3.msra.mxu0 %v15245_v21  ;;  %14417 = vmatmul.mubr.msk.f32.vlgmr.msra.gmra.mxu1 %vm283_vm0, %v15529_v41  ;;  %512 = vst.msk [vmem:[#allocation2 + $0x159] sm:$0xff] %vm283_vm0, %v506_v33 }
  0x6d   : > { %14425 = vmatpush3.msra.mxu1 %v15273_v36  ;;  %14421 = vmatprep.mubr.msk.f32.mxu0 %vm283_vm0, %v15569_v58 }
  0x6e   : > { %14429 = vmatprep.subr.mxu0 %v15055_v0  ;;  %14426 = vmatprep.mubr.msk.f32.mxu1 %vm283_vm0, %v15576_v59 }
  0x6f   : > { %14422 = vmatmul.mubr.msk.f32.vlgmr.msra.gmra.mxu0 %vm283_vm0, %v3555_v60  ;;  %14434 = vmatprep.subr.mxu1 %v15060_v1 }
  0x70   : > { %14430 = vmatpush3.msra.mxu0 %v15055_v0  ;;  %14427 = vmatmul.mubr.msk.f32.vlgmr.msra.gmra.mxu1 %vm283_vm0, %v3641_v8  ;;  %v3923_v0 = vsel %vm713_vm3, %v15474_v17, %v3922_v13  ;;  %v4351_v17 = vrot.slane %v15619_v43, 1 }
  0x71   : > { %14435 = vmatpush3.msra.mxu1 %v15060_v1  ;;  %14431 = vmatprep.mubr.msk.f32.mxu0 %vm283_vm0, %v15480_v23  ;;  %v4095_v1 = vrot.slane %v4007_v14, 1 }
  0x72   : > { %14439 = vmatprep.subr.mxu0 %v15121_v3  ;;  %14436 = vmatprep.mubr.msk.f32.mxu1 %vm283_vm0, %v15439_v2  ;;  %v15621_v2 = vld [vmem:[#allocation2 + $0x98] sm:$0xff] }
  0x73   : > { %14432 = vmatmul.mubr.msk.f32.vlgmr.msra.gmra.mxu0 %vm283_vm0, %v3760_v12  ;;  %14444 = vmatprep.subr.mxu1 %v15126_v4  ;;  %v15633_v23 = vrot.slane %v15621_v2, 1  ;;  %v4096_v24 = vsel %vm549_vm2, %v15545_v45, %v4095_v1  ;;  %v15650_v30 = vrot.slane %v15621_v2, 2  ;;  %v505_v45 = vmax.f32 %v503_v49, 0.0  ;;  %v15783_v12 = vld [vmem:[%s16937_s1] ss:$0 sm:$0xff] }
  0x74   : > { %14440 = vmatpush3.msra.mxu0 %v15121_v3  ;;  %14437 = vmatmul.mubr.msk.f32.vlgmr.msra.gmra.mxu1 %vm283_vm0, %v15441_v7  ;;  %v4266_v7 = vld [vmem:[#allocation2 + $0xa0] sm:$0x3]  ;;  %v516_v13 = vmul.f32 %v15783_v12, %v13490_v38  ;;  %v517_v14 = vmul.f32 %v15783_v12, %v13491_v11  ;;  %v6159_v49 = vrot.slane %v6152_v26, 1  ;;  %v532_v33 = vmul.f32 %v15783_v12, %v13493_v51  ;;  %v6952_v11 = vld [vmem:[#allocation2 + $0xd0] sm:$0x3] }
  0x75   : > { %14445 = vmatpush3.msra.mxu1 %v15126_v4  ;;  %14441 = vmatprep.mubr.msk.f32.mxu0 %vm283_vm0, %v15494_v28  ;;  %v4354_v27 = vrot.slane %v4266_v7, 1  ;;  %v4437_v28 = vrot.slane %v15619_v43, 2  ;;  %v15656_v32 = vsel %vm549_vm2, %v4351_v17, %v15633_v23  ;;  %v4440_v34 = vrot.slane %v4266_v7, 2  ;;  %511 = vst.msk [vmem:[#allocation2 + $0x151] sm:$0xff] %vm283_vm0, %v505_v45  ;;  %v5607_v7 = vld [vmem:[#allocation2 + $0xb8] sm:$0x3] }
  0x76   : > { %14449 = vmatprep.subr.mxu0 %v15188_v37  ;;  %14446 = vmatprep.mubr.msk.f32.mxu1 %vm283_vm0, %v15527_v40  ;;  %v4896_v56 = vsel %vm549_vm2, %v15633_v23, %v4895_v52  ;;  %v4982_v39 = vsel %vm713_vm3, %v15650_v30, %v4981_v48  ;;  %v5360_v15 = vsel %vm549_vm2, %v15633_v23, %v5359_v10  ;;  %v15806_v17 = vld [vmem:[%s16939_s3 + $0x10] sm:$0xff]  ;;  %v6322_v52 = vrot.slane %v6152_v26, 2 }
  0x77   : > { %14442 = vmatmul.mubr.msk.f32.vlgmr.msra.gmra.mxu0 %vm283_vm0, %v3923_v0  ;;  %14454 = vmatprep.subr.mxu1 %v15166_v20  ;;  %v4355_v61 = vsel %vm549_vm2, %v15633_v23, %v4354_v27  ;;  %v15670_v19 = vsel %vm713_vm3, %v4437_v28, %v15650_v30  ;;  %v4441_v44 = vsel %vm713_vm3, %v15650_v30, %v4440_v34  ;;  %v15796_v0 = vld [vmem:[%s16938_s2] ss:$0 sm:$0xff] }
  0x78   : > { %14450 = vmatpush3.msra.mxu0 %v15188_v37  ;;  %14447 = vmatmul.mubr.msk.f32.vlgmr.msra.gmra.mxu1 %vm283_vm0, %v15529_v41  ;;  %v518_v1 = vadd.f32 %v15796_v0, %v516_v13  ;;  %v519_v18 = vadd.f32 %v15796_v0, %v517_v14  ;;  %v5523_v27 = vsel %vm713_vm3, %v15650_v30, %v5522_v16  ;;  %v15823_v28 = vld [vmem:[#allocation2 + $0xc0] sm:$0xff]  ;;  %v15839_v30 = vld [vmem:[%s16939_s3 + $0x28] sm:$0xff] }
  0x79   : > { %14455 = vmatpush3.msra.mxu1 %v15166_v20  ;;  %14451 = vmatprep.mubr.msk.f32.mxu0 %vm283_vm0, %v15569_v58  ;;  %v5951_v34 = vrot.slane %v15823_v28, 1  ;;  %v6037_v9 = vrot.slane %v15823_v28, 2  ;;  %v15979_v14 = vld [vmem:[%s16939_s3 + $0x40] sm:$0xff] }
  0x7a   : > { %14459 = vmatprep.subr.mxu0 %v15213_v54  ;;  %14456 = vmatprep.mubr.msk.f32.mxu1 %vm283_vm0, %v15576_v59  ;;  %v520_v23 = vmax.f32 %v518_v1, 0.0 }
  0x7b   : > { %14452 = vmatmul.mubr.msk.f32.vlgmr.msra.gmra.mxu0 %vm283_vm0, %v4096_v24  ;;  %14464 = vmatprep.subr.mxu1 %v15245_v21  ;;  %v521_v24 = vmax.f32 %v519_v18, 0.0 }
  0x7c   : > { %14460 = vmatpush3.msra.mxu0 %v15213_v54  ;;  %14457 = vmatmul.mubr.msk.f32.vlgmr.msra.gmra.mxu1 %vm283_vm0, %v4182_v25  ;;  %v15815_v25 = vld [vmem:[%s16939_s3 + $0x18] sm:$0xff]  ;;  %526 = vst.msk [vmem:[#allocation2 + $0x169] sm:$0xff] %vm283_vm0, %v520_v23  ;;  %v7207_v23 = vld [vmem:[#allocation2 + $0xe8] sm:$0x3] }
  0x7d   : > { %14465 = vmatpush3.msra.mxu1 %v15245_v21  ;;  %14461 = vmatprep.mubr.msk.f32.mxu0 %vm283_vm0, %v15619_v43  ;;  %527 = vst.msk [vmem:[#allocation2 + $0x171] sm:$0xff] %vm283_vm0, %v521_v24 }
  0x7e   : > { %14469 = vmatprep.subr.mxu0 %v15273_v36  ;;  %14466 = vmatprep.mubr.msk.f32.mxu1 %vm283_vm0, %v15656_v32 }
  0x7f   : > { %14462 = vmatmul.mubr.msk.f32.vlgmr.msra.gmra.mxu0 %vm283_vm0, %v15621_v2  ;;  %14474 = vmatprep.subr.mxu1 %v15679_v42 }
  0x80   : > { %14470 = vmatpush3.msra.mxu0 %v15273_v36  ;;  %14467 = vmatmul.mubr.msk.f32.vlgmr.msra.gmra.mxu1 %vm283_vm0, %v4355_v61  ;;  %v15844_v61 = vrot.slane %v15825_v31, 1 }
  0x81   : > { %14475 = vmatpush3.msra.mxu1 %v15679_v42  ;;  %14471 = vmatprep.mubr.msk.f32.mxu0 %vm283_vm0, %v15670_v19 }
  0x82   : > { %14479 = vmatprep.subr.mxu0 %v15698_v50  ;;  %14476 = vmatprep.mubr.msk.f32.mxu1 %vm283_vm0, %v15569_v58 }
  0x83   : > { %14472 = vmatmul.mubr.msk.f32.vlgmr.msra.gmra.mxu0 %vm283_vm0, %v4441_v44  ;;  %14484 = vmatprep.subr.mxu1 %v15121_v3  ;;  %v15872_v44 = vsel %vm549_vm2, %v5951_v34, %v15844_v61 }
  0x84   : > { %14480 = vmatpush3.msra.mxu0 %v15698_v50  ;;  %14477 = vmatmul.mubr.msk.f32.vlgmr.msra.gmra.mxu1 %vm283_vm0, %v4560_v46 }
  0x85   : > { %14485 = vmatpush3.msra.mxu1 %v15121_v3  ;;  %14481 = vmatprep.mubr.msk.f32.mxu0 %vm283_vm0, %v15527_v40  ;;  %v15720_v3 = vld [vmem:[#allocation2 + $0xa8] sm:$0xff]  ;;  %v15722_v40 = vld [vmem:[#allocation2 + $0xb0] sm:$0xff] }
  0x86   : > { %14489 = vmatprep.subr.mxu0 %v15126_v4  ;;  %14486 = vmatprep.mubr.msk.f32.mxu1 %vm283_vm0, %v15576_v59  ;;  %v5151_v57 = vrot.slane %v15720_v3, 1  ;;  %v5237_v58 = vrot.slane %v15720_v3, 2  ;;  %v15743_v59 = vrot.slane %v15722_v40, 2 }
  0x87   : > { %14482 = vmatmul.mubr.msk.f32.vlgmr.msra.gmra.mxu0 %vm283_vm0, %v15529_v41  ;;  %14494 = vmatprep.subr.mxu1 %v15188_v37  ;;  %v5066_v41 = vld [vmem:[#allocation2 + $0xb8] sm:$0x3] }
  0x88   : > { %14490 = vmatpush3.msra.mxu0 %v15126_v4  ;;  %14487 = vmatmul.mubr.msk.f32.vlgmr.msra.gmra.mxu1 %vm283_vm0, %v4723_v6  ;;  %v15736_v4 = vrot.slane %v15722_v40, 1  ;;  %v5154_v60 = vrot.slane %v5066_v41, 1  ;;  %v5240_v62 = vrot.slane %v5066_v41, 2  ;;  %v15763_v63 = vsel %vm713_vm3, %v5237_v58, %v15743_v59 }
  0x89   : > { %14495 = vmatpush3.msra.mxu1 %v15188_v37  ;;  %14491 = vmatprep.mubr.msk.f32.mxu0 %vm283_vm0, %v15619_v43 }
  0x8a   : > { %14499 = vmatprep.subr.mxu0 %v15166_v20  ;;  %14496 = vmatprep.mubr.msk.f32.mxu1 %vm283_vm0, %v15656_v32  ;;  %v5155_v8 = vsel %vm549_vm2, %v15736_v4, %v5154_v60  ;;  %v5241_v29 = vsel %vm713_vm3, %v15743_v59, %v5240_v62  ;;  %v6160_v6 = vsel %vm549_vm2, %v15736_v4, %v6159_v49 }
  0x8b   : > { %14492 = vmatmul.mubr.msk.f32.vlgmr.msra.gmra.mxu0 %vm283_vm0, %v15621_v2  ;;  %14504 = vmatprep.subr.mxu1 %v15213_v54 }
  0x8c   : > { %14500 = vmatpush3.msra.mxu0 %v15166_v20  ;;  %14497 = vmatmul.mubr.msk.f32.vlgmr.msra.gmra.mxu1 %vm283_vm0, %v4896_v56  ;;  %v15757_v20 = vsel %vm549_vm2, %v5151_v57, %v15736_v4  ;;  %v534_v56 = vadd.f32 %v15796_v0, %v532_v33 }
  0x8d   : > { %14505 = vmatpush3.msra.mxu1 %v15213_v54  ;;  %14501 = vmatprep.mubr.msk.f32.mxu0 %vm283_vm0, %v15670_v19 }
  0x8e   : > { %14509 = vmatprep.subr.mxu0 %v15245_v21  ;;  %14506 = vmatprep.mubr.msk.f32.mxu1 %vm283_vm0, %v15720_v3  ;;  %v536_v57 = vmax.f32 %v534_v56, 0.0  ;;  %v8266_v56 = vld [vmem:[#allocation2 + $0x118] sm:$0x3] }
  0x8f   : > { %14502 = vmatmul.mubr.msk.f32.vlgmr.msra.gmra.mxu0 %vm283_vm0, %v4982_v39  ;;  %14514 = vmatprep.subr.mxu1 %v15273_v36  ;;  %v15926_v39 = vld [vmem:[#allocation2 + $0xd8] sm:$0xff] }
  0x90   : > { %14510 = vmatpush3.msra.mxu0 %v15245_v21  ;;  %14507 = vmatmul.mubr.msk.f32.vlgmr.msra.gmra.mxu1 %vm283_vm0, %v15722_v40  ;;  %542 = vst.msk [vmem:[#allocation2 + $0x189] sm:$0xff] %vm283_vm0, %v536_v57  ;;  %v6751_v62 = vrot.slane %v15926_v39, 1 }
  0x91   : > { %14515 = vmatpush3.msra.mxu1 %v15273_v36  ;;  %14511 = vmatprep.mubr.msk.f32.mxu0 %vm283_vm0, %v15757_v20 }
  0x92   : > { %14519 = vmatprep.subr.mxu0 %v15679_v42  ;;  %14516 = vmatprep.mubr.msk.f32.mxu1 %vm283_vm0, %v15763_v63 }
  0x93   : > { %14512 = vmatmul.mubr.msk.f32.vlgmr.msra.gmra.mxu0 %vm283_vm0, %v5155_v8  ;;  %14524 = vmatprep.subr.mxu1 %v15698_v50 }
  0x94   : > { %14520 = vmatpush3.msra.mxu0 %v15679_v42  ;;  %14517 = vmatmul.mubr.msk.f32.vlgmr.msra.gmra.mxu1 %vm283_vm0, %v5241_v29 }
  0x95   : > { %14525 = vmatpush3.msra.mxu1 %v15698_v50  ;;  %14521 = vmatprep.mubr.msk.f32.mxu0 %vm283_vm0, %v15656_v32  ;;  %v5781_v32 = vrot.slane %v5607_v7, 2 }
  0x96   : > { %14529 = vmatprep.subr.mxu0 %v15806_v17  ;;  %14526 = vmatprep.mubr.msk.f32.mxu1 %vm283_vm0, %v15619_v43  ;;  %v5695_v43 = vrot.slane %v5607_v7, 1  ;;  %v7122_v7 = vrot.slane %v6952_v11, 2 }
  0x97   : > { %14522 = vmatmul.mubr.msk.f32.vlgmr.msra.gmra.mxu0 %vm283_vm0, %v5360_v15  ;;  %14534 = vmatprep.subr.mxu1 %v15815_v25 }
  0x98   : > { %14530 = vmatpush3.msra.mxu0 %v15806_v17  ;;  %14527 = vmatmul.mubr.msk.f32.vlgmr.msra.gmra.mxu1 %vm283_vm0, %v15621_v2  ;;  %v5866_v2 = vld [vmem:[#allocation2 + $0xd0] sm:$0x3]  ;;  %v5696_v35 = vsel %vm549_vm2, %v15736_v4, %v5695_v43  ;;  %v6323_v4 = vsel %vm713_vm3, %v15743_v59, %v6322_v52  ;;  %v7123_v24 = vsel %vm713_vm3, %v15866_v55, %v7122_v7 }
  0x99   : > { %14535 = vmatpush3.msra.mxu1 %v15815_v25  ;;  %14531 = vmatprep.mubr.msk.f32.mxu0 %vm283_vm0, %v15670_v19  ;;  %v5782_v19 = vsel %vm713_vm3, %v15743_v59, %v5781_v32  ;;  %v5954_v53 = vrot.slane %v5866_v2, 1  ;;  %v6040_v46 = vrot.slane %v5866_v2, 2  ;;  %v16018_v43 = vld [vmem:[#allocation2 + $0xf0] sm:$0xff]  ;;  %v16020_v32 = vld [vmem:[#allocation2 + $0xf8] sm:$0xff] }
  0x9a   : > { %14539 = vmatprep.subr.mxu0 %v15188_v37  ;;  %14536 = vmatprep.mubr.msk.f32.mxu1 %vm283_vm0, %v15720_v3  ;;  %v15849_v37 = vld [vmem:[%s16939_s3 + $0x20] sm:$0xff]  ;;  %v7551_v2 = vrot.slane %v16018_v43, 1  ;;  %v16032_v34 = vrot.slane %v16020_v32, 1  ;;  %v16103_v52 = vld [vmem:[#allocation2 + $0x110] sm:$0xff] }
  0x9b   : > { %14532 = vmatmul.mubr.msk.f32.vlgmr.msra.gmra.mxu0 %vm283_vm0, %v5523_v27  ;;  %14544 = vmatprep.subr.mxu1 %v15839_v30  ;;  %v5955_v47 = vsel %vm549_vm2, %v15844_v61, %v5954_v53  ;;  %v6041_v45 = vsel %vm713_vm3, %v15866_v55, %v6040_v46  ;;  %v7295_v27 = vrot.slane %v7207_v23, 1  ;;  %v7637_v53 = vrot.slane %v16018_v43, 2 }
  0x9c   : > { %14540 = vmatpush3.msra.mxu0 %v15849_v37  ;;  %14537 = vmatmul.mubr.msk.f32.vlgmr.msra.gmra.mxu1 %vm283_vm0, %v15722_v40  ;;  %v16055_v26 = vsel %vm549_vm2, %v7551_v2, %v16032_v34  ;;  %v16117_v57 = vrot.slane %v16103_v52, 1  ;;  %v9352_v2 = vld [vmem:[#allocation2 + $0x118] sm:$0x3] }
  0x9d   : > { %14545 = vmatpush3.msra.mxu1 %v15839_v30  ;;  %14541 = vmatprep.mubr.msk.f32.mxu0 %vm283_vm0, %v15757_v20 }
  0x9e   : > { %14549 = vmatprep.subr.mxu0 %v15213_v54  ;;  %14546 = vmatprep.mubr.msk.f32.mxu1 %vm283_vm0, %v15763_v63 }
  0x9f   : > { %14542 = vmatmul.mubr.msk.f32.vlgmr.msra.gmra.mxu0 %vm283_vm0, %v5696_v35  ;;  %14554 = vmatprep.subr.mxu1 %v15245_v21 }
  0xa0   : > { %14550 = vmatpush3.msra.mxu0 %v15213_v54  ;;  %14547 = vmatmul.mubr.msk.f32.vlgmr.msra.gmra.mxu1 %vm283_vm0, %v5782_v19  ;;  %v15886_v54 = vsel %vm713_vm3, %v6037_v9, %v15866_v55  ;;  %v16049_v9 = vrot.slane %v16020_v32, 2 }
  0xa1   : > { %14555 = vmatpush3.msra.mxu1 %v15245_v21  ;;  %14551 = vmatprep.mubr.msk.f32.mxu0 %vm283_vm0, %v15823_v28  ;;  %v531_v21 = vmul.f32 %v15783_v12, %v13492_v5  ;;  %v15966_v12 = vld [vmem:[%s16939_s3 + $0x38] sm:$0xff] }
  0xa2   : > { %14559 = vmatprep.subr.mxu0 %v15273_v36  ;;  %14556 = vmatprep.mubr.msk.f32.mxu1 %vm283_vm0, %v15872_v44  ;;  %v16069_v49 = vsel %vm713_vm3, %v7637_v53, %v16049_v9 }
  0xa3   : > { %14552 = vmatmul.mubr.msk.f32.vlgmr.msra.gmra.mxu0 %vm283_vm0, %v15825_v31  ;;  %14564 = vmatprep.subr.mxu1 %v15679_v42  ;;  %v533_v48 = vadd.f32 %v15796_v0, %v531_v21  ;;  %v6959_v0 = vrot.slane %v6952_v11, 1  ;;  %v8007_v21 = vld [vmem:[#allocation2 + $0x100] sm:$0x3] }
  0xa4   : > { %14560 = vmatpush3.msra.mxu0 %v15273_v36  ;;  %14557 = vmatmul.mubr.msk.f32.vlgmr.msra.gmra.mxu1 %vm283_vm0, %v5955_v47  ;;  %v6407_v36 = vld [vmem:[#allocation2 + $0xd0] sm:$0x3]  ;;  %v8095_v33 = vrot.slane %v8007_v21, 1 }
  0xa5   : > { %14565 = vmatpush3.msra.mxu1 %v15679_v42  ;;  %14561 = vmatprep.mubr.msk.f32.mxu0 %vm283_vm0, %v15886_v54  ;;  %v535_v41 = vmax.f32 %v533_v48, 0.0  ;;  %v6495_v58 = vrot.slane %v6407_v36, 1  ;;  %v6581_v59 = vrot.slane %v6407_v36, 2  ;;  %v6960_v18 = vsel %vm549_vm2, %v15844_v61, %v6959_v0 }
  0xa6   : > { %14569 = vmatprep.subr.mxu0 %v15698_v50  ;;  %14566 = vmatprep.mubr.msk.f32.mxu1 %vm283_vm0, %v15757_v20  ;;  %v15949_v20 = vld [vmem:[%s16939_s3 + $0x30] sm:$0xff]  ;;  %v8181_v48 = vrot.slane %v8007_v21, 2  ;;  %v8096_v36 = vsel %vm549_vm2, %v16032_v34, %v8095_v33 }
  0xa7   : > { %14562 = vmatmul.mubr.msk.f32.vlgmr.msra.gmra.mxu0 %vm283_vm0, %v6041_v45  ;;  %14574 = vmatprep.subr.mxu1 %v15806_v17  ;;  %541 = vst.msk [vmem:[#allocation2 + $0x181] sm:$0xff] %vm283_vm0, %v535_v41  ;;  %v6496_v60 = vsel %vm549_vm2, %v15844_v61, %v6495_v58  ;;  %v6582_v10 = vsel %vm713_vm3, %v15866_v55, %v6581_v59  ;;  %v7752_v55 = vld [vmem:[#allocation2 + $0xe8] sm:$0x3]  ;;  %v16124_v58 = vrot.slane %v16103_v52, 2  ;;  %v8440_v59 = vrot.slane %v8266_v56, 2 }
  0xa8   : > { %14570 = vmatpush3.msra.mxu0 %v15698_v50  ;;  %14567 = vmatmul.mubr.msk.f32.vlgmr.msra.gmra.mxu1 %vm283_vm0, %v6160_v6  ;;  %v7759_v47 = vrot.slane %v7752_v55, 1  ;;  %v7922_v51 = vrot.slane %v7752_v55, 2  ;;  %v16101_v6 = vld [vmem:[#allocation2 + $0x108] sm:$0xff]  ;;  %v9607_v21 = vld [vmem:[#allocation2 + $0x130] sm:$0x3] }
  0xa9   : > { %14575 = vmatpush3.msra.mxu1 %v15806_v17  ;;  %14571 = vmatprep.mubr.msk.f32.mxu0 %vm283_vm0, %v15720_v3  ;;  %v15928_v3 = vld [vmem:[#allocation2 + $0xe0] sm:$0xff]  ;;  %v8351_v41 = vrot.slane %v16101_v6, 1 }
  0xaa   : > { %14579 = vmatprep.subr.mxu0 %v15815_v25  ;;  %14576 = vmatprep.mubr.msk.f32.mxu1 %vm283_vm0, %v15763_v63  ;;  %v15942_v22 = vrot.slane %v15928_v3, 1  ;;  %v6837_v63 = vrot.slane %v15926_v39, 2  ;;  %v15954_v8 = vrot.slane %v15928_v3, 2 }
  0xab   : > { %14572 = vmatmul.mubr.msk.f32.vlgmr.msra.gmra.mxu0 %vm283_vm0, %v15722_v40  ;;  %14584 = vmatprep.subr.mxu1 %v15849_v37  ;;  %v6666_v40 = vld [vmem:[#allocation2 + $0xe8] sm:$0x3] }
  0xac   : > { %14580 = vmatpush3.msra.mxu0 %v15815_v25  ;;  %14577 = vmatmul.mubr.msk.f32.vlgmr.msra.gmra.mxu1 %vm283_vm0, %v6323_v4  ;;  %v6754_v29 = vrot.slane %v6666_v40, 1  ;;  %v6840_v38 = vrot.slane %v6666_v40, 2  ;;  %v15973_v13 = vsel %vm549_vm2, %v6751_v62, %v15942_v22  ;;  %v15984_v15 = vsel %vm713_vm3, %v6837_v63, %v15954_v8 }
  0xad   : > { %14585 = vmatpush3.msra.mxu1 %v15849_v37  ;;  %14581 = vmatprep.mubr.msk.f32.mxu0 %vm283_vm0, %v15823_v28  ;;  %v7296_v61 = vsel %vm549_vm2, %v15942_v22, %v7295_v27  ;;  %v7760_v5 = vsel %vm549_vm2, %v15942_v22, %v7759_v47  ;;  %v7923_v45 = vsel %vm713_vm3, %v15954_v8, %v7922_v51  ;;  %v8437_v4 = vrot.slane %v16101_v6, 2 }
  0xae   : > { %14589 = vmatprep.subr.mxu0 %v15839_v30  ;;  %14586 = vmatprep.mubr.msk.f32.mxu1 %vm283_vm0, %v15872_v44  ;;  %v6755_v16 = vsel %vm549_vm2, %v15942_v22, %v6754_v29  ;;  %v6841_v1 = vsel %vm713_vm3, %v15954_v8, %v6840_v38  ;;  %v16138_v40 = vsel %vm549_vm2, %v8351_v41, %v16117_v57  ;;  %v8807_v38 = vld [vmem:[#allocation2 + $0x118] sm:$0x3] }
  0xaf   : > { %14582 = vmatmul.mubr.msk.f32.vlgmr.msra.gmra.mxu0 %vm283_vm0, %v15825_v31  ;;  %14594 = vmatprep.subr.mxu1 %v15949_v20  ;;  %v16144_v62 = vsel %vm713_vm3, %v8437_v4, %v16124_v58  ;;  %v8981_v0 = vrot.slane %v8807_v38, 2 }
  0xb0   : > { %14590 = vmatpush3.msra.mxu0 %v15839_v30  ;;  %14587 = vmatmul.mubr.msk.f32.vlgmr.msra.gmra.mxu1 %vm283_vm0, %v6496_v60  ;;  %v8552_v60 = vld [vmem:[#allocation2 + $0x100] sm:$0x3] }
  0xb1   : > { %14595 = vmatpush3.msra.mxu1 %v15949_v20  ;;  %14591 = vmatprep.mubr.msk.f32.mxu0 %vm283_vm0, %v15886_v54  ;;  %v8559_v63 = vrot.slane %v8552_v60, 1  ;;  %v8722_v29 = vrot.slane %v8552_v60, 2 }
  0xb2   : > { %14599 = vmatprep.subr.mxu0 %v15966_v12  ;;  %14596 = vmatprep.mubr.msk.f32.mxu1 %vm283_vm0, %v15926_v39 }
  0xb3   : > { %14592 = vmatmul.mubr.msk.f32.vlgmr.msra.gmra.mxu0 %vm283_vm0, %v6582_v10  ;;  %14604 = vmatprep.subr.mxu1 %v15979_v14  ;;  %v8560_v10 = vsel %vm549_vm2, %v16032_v34, %v8559_v63  ;;  %v8723_v11 = vsel %vm713_vm3, %v16049_v9, %v8722_v29 }
  0xb4   : > { %14600 = vmatpush3.msra.mxu0 %v15966_v12  ;;  %14597 = vmatmul.mubr.msk.f32.vlgmr.msra.gmra.mxu1 %vm283_vm0, %v15928_v3 }
  0xb5   : > { %14605 = vmatpush3.msra.mxu1 %v15979_v14  ;;  %14601 = vmatprep.mubr.msk.f32.mxu0 %vm283_vm0, %v15973_v13 }
  0xb6   : > { %14609 = vmatprep.subr.mxu0 %v15679_v42  ;;  %14606 = vmatprep.mubr.msk.f32.mxu1 %vm283_vm0, %v15984_v15 }
  0xb7   : > { %14602 = vmatmul.mubr.msk.f32.vlgmr.msra.gmra.mxu0 %vm283_vm0, %v6755_v16  ;;  %14614 = vmatprep.subr.mxu1 %v15698_v50  ;;  %v16180_v16 = vld [vmem:[#allocation2 + $0x128] sm:$0xff] }
  0xb8   : > { %14610 = vmatpush3.msra.mxu0 %v15679_v42  ;;  %14607 = vmatmul.mubr.msk.f32.vlgmr.msra.gmra.mxu1 %vm283_vm0, %v6841_v1  ;;  %v9066_v1 = vld [vmem:[#allocation2 + $0x130] sm:$0x3]  ;;  %v16192_v7 = vrot.slane %v16180_v16, 1 }
  0xb9   : > { %14615 = vmatpush3.msra.mxu1 %v15698_v50  ;;  %14611 = vmatprep.mubr.msk.f32.mxu0 %vm283_vm0, %v15872_v44  ;;  %v9154_v27 = vrot.slane %v9066_v1, 1 }
  0xba   : > { %14619 = vmatprep.subr.mxu0 %v15806_v17  ;;  %14616 = vmatprep.mubr.msk.f32.mxu1 %vm283_vm0, %v15823_v28  ;;  %v7381_v28 = vrot.slane %v7207_v23, 2 }
  0xbb   : > { %14612 = vmatmul.mubr.msk.f32.vlgmr.msra.gmra.mxu0 %vm283_vm0, %v6960_v18  ;;  %14624 = vmatprep.subr.mxu1 %v15815_v25  ;;  %v9155_v53 = vsel %vm549_vm2, %v16192_v7, %v9154_v27 }
  0xbc   : > { %14620 = vmatpush3.msra.mxu0 %v15806_v17  ;;  %14617 = vmatmul.mubr.msk.f32.vlgmr.msra.gmra.mxu1 %vm283_vm0, %v15825_v31  ;;  %v7466_v31 = vld [vmem:[#allocation2 + $0x100] sm:$0x3]  ;;  %v7382_v35 = vsel %vm713_vm3, %v15954_v8, %v7381_v28  ;;  %v8441_v8 = vsel %vm713_vm3, %v16124_v58, %v8440_v59  ;;  %v9781_v59 = vrot.slane %v9607_v21, 2 }
  0xbd   : > { %14625 = vmatpush3.msra.mxu1 %v15815_v25  ;;  %14621 = vmatprep.mubr.msk.f32.mxu0 %vm283_vm0, %v15886_v54  ;;  %v7554_v19 = vrot.slane %v7466_v31, 1  ;;  %v7640_v44 = vrot.slane %v7466_v31, 2  ;;  %v16209_v31 = vrot.slane %v16180_v16, 2 }
  0xbe   : > { %14629 = vmatprep.subr.mxu0 %v15849_v37  ;;  %14626 = vmatprep.mubr.msk.f32.mxu1 %vm283_vm0, %v15926_v39 }
  0xbf   : > { %14622 = vmatmul.mubr.msk.f32.vlgmr.msra.gmra.mxu0 %vm283_vm0, %v7123_v24  ;;  %14634 = vmatprep.subr.mxu1 %v15839_v30  ;;  %v7555_v46 = vsel %vm549_vm2, %v16032_v34, %v7554_v19  ;;  %v7641_v54 = vsel %vm713_vm3, %v16049_v9, %v7640_v44  ;;  %v8982_v24 = vsel %vm713_vm3, %v16124_v58, %v8981_v0 }
  0xc0   : > { %14630 = vmatpush3.msra.mxu0 %v15849_v37  ;;  %14627 = vmatmul.mubr.msk.f32.vlgmr.msra.gmra.mxu1 %vm283_vm0, %v15928_v3 }
  0xc1   : > { %14635 = vmatpush3.msra.mxu1 %v15839_v30  ;;  %14631 = vmatprep.mubr.msk.f32.mxu0 %vm283_vm0, %v15973_v13 }
  0xc2   : > { %14639 = vmatprep.subr.mxu0 %v15949_v20  ;;  %14636 = vmatprep.mubr.msk.f32.mxu1 %vm283_vm0, %v15984_v15 }
  0xc3   : > { %14632 = vmatmul.mubr.msk.f32.vlgmr.msra.gmra.mxu0 %vm283_vm0, %v7296_v61  ;;  %14644 = vmatprep.subr.mxu1 %v15966_v12 }
  0xc4   : > { %14640 = vmatpush3.msra.mxu0 %v15949_v20  ;;  %14637 = vmatmul.mubr.msk.f32.vlgmr.msra.gmra.mxu1 %vm283_vm0, %v7382_v35  ;;  %v9240_v35 = vrot.slane %v9066_v1, 2 }
  0xc5   : > { %14645 = vmatpush3.msra.mxu1 %v15966_v12  ;;  %14641 = vmatprep.mubr.msk.f32.mxu0 %vm283_vm0, %v16018_v43 }
  0xc6   : > { %14649 = vmatprep.subr.mxu0 %v15979_v14  ;;  %14646 = vmatprep.mubr.msk.f32.mxu1 %vm283_vm0, %v16055_v26 }
  0xc7   : > { %14642 = vmatmul.mubr.msk.f32.vlgmr.msra.gmra.mxu0 %vm283_vm0, %v16020_v32  ;;  %14654 = vmatprep.subr.mxu1 %v15679_v42 }
  0xc8   : > { %14650 = vmatpush3.msra.mxu0 %v15979_v14  ;;  %14647 = vmatmul.mubr.msk.f32.vlgmr.msra.gmra.mxu1 %vm283_vm0, %v7555_v46  ;;  %v9241_v46 = vsel %vm713_vm3, %v16209_v31, %v9240_v35  ;;  %v16305_v35 = vld [vmem:[%s16940_s4] ss:$0 sm:$0xff] }
  0xc9   : > { %14655 = vmatpush3.msra.mxu1 %v15679_v42  ;;  %14651 = vmatprep.mubr.msk.f32.mxu0 %vm283_vm0, %v16069_v49 }
  0xca   : > { %14659 = vmatprep.subr.mxu0 %v15698_v50  ;;  %14656 = vmatprep.mubr.msk.f32.mxu1 %vm283_vm0, %v15973_v13  ;;  %v8895_v13 = vrot.slane %v8807_v38, 1 }
  0xcb   : > { %14652 = vmatmul.mubr.msk.f32.vlgmr.msra.gmra.mxu0 %vm283_vm0, %v7641_v54  ;;  %14664 = vmatprep.subr.mxu1 %v15806_v17 }
  0xcc   : > { %14660 = vmatpush3.msra.mxu0 %v15698_v50  ;;  %14657 = vmatmul.mubr.msk.f32.vlgmr.msra.gmra.mxu1 %vm283_vm0, %v7760_v5  ;;  %v8896_v23 = vsel %vm549_vm2, %v16117_v57, %v8895_v13  ;;  %v9522_v5 = vrot.slane %v9352_v2, 2 }
  0xcd   : > { %14665 = vmatpush3.msra.mxu1 %v15806_v17  ;;  %14661 = vmatprep.mubr.msk.f32.mxu0 %vm283_vm0, %v15926_v39  ;;  %v8182_v39 = vsel %vm713_vm3, %v16049_v9, %v8181_v48  ;;  %v9359_v9 = vrot.slane %v9352_v2, 1 }
  0xce   : > { %14669 = vmatprep.subr.mxu0 %v15815_v25  ;;  %14666 = vmatprep.mubr.msk.f32.mxu1 %vm283_vm0, %v15984_v15  ;;  %v16178_v15 = vld [vmem:[#allocation2 + $0x120] sm:$0xff] }
  0xcf   : > { %14662 = vmatmul.mubr.msk.f32.vlgmr.msra.gmra.mxu0 %vm283_vm0, %v15928_v3  ;;  %14674 = vmatprep.subr.mxu1 %v15849_v37  ;;  %v8354_v3 = vrot.slane %v8266_v56, 1  ;;  %v9151_v18 = vrot.slane %v16178_v15, 1  ;;  %v9237_v28 = vrot.slane %v16178_v15, 2  ;;  %v9360_v54 = vsel %vm549_vm2, %v16117_v57, %v9359_v9 }
  0xd0   : > { %14670 = vmatpush3.msra.mxu0 %v15815_v25  ;;  %14667 = vmatmul.mubr.msk.f32.vlgmr.msra.gmra.mxu1 %vm283_vm0, %v7923_v45  ;;  %v9695_v56 = vrot.slane %v9607_v21, 1 }
  0xd1   : > { %14675 = vmatpush3.msra.mxu1 %v15849_v37  ;;  %14671 = vmatprep.mubr.msk.f32.mxu0 %vm283_vm0, %v16018_v43  ;;  %v8355_v22 = vsel %vm549_vm2, %v16117_v57, %v8354_v3  ;;  %v16215_v34 = vsel %vm549_vm2, %v9151_v18, %v16192_v7  ;;  %v16229_v44 = vsel %vm713_vm3, %v9237_v28, %v16209_v31 }
  0xd2   : > { %14679 = vmatprep.subr.mxu0 %v15839_v30  ;;  %14676 = vmatprep.mubr.msk.f32.mxu1 %vm283_vm0, %v16055_v26  ;;  %v9782_v18 = vsel %vm713_vm3, %v16209_v31, %v9781_v59 }
  0xd3   : > { %14672 = vmatmul.mubr.msk.f32.vlgmr.msra.gmra.mxu0 %vm283_vm0, %v16020_v32  ;;  %14684 = vmatprep.subr.mxu1 %v15949_v20 }
  0xd4   : > { %14680 = vmatpush3.msra.mxu0 %v15839_v30  ;;  %14677 = vmatmul.mubr.msk.f32.vlgmr.msra.gmra.mxu1 %vm283_vm0, %v8096_v36  ;;  %v9523_v36 = vsel %vm713_vm3, %v16124_v58, %v9522_v5 }
  0xd5   : > { %14685 = vmatpush3.msra.mxu1 %v15949_v20  ;;  %14681 = vmatprep.mubr.msk.f32.mxu0 %vm283_vm0, %v16069_v49 }
  0xd6   : > { %14689 = vmatprep.subr.mxu0 %v15966_v12  ;;  %14686 = vmatprep.mubr.msk.f32.mxu1 %vm283_vm0, %v16101_v6 }
  0xd7   : > { %14682 = vmatmul.mubr.msk.f32.vlgmr.msra.gmra.mxu0 %vm283_vm0, %v8182_v39  ;;  %14694 = vmatprep.subr.mxu1 %v15979_v14  ;;  %v16261_v39 = vld [vmem:[#allocation2 + $0x138] sm:$0xff] }
  0xd8   : > { %14690 = vmatpush3.msra.mxu0 %v15966_v12  ;;  %14687 = vmatmul.mubr.msk.f32.vlgmr.msra.gmra.mxu1 %vm283_vm0, %v16103_v52  ;;  %v10037_v38 = vrot.slane %v16261_v39, 2 }
  0xd9   : > { %14695 = vmatpush3.msra.mxu1 %v15979_v14  ;;  %14691 = vmatprep.mubr.msk.f32.mxu0 %vm283_vm0, %v16138_v40 }
  0xda   : > { %14699 = vmatprep.subr.mxu0 %v15679_v42  ;;  %14696 = vmatprep.mubr.msk.f32.mxu1 %vm283_vm0, %v16144_v62 }
  0xdb   : > { %14692 = vmatmul.mubr.msk.f32.vlgmr.msra.gmra.mxu0 %vm283_vm0, %v8355_v22  ;;  %14704 = vmatprep.subr.mxu1 %v15698_v50 }
  0xdc   : > { %14700 = vmatpush3.msra.mxu0 %v15679_v42  ;;  %14697 = vmatmul.mubr.msk.f32.vlgmr.msra.gmra.mxu1 %vm283_vm0, %v8441_v8  ;;  %v9951_v8 = vrot.slane %v16261_v39, 1 }
  0xdd   : > { %14705 = vmatpush3.msra.mxu1 %v15698_v50  ;;  %14701 = vmatprep.mubr.msk.f32.mxu0 %vm283_vm0, %v16055_v26 }
  0xde   : > { %14709 = vmatprep.subr.mxu0 %v15806_v17  ;;  %14706 = vmatprep.mubr.msk.f32.mxu1 %vm283_vm0, %v16018_v43 }
  0xdf   : > { %14702 = vmatmul.mubr.msk.f32.vlgmr.msra.gmra.mxu0 %vm283_vm0, %v8560_v10  ;;  %14714 = vmatprep.subr.mxu1 %v15815_v25 }
  0xe0   : > { %14710 = vmatpush3.msra.mxu0 %v15806_v17  ;;  %14707 = vmatmul.mubr.msk.f32.vlgmr.msra.gmra.mxu1 %vm283_vm0, %v16020_v32  ;;  %v14258_v32 = vpop.f32.mrf.mxu1 }
  0xe1   : > { %14715 = vmatpush3.msra.mxu1 %v15815_v25  ;;  %14711 = vmatprep.mubr.msk.f32.mxu0 %vm283_vm0, %v16069_v49 }
  0xe2   : > { %14719 = vmatprep.subr.mxu0 %v15849_v37  ;;  %14716 = vmatprep.mubr.msk.f32.mxu1 %vm283_vm0, %v16101_v6  ;;  %v704_v55 = vpop.f32.mrf.mxu1 }
  0xe3   : > { %14712 = vmatmul.mubr.msk.f32.vlgmr.msra.gmra.mxu0 %vm283_vm0, %v8723_v11  ;;  %14724 = vmatprep.subr.mxu1 %v15839_v30 }
  0xe4   : > { %14720 = vmatpush3.msra.mxu0 %v15849_v37  ;;  %14717 = vmatmul.mubr.msk.f32.vlgmr.msra.gmra.mxu1 %vm283_vm0, %v16103_v52 }
  0xe5   : > { %14725 = vmatpush3.msra.mxu1 %v15839_v30  ;;  %14721 = vmatprep.mubr.msk.f32.mxu0 %vm283_vm0, %v16138_v40 }
  0xe6   : > { %14729 = vmatprep.subr.mxu0 %v15949_v20  ;;  %14726 = vmatprep.mubr.msk.f32.mxu1 %vm283_vm0, %v16144_v62 }
  0xe7   : > { %14722 = vmatmul.mubr.msk.f32.vlgmr.msra.gmra.mxu0 %vm283_vm0, %v8896_v23  ;;  %14734 = vmatprep.subr.mxu1 %v15966_v12 }
  0xe8   : > { %14730 = vmatpush3.msra.mxu0 %v15949_v20  ;;  %14727 = vmatmul.mubr.msk.f32.vlgmr.msra.gmra.mxu1 %vm283_vm0, %v8982_v24  ;;  %v16290_v24 = vld [vmem:[#allocation2 + $0x130] sm:$0x3] }
  0xe9   : > { %v14253_v43 = vpop.f32.mrf.mxu0  ;;  %14735 = vmatpush3.msra.mxu1 %v15966_v12  ;;  %14731 = vmatprep.mubr.msk.f32.mxu0 %vm283_vm0, %v16178_v15  ;;  %v10159_v9 = vrot.slane %v16290_v24, 1 }
  0xea   : > { %v710_v19 = vadd.f32 %v14258_v32, %v14253_v43  ;;  %14739 = vmatprep.subr.mxu0 %v15979_v14  ;;  %14736 = vmatprep.mubr.msk.f32.mxu1 %vm283_vm0, %v16215_v34 }
  0xeb   : > { %v625_v61 = vpop.f32.mrf.mxu0  ;;  %14732 = vmatmul.mubr.msk.f32.vlgmr.msra.gmra.mxu0 %vm283_vm0, %v16180_v16  ;;  %14744 = vmatprep.subr.mxu1 %v15679_v42 }
  0xec   : > { %14740 = vmatpush3.msra.mxu0 %v15979_v14  ;;  %14737 = vmatmul.mubr.msk.f32.vlgmr.msra.gmra.mxu1 %vm283_vm0, %v9155_v53  ;;  %v705_v47 = vadd.f32 %v704_v55, %v625_v61 }
  0xed   : > { %v14263_v26 = vpop.f32.mrf.mxu0  ;;  %14745 = vmatpush3.msra.mxu1 %v15679_v42  ;;  %14741 = vmatprep.mubr.msk.f32.mxu0 %vm283_vm0, %v16229_v44 }
  0xee   : > { %v799_v49 = vadd.f32 %v14263_v26, %v710_v19  ;;  %14749 = vmatprep.subr.mxu0 %v15698_v50  ;;  %14746 = vmatprep.mubr.msk.f32.mxu1 %vm283_vm0, %v16138_v40  ;;  %v9866_v40 = vld [vmem:[#allocation2 + $0x148] sm:$0x3] }
  0xef   : > { %v789_v51 = vpop.f32.mrf.mxu0  ;;  %14742 = vmatmul.mubr.msk.f32.vlgmr.msra.gmra.mxu0 %vm283_vm0, %v9241_v46  ;;  %14754 = vmatprep.subr.mxu1 %v15806_v17  ;;  %v9954_v23 = vrot.slane %v9866_v40, 1  ;;  %v10040_v43 = vrot.slane %v9866_v40, 2 }
  0xf0   : > { %14750 = vmatpush3.msra.mxu0 %v15698_v50  ;;  %v14268_v45 = vpop.f32.mrf.mxu1  ;;  %14747 = vmatmul.mubr.msk.f32.vlgmr.msra.gmra.mxu1 %vm283_vm0, %v9360_v54  ;;  %v798_v33 = vadd.f32 %v789_v51, %v705_v47 }
  0xf1   : > { %v885_v48 = vadd.f32 %v14268_v45, %v799_v49  ;;  %14755 = vmatpush3.msra.mxu1 %v15806_v17  ;;  %14751 = vmatprep.mubr.msk.f32.mxu0 %vm283_vm0, %v16101_v6  ;;  %v16263_v6 = vld [vmem:[#allocation2 + $0x140] sm:$0xff] }
  0xf2   : > { %v875_v41 = vpop.f32.mrf.mxu1  ;;  %14759 = vmatprep.subr.mxu0 %v15815_v25  ;;  %14756 = vmatprep.mubr.msk.f32.mxu1 %vm283_vm0, %v16144_v62  ;;  %v16277_v10 = vrot.slane %v16263_v6, 1  ;;  %v16284_v11 = vrot.slane %v16263_v6, 2 }
  0xf3   : > { %v884_v57 = vadd.f32 %v875_v41, %v798_v33  ;;  %v14273_v4 = vpop.f32.mrf.mxu0  ;;  %14752 = vmatmul.mubr.msk.f32.vlgmr.msra.gmra.mxu0 %vm283_vm0, %v16103_v52  ;;  %14764 = vmatprep.subr.mxu1 %v15849_v37  ;;  %v9696_v52 = vsel %vm549_vm2, %v16192_v7, %v9695_v56  ;;  %v10160_v33 = vsel %vm549_vm2, %v16192_v7, %v10159_v9  ;;  %v10407_v7 = vld [vmem:[#allocation2 + $0x148] sm:$0x3] }
  0xf4   : > { %v972_v3 = vadd.f32 %v14273_v4, %v885_v48  ;;  %14760 = vmatpush3.msra.mxu0 %v15815_v25  ;;  %v14278_v58 = vpop.f32.mrf.mxu1  ;;  %14757 = vmatmul.mubr.msk.f32.vlgmr.msra.gmra.mxu1 %vm283_vm0, %v9523_v36  ;;  %v16300_v61 = vsel %vm549_vm2, %v9951_v8, %v16277_v10  ;;  %v16311_v53 = vsel %vm713_vm3, %v10037_v38, %v16284_v11  ;;  %v10322_v48 = vrot.slane %v16290_v24, 2  ;;  %v16368_v38 = vld [vmem:[#allocation2 + $0x158] sm:$0xff] }
  0xf5   : > { %v962_v60 = vpop.f32.mrf.mxu0  ;;  %14765 = vmatpush3.msra.mxu1 %v15849_v37  ;;  %14761 = vmatprep.mubr.msk.f32.mxu0 %vm283_vm0, %v16178_v15  ;;  %v9955_v47 = vsel %vm549_vm2, %v16277_v10, %v9954_v23  ;;  %v10041_v54 = vsel %vm713_vm3, %v16284_v11, %v10040_v43 }
  0xf6   : > { %v1058_v62 = vadd.f32 %v14278_v58, %v972_v3  ;;  %v971_v22 = vadd.f32 %v962_v60, %v884_v57  ;;  %v1048_v63 = vpop.f32.mrf.mxu1  ;;  %14769 = vmatprep.subr.mxu0 %v15839_v30  ;;  %14766 = vmatprep.mubr.msk.f32.mxu1 %vm283_vm0, %v16215_v34 }
  0xf7   : > { %v14283_v29 = vpop.f32.mrf.mxu0  ;;  %14762 = vmatmul.mubr.msk.f32.vlgmr.msra.gmra.mxu0 %vm283_vm0, %v16180_v16  ;;  %14774 = vmatprep.subr.mxu1 %v15949_v20 }
  0xf8   : > { %v1057_v13 = vadd.f32 %v1048_v63, %v971_v22  ;;  %v1144_v0 = vadd.f32 %v14283_v29, %v1058_v62  ;;  %14770 = vmatpush3.msra.mxu0 %v15839_v30  ;;  %v14288_v1 = vpop.f32.mrf.mxu1  ;;  %14767 = vmatmul.mubr.msk.f32.vlgmr.msra.gmra.mxu1 %vm283_vm0, %v9696_v52  ;;  %v16366_v29 = vld [vmem:[#allocation2 + $0x150] sm:$0xff] }
  0xf9   : > { %v1134_v27 = vpop.f32.mrf.mxu0  ;;  %14775 = vmatpush3.msra.mxu1 %v15949_v20  ;;  %14771 = vmatprep.mubr.msk.f32.mxu0 %vm283_vm0, %v16229_v44 }
  0xfa   : > { %v1231_v32 = vadd.f32 %v14288_v1, %v1144_v0  ;;  %v1143_v28 = vadd.f32 %v1134_v27, %v1057_v13  ;;  %v1221_v2 = vpop.f32.mrf.mxu1  ;;  %14779 = vmatprep.subr.mxu0 %v15966_v12  ;;  %14776 = vmatprep.mubr.msk.f32.mxu1 %vm283_vm0, %v16261_v39  ;;  %v10581_v1 = vrot.slane %v10407_v7, 2  ;;  %v16382_v27 = vrot.slane %v16368_v38, 1 }
  0xfb   : > { %v14293_v19 = vpop.f32.mrf.mxu0  ;;  %14772 = vmatmul.mubr.msk.f32.vlgmr.msra.gmra.mxu0 %vm283_vm0, %v9782_v18  ;;  %14784 = vmatprep.subr.mxu1 %v15979_v14 }
  0xfc   : > { %v1230_v55 = vadd.f32 %v1221_v2, %v1143_v28  ;;  %v1317_v26 = vadd.f32 %v14293_v19, %v1231_v32  ;;  %14780 = vmatpush3.msra.mxu0 %v15966_v12  ;;  %v14298_v46 = vpop.f32.mrf.mxu1  ;;  %14777 = vmatmul.mubr.msk.f32.vlgmr.msra.gmra.mxu1 %vm283_vm0, %v16263_v6  ;;  %v10582_v19 = vsel %vm713_vm3, %v16284_v11, %v10581_v1 }
  0xfd   : > { %v1307_v49 = vpop.f32.mrf.mxu0  ;;  %14785 = vmatpush3.msra.mxu1 %v15979_v14  ;;  %14781 = vmatprep.mubr.msk.f32.mxu0 %vm283_vm0, %v16300_v61 }
  0xfe   : > { %v1325_v5 = vadd.f32 %v16305_v35, %v1317_v26  ;;  %v1316_v51 = vadd.f32 %v1307_v49, %v1230_v55  ;;  %v1431_v21 = vpop.f32.mrf.mxu1  ;;  %14789 = vmatprep.subr.mxu0 %v15679_v42  ;;  %14786 = vmatprep.mubr.msk.f32.mxu1 %vm283_vm0, %v16311_v53  ;;  %v16394_v55 = vld [vmem:[#allocation2 + $0x148] sm:$0x3] }
  0xff   : > { %v14303_v45 = vpop.f32.mrf.mxu0  ;;  %14782 = vmatmul.mubr.msk.f32.vlgmr.msra.gmra.mxu0 %vm283_vm0, %v9955_v47  ;;  %14794 = vmatprep.subr.mxu1 %v15698_v50 }
 0x100   : > { %1327 = vst.msk [vmem:[%s16324_s9 + $0x8] sm:$0xff] %vm283_vm0, %v1325_v5  ;;  %v1339_v36 = vmul.f32 %v1325_v5, %v1325_v5  ;;  %v1324_v56 = vadd.f32 %v16305_v35, %v1316_v51  ;;  %v1516_v41 = vadd.f32 %v14303_v45, %v14298_v46  ;;  %14790 = vmatpush3.msra.mxu0 %v15679_v42  ;;  %v14308_v57 = vpop.f32.mrf.mxu1  ;;  %v1329_v3 = vsel %vm283_vm0, %v1325_v5, 0.0 }
 0x101   : > { %14787 = vmatmul.mubr.msk.f32.vlgmr.msra.gmra.mxu1 %vm283_vm0, %v10041_v54  ;;  %v1510_v4 = vpop.f32.mrf.mxu0  ;;  %14791 = vmatprep.mubr.msk.f32.mxu0 %vm283_vm0, %v16215_v34  ;;  %v10323_v34 = vsel %vm713_vm3, %v16209_v31, %v10322_v48  ;;  %v10837_v46 = vrot.slane %v16366_v29, 2  ;;  %v10959_v45 = vrot.slane %v16394_v55, 1 }
 0x102   : > { %14795 = vmatpush3.msra.mxu1 %v15698_v50  ;;  %1326 = vst.msk [vmem:[%s16324_s9] sm:$0xff] %vm283_vm0, %v1324_v56  ;;  %v1328_v58 = vsel %vm283_vm0, %v1324_v56, 0.0  ;;  %v1338_v59 = vmul.f32 %v1324_v56, %v1324_v56  ;;  %v1604_v60 = vadd.f32 %v14308_v57, %v1516_v41  ;;  %v1594_v52 = vpop.f32.mrf.mxu1  ;;  %14799 = vmatprep.subr.mxu0 %v15806_v17  ;;  %v1341_v62 = vsel %vm283_vm0, %v1339_v36, 0.0 }
 0x103   : > { %14796 = vmatprep.mubr.msk.f32.mxu1 %vm283_vm0, %v16178_v15  ;;  %v16355_v42 = vadd.f32 %v1329_v3, %v1328_v58  ;;  %v1511_v50 = vadd.f32 %v1510_v4, %v1431_v21  ;;  %v14313_v40 = vpop.f32.mrf.mxu0  ;;  %14792 = vmatmul.mubr.msk.f32.vlgmr.msra.gmra.mxu0 %vm283_vm0, %v10160_v33  ;;  %v10495_v15 = vrot.slane %v10407_v7, 1 }
 0x104   : > { %14804 = vmatprep.subr.mxu1 %v15815_v25  ;;  %v1340_v22 = vsel %vm283_vm0, %v1338_v59, 0.0  ;;  %v1690_v63 = vadd.f32 %v14313_v40, %v1604_v60  ;;  %14800 = vmatpush3.msra.mxu0 %v15806_v17  ;;  %v14318_v8 = vpop.f32.mrf.mxu1  ;;  %v16431_v59 = vld [vmem:[%s16939_s3 + $0x8] sm:$0xff]  ;;  %v10960_v40 = vsel %vm549_vm2, %v16277_v10, %v10959_v45 }
 0x105   : > { %14797 = vmatmul.mubr.msk.f32.vlgmr.msra.gmra.mxu1 %vm283_vm0, %v16180_v16  ;;  %v16370_v13 = vadd.f32 %v1341_v62, %v1340_v22  ;;  %v1603_v0 = vadd.f32 %v1594_v52, %v1511_v50  ;;  %v1680_v31 = vpop.f32.mrf.mxu0  ;;  %14801 = vmatprep.mubr.msk.f32.mxu0 %vm283_vm0, %v16229_v44  ;;  %v10666_v16 = vld [vmem:[#allocation2 + $0x160] sm:$0x3]  ;;  %v10496_v32 = vsel %vm549_vm2, %v16277_v10, %v10495_v15  ;;  %v1331_v33 = vrot.slane %v16355_v42, 4 }
 0x106   : > { %14805 = vmatpush3.msra.mxu1 %v15815_v25  ;;  %v1777_v17 = vadd.f32 %v14318_v8, %v1690_v63  ;;  %v1767_v18 = vpop.f32.mrf.mxu1  ;;  %14809 = vmatprep.subr.mxu0 %v15849_v37  ;;  %v10751_v25 = vrot.slane %v16366_v29, 1  ;;  %v10754_v9 = vrot.slane %v10666_v16, 1  ;;  %v10840_v21 = vrot.slane %v10666_v16, 2  ;;  %v16442_v62 = vld [vmem:[#allocation2 + $0x160] sm:$0x3] }
 0x107   : > { %14806 = vmatprep.mubr.msk.f32.mxu1 %vm283_vm0, %v16261_v39  ;;  %v1689_v23 = vadd.f32 %v1680_v31, %v1603_v0  ;;  %v14323_v24 = vpop.f32.mrf.mxu0  ;;  %14802 = vmatmul.mubr.msk.f32.vlgmr.msra.gmra.mxu0 %vm283_vm0, %v10323_v34  ;;  %v1343_v41 = vrot.slane %v16370_v13, 4  ;;  %v11122_v34 = vrot.slane %v16394_v55, 2  ;;  %v1332_v22 = vadd.f32 %v1331_v33, %v16355_v42  ;;  %v16456_v31 = vld [vmem:[%s16939_s3] sm:$0xff] }
 0x108   : > { %14814 = vmatprep.subr.mxu1 %v15839_v30  ;;  %v1863_v44 = vadd.f32 %v14323_v24, %v1777_v17  ;;  %14810 = vmatpush3.msra.mxu0 %v15849_v37  ;;  %v14328_v43 = vpop.f32.mrf.mxu1  ;;  %v16407_v54 = vsel %vm549_vm2, %v10751_v25, %v16382_v27  ;;  %v10755_v56 = vsel %vm549_vm2, %v16382_v27, %v10754_v9  ;;  %v11295_v16 = vrot.slane %v16442_v62, 1 }
 0x109   : > { %14807 = vmatmul.mubr.msk.f32.vlgmr.msra.gmra.mxu1 %vm283_vm0, %v16263_v6  ;;  %v1776_v28 = vadd.f32 %v1767_v18, %v1689_v23  ;;  %v1853_v2 = vpop.f32.mrf.mxu0  ;;  %14811 = vmatprep.mubr.msk.f32.mxu0 %vm283_vm0, %v16300_v61  ;;  %v16449_v0 = vadd.f32 %v1343_v41, %v16370_v13  ;;  %v16466_v18 = vld [vmem:[%s16939_s3 + $0x10] sm:$0xff]  ;;  %v11123_v24 = vsel %vm713_vm3, %v16284_v11, %v11122_v34  ;;  %v11381_v25 = vrot.slane %v16442_v62, 2  ;;  %v16523_v34 = vld [vmem:[%s16939_s3 + $0x28] sm:$0xff] }
 0x10a   : > { %14815 = vmatpush3.msra.mxu1 %v15839_v30  ;;  %v1949_v37 = vadd.f32 %v14328_v43, %v1863_v44  ;;  %v1939_v26 = vpop.f32.mrf.mxu1  ;;  %14819 = vmatprep.subr.mxu0 %v15949_v20  ;;  %v16401_v30 = vrot.slane %v16368_v38, 2  ;;  %v1333_v44 = vrot.slane %v1332_v22, 2 }
 0x10b   : > { %14816 = vmatprep.mubr.msk.f32.mxu1 %vm283_vm0, %v16311_v53  ;;  %v1862_v47 = vadd.f32 %v1853_v2, %v1776_v28  ;;  %v14333_v49 = vpop.f32.mrf.mxu0  ;;  %14812 = vmatmul.mubr.msk.f32.vlgmr.msra.gmra.mxu0 %vm283_vm0, %v10496_v32 }
 0x10c   : > { %14824 = vmatprep.subr.mxu1 %v15966_v12  ;;  %v2036_v5 = vadd.f32 %v14333_v49, %v1949_v37  ;;  %14820 = vmatpush3.msra.mxu0 %v15949_v20  ;;  %v14338_v51 = vpop.f32.mrf.mxu1  ;;  %v16424_v7 = vsel %vm713_vm3, %v10837_v46, %v16401_v30  ;;  %v10841_v50 = vsel %vm713_vm3, %v16401_v30, %v10840_v21  ;;  %v16485_v37 = vld [vmem:[%s16939_s3 + $0x18] sm:$0xff]  ;;  %v16492_v46 = vld [vmem:[#allocation2 + $0x170] sm:$0xff] }
 0x10d   : > { %14817 = vmatmul.mubr.msk.f32.vlgmr.msra.gmra.mxu1 %vm283_vm0, %v10582_v19  ;;  %v1948_v48 = vadd.f32 %v1939_v26, %v1862_v47  ;;  %v2026_v36 = vpop.f32.mrf.mxu0  ;;  %14821 = vmatprep.mubr.msk.f32.mxu0 %vm283_vm0, %v16366_v29  ;;  %v16490_v26 = vld [vmem:[#allocation2 + $0x168] sm:$0xff] }
 0x10e   : > { %14825 = vmatpush3.msra.mxu1 %v15966_v12  ;;  %v2122_v57 = vadd.f32 %v14338_v51, %v2036_v5  ;;  %v2112_v4 = vpop.f32.mrf.mxu1  ;;  %14829 = vmatprep.subr.mxu0 %v15979_v14  ;;  %v16502_v51 = vld [vmem:[%s16939_s3 + $0x20] sm:$0xff] }
 0x10f   : > { %14826 = vmatprep.mubr.msk.f32.mxu1 %vm283_vm0, %v16407_v54  ;;  %v2035_v3 = vadd.f32 %v2026_v36, %v1948_v48  ;;  %v14343_v58 = vpop.f32.mrf.mxu0  ;;  %14822 = vmatmul.mubr.msk.f32.vlgmr.msra.gmra.mxu0 %vm283_vm0, %v16368_v38 }
 0x110   : > { %14834 = vmatprep.subr.mxu1 %v16431_v59  ;;  %v2124_v60 = vadd.f32 %v16305_v35, %v2122_v57  ;;  %14830 = vmatpush3.msra.mxu0 %v15979_v14  ;;  %v14348_v52 = vpop.f32.mrf.mxu1  ;;  %v11382_v57 = vsel %vm713_vm3, %v16401_v30, %v11381_v25 }
 0x111   : > { %14827 = vmatmul.mubr.msk.f32.vlgmr.msra.gmra.mxu1 %vm283_vm0, %v10755_v56  ;;  %v2121_v63 = vadd.f32 %v2112_v4, %v2035_v3  ;;  %v2316_v8 = vadd.f32 %v14348_v52, %v14343_v58  ;;  %v2231_v15 = vpop.f32.mrf.mxu0  ;;  %14831 = vmatprep.mubr.msk.f32.mxu0 %vm283_vm0, %v16424_v7  ;;  %v1334_v56 = vadd.f32 %v1333_v44, %v1332_v22  ;;  %v11551_v4 = vrot.slane %v16490_v26, 1 }
 0x112   : > { %14835 = vmatpush3.msra.mxu1 %v16431_v59  ;;  %13532 = vst.msk [vmem:[%s16324_s9 + $0x18] sm:$0xff] %vm283_vm0, %v2124_v60  ;;  %v2310_v10 = vpop.f32.mrf.mxu1  ;;  %14839 = vmatprep.subr.mxu0 %v16456_v31  ;;  %v2139_v42 = vmul.f32 %v2124_v60, %v2124_v60  ;;  %v2129_v43 = vsel %vm283_vm0, %v2124_v60, 0.0  ;;  %v16518_v3 = vrot.slane %v16492_v46, 1 }
 0x113   : > { %14836 = vmatprep.mubr.msk.f32.mxu1 %vm283_vm0, %v16300_v61  ;;  %v2123_v1 = vadd.f32 %v16305_v35, %v2121_v63  ;;  %v2311_v17 = vadd.f32 %v2310_v10, %v2231_v15  ;;  %v14353_v13 = vpop.f32.mrf.mxu0  ;;  %14832 = vmatmul.mubr.msk.f32.vlgmr.msra.gmra.mxu0 %vm283_vm0, %v10841_v50  ;;  %v11637_v63 = vrot.slane %v16490_v26, 2  ;;  %v16535_v15 = vrot.slane %v16492_v46, 2 }
 0x114   : > { %14844 = vmatprep.subr.mxu1 %v16466_v18  ;;  %v2404_v23 = vadd.f32 %v14353_v13, %v2316_v8  ;;  %14840 = vmatpush3.msra.mxu0 %v16456_v31  ;;  %v14358_v61 = vpop.f32.mrf.mxu1  ;;  %v2141_v47 = vsel %vm283_vm0, %v2139_v42, 0.0  ;;  %v16539_v13 = vld [vmem:[#allocation2 + $0x160] sm:$0x3] }
 0x115   : > { %14837 = vmatmul.mubr.msk.f32.vlgmr.msra.gmra.mxu1 %vm283_vm0, %v10960_v40  ;;  %13531 = vst.msk [vmem:[%s16324_s9 + $0x10] sm:$0xff] %vm283_vm0, %v2123_v1  ;;  %v2128_v32 = vsel %vm283_vm0, %v2123_v1, 0.0  ;;  %v2138_v28 = vmul.f32 %v2123_v1, %v2123_v1  ;;  %v2394_v2 = vpop.f32.mrf.mxu0  ;;  %14841 = vmatprep.mubr.msk.f32.mxu0 %vm283_vm0, %v16261_v39  ;;  %v1345_v39 = vrot.slane %v16449_v0, 2 }
 0x116   : > { %14845 = vmatpush3.msra.mxu1 %v16466_v18  ;;  %v2130_v19 = vadd.f32 %v2129_v43, %v2128_v32  ;;  %v2490_v9 = vadd.f32 %v14358_v61, %v2404_v23  ;;  %v2403_v55 = vadd.f32 %v2394_v2, %v2311_v17  ;;  %v2480_v11 = vpop.f32.mrf.mxu1  ;;  %14849 = vmatprep.subr.mxu0 %v16485_v37 }
 0x117   : > { %14846 = vmatprep.mubr.msk.f32.mxu1 %vm283_vm0, %v16311_v53  ;;  %v2140_v49 = vsel %vm283_vm0, %v2138_v28, 0.0  ;;  %v14363_v5 = vpop.f32.mrf.mxu0  ;;  %14842 = vmatmul.mubr.msk.f32.vlgmr.msra.gmra.mxu0 %vm283_vm0, %v16263_v6  ;;  %v11296_v53 = vsel %vm549_vm2, %v16382_v27, %v11295_v16  ;;  %v16509_v6 = vld [vmem:[#allocation2 + $0x178] sm:$0x3]  ;;  %v1346_v62 = vadd.f32 %v1345_v39, %v16449_v0  ;;  %v1335_v16 = vrot.slane %v1334_v56, 1 }
 0x118   : > { %14854 = vmatprep.subr.mxu1 %v16502_v51  ;;  %v2131_v21 = vrot.slane %v2130_v19, 4  ;;  %v2142_v45 = vadd.f32 %v2141_v47, %v2140_v49  ;;  %v2489_v33 = vadd.f32 %v2480_v11, %v2403_v55  ;;  %v2577_v48 = vadd.f32 %v14363_v5, %v2490_v9  ;;  %14850 = vmatpush3.msra.mxu0 %v16485_v37  ;;  %v14368_v36 = vpop.f32.mrf.mxu1 }
 0x119   : > { %14847 = vmatmul.mubr.msk.f32.vlgmr.msra.gmra.mxu1 %vm283_vm0, %v11123_v24  ;;  %v2567_v41 = vpop.f32.mrf.mxu0  ;;  %14851 = vmatprep.mubr.msk.f32.mxu0 %vm283_vm0, %v16366_v29  ;;  %v11554_v8 = vrot.slane %v16509_v6, 1  ;;  %v16546_v61 = vsel %vm549_vm2, %v11551_v4, %v16518_v3  ;;  %v11640_v24 = vrot.slane %v16509_v6, 2  ;;  %v16558_v9 = vsel %vm713_vm3, %v11637_v63, %v16535_v15 }
 0x11a   : > { %14855 = vmatpush3.msra.mxu1 %v16502_v51  ;;  %v2132_v58 = vadd.f32 %v2131_v21, %v2130_v19  ;;  %v2143_v60 = vrot.slane %v2142_v45, 4  ;;  %v2663_v52 = vadd.f32 %v14368_v36, %v2577_v48  ;;  %v2576_v50 = vadd.f32 %v2567_v41, %v2489_v33  ;;  %v2653_v40 = vpop.f32.mrf.mxu1  ;;  %14859 = vmatprep.subr.mxu0 %v16523_v34 }
 0x11b   : > { %14856 = vmatprep.mubr.msk.f32.mxu1 %vm283_vm0, %v16407_v54  ;;  %v14373_v22 = vpop.f32.mrf.mxu0  ;;  %14852 = vmatmul.mubr.msk.f32.vlgmr.msra.gmra.mxu0 %vm283_vm0, %v16368_v38  ;;  %v11555_v19 = vsel %vm549_vm2, %v16518_v3, %v11554_v8  ;;  %v11759_v55 = vrot.slane %v16539_v13, 1 }
 0x11c   : > { %14864 = vmatprep.subr.mxu1 %v15949_v20  ;;  %v2133_v10 = vrot.slane %v2132_v58, 2  ;;  %v2144_v42 = vadd.f32 %v2143_v60, %v2142_v45  ;;  %v2662_v1 = vadd.f32 %v2653_v40, %v2576_v50  ;;  %v2749_v17 = vadd.f32 %v14373_v22, %v2663_v52  ;;  %14860 = vmatpush3.msra.mxu0 %v16523_v34  ;;  %v14378_v0 = vpop.f32.mrf.mxu1 }
 0x11d   : > { %14857 = vmatmul.mubr.msk.f32.vlgmr.msra.gmra.mxu1 %vm283_vm0, %v11296_v53  ;;  %v2739_v23 = vpop.f32.mrf.mxu0  ;;  %14861 = vmatprep.mubr.msk.f32.mxu0 %vm283_vm0, %v16424_v7  ;;  %v1336_v53 = vadd.f32 %v1335_v16, %v1334_v56  ;;  %v11641_v45 = vsel %vm713_vm3, %v16535_v15, %v11640_v24  ;;  %v11922_v60 = vrot.slane %v16539_v13, 2  ;;  %v16604_v24 = vld [vmem:[#allocation2 + $0x180] sm:$0xff] }
 0x11e   : > { %14865 = vmatpush3.msra.mxu1 %v15949_v20  ;;  %v2134_v25 = vadd.f32 %v2133_v10, %v2132_v58  ;;  %v2145_v44 = vrot.slane %v2144_v42, 2  ;;  %v2836_v43 = vadd.f32 %v14378_v0, %v2749_v17  ;;  %v2748_v32 = vadd.f32 %v2739_v23, %v2662_v1  ;;  %v2826_v28 = vpop.f32.mrf.mxu1  ;;  %14869 = vmatprep.subr.mxu0 %v15966_v12 }
 0x11f   : > { %14866 = vmatprep.mubr.msk.f32.mxu1 %vm283_vm0, %v16490_v26  ;;  %v1347_v20 = vrot.slane %v1346_v62, 1  ;;  %v14383_v2 = vpop.f32.mrf.mxu0  ;;  %14862 = vmatmul.mubr.msk.f32.vlgmr.msra.gmra.mxu0 %vm283_vm0, %v11382_v57 }
 0x120   : > { %14874 = vmatprep.subr.mxu1 %v15979_v14  ;;  %v2135_v11 = vrot.slane %v2134_v25, 1  ;;  %v2146_v39 = vadd.f32 %v2145_v44, %v2144_v42  ;;  %v2835_v47 = vadd.f32 %v2826_v28, %v2748_v32  ;;  %v2922_v49 = vadd.f32 %v14383_v2, %v2836_v43  ;;  %14870 = vmatpush3.msra.mxu0 %v15966_v12  ;;  %v14388_v5 = vpop.f32.mrf.mxu1 }
 0x121   : > { %14867 = vmatmul.mubr.msk.f32.vlgmr.msra.gmra.mxu1 %vm283_vm0, %v16492_v46  ;;  %v2912_v21 = vpop.f32.mrf.mxu0  ;;  %14871 = vmatprep.mubr.msk.f32.mxu0 %vm283_vm0, %v16546_v61  ;;  %v1348_v41 = vadd.f32 %v1347_v20, %v1346_v62 }
 0x122   : > { %14875 = vmatpush3.msra.mxu1 %v15979_v14  ;;  %v2136_v33 = vadd.f32 %v2135_v11, %v2134_v25  ;;  %v2147_v48 = vrot.slane %v2146_v39, 1  ;;  %v2924_v36 = vadd.f32 %v16305_v35, %v2922_v49  ;;  %v2921_v12 = vadd.f32 %v2912_v21, %v2835_v47  ;;  %v3031_v6 = vpop.f32.mrf.mxu1  ;;  %14879 = vmatprep.subr.mxu0 %v16431_v59  ;;  %v16606_v25 = vld [vmem:[#allocation2 + $0x188] sm:$0xff] }
 0x123   : > { %14876 = vmatprep.mubr.msk.f32.mxu1 %vm283_vm0, %v16558_v9  ;;  %v14393_v56 = vpop.f32.mrf.mxu0  ;;  %14872 = vmatmul.mubr.msk.f32.vlgmr.msra.gmra.mxu0 %vm283_vm0, %v11555_v19  ;;  %v11760_v14 = vsel %vm549_vm2, %v16382_v27, %v11759_v55  ;;  %v12007_v27 = vld [vmem:[#allocation2 + $0x178] sm:$0x3]  ;;  %v16616_v55 = vld [vmem:[#allocation2 + $0x190] sm:$0x3]  ;;  %v16622_v47 = vrot.slane %v16606_v25, 1 }
 0x124   : > { %14884 = vmatprep.subr.mxu1 %v16456_v31  ;;  %v16577_v57 = vadd.f32 %v2136_v33, %v1336_v53  ;;  %v2148_v4 = vadd.f32 %v2147_v48, %v2146_v39  ;;  %13552 = vst.msk [vmem:[%s16324_s9 + $0x28] sm:$0xff] %vm283_vm0, %v2924_v36  ;;  %14880 = vmatpush3.msra.mxu0 %v16431_v59  ;;  %v14398_v58 = vpop.f32.mrf.mxu1  ;;  %v2929_v10 = vsel %vm283_vm0, %v2924_v36, 0.0  ;;  %v12095_v23 = vrot.slane %v12007_v27, 1 }
 0x125   : > { %14877 = vmatmul.mubr.msk.f32.vlgmr.msra.gmra.mxu1 %vm283_vm0, %v11641_v45  ;;  %v2939_v52 = vmul.f32 %v2924_v36, %v2924_v36  ;;  %v2923_v50 = vadd.f32 %v16305_v35, %v2921_v12  ;;  %v3116_v40 = vadd.f32 %v14393_v56, %v14388_v5  ;;  %v3110_v22 = vpop.f32.mrf.mxu0  ;;  %14881 = vmatprep.mubr.msk.f32.mxu0 %vm283_vm0, %v16407_v54  ;;  %v12437_v12 = vrot.slane %v16604_v24, 2 }
 0x126   : > { %14885 = vmatpush3.msra.mxu1 %v16456_v31  ;;  %v16588_v62 = vadd.f32 %v2148_v4, %v1348_v41  ;;  %v3111_v63 = vadd.f32 %v3110_v22, %v3031_v6  ;;  %v3194_v8 = vpop.f32.mrf.mxu1  ;;  %14889 = vmatprep.subr.mxu0 %v16466_v18  ;;  %v12096_v45 = vsel %vm549_vm2, %v16518_v3, %v12095_v23  ;;  %v12354_v6 = vrot.slane %v16616_v55, 1  ;;  %v16653_v22 = vld [vmem:[%s16939_s3 + $0x38] sm:$0xff] }
 0x127   : > { %14886 = vmatprep.mubr.msk.f32.mxu1 %vm283_vm0, %v16366_v29  ;;  %13551 = vst.msk [vmem:[%s16324_s9 + $0x20] sm:$0xff] %vm283_vm0, %v2923_v50  ;;  %v2928_v42 = vsel %vm283_vm0, %v2923_v50, 0.0  ;;  %v2938_v1 = vmul.f32 %v2923_v50, %v2923_v50  ;;  %v3204_v17 = vadd.f32 %v14398_v58, %v3116_v40  ;;  %v14403_v0 = vpop.f32.mrf.mxu0  ;;  %14882 = vmatmul.mubr.msk.f32.vlgmr.msra.gmra.mxu0 %vm283_vm0, %v11760_v14  ;;  %v2941_v44 = vsel %vm283_vm0, %v2939_v52, 0.0  ;;  %v16639_v58 = vld [vmem:[%s16939_s3 + $0x30] sm:$0xff]  ;;  %v16647_v52 = vld [vmem:[#allocation2 + $0x178] sm:$0x3] }
 0x128   : > { %14894 = vmatprep.subr.mxu1 %v16485_v37  ;;  %v2930_v54 = vadd.f32 %v2929_v10, %v2928_v42  ;;  %v3203_v13 = vadd.f32 %v3194_v8, %v3111_v63  ;;  %14890 = vmatpush3.msra.mxu0 %v16466_v18  ;;  %v14408_v16 = vpop.f32.mrf.mxu1  ;;  %v11923_v29 = vsel %vm713_vm3, %v16401_v30, %v11922_v60  ;;  %v16645_v60 = vrot.slane %v16606_v25, 2 }
 0x129   : > { %14887 = vmatmul.mubr.msk.f32.vlgmr.msra.gmra.mxu1 %vm283_vm0, %v16368_v38  ;;  %v2940_v43 = vsel %vm283_vm0, %v2938_v1, 0.0  ;;  %v3290_v32 = vadd.f32 %v14403_v0, %v3204_v17  ;;  %v3280_v28 = vpop.f32.mrf.mxu0  ;;  %14891 = vmatprep.mubr.msk.f32.mxu0 %vm283_vm0, %v16424_v7  ;;  %v12181_v38 = vrot.slane %v12007_v27, 2  ;;  %v12351_v7 = vrot.slane %v16604_v24, 1 }
 0x12a   : > { %14895 = vmatpush3.msra.mxu1 %v16485_v37  ;;  %v2931_v20 = vrot.slane %v2930_v54, 4  ;;  %v2942_v2 = vadd.f32 %v2941_v44, %v2940_v43  ;;  %v3289_v30 = vadd.f32 %v3280_v28, %v3203_v13  ;;  %v3367_v19 = vpop.f32.mrf.mxu1  ;;  %14899 = vmatprep.subr.mxu0 %v16502_v51  ;;  %v12440_v1 = vrot.slane %v16616_v55, 2  ;;  %v16672_v43 = vld [vmem:[%s16939_s3 + $0x40] sm:$0xff] }
 0x12b   : > { %14896 = vmatprep.mubr.msk.f32.mxu1 %vm283_vm0, %v16490_v26  ;;  %v3377_v11 = vadd.f32 %v14408_v16, %v3290_v32  ;;  %v14413_v39 = vpop.f32.mrf.mxu0  ;;  %14892 = vmatmul.mubr.msk.f32.vlgmr.msra.gmra.mxu0 %vm283_vm0, %v11923_v29  ;;  %v12182_v36 = vsel %vm713_vm3, %v16535_v15, %v12181_v38  ;;  %v16658_v27 = vsel %vm549_vm2, %v12351_v7, %v16622_v47  ;;  %v12559_v13 = vrot.slane %v16647_v52, 1 }
 0x12c   : > { %14904 = vmatprep.subr.mxu1 %v16523_v34  ;;  %v2932_v49 = vadd.f32 %v2931_v20, %v2930_v54  ;;  %v2943_v5 = vrot.slane %v2942_v2, 4  ;;  %v3376_v53 = vadd.f32 %v3367_v19, %v3289_v30  ;;  %14900 = vmatpush3.msra.mxu0 %v16502_v51  ;;  %v14418_v21 = vpop.f32.mrf.mxu1  ;;  %v12355_v54 = vsel %vm549_vm2, %v16622_v47, %v12354_v6 }
 0x12d   : > { %14897 = vmatmul.mubr.msk.f32.vlgmr.msra.gmra.mxu1 %vm283_vm0, %v16492_v46  ;;  %v3463_v33 = vadd.f32 %v14413_v39, %v3377_v11  ;;  %v3453_v48 = vpop.f32.mrf.mxu0  ;;  %14901 = vmatprep.mubr.msk.f32.mxu0 %vm283_vm0, %v16546_v61  ;;  %v16679_v32 = vsel %vm713_vm3, %v12437_v12, %v16645_v60  ;;  %v12441_v55 = vsel %vm713_vm3, %v16645_v60, %v12440_v1 }
 0x12e   : > { %14905 = vmatpush3.msra.mxu1 %v16523_v34  ;;  %v2933_v56 = vrot.slane %v2932_v49, 2  ;;  %v2944_v14 = vadd.f32 %v2943_v5, %v2942_v2  ;;  %v3462_v41 = vadd.f32 %v3453_v48, %v3376_v53  ;;  %v3539_v4 = vpop.f32.mrf.mxu1  ;;  %14909 = vmatprep.subr.mxu0 %v16639_v58  ;;  %v12722_v5 = vrot.slane %v16647_v52, 2 }
 0x12f   : > { %14906 = vmatprep.mubr.msk.f32.mxu1 %vm283_vm0, %v16558_v9  ;;  %v3549_v50 = vadd.f32 %v14418_v21, %v3463_v33  ;;  %v14423_v40 = vpop.f32.mrf.mxu0  ;;  %14902 = vmatmul.mubr.msk.f32.vlgmr.msra.gmra.mxu0 %vm283_vm0, %v12096_v45 }
 0x130   : > { %14914 = vmatprep.subr.mxu1 %v16653_v22  ;;  %v2934_v63 = vadd.f32 %v2933_v56, %v2932_v49  ;;  %v2945_v8 = vrot.slane %v2944_v14, 2  ;;  %v3548_v10 = vadd.f32 %v3539_v4, %v3462_v41  ;;  %14910 = vmatpush3.msra.mxu0 %v16639_v58  ;;  %v14428_v42 = vpop.f32.mrf.mxu1  ;;  %v12560_v49 = vsel %vm549_vm2, %v16518_v3, %v12559_v13 }
 0x131   : > { %14907 = vmatmul.mubr.msk.f32.vlgmr.msra.gmra.mxu1 %vm283_vm0, %v12182_v36  ;;  %v3636_v17 = vadd.f32 %v14423_v40, %v3549_v50  ;;  %v3626_v0 = vpop.f32.mrf.mxu0  ;;  %14911 = vmatprep.mubr.msk.f32.mxu0 %vm283_vm0, %v16604_v24 }
 0x132   : > { %14915 = vmatpush3.msra.mxu1 %v16653_v22  ;;  %v2935_v16 = vrot.slane %v2934_v63, 1  ;;  %v2946_v29 = vadd.f32 %v2945_v8, %v2944_v14  ;;  %v3635_v23 = vadd.f32 %v3626_v0, %v3548_v10  ;;  %v3712_v44 = vpop.f32.mrf.mxu1  ;;  %14919 = vmatprep.subr.mxu0 %v16672_v43 }
 0x133   : > { %14916 = vmatprep.mubr.msk.f32.mxu1 %vm283_vm0, %v16658_v27  ;;  %v3722_v28 = vadd.f32 %v14428_v42, %v3636_v17  ;;  %v14433_v38 = vpop.f32.mrf.mxu0  ;;  %14912 = vmatmul.mubr.msk.f32.vlgmr.msra.gmra.mxu0 %vm283_vm0, %v16606_v25  ;;  %v16731_v42 = vld [vmem:[#allocation2 + $0x1a0] sm:$0xff] }
 0x134   : > { %14924 = vmatprep.subr.mxu1 %v16431_v59  ;;  %v2936_v20 = vadd.f32 %v2935_v16, %v2934_v63  ;;  %v2947_v2 = vrot.slane %v2946_v29, 1  ;;  %v3721_v30 = vadd.f32 %v3712_v44, %v3635_v23  ;;  %14920 = vmatpush3.msra.mxu0 %v16672_v43  ;;  %v14438_v19 = vpop.f32.mrf.mxu1 }
 0x135   : > { %14917 = vmatmul.mubr.msk.f32.vlgmr.msra.gmra.mxu1 %vm283_vm0, %v12355_v54  ;;  %v3724_v11 = vadd.f32 %v16305_v35, %v3722_v28  ;;  %v3916_v39 = vadd.f32 %v14438_v19, %v14433_v38  ;;  %v3831_v7 = vpop.f32.mrf.mxu0  ;;  %14921 = vmatprep.mubr.msk.f32.mxu0 %vm283_vm0, %v16679_v32  ;;  %v13152_v38 = vrot.slane %v16731_v42, 1 }
 0x136   : > { %14925 = vmatpush3.msra.mxu1 %v16431_v59  ;;  %v16696_v53 = vadd.f32 %v2936_v20, %v16577_v57  ;;  %v2948_v21 = vadd.f32 %v2947_v2, %v2946_v29  ;;  %v3723_v45 = vadd.f32 %v16305_v35, %v3721_v30  ;;  %v3910_v33 = vpop.f32.mrf.mxu1  ;;  %14929 = vmatprep.subr.mxu0 %v16456_v31  ;;  %v16702_v59 = vld [vmem:[#allocation2 + $0x190] sm:$0x3]  ;;  %v13066_v29 = vld [vmem:[#allocation2 + $0x1a8] sm:$0x3] }
 0x137   : > { %14926 = vmatprep.mubr.msk.f32.mxu1 %vm283_vm0, %v16546_v61  ;;  %13572 = vst.msk [vmem:[%s16324_s9 + $0x38] sm:$0xff] %vm283_vm0, %v3724_v11  ;;  %v3729_v3 = vsel %vm283_vm0, %v3724_v11, 0.0  ;;  %v3739_v48 = vmul.f32 %v3724_v11, %v3724_v11  ;;  %v3911_v36 = vadd.f32 %v3910_v33, %v3831_v7  ;;  %v14443_v12 = vpop.f32.mrf.mxu0  ;;  %14922 = vmatmul.mubr.msk.f32.vlgmr.msra.gmra.mxu0 %vm283_vm0, %v12441_v55  ;;  %v12895_v52 = vrot.slane %v16702_v59, 1 }
 0x138   : > { %14934 = vmatprep.subr.mxu1 %v16466_v18  ;;  %v16710_v57 = vadd.f32 %v2948_v21, %v16588_v62  ;;  %13571 = vst.msk [vmem:[%s16324_s9 + $0x30] sm:$0xff] %vm283_vm0, %v3723_v45  ;;  %v3728_v61 = vsel %vm283_vm0, %v3723_v45, 0.0  ;;  %v3738_v6 = vmul.f32 %v3723_v45, %v3723_v45  ;;  %v4004_v56 = vadd.f32 %v14443_v12, %v3916_v39  ;;  %v14448_v14 = vpop.f32.mrf.mxu1 }
 0x139   : > { %14930 = vmatpush3.msra.mxu0 %v16456_v31  ;;  %14927 = vmatmul.mubr.msk.f32.vlgmr.msra.gmra.mxu1 %vm283_vm0, %v12560_v49  ;;  %v3730_v41 = vadd.f32 %v3729_v3, %v3728_v61  ;;  %v3994_v4 = vpop.f32.mrf.mxu0  ;;  %v12723_v62 = vsel %vm713_vm3, %v16535_v15, %v12722_v5  ;;  %v3741_v50 = vsel %vm283_vm0, %v3739_v48, 0.0  ;;  %v13064_v15 = vld [vmem:[#allocation2 + $0x198] sm:$0xff]  ;;  %v13154_v11 = vrot.slane %v13066_v29, 1 }
 0x13a   : > { %14935 = vmatpush3.msra.mxu1 %v16466_v18  ;;  %14931 = vmatprep.mubr.msk.f32.mxu0 %vm283_vm0, %v16490_v26  ;;  %v3740_v40 = vsel %vm283_vm0, %v3738_v6, 0.0  ;;  %v4090_v31 = vadd.f32 %v14448_v14, %v4004_v56  ;;  %v4003_v63 = vadd.f32 %v3994_v4, %v3911_v36  ;;  %v4080_v8 = vpop.f32.mrf.mxu1  ;;  %v13151_v28 = vrot.slane %v13064_v15, 1 }
 0x13b   : > { %14939 = vmatprep.subr.mxu0 %v16485_v37  ;;  %14936 = vmatprep.mubr.msk.f32.mxu1 %vm283_vm0, %v16558_v9  ;;  %v3731_v18 = vrot.slane %v3730_v41, 4  ;;  %v3742_v10 = vadd.f32 %v3741_v50, %v3740_v40  ;;  %v14453_v26 = vpop.f32.mrf.mxu0  ;;  %v12981_v9 = vrot.slane %v16702_v59, 2  ;;  %v13155_v36 = vsel %vm549_vm2, %v13152_v38, %v13154_v11 }
 0x13c   : > { %14932 = vmatmul.mubr.msk.f32.vlgmr.msra.gmra.mxu0 %vm283_vm0, %v16492_v46  ;;  %14944 = vmatprep.subr.mxu1 %v16502_v51  ;;  %v4089_v1 = vadd.f32 %v4080_v8, %v4003_v63  ;;  %v4177_v17 = vadd.f32 %v14453_v26, %v4090_v31  ;;  %v14458_v0 = vpop.f32.mrf.mxu1  ;;  %v12896_v46 = vsel %vm549_vm2, %v16622_v47, %v12895_v52  ;;  %v13238_v47 = vrot.slane %v16731_v42, 2 }
 0x13d   : > { %14940 = vmatpush3.msra.mxu0 %v16485_v37  ;;  %14937 = vmatmul.mubr.msk.f32.vlgmr.msra.gmra.mxu1 %vm283_vm0, %v12723_v62  ;;  %v3732_v54 = vadd.f32 %v3731_v18, %v3730_v41  ;;  %v3743_v13 = vrot.slane %v3742_v10, 4  ;;  %v4167_v16 = vpop.f32.mrf.mxu0 }
 0x13e   : > { %14945 = vmatpush3.msra.mxu1 %v16502_v51  ;;  %14941 = vmatprep.mubr.msk.f32.mxu0 %vm283_vm0, %v16604_v24  ;;  %v4263_v23 = vadd.f32 %v14458_v0, %v4177_v17  ;;  %v4176_v44 = vadd.f32 %v4167_v16, %v4089_v1  ;;  %v4253_v37 = vpop.f32.mrf.mxu1  ;;  %v13237_v24 = vrot.slane %v13064_v15, 2 }
 0x13f   : > { %14949 = vmatprep.subr.mxu0 %v16523_v34  ;;  %14946 = vmatprep.mubr.msk.f32.mxu1 %vm283_vm0, %v16658_v27  ;;  %v3733_v20 = vrot.slane %v3732_v54, 2  ;;  %v3744_v51 = vadd.f32 %v3743_v13, %v3742_v10  ;;  %v14463_v2 = vpop.f32.mrf.mxu0  ;;  %v12982_v27 = vsel %vm713_vm3, %v16645_v60, %v12981_v9 }
 0x140   : > { %14942 = vmatmul.mubr.msk.f32.vlgmr.msra.gmra.mxu0 %vm283_vm0, %v16606_v25  ;;  %14954 = vmatprep.subr.mxu1 %v16639_v58  ;;  %v4262_v30 = vadd.f32 %v4253_v37, %v4176_v44  ;;  %v4349_v19 = vadd.f32 %v14463_v2, %v4263_v23  ;;  %v14468_v55 = vpop.f32.mrf.mxu1  ;;  %v13240_v25 = vrot.slane %v13066_v29, 2 }
 0x141   : > { %14950 = vmatpush3.msra.mxu0 %v16523_v34  ;;  %14947 = vmatmul.mubr.msk.f32.vlgmr.msra.gmra.mxu1 %vm283_vm0, %v12896_v46  ;;  %v3734_v39 = vadd.f32 %v3733_v20, %v3732_v54  ;;  %v3745_v7 = vrot.slane %v3744_v51, 2  ;;  %v4339_v49 = vpop.f32.mrf.mxu0  ;;  %v13153_v34 = vsel %vm549_vm2, %v13151_v28, %v13152_v38 }
 0x142   : > { %14955 = vmatpush3.msra.mxu1 %v16639_v58  ;;  %14951 = vmatprep.mubr.msk.f32.mxu0 %vm283_vm0, %v16679_v32  ;;  %v4436_v5 = vadd.f32 %v14468_v55, %v4349_v19  ;;  %v4348_v21 = vadd.f32 %v4339_v49, %v4262_v30  ;;  %v4426_v45 = vpop.f32.mrf.mxu1  ;;  %v13239_v58 = vsel %vm713_vm3, %v13237_v24, %v13238_v47 }
 0x143   : > { %14959 = vmatprep.subr.mxu0 %v16653_v22  ;;  %14956 = vmatprep.mubr.msk.f32.mxu1 %vm283_vm0, %v13064_v15  ;;  %v3735_v60 = vrot.slane %v3734_v39, 1  ;;  %v3746_v33 = vadd.f32 %v3745_v7, %v3744_v51  ;;  %v14473_v59 = vpop.f32.mrf.mxu0  ;;  %v13241_v56 = vsel %vm713_vm3, %v13238_v47, %v13240_v25 }
 0x144   : > { %14952 = vmatmul.mubr.msk.f32.vlgmr.msra.gmra.mxu0 %vm283_vm0, %v12982_v27  ;;  %14964 = vmatprep.subr.mxu1 %v16672_v43  ;;  %v4435_v32 = vadd.f32 %v4426_v45, %v4348_v21  ;;  %v4522_v3 = vadd.f32 %v14473_v59, %v4436_v5  ;;  %v14478_v48 = vpop.f32.mrf.mxu1 }
 0x145   : > { %14960 = vmatpush3.msra.mxu0 %v16653_v22  ;;  %14957 = vmatmul.mubr.msk.f32.vlgmr.msra.gmra.mxu1 %vm283_vm0, %v16731_v42  ;;  %v3736_v12 = vadd.f32 %v3735_v60, %v3734_v39  ;;  %v3747_v61 = vrot.slane %v3746_v33, 1  ;;  %v4512_v6 = vpop.f32.mrf.mxu0 }
 0x146   : > { %14965 = vmatpush3.msra.mxu1 %v16672_v43  ;;  %14961 = vmatprep.mubr.msk.f32.mxu0 %vm283_vm0, %v13153_v34  ;;  %v4524_v14 = vadd.f32 %v16305_v35, %v4522_v3  ;;  %v4521_v41 = vadd.f32 %v4512_v6, %v4435_v32  ;;  %v4631_v22 = vpop.f32.mrf.mxu1 }
 0x147   : > { %14966 = vmatprep.mubr.msk.f32.mxu1 %vm283_vm0, %v13239_v58  ;;  %v3737_v4 = vadd.f32 %v3736_v12, %v16696_v53  ;;  %v3748_v62 = vadd.f32 %v3747_v61, %v3746_v33  ;;  %v14483_v52 = vpop.f32.mrf.mxu0 }
 0x148   : > { %14962 = vmatmul.mubr.msk.f32.vlgmr.msra.gmra.mxu0 %vm283_vm0, %v13155_v36  ;;  %13592 = vst.msk [vmem:[%s16324_s9 + $0x48] sm:$0xff] %vm283_vm0, %v4524_v14  ;;  %v4539_v43 = vmul.f32 %v4524_v14, %v4524_v14  ;;  %v4523_v50 = vadd.f32 %v16305_v35, %v4521_v41  ;;  %v4716_v40 = vadd.f32 %v14483_v52, %v14478_v48  ;;  %v14488_v31 = vpop.f32.mrf.mxu1  ;;  %v4529_v18 = vsel %vm283_vm0, %v4524_v14, 0.0  ;;  %v16787_v48 = vld [vmem:[%s16940_s4] ss:$0 sm:$0xff] }
 0x149   : > { %14967 = vmatmul.mubr.msk.f32.vlgmr.msra.gmra.mxu1 %vm283_vm0, %v13241_v56  ;;  %v3749_v63 = vadd.f32 %v3748_v62, %v16710_v57  ;;  %v4710_v8 = vpop.f32.mrf.mxu0 }
 0x14a   : > { %13591 = vst.msk [vmem:[%s16324_s9 + $0x40] sm:$0xff] %vm283_vm0, %v4523_v50  ;;  %v4528_v53 = vsel %vm283_vm0, %v4523_v50, 0.0  ;;  %v4538_v10 = vmul.f32 %v4523_v50, %v4523_v50  ;;  %v4804_v26 = vadd.f32 %v14488_v31, %v4716_v40  ;;  %v4794_v15 = vpop.f32.mrf.mxu1  ;;  %v4711_v1 = vadd.f32 %v4710_v8, %v4631_v22 }
 0x14b   : > { %v4530_v42 = vadd.f32 %v4529_v18, %v4528_v53  ;;  %v14493_v17 = vpop.f32.mrf.mxu0  ;;  %v4541_v35 = vsel %vm283_vm0, %v4539_v43, 0.0 }
 0x14c   : > { %v4540_v0 = vsel %vm283_vm0, %v4538_v10, 0.0  ;;  %v4890_v9 = vadd.f32 %v14493_v17, %v4804_v26  ;;  %v14498_v54 = vpop.f32.mrf.mxu1  ;;  %v4803_v16 = vadd.f32 %v4794_v15, %v4711_v1 }
 0x14d   : > { %v4531_v57 = vrot.slane %v4530_v42, 4  ;;  %v4542_v13 = vadd.f32 %v4541_v35, %v4540_v0  ;;  %v4880_v46 = vpop.f32.mrf.mxu0 }
 0x14e   : > { %v4977_v29 = vadd.f32 %v14498_v54, %v4890_v9  ;;  %v4967_v23 = vpop.f32.mrf.mxu1  ;;  %v4889_v28 = vadd.f32 %v4880_v46, %v4803_v16 }
 0x14f   : > { %v4532_v44 = vadd.f32 %v4531_v57, %v4530_v42  ;;  %v4543_v37 = vrot.slane %v4542_v13, 4  ;;  %v14503_v38 = vpop.f32.mrf.mxu0 }
 0x150   : > { %v5063_v20 = vadd.f32 %v14503_v38, %v4977_v29  ;;  %v14508_v51 = vpop.f32.mrf.mxu1  ;;  %v4976_v47 = vadd.f32 %v4967_v23, %v4889_v28 }
 0x151   : > { %v4533_v2 = vrot.slane %v4532_v44, 2  ;;  %v4544_v24 = vadd.f32 %v4543_v37, %v4542_v13  ;;  %v5053_v30 = vpop.f32.mrf.mxu0 }
 0x152   : > { %v5149_v19 = vadd.f32 %v14508_v51, %v5063_v20  ;;  %v5139_v55 = vpop.f32.mrf.mxu1  ;;  %v5062_v39 = vadd.f32 %v5053_v30, %v4976_v47 }
 0x153   : > { %v4534_v27 = vadd.f32 %v4533_v2, %v4532_v44  ;;  %v4545_v11 = vrot.slane %v4544_v24, 2  ;;  %v14513_v7 = vpop.f32.mrf.mxu0 }
 0x154   : > { %v5236_v49 = vadd.f32 %v14513_v7, %v5149_v19  ;;  %v14518_v25 = vpop.f32.mrf.mxu1  ;;  %v5148_v45 = vadd.f32 %v5139_v55, %v5062_v39 }
 0x155   : > { %v4535_v5 = vrot.slane %v4534_v27, 1  ;;  %v4546_v21 = vadd.f32 %v4545_v11, %v4544_v24  ;;  %v5226_v34 = vpop.f32.mrf.mxu0 }
 0x156   : > { %v5322_v60 = vadd.f32 %v14518_v25, %v5236_v49  ;;  %v5312_v33 = vpop.f32.mrf.mxu1  ;;  %v5235_v32 = vadd.f32 %v5226_v34, %v5148_v45 }
 0x157   : > { %v4536_v59 = vadd.f32 %v4535_v5, %v4534_v27  ;;  %v4547_v58 = vrot.slane %v4546_v21, 1  ;;  %v14523_v3 = vpop.f32.mrf.mxu0 }
 0x158   : > { %v5324_v36 = vadd.f32 %v16787_v48, %v5322_v60  ;;  %v14528_v12 = vpop.f32.mrf.mxu1  ;;  %v5321_v56 = vadd.f32 %v5312_v33, %v5235_v32 }
 0x159   : > { %v4537_v61 = vadd.f32 %v4536_v59, %v3737_v4  ;;  %v4548_v6 = vadd.f32 %v4547_v58, %v4546_v21  ;;  %v5516_v14 = vadd.f32 %v14528_v12, %v14523_v3  ;;  %v5431_v41 = vpop.f32.mrf.mxu0 }
 0x15a   : > { %13612 = vst.msk [vmem:[%s16324_s9 + $0x58] sm:$0xff] %vm283_vm0, %v5324_v36  ;;  %v5510_v22 = vpop.f32.mrf.mxu1  ;;  %v5339_v52 = vmul.f32 %v5324_v36, %v5324_v36  ;;  %v5323_v43 = vadd.f32 %v16787_v48, %v5321_v56  ;;  %v5329_v18 = vsel %vm283_vm0, %v5324_v36, 0.0 }
 0x15b   : > { %v16792_v62 = vadd.f32 %v4548_v6, %v3749_v63  ;;  %v5511_v50 = vadd.f32 %v5510_v22, %v5431_v41  ;;  %v14533_v40 = vpop.f32.mrf.mxu0 }
 0x15c   : > { %v5604_v31 = vadd.f32 %v14533_v40, %v5516_v14  ;;  %v14538_v8 = vpop.f32.mrf.mxu1  ;;  %13611 = vst.msk [vmem:[%s16324_s9 + $0x50] sm:$0xff] %vm283_vm0, %v5323_v43  ;;  %v5328_v4 = vsel %vm283_vm0, %v5323_v43, 0.0  ;;  %v5338_v53 = vmul.f32 %v5323_v43, %v5323_v43  ;;  %v5341_v1 = vsel %vm283_vm0, %v5339_v52, 0.0 }
 0x15d   : > { %v5594_v10 = vpop.f32.mrf.mxu0  ;;  %v5330_v26 = vadd.f32 %v5329_v18, %v5328_v4 }
 0x15e   : > { %v5690_v15 = vadd.f32 %v14538_v8, %v5604_v31  ;;  %v5603_v42 = vadd.f32 %v5594_v10, %v5511_v50  ;;  %v5680_v63 = vpop.f32.mrf.mxu1  ;;  %v5340_v17 = vsel %vm283_vm0, %v5338_v53, 0.0 }
 0x15f   : > { %v14543_v35 = vpop.f32.mrf.mxu0  ;;  %v5331_v0 = vrot.slane %v5330_v26, 4  ;;  %v5342_v9 = vadd.f32 %v5341_v1, %v5340_v17 }
 0x160   : > { %v5689_v54 = vadd.f32 %v5680_v63, %v5603_v42  ;;  %v5777_v57 = vadd.f32 %v14543_v35, %v5690_v15  ;;  %v14548_v13 = vpop.f32.mrf.mxu1 }
 0x161   : > { %v5767_v16 = vpop.f32.mrf.mxu0  ;;  %v5332_v46 = vadd.f32 %v5331_v0, %v5330_v26  ;;  %v5343_v29 = vrot.slane %v5342_v9, 4 }
 0x162   : > { %v5863_v23 = vadd.f32 %v14548_v13, %v5777_v57  ;;  %v5776_v44 = vadd.f32 %v5767_v16, %v5689_v54  ;;  %v5853_v37 = vpop.f32.mrf.mxu1 }
 0x163   : > { %v14553_v28 = vpop.f32.mrf.mxu0  ;;  %v5333_v38 = vrot.slane %v5332_v46, 2  ;;  %v5344_v20 = vadd.f32 %v5343_v29, %v5342_v9 }
 0x164   : > { %v5862_v51 = vadd.f32 %v5853_v37, %v5776_v44  ;;  %v5949_v2 = vadd.f32 %v14553_v28, %v5863_v23  ;;  %v14558_v24 = vpop.f32.mrf.mxu1 }
 0x165   : > { %v5939_v47 = vpop.f32.mrf.mxu0  ;;  %v5334_v30 = vadd.f32 %v5333_v38, %v5332_v46  ;;  %v5345_v19 = vrot.slane %v5344_v20, 2 }
 0x166   : > { %v6036_v55 = vadd.f32 %v14558_v24, %v5949_v2  ;;  %v5948_v27 = vadd.f32 %v5939_v47, %v5862_v51  ;;  %v6026_v11 = vpop.f32.mrf.mxu1 }
 0x167   : > { %v14563_v39 = vpop.f32.mrf.mxu0  ;;  %v5335_v7 = vrot.slane %v5334_v30, 1  ;;  %v5346_v49 = vadd.f32 %v5345_v19, %v5344_v20 }
 0x168   : > { %v6035_v25 = vadd.f32 %v6026_v11, %v5948_v27  ;;  %v6122_v5 = vadd.f32 %v14563_v39, %v6036_v55  ;;  %v14568_v21 = vpop.f32.mrf.mxu1 }
 0x169   : > { %v6112_v45 = vpop.f32.mrf.mxu0  ;;  %v5336_v34 = vadd.f32 %v5335_v7, %v5334_v30  ;;  %v5347_v60 = vrot.slane %v5346_v49, 1 }
 0x16a   : > { %v6124_v33 = vadd.f32 %v16787_v48, %v6122_v5  ;;  %v6121_v59 = vadd.f32 %v6112_v45, %v6035_v25  ;;  %v6231_v58 = vpop.f32.mrf.mxu1 }
 0x16b   : > { %v14573_v32 = vpop.f32.mrf.mxu0  ;;  %v5337_v3 = vadd.f32 %v5336_v34, %v4537_v61  ;;  %v5348_v36 = vadd.f32 %v5347_v60, %v5346_v49 }
 0x16c   : > { %13632 = vst.msk [vmem:[%s16324_s9 + $0x68] sm:$0xff] %vm283_vm0, %v6124_v33  ;;  %v14578_v12 = vpop.f32.mrf.mxu1  ;;  %v6139_v6 = vmul.f32 %v6124_v33, %v6124_v33  ;;  %v6123_v56 = vadd.f32 %v16787_v48, %v6121_v59  ;;  %v6316_v14 = vadd.f32 %v14573_v32, %v14568_v21  ;;  %v6129_v50 = vsel %vm283_vm0, %v6124_v33, 0.0 }
 0x16d   : > { %v6310_v41 = vpop.f32.mrf.mxu0  ;;  %v5349_v22 = vadd.f32 %v5348_v36, %v16792_v62 }
 0x16e   : > { %v6311_v52 = vadd.f32 %v6310_v41, %v6231_v58  ;;  %v6394_v43 = vpop.f32.mrf.mxu1  ;;  %13631 = vst.msk [vmem:[%s16324_s9 + $0x60] sm:$0xff] %vm283_vm0, %v6123_v56  ;;  %v6128_v40 = vsel %vm283_vm0, %v6123_v56, 0.0  ;;  %v6138_v61 = vmul.f32 %v6123_v56, %v6123_v56  ;;  %v6404_v31 = vadd.f32 %v14578_v12, %v6316_v14 }
 0x16f   : > { %v14583_v8 = vpop.f32.mrf.mxu0  ;;  %v6130_v18 = vadd.f32 %v6129_v50, %v6128_v40  ;;  %v6141_v10 = vsel %vm283_vm0, %v6139_v6, 0.0 }
 0x170   : > { %v6403_v4 = vadd.f32 %v6394_v43, %v6311_v52  ;;  %v14588_v53 = vpop.f32.mrf.mxu1  ;;  %v6140_v26 = vsel %vm283_vm0, %v6138_v61, 0.0  ;;  %v6490_v15 = vadd.f32 %v14583_v8, %v6404_v31 }
 0x171   : > { %v6480_v62 = vpop.f32.mrf.mxu0  ;;  %v6131_v42 = vrot.slane %v6130_v18, 4  ;;  %v6142_v63 = vadd.f32 %v6141_v10, %v6140_v26 }
 0x172   : > { %v6489_v1 = vadd.f32 %v6480_v62, %v6403_v4  ;;  %v6567_v17 = vpop.f32.mrf.mxu1  ;;  %v6577_v35 = vadd.f32 %v14588_v53, %v6490_v15 }
 0x173   : > { %v14593_v0 = vpop.f32.mrf.mxu0  ;;  %v6132_v9 = vadd.f32 %v6131_v42, %v6130_v18  ;;  %v6143_v54 = vrot.slane %v6142_v63, 4 }
 0x174   : > { %v6576_v57 = vadd.f32 %v6567_v17, %v6489_v1  ;;  %v14598_v13 = vpop.f32.mrf.mxu1  ;;  %v6663_v16 = vadd.f32 %v14593_v0, %v6577_v35 }
 0x175   : > { %v6653_v46 = vpop.f32.mrf.mxu0  ;;  %v6133_v29 = vrot.slane %v6132_v9, 2  ;;  %v6144_v23 = vadd.f32 %v6143_v54, %v6142_v63 }
 0x176   : > { %v6662_v44 = vadd.f32 %v6653_v46, %v6576_v57  ;;  %v6739_v37 = vpop.f32.mrf.mxu1  ;;  %v6749_v28 = vadd.f32 %v14598_v13, %v6663_v16 }
 0x177   : > { %v14603_v38 = vpop.f32.mrf.mxu0  ;;  %v6134_v20 = vadd.f32 %v6133_v29, %v6132_v9  ;;  %v6145_v51 = vrot.slane %v6144_v23, 2 }
 0x178   : > { %v6748_v2 = vadd.f32 %v6739_v37, %v6662_v44  ;;  %v14608_v24 = vpop.f32.mrf.mxu1  ;;  %v6836_v47 = vadd.f32 %v14603_v38, %v6749_v28 }
 0x179   : > { %v6826_v30 = vpop.f32.mrf.mxu0  ;;  %v6135_v19 = vrot.slane %v6134_v20, 1  ;;  %v6146_v55 = vadd.f32 %v6145_v51, %v6144_v23 }
 0x17a   : > { %v6835_v27 = vadd.f32 %v6826_v30, %v6748_v2  ;;  %v6912_v11 = vpop.f32.mrf.mxu1  ;;  %v6922_v39 = vadd.f32 %v14608_v24, %v6836_v47 }
 0x17b   : > { %v14613_v7 = vpop.f32.mrf.mxu0  ;;  %v6136_v49 = vadd.f32 %v6135_v19, %v6134_v20  ;;  %v6147_v25 = vrot.slane %v6146_v55, 1 }
 0x17c   : > { %v6921_v5 = vadd.f32 %v6912_v11, %v6835_v27  ;;  %v14618_v21 = vpop.f32.mrf.mxu1  ;;  %v6924_v45 = vadd.f32 %v16787_v48, %v6922_v39 }
 0x17d   : > { %v7116_v34 = vadd.f32 %v14618_v21, %v14613_v7  ;;  %v7031_v60 = vpop.f32.mrf.mxu0  ;;  %v6137_v33 = vadd.f32 %v6136_v49, %v5337_v3  ;;  %v6148_v59 = vadd.f32 %v6147_v25, %v6146_v55 }
 0x17e   : > { %v6923_v58 = vadd.f32 %v16787_v48, %v6921_v5  ;;  %v7110_v32 = vpop.f32.mrf.mxu1  ;;  %13652 = vst.msk [vmem:[%s16324_s9 + $0x78] sm:$0xff] %vm283_vm0, %v6924_v45  ;;  %v6929_v36 = vsel %vm283_vm0, %v6924_v45, 0.0  ;;  %v6939_v12 = vmul.f32 %v6924_v45, %v6924_v45 }
 0x17f   : > { %v7111_v6 = vadd.f32 %v7110_v32, %v7031_v60  ;;  %v14623_v56 = vpop.f32.mrf.mxu0  ;;  %v6149_v14 = vadd.f32 %v6148_v59, %v5349_v22 }
 0x180   : > { %13651 = vst.msk [vmem:[%s16324_s9 + $0x70] sm:$0xff] %vm283_vm0, %v6923_v58  ;;  %v6928_v41 = vsel %vm283_vm0, %v6923_v58, 0.0  ;;  %v6938_v52 = vmul.f32 %v6923_v58, %v6923_v58  ;;  %v7204_v43 = vadd.f32 %v14623_v56, %v7116_v34  ;;  %v14628_v50 = vpop.f32.mrf.mxu1  ;;  %v6941_v61 = vsel %vm283_vm0, %v6939_v12, 0.0 }
 0x181   : > { %v6930_v3 = vadd.f32 %v6929_v36, %v6928_v41  ;;  %v7194_v40 = vpop.f32.mrf.mxu0 }
 0x182   : > { %v6940_v31 = vsel %vm283_vm0, %v6938_v52, 0.0  ;;  %v7290_v8 = vadd.f32 %v14628_v50, %v7204_v43  ;;  %v7203_v18 = vadd.f32 %v7194_v40, %v7111_v6  ;;  %v7280_v4 = vpop.f32.mrf.mxu1 }
 0x183   : > { %v6931_v53 = vrot.slane %v6930_v3, 4  ;;  %v6942_v10 = vadd.f32 %v6941_v61, %v6940_v31  ;;  %v14633_v26 = vpop.f32.mrf.mxu0 }
 0x184   : > { %v7289_v22 = vadd.f32 %v7280_v4, %v7203_v18  ;;  %v7377_v15 = vadd.f32 %v14633_v26, %v7290_v8  ;;  %v14638_v62 = vpop.f32.mrf.mxu1 }
 0x185   : > { %v6932_v42 = vadd.f32 %v6931_v53, %v6930_v3  ;;  %v6943_v63 = vrot.slane %v6942_v10, 4  ;;  %v7367_v1 = vpop.f32.mrf.mxu0 }
 0x186   : > { %v7463_v17 = vadd.f32 %v14638_v62, %v7377_v15  ;;  %v7376_v35 = vadd.f32 %v7367_v1, %v7289_v22  ;;  %v7453_v0 = vpop.f32.mrf.mxu1 }
 0x187   : > { %v6933_v9 = vrot.slane %v6932_v42, 2  ;;  %v6944_v54 = vadd.f32 %v6943_v63, %v6942_v10  ;;  %v14643_v57 = vpop.f32.mrf.mxu0 }
 0x188   : > { %v7462_v13 = vadd.f32 %v7453_v0, %v7376_v35  ;;  %v7549_v16 = vadd.f32 %v14643_v57, %v7463_v17  ;;  %v14648_v46 = vpop.f32.mrf.mxu1 }
 0x189   : > { %v6934_v29 = vadd.f32 %v6933_v9, %v6932_v42  ;;  %v6945_v23 = vrot.slane %v6944_v54, 2  ;;  %v7539_v44 = vpop.f32.mrf.mxu0 }
 0x18a   : > { %v7636_v37 = vadd.f32 %v14648_v46, %v7549_v16  ;;  %v7548_v28 = vadd.f32 %v7539_v44, %v7462_v13  ;;  %v7626_v38 = vpop.f32.mrf.mxu1 }
 0x18b   : > { %v6935_v20 = vrot.slane %v6934_v29, 1  ;;  %v6946_v51 = vadd.f32 %v6945_v23, %v6944_v54  ;;  %v14653_v2 = vpop.f32.mrf.mxu0 }
 0x18c   : > { %v7635_v24 = vadd.f32 %v7626_v38, %v7548_v28  ;;  %v7722_v47 = vadd.f32 %v14653_v2, %v7636_v37  ;;  %v14658_v30 = vpop.f32.mrf.mxu1 }
 0x18d   : > { %v6936_v19 = vadd.f32 %v6935_v20, %v6934_v29  ;;  %v6947_v55 = vrot.slane %v6946_v51, 1  ;;  %v7712_v27 = vpop.f32.mrf.mxu0 }
 0x18e   : > { %v7724_v11 = vadd.f32 %v16787_v48, %v7722_v47  ;;  %v7721_v39 = vadd.f32 %v7712_v27, %v7635_v24  ;;  %v7831_v7 = vpop.f32.mrf.mxu1 }
 0x18f   : > { %v6937_v49 = vadd.f32 %v6936_v19, %v6137_v33  ;;  %v6948_v25 = vadd.f32 %v6947_v55, %v6946_v51  ;;  %v14663_v5 = vpop.f32.mrf.mxu0 }
 0x190   : > { %13672 = vst.msk [vmem:[%s16324_s9 + $0x88] sm:$0xff] %vm283_vm0, %v7724_v11  ;;  %v7739_v21 = vmul.f32 %v7724_v11, %v7724_v11  ;;  %v7723_v45 = vadd.f32 %v16787_v48, %v7721_v39  ;;  %v7916_v34 = vadd.f32 %v14663_v5, %v14658_v30  ;;  %v14668_v60 = vpop.f32.mrf.mxu1  ;;  %v7729_v32 = vsel %vm283_vm0, %v7724_v11, 0.0 }
 0x191   : > { %v6949_v59 = vadd.f32 %v6948_v25, %v6149_v14  ;;  %v7910_v58 = vpop.f32.mrf.mxu0 }
 0x192   : > { %13671 = vst.msk [vmem:[%s16324_s9 + $0x80] sm:$0xff] %vm283_vm0, %v7723_v45  ;;  %v7728_v36 = vsel %vm283_vm0, %v7723_v45, 0.0  ;;  %v7738_v12 = vmul.f32 %v7723_v45, %v7723_v45  ;;  %v8004_v6 = vadd.f32 %v14668_v60, %v7916_v34  ;;  %v7994_v33 = vpop.f32.mrf.mxu1  ;;  %v7911_v41 = vadd.f32 %v7910_v58, %v7831_v7 }
 0x193   : > { %v7730_v56 = vadd.f32 %v7729_v32, %v7728_v36  ;;  %v14673_v52 = vpop.f32.mrf.mxu0  ;;  %v7741_v43 = vsel %vm283_vm0, %v7739_v21, 0.0 }
 0x194   : > { %v7740_v50 = vsel %vm283_vm0, %v7738_v12, 0.0  ;;  %v8090_v3 = vadd.f32 %v14673_v52, %v8004_v6  ;;  %v14678_v40 = vpop.f32.mrf.mxu1  ;;  %v8003_v31 = vadd.f32 %v7994_v33, %v7911_v41 }
 0x195   : > { %v7731_v14 = vrot.slane %v7730_v56, 4  ;;  %v7742_v61 = vadd.f32 %v7741_v43, %v7740_v50  ;;  %v8080_v8 = vpop.f32.mrf.mxu0 }
 0x196   : > { %v8177_v18 = vadd.f32 %v14678_v40, %v8090_v3  ;;  %v8167_v4 = vpop.f32.mrf.mxu1  ;;  %v8089_v26 = vadd.f32 %v8080_v8, %v8003_v31 }
 0x197   : > { %v7732_v53 = vadd.f32 %v7731_v14, %v7730_v56  ;;  %v7743_v10 = vrot.slane %v7742_v61, 4  ;;  %v14683_v22 = vpop.f32.mrf.mxu0 }
 0x198   : > { %v8263_v15 = vadd.f32 %v14683_v22, %v8177_v18  ;;  %v14688_v62 = vpop.f32.mrf.mxu1  ;;  %v8176_v1 = vadd.f32 %v8167_v4, %v8089_v26 }
 0x199   : > { %v7733_v42 = vrot.slane %v7732_v53, 2  ;;  %v7744_v63 = vadd.f32 %v7743_v10, %v7742_v61  ;;  %v8253_v17 = vpop.f32.mrf.mxu0 }
 0x19a   : > { %v8349_v35 = vadd.f32 %v14688_v62, %v8263_v15  ;;  %v8339_v0 = vpop.f32.mrf.mxu1  ;;  %v8262_v57 = vadd.f32 %v8253_v17, %v8176_v1 }
 0x19b   : > { %v7734_v9 = vadd.f32 %v7733_v42, %v7732_v53  ;;  %v7745_v54 = vrot.slane %v7744_v63, 2  ;;  %v14693_v13 = vpop.f32.mrf.mxu0 }
 0x19c   : > { %v8436_v16 = vadd.f32 %v14693_v13, %v8349_v35  ;;  %v14698_v46 = vpop.f32.mrf.mxu1  ;;  %v8348_v44 = vadd.f32 %v8339_v0, %v8262_v57 }
 0x19d   : > { %v7735_v29 = vrot.slane %v7734_v9, 1  ;;  %v7746_v23 = vadd.f32 %v7745_v54, %v7744_v63  ;;  %v8426_v37 = vpop.f32.mrf.mxu0 }
 0x19e   : > { %v8522_v28 = vadd.f32 %v14698_v46, %v8436_v16  ;;  %v8512_v38 = vpop.f32.mrf.mxu1  ;;  %v8435_v2 = vadd.f32 %v8426_v37, %v8348_v44 }
 0x19f   : > { %v7736_v20 = vadd.f32 %v7735_v29, %v7734_v9  ;;  %v7747_v51 = vrot.slane %v7746_v23, 1  ;;  %v14703_v24 = vpop.f32.mrf.mxu0 }
 0x1a0   : > { %v8524_v47 = vadd.f32 %v16787_v48, %v8522_v28  ;;  %v14708_v30 = vpop.f32.mrf.mxu1  ;;  %v8521_v27 = vadd.f32 %v8512_v38, %v8435_v2 }
 0x1a1   : > { %v7737_v19 = vadd.f32 %v7736_v20, %v6937_v49  ;;  %v7748_v55 = vadd.f32 %v7747_v51, %v7746_v23  ;;  %v8716_v11 = vadd.f32 %v14708_v30, %v14703_v24  ;;  %v8631_v39 = vpop.f32.mrf.mxu0 }
 0x1a2   : > { %13692 = vst.msk [vmem:[%s16324_s9 + $0x98] sm:$0xff] %vm283_vm0, %v8524_v47  ;;  %v8710_v7 = vpop.f32.mrf.mxu1  ;;  %v8539_v5 = vmul.f32 %v8524_v47, %v8524_v47  ;;  %v8523_v21 = vadd.f32 %v16787_v48, %v8521_v27  ;;  %v8529_v32 = vsel %vm283_vm0, %v8524_v47, 0.0 }
 0x1a3   : > { %v16835_v25 = vadd.f32 %v7748_v55, %v6949_v59  ;;  %v8711_v45 = vadd.f32 %v8710_v7, %v8631_v39  ;;  %v14713_v34 = vpop.f32.mrf.mxu0 }
 0x1a4   : > { %v8804_v60 = vadd.f32 %v14713_v34, %v8716_v11  ;;  %v14718_v58 = vpop.f32.mrf.mxu1  ;;  %13691 = vst.msk [vmem:[%s16324_s9 + $0x90] sm:$0xff] %vm283_vm0, %v8523_v21  ;;  %v8528_v49 = vsel %vm283_vm0, %v8523_v21, 0.0  ;;  %v8538_v36 = vmul.f32 %v8523_v21, %v8523_v21  ;;  %v8541_v41 = vsel %vm283_vm0, %v8539_v5, 0.0 }
 0x1a5   : > { %v8794_v12 = vpop.f32.mrf.mxu0  ;;  %v8530_v6 = vadd.f32 %v8529_v32, %v8528_v49 }
 0x1a6   : > { %v8890_v33 = vadd.f32 %v14718_v58, %v8804_v60  ;;  %v8803_v56 = vadd.f32 %v8794_v12, %v8711_v45  ;;  %v8880_v59 = vpop.f32.mrf.mxu1  ;;  %v8540_v52 = vsel %vm283_vm0, %v8538_v36, 0.0 }
 0x1a7   : > { %v14723_v43 = vpop.f32.mrf.mxu0  ;;  %v8531_v50 = vrot.slane %v8530_v6, 4  ;;  %v8542_v3 = vadd.f32 %v8541_v41, %v8540_v52 }
 0x1a8   : > { %v8889_v40 = vadd.f32 %v8880_v59, %v8803_v56  ;;  %v8977_v14 = vadd.f32 %v14723_v43, %v8890_v33  ;;  %v14728_v61 = vpop.f32.mrf.mxu1 }
 0x1a9   : > { %v8967_v31 = vpop.f32.mrf.mxu0  ;;  %v8532_v8 = vadd.f32 %v8531_v50, %v8530_v6  ;;  %v8543_v18 = vrot.slane %v8542_v3, 4 }
 0x1aa   : > { %v9063_v4 = vadd.f32 %v14728_v61, %v8977_v14  ;;  %v8976_v53 = vadd.f32 %v8967_v31, %v8889_v40  ;;  %v9053_v10 = vpop.f32.mrf.mxu1 }
 0x1ab   : > { %v14733_v26 = vpop.f32.mrf.mxu0  ;;  %v8533_v22 = vrot.slane %v8532_v8, 2  ;;  %v8544_v15 = vadd.f32 %v8543_v18, %v8542_v3 }
 0x1ac   : > { %v9062_v62 = vadd.f32 %v9053_v10, %v8976_v53  ;;  %v9149_v42 = vadd.f32 %v14733_v26, %v9063_v4  ;;  %v14738_v63 = vpop.f32.mrf.mxu1 }
 0x1ad   : > { %v9139_v1 = vpop.f32.mrf.mxu0  ;;  %v8534_v17 = vadd.f32 %v8533_v22, %v8532_v8  ;;  %v8545_v35 = vrot.slane %v8544_v15, 2 }
 0x1ae   : > { %v9236_v0 = vadd.f32 %v14738_v63, %v9149_v42  ;;  %v9148_v9 = vadd.f32 %v9139_v1, %v9062_v62  ;;  %v9226_v54 = vpop.f32.mrf.mxu1 }
 0x1af   : > { %v14743_v57 = vpop.f32.mrf.mxu0  ;;  %v8535_v13 = vrot.slane %v8534_v17, 1  ;;  %v8546_v16 = vadd.f32 %v8545_v35, %v8544_v15 }
 0x1b0   : > { %v9235_v46 = vadd.f32 %v9226_v54, %v9148_v9  ;;  %v9322_v29 = vadd.f32 %v14743_v57, %v9236_v0  ;;  %v14748_v23 = vpop.f32.mrf.mxu1 }
 0x1b1   : > { %v9312_v44 = vpop.f32.mrf.mxu0  ;;  %v8536_v37 = vadd.f32 %v8535_v13, %v8534_v17  ;;  %v8547_v28 = vrot.slane %v8546_v16, 1 }
 0x1b2   : > { %v9324_v38 = vadd.f32 %v16787_v48, %v9322_v29  ;;  %v9321_v20 = vadd.f32 %v9312_v44, %v9235_v46  ;;  %v9431_v51 = vpop.f32.mrf.mxu1 }
 0x1b3   : > { %v14753_v2 = vpop.f32.mrf.mxu0  ;;  %v8537_v24 = vadd.f32 %v8536_v37, %v7737_v19  ;;  %v8548_v47 = vadd.f32 %v8547_v28, %v8546_v16 }
 0x1b4   : > { %13712 = vst.msk [vmem:[%s16324_s9 + $0xa8] sm:$0xff] %vm283_vm0, %v9324_v38  ;;  %v14758_v30 = vpop.f32.mrf.mxu1  ;;  %v9339_v55 = vmul.f32 %v9324_v38, %v9324_v38  ;;  %v9323_v27 = vadd.f32 %v16787_v48, %v9321_v20  ;;  %v9516_v11 = vadd.f32 %v14753_v2, %v14748_v23  ;;  %v9329_v45 = vsel %vm283_vm0, %v9324_v38, 0.0 }
 0x1b5   : > { %v9510_v39 = vpop.f32.mrf.mxu0  ;;  %v8549_v7 = vadd.f32 %v8548_v47, %v16835_v25 }
 0x1b6   : > { %v9511_v5 = vadd.f32 %v9510_v39, %v9431_v51  ;;  %v9594_v21 = vpop.f32.mrf.mxu1  ;;  %13711 = vst.msk [vmem:[%s16324_s9 + $0xa0] sm:$0xff] %vm283_vm0, %v9323_v27  ;;  %v9328_v34 = vsel %vm283_vm0, %v9323_v27, 0.0  ;;  %v9338_v19 = vmul.f32 %v9323_v27, %v9323_v27  ;;  %v9604_v60 = vadd.f32 %v14758_v30, %v9516_v11 }
 0x1b7   : > { %v14763_v58 = vpop.f32.mrf.mxu0  ;;  %v9330_v32 = vadd.f32 %v9329_v45, %v9328_v34  ;;  %v9341_v12 = vsel %vm283_vm0, %v9339_v55, 0.0 }
 0x1b8   : > { %v9603_v49 = vadd.f32 %v9594_v21, %v9511_v5  ;;  %v14768_v36 = vpop.f32.mrf.mxu1  ;;  %v9340_v6 = vsel %vm283_vm0, %v9338_v19, 0.0  ;;  %v9690_v33 = vadd.f32 %v14763_v58, %v9604_v60 }
 0x1b9   : > { %v9680_v25 = vpop.f32.mrf.mxu0  ;;  %v9331_v56 = vrot.slane %v9330_v32, 4  ;;  %v9342_v59 = vadd.f32 %v9341_v12, %v9340_v6 }
 0x1ba   : > { %v9689_v41 = vadd.f32 %v9680_v25, %v9603_v49  ;;  %v9767_v52 = vpop.f32.mrf.mxu1  ;;  %v9777_v43 = vadd.f32 %v14768_v36, %v9690_v33 }
 0x1bb   : > { %v14773_v50 = vpop.f32.mrf.mxu0  ;;  %v9332_v3 = vadd.f32 %v9331_v56, %v9330_v32  ;;  %v9343_v40 = vrot.slane %v9342_v59, 4 }
 0x1bc   : > { %v9776_v14 = vadd.f32 %v9767_v52, %v9689_v41  ;;  %v14778_v61 = vpop.f32.mrf.mxu1  ;;  %v9863_v31 = vadd.f32 %v14773_v50, %v9777_v43 }
 0x1bd   : > { %v9853_v8 = vpop.f32.mrf.mxu0  ;;  %v9333_v18 = vrot.slane %v9332_v3, 2  ;;  %v9344_v4 = vadd.f32 %v9343_v40, %v9342_v59 }
 0x1be   : > { %v9862_v53 = vadd.f32 %v9853_v8, %v9776_v14  ;;  %v9939_v10 = vpop.f32.mrf.mxu1  ;;  %v9949_v26 = vadd.f32 %v14778_v61, %v9863_v31 }
 0x1bf   : > { %v14783_v22 = vpop.f32.mrf.mxu0  ;;  %v9334_v15 = vadd.f32 %v9333_v18, %v9332_v3  ;;  %v9345_v62 = vrot.slane %v9344_v4, 2 }
 0x1c0   : > { %v9948_v42 = vadd.f32 %v9939_v10, %v9862_v53  ;;  %v10036_v1 = vadd.f32 %v14783_v22, %v9949_v26 }
 0x1c1   : > { %v14788_v63 = vpop.f32.mrf.mxu1  ;;  %v10026_v17 = vpop.f32.mrf.mxu0  ;;  %v9335_v35 = vrot.slane %v9334_v15, 1  ;;  %v9346_v0 = vadd.f32 %v9345_v62, %v9344_v4 }
 0x1c2   : > { %v10035_v9 = vadd.f32 %v10026_v17, %v9948_v42  ;;  %v10122_v57 = vadd.f32 %v14788_v63, %v10036_v1 }
 0x1c3   : > { %v10112_v54 = vpop.f32.mrf.mxu1  ;;  %v14793_v13 = vpop.f32.mrf.mxu0  ;;  %v9336_v16 = vadd.f32 %v9335_v35, %v9334_v15  ;;  %v9347_v46 = vrot.slane %v9346_v0, 1 }
 0x1c4   : > { %v10121_v29 = vadd.f32 %v10112_v54, %v10035_v9  ;;  %v10124_v44 = vadd.f32 %v16787_v48, %v10122_v57 }
 0x1c5   : > { %v14798_v23 = vpop.f32.mrf.mxu1  ;;  %v10231_v28 = vpop.f32.mrf.mxu0  ;;  %v9337_v38 = vadd.f32 %v9336_v16, %v8537_v24  ;;  %v9348_v20 = vadd.f32 %v9347_v46, %v9346_v0 }
 0x1c6   : > { %v10316_v37 = vadd.f32 %v14798_v23, %v14793_v13  ;;  %v10123_v51 = vadd.f32 %v16787_v48, %v10121_v29  ;;  %13732 = vst.msk [vmem:[%s16324_s9 + $0xb8] sm:$0xff] %vm283_vm0, %v10124_v44  ;;  %v10129_v47 = vsel %vm283_vm0, %v10124_v44, 0.0  ;;  %v10139_v30 = vmul.f32 %v10124_v44, %v10124_v44 }
 0x1c7   : > { %v10310_v2 = vpop.f32.mrf.mxu1  ;;  %v14803_v27 = vpop.f32.mrf.mxu0  ;;  %v9349_v11 = vadd.f32 %v9348_v20, %v8549_v7 }
 0x1c8   : > { %v10311_v55 = vadd.f32 %v10310_v2, %v10231_v28  ;;  %13731 = vst.msk [vmem:[%s16324_s9 + $0xb0] sm:$0xff] %vm283_vm0, %v10123_v51  ;;  %v10128_v39 = vsel %vm283_vm0, %v10123_v51, 0.0  ;;  %v10138_v5 = vmul.f32 %v10123_v51, %v10123_v51  ;;  %v10404_v21 = vadd.f32 %v14803_v27, %v10316_v37 }
 0x1c9   : > { %v14808_v45 = vpop.f32.mrf.mxu1  ;;  %v10130_v24 = vadd.f32 %v10129_v47, %v10128_v39  ;;  %v10394_v34 = vpop.f32.mrf.mxu0  ;;  %v10141_v19 = vsel %vm283_vm0, %v10139_v30, 0.0 }
 0x1ca   : > { %v10140_v60 = vsel %vm283_vm0, %v10138_v5, 0.0  ;;  %v10490_v58 = vadd.f32 %v14808_v45, %v10404_v21  ;;  %v10403_v32 = vadd.f32 %v10394_v34, %v10311_v55 }
 0x1cb   : > { %v10480_v49 = vpop.f32.mrf.mxu1  ;;  %v10131_v36 = vrot.slane %v10130_v24, 4  ;;  %v10142_v12 = vadd.f32 %v10141_v19, %v10140_v60  ;;  %v14813_v6 = vpop.f32.mrf.mxu0 }
 0x1cc   : > { %v10489_v7 = vadd.f32 %v10480_v49, %v10403_v32  ;;  %v10577_v33 = vadd.f32 %v14813_v6, %v10490_v58 }
 0x1cd   : > { %v14818_v25 = vpop.f32.mrf.mxu1  ;;  %v10132_v56 = vadd.f32 %v10131_v36, %v10130_v24  ;;  %v10143_v59 = vrot.slane %v10142_v12, 4  ;;  %v10567_v41 = vpop.f32.mrf.mxu0 }
 0x1ce   : > { %v10663_v52 = vadd.f32 %v14818_v25, %v10577_v33  ;;  %v10576_v43 = vadd.f32 %v10567_v41, %v10489_v7 }
 0x1cf   : > { %v10653_v50 = vpop.f32.mrf.mxu1  ;;  %v10133_v3 = vrot.slane %v10132_v56, 2  ;;  %v10144_v40 = vadd.f32 %v10143_v59, %v10142_v12  ;;  %v14823_v14 = vpop.f32.mrf.mxu0 }
 0x1d0   : > { %v10662_v61 = vadd.f32 %v10653_v50, %v10576_v43  ;;  %v10749_v31 = vadd.f32 %v14823_v14, %v10663_v52 }
 0x1d1   : > { %v14828_v8 = vpop.f32.mrf.mxu1  ;;  %v10134_v18 = vadd.f32 %v10133_v3, %v10132_v56  ;;  %v10145_v4 = vrot.slane %v10144_v40, 2  ;;  %v10739_v53 = vpop.f32.mrf.mxu0 }
 0x1d2   : > { %v10836_v10 = vadd.f32 %v14828_v8, %v10749_v31  ;;  %v10748_v26 = vadd.f32 %v10739_v53, %v10662_v61 }
 0x1d3   : > { %v10826_v22 = vpop.f32.mrf.mxu1  ;;  %v10135_v15 = vrot.slane %v10134_v18, 1  ;;  %v10146_v62 = vadd.f32 %v10145_v4, %v10144_v40  ;;  %v14833_v42 = vpop.f32.mrf.mxu0 }
 0x1d4   : > { %v10835_v63 = vadd.f32 %v10826_v22, %v10748_v26  ;;  %v10922_v1 = vadd.f32 %v14833_v42, %v10836_v10 }
 0x1d5   : > { %v14838_v17 = vpop.f32.mrf.mxu1  ;;  %v10136_v35 = vadd.f32 %v10135_v15, %v10134_v18  ;;  %v10147_v0 = vrot.slane %v10146_v62, 1  ;;  %v10912_v9 = vpop.f32.mrf.mxu0 }
 0x1d6   : > { %v16866_v54 = vadd.f32 %v16787_v48, %v10922_v1  ;;  %v10921_v57 = vadd.f32 %v10912_v9, %v10835_v63 }
 0x1d7   : > { %v11031_v13 = vpop.f32.mrf.mxu1  ;;  %v16868_v16 = vadd.f32 %v10136_v35, %v9337_v38  ;;  %v10148_v46 = vadd.f32 %v10147_v0, %v10146_v62  ;;  %v14843_v29 = vpop.f32.mrf.mxu0 }
 0x1d8   : > { %13752 = vst.msk [vmem:[%s16324_s9 + $0xc8] sm:$0xff] %vm283_vm0, %v16866_v54  ;;  %v16874_v23 = vadd.f32 %v16787_v48, %v10921_v57  ;;  %v11116_v44 = vadd.f32 %v14843_v29, %v14838_v17 }
 0x1d9   : > { %v14848_v37 = vpop.f32.mrf.mxu1  ;;  %v16876_v28 = vadd.f32 %v10148_v46, %v9349_v11  ;;  %v11110_v20 = vpop.f32.mrf.mxu0 }
 0x1da   : > { %13751 = vst.msk [vmem:[%s16324_s9 + $0xc0] sm:$0xff] %vm283_vm0, %v16874_v23  ;;  %v11204_v51 = vadd.f32 %v14848_v37, %v11116_v44  ;;  %v11111_v38 = vadd.f32 %v11110_v20, %v11031_v13  ;;  %v10938_v44 = vmul.f32 %v16874_v23, %v16874_v23 }
 0x1db   : > { %v11194_v2 = vpop.f32.mrf.mxu1  ;;  %v14853_v47 = vpop.f32.mrf.mxu0 }
 0x1dc   : > { %v11290_v30 = vadd.f32 %v14853_v47, %v11204_v51  ;;  %v11203_v27 = vadd.f32 %v11194_v2, %v11111_v38  ;;  %v10939_v38 = vmul.f32 %v16866_v54, %v16866_v54 }
 0x1dd   : > { %v14858_v55 = vpop.f32.mrf.mxu1  ;;  %v11280_v39 = vpop.f32.mrf.mxu0 }
 0x1de   : > { %v11377_v5 = vadd.f32 %v14858_v55, %v11290_v30  ;;  %v11289_v45 = vadd.f32 %v11280_v39, %v11203_v27  ;;  %v10928_v27 = vsel %vm283_vm0, %v16874_v23, 0.0 }
 0x1df   : > { %v11367_v21 = vpop.f32.mrf.mxu1  ;;  %v14863_v24 = vpop.f32.mrf.mxu0 }
 0x1e0   : > { %v11463_v34 = vadd.f32 %v14863_v24, %v11377_v5  ;;  %v11376_v11 = vadd.f32 %v11367_v21, %v11289_v45  ;;  %v10940_v5 = vsel %vm283_vm0, %v10938_v44, 0.0 }
 0x1e1   : > { %v14868_v19 = vpop.f32.mrf.mxu1  ;;  %v11453_v60 = vpop.f32.mrf.mxu0 }
 0x1e2   : > { %v11549_v58 = vadd.f32 %v14868_v19, %v11463_v34  ;;  %v11462_v49 = vadd.f32 %v11453_v60, %v11376_v11  ;;  %v10929_v19 = vsel %vm283_vm0, %v16866_v54, 0.0  ;;  %v10941_v60 = vsel %vm283_vm0, %v10939_v38, 0.0 }
 0x1e3   : > { %v11539_v32 = vpop.f32.mrf.mxu1  ;;  %v14873_v36 = vpop.f32.mrf.mxu0 }
 0x1e4   : > { %v11636_v12 = vadd.f32 %v14873_v36, %v11549_v58  ;;  %v11548_v7 = vadd.f32 %v11539_v32, %v11462_v49  ;;  %v10930_v58 = vadd.f32 %v10929_v19, %v10928_v27  ;;  %v10942_v36 = vadd.f32 %v10941_v60, %v10940_v5 }
 0x1e5   : > { %v14878_v6 = vpop.f32.mrf.mxu1  ;;  %v11626_v33 = vpop.f32.mrf.mxu0 }
 0x1e6   : > { %v11722_v25 = vadd.f32 %v14878_v6, %v11636_v12  ;;  %v11635_v59 = vadd.f32 %v11626_v33, %v11548_v7 }
 0x1e7   : > { %v11712_v56 = vpop.f32.mrf.mxu1  ;;  %v14883_v41 = vpop.f32.mrf.mxu0 }
 0x1e8   : > { %v11724_v52 = vadd.f32 %v16787_v48, %v11722_v25  ;;  %v11721_v50 = vadd.f32 %v11712_v56, %v11635_v59 }
 0x1e9   : > { %v14888_v43 = vpop.f32.mrf.mxu1  ;;  %v11831_v40 = vpop.f32.mrf.mxu0 }
 0x1ea   : > { %v11916_v3 = vadd.f32 %v14888_v43, %v14883_v41  ;;  %13772 = vst.msk [vmem:[%s16324_s9 + $0xd8] sm:$0xff] %vm283_vm0, %v11724_v52  ;;  %v11723_v61 = vadd.f32 %v16787_v48, %v11721_v50  ;;  %v11739_v32 = vmul.f32 %v11724_v52, %v11724_v52  ;;  %v11729_v7 = vsel %vm283_vm0, %v11724_v52, 0.0 }
 0x1eb   : > { %v11910_v14 = vpop.f32.mrf.mxu1  ;;  %v14893_v8 = vpop.f32.mrf.mxu0 }
 0x1ec   : > { %v11911_v31 = vadd.f32 %v11910_v14, %v11831_v40  ;;  %v12004_v18 = vadd.f32 %v14893_v8, %v11916_v3  ;;  %13771 = vst.msk [vmem:[%s16324_s9 + $0xd0] sm:$0xff] %vm283_vm0, %v11723_v61  ;;  %v11738_v21 = vmul.f32 %v11723_v61, %v11723_v61  ;;  %v11728_v49 = vsel %vm283_vm0, %v11723_v61, 0.0 }
 0x1ed   : > { %v14898_v4 = vpop.f32.mrf.mxu1  ;;  %v11994_v53 = vpop.f32.mrf.mxu0  ;;  %v11730_v41 = vadd.f32 %v11729_v7, %v11728_v49  ;;  %v10931_v14 = vrot.slane %v10930_v58, 4  ;;  %v11741_v61 = vsel %vm283_vm0, %v11739_v32, 0.0 }
 0x1ee   : > { %v12090_v10 = vadd.f32 %v14898_v4, %v12004_v18  ;;  %v12003_v26 = vadd.f32 %v11994_v53, %v11911_v31  ;;  %v11740_v33 = vsel %vm283_vm0, %v11738_v21, 0.0 }
 0x1ef   : > { %v12080_v22 = vpop.f32.mrf.mxu1  ;;  %v14903_v15 = vpop.f32.mrf.mxu0  ;;  %v11742_v18 = vadd.f32 %v11741_v61, %v11740_v33 }
 0x1f0   : > { %v12089_v62 = vadd.f32 %v12080_v22, %v12003_v26  ;;  %v12177_v42 = vadd.f32 %v14903_v15, %v12090_v10  ;;  %v10943_v22 = vrot.slane %v10942_v36, 4 }
 0x1f1   : > { %v14908_v63 = vpop.f32.mrf.mxu1  ;;  %v12167_v1 = vpop.f32.mrf.mxu0 }
 0x1f2   : > { %v12263_v17 = vadd.f32 %v14908_v63, %v12177_v42  ;;  %v12176_v35 = vadd.f32 %v12167_v1, %v12089_v62  ;;  %v11731_v63 = vrot.slane %v11730_v41, 4 }
 0x1f3   : > { %v12253_v0 = vpop.f32.mrf.mxu1  ;;  %v14913_v9 = vpop.f32.mrf.mxu0 }
 0x1f4   : > { %v12262_v57 = vadd.f32 %v12253_v0, %v12176_v35  ;;  %v12349_v13 = vadd.f32 %v14913_v9, %v12263_v17  ;;  %v10932_v0 = vadd.f32 %v10931_v14, %v10930_v58 }
 0x1f5   : > { %v14918_v46 = vpop.f32.mrf.mxu1  ;;  %v12339_v29 = vpop.f32.mrf.mxu0 }
 0x1f6   : > { %v12436_v37 = vadd.f32 %v14918_v46, %v12349_v13  ;;  %v12348_v20 = vadd.f32 %v12339_v29, %v12262_v57  ;;  %v11743_v13 = vrot.slane %v11742_v18, 4 }
 0x1f7   : > { %v12426_v51 = vpop.f32.mrf.mxu1  ;;  %v14923_v2 = vpop.f32.mrf.mxu0 }
 0x1f8   : > { %v12435_v47 = vadd.f32 %v12426_v51, %v12348_v20  ;;  %v12522_v30 = vadd.f32 %v14923_v2, %v12436_v37  ;;  %v10944_v37 = vadd.f32 %v10943_v22, %v10942_v36  ;;  %v11732_v2 = vadd.f32 %v11731_v63, %v11730_v41 }
 0x1f9   : > { %v14928_v55 = vpop.f32.mrf.mxu1  ;;  %v12512_v39 = vpop.f32.mrf.mxu0  ;;  %v11744_v5 = vadd.f32 %v11743_v13, %v11742_v18 }
 0x1fa   : > { %v12524_v45 = vadd.f32 %v16787_v48, %v12522_v30  ;;  %v12521_v24 = vadd.f32 %v12512_v39, %v12435_v47  ;;  %v16904_v48 = vld [vmem:[%s16940_s4] ss:$0 sm:$0xff]  ;;  %v11733_v60 = vrot.slane %v11732_v2, 2 }
 0x1fb   : > { %v12631_v34 = vpop.f32.mrf.mxu1  ;;  %v11745_v36 = vrot.slane %v11744_v5, 2 }
 0x1fc   : > { %v14933_v11 = vpop.f32.mrf.mxu0  ;;  %13792 = vst.msk [vmem:[%s16324_s9 + $0xe8] sm:$0xff] %vm283_vm0, %v12524_v45  ;;  %v12523_v12 = vadd.f32 %v16904_v48, %v12521_v24  ;;  %v12539_v25 = vmul.f32 %v12524_v45, %v12524_v45  ;;  %v12529_v31 = vsel %vm283_vm0, %v12524_v45, 0.0  ;;  %v11734_v33 = vadd.f32 %v11733_v60, %v11732_v2 }
 0x1fd   : > { %v14938_v23 = vpop.f32.mrf.mxu1  ;;  %v12716_v54 = vadd.f32 %v14933_v11, %v14928_v55  ;;  %v10933_v55 = vrot.slane %v10932_v0, 2 }
 0x1fe   : > { %v12710_v6 = vpop.f32.mrf.mxu0  ;;  %13791 = vst.msk [vmem:[%s16324_s9 + $0xe0] sm:$0xff] %vm283_vm0, %v12523_v12  ;;  %v12528_v43 = vsel %vm283_vm0, %v12523_v12, 0.0  ;;  %v12538_v50 = vmul.f32 %v12523_v12, %v12523_v12  ;;  %v12541_v15 = vsel %vm283_vm0, %v12539_v25, 0.0 }
 0x1ff   : > { %v12711_v56 = vadd.f32 %v12710_v6, %v12631_v34  ;;  %v12794_v59 = vpop.f32.mrf.mxu1  ;;  %v12804_v3 = vadd.f32 %v14938_v23, %v12716_v54  ;;  %v12530_v4 = vadd.f32 %v12529_v31, %v12528_v43  ;;  %v10945_v34 = vrot.slane %v10944_v37, 2 }
 0x200   : > { %v14943_v40 = vpop.f32.mrf.mxu0  ;;  %v12540_v53 = vsel %vm283_vm0, %v12538_v50, 0.0  ;;  %v10934_v49 = vadd.f32 %v10933_v55, %v10932_v0  ;;  %v13350_v0 = vlaneseq }
 0x201   : > { %v12803_v8 = vadd.f32 %v12794_v59, %v12711_v56  ;;  %v14948_v52 = vpop.f32.mrf.mxu1  ;;  %v12890_v10 = vadd.f32 %v14943_v40, %v12804_v3  ;;  %v12542_v1 = vadd.f32 %v12541_v15, %v12540_v53  ;;  %v12531_v46 = vrot.slane %v12530_v4, 4 }
 0x202   : > { %v12880_v26 = vpop.f32.mrf.mxu0  ;;  %v10946_v6 = vadd.f32 %v10945_v34, %v10944_v37  ;;  %v10935_v59 = vrot.slane %v10934_v49, 1  ;;  %v11746_v3 = vadd.f32 %v11745_v36, %v11744_v5  ;;  %v13351_v2 = vshrl.u32 %v13350_v0, 7 }
 0x203   : > { %v12889_v62 = vadd.f32 %v12880_v26, %v12803_v8  ;;  %v12967_v42 = vpop.f32.mrf.mxu1  ;;  %v12977_v17 = vadd.f32 %v14948_v52, %v12890_v10  ;;  %v12543_v38 = vrot.slane %v12542_v1, 4  ;;  %v12532_v21 = vadd.f32 %v12531_v46, %v12530_v4 }
 0x204   : > { %v14953_v35 = vpop.f32.mrf.mxu0  ;;  %v10947_v61 = vrot.slane %v10946_v6, 1  ;;  %v11735_v8 = vrot.slane %v11734_v33, 1  ;;  %v10936_v53 = vadd.f32 %v10935_v59, %v10934_v49  ;;  %v11747_v10 = vrot.slane %v11746_v3, 1 }
 0x205   : > { %v12976_v9 = vadd.f32 %v12967_v42, %v12889_v62  ;;  %v14958_v57 = vpop.f32.mrf.mxu1  ;;  %v13063_v29 = vadd.f32 %v14953_v35, %v12977_v17  ;;  %v12544_v58 = vadd.f32 %v12543_v38, %v12542_v1  ;;  %v12533_v12 = vrot.slane %v12532_v21, 2 }
 0x206   : > { %v13053_v44 = vpop.f32.mrf.mxu0  ;;  %v10948_v62 = vadd.f32 %v10947_v61, %v10946_v6  ;;  %v11736_v42 = vadd.f32 %v11735_v8, %v11734_v33  ;;  %v10937_v35 = vadd.f32 %v10936_v53, %v16868_v16  ;;  %vm13352_vm4 = vcmp.eq.s32.totalorder %v13351_v2, 0 }
 0x207   : > { %v13062_v20 = vadd.f32 %v13053_v44, %v12976_v9  ;;  %v13139_v51 = vpop.f32.mrf.mxu1  ;;  %v13149_v47 = vadd.f32 %v14958_v57, %v13063_v29  ;;  %v12545_v25 = vrot.slane %v12544_v58, 2  ;;  %v12534_v40 = vadd.f32 %v12533_v12, %v12532_v21 }
 0x208   : > { %v14963_v30 = vpop.f32.mrf.mxu0  ;;  %v11748_v9 = vadd.f32 %v11747_v10, %v11746_v3  ;;  %v10949_v29 = vadd.f32 %v10948_v62, %v16876_v28  ;;  %v11737_v44 = vadd.f32 %v11736_v42, %v10937_v35  ;;  %vm13354_vm5 = vcmp.eq.s32.totalorder %v13351_v2, 1 }
 0x209   : > { %v13148_v27 = vadd.f32 %v13139_v51, %v13062_v20  ;;  %v14968_v39 = vpop.f32.mrf.mxu1  ;;  %v13236_v45 = vadd.f32 %v14963_v30, %v13149_v47  ;;  %v12546_v52 = vadd.f32 %v12545_v25, %v12544_v58  ;;  %v12535_v26 = vrot.slane %v12534_v40, 1 }
 0x20a   : > { %v13226_v24 = vpop.f32.mrf.mxu0  ;;  %v11749_v38 = vadd.f32 %v11748_v9, %v10949_v29 }
 0x20b   : > { %v13235_v19 = vadd.f32 %v13226_v24, %v13148_v27  ;;  %v13312_v11 = vpop.f32.mrf.mxu1  ;;  %v13322_v32 = vadd.f32 %v14968_v39, %v13236_v45  ;;  %v12547_v63 = vrot.slane %v12546_v52, 1  ;;  %v12536_v57 = vadd.f32 %v12535_v26, %v12534_v40 }
 0x20d   : > { %v13321_v23 = vadd.f32 %v13312_v11, %v13235_v19  ;;  %v13324_v54 = vadd.f32 %v16904_v48, %v13322_v32  ;;  %v12548_v37 = vadd.f32 %v12547_v63, %v12546_v52  ;;  %v12537_v47 = vadd.f32 %v12536_v57, %v11737_v44 }
 0x20f   : > { %v13323_v7 = vadd.f32 %v16904_v48, %v13321_v23  ;;  %13812 = vst.msk [vmem:[%s16324_s9 + $0xf8] sm:$0xff] %vm283_vm0, %v13324_v54  ;;  %v13339_v56 = vmul.f32 %v13324_v54, %v13324_v54  ;;  %v13329_v41 = vsel %vm283_vm0, %v13324_v54, 0.0  ;;  %v12549_v27 = vadd.f32 %v12548_v37, %v11749_v38 }
 0x211   : > { %13811 = vst.msk [vmem:[%s16324_s9 + $0xf0] sm:$0xff] %vm283_vm0, %v13323_v7  ;;  %v13328_v43 = vsel %vm283_vm0, %v13323_v7, 0.0  ;;  %v13338_v50 = vmul.f32 %v13323_v7, %v13323_v7  ;;  %v13341_v31 = vsel %vm283_vm0, %v13339_v56, 0.0  ;;  %s13453_s9 = sshll.u32 %s16944_s22, 3 }
 0x212   : > { %v13330_v14 = vadd.f32 %v13329_v41, %v13328_v43  ;;  %s262_s13 = scalar_lea.vmem %s16942_s6, %s13453_s9 }
 0x213   : > { %v13340_v48 = vsel %vm283_vm0, %v13338_v50, 0.0 }
 0x214   : > { %v13331_v18 = vrot.slane %v13330_v14, 4  ;;  %v13342_v4 = vadd.f32 %v13341_v31, %v13340_v48 }
 0x216   : > { %v13332_v22 = vadd.f32 %v13331_v18, %v13330_v14  ;;  %v13343_v15 = vrot.slane %v13342_v4, 4 }
 0x218   : > { %v13333_v1 = vrot.slane %v13332_v22, 2  ;;  %v13344_v17 = vadd.f32 %v13343_v15, %v13342_v4 }
 0x21a   : > { %v13334_v13 = vadd.f32 %v13333_v1, %v13332_v22  ;;  %v13345_v46 = vrot.slane %v13344_v17, 2 }
 0x21c   : > { %v13335_v20 = vrot.slane %v13334_v13, 1  ;;  %v13346_v51 = vadd.f32 %v13345_v46, %v13344_v17 }
 0x21e   : > { %v13336_v30 = vadd.f32 %v13335_v20, %v13334_v13  ;;  %v13347_v55 = vrot.slane %v13346_v51, 1 }
 0x220   : > { %v13337_v39 = vadd.f32 %v13336_v30, %v12537_v47  ;;  %v13348_v16 = vadd.f32 %v13347_v55, %v13346_v51 }
 0x222   : > { %v13349_v5 = vadd.f32 %v13348_v16, %v12549_v27  ;;  %v13353_v28 = vsel %vm13352_vm4, %v13337_v39, 0.0 }
 0x224   : > { %v13355_v21 = vsel %vm13354_vm5, %v13349_v5, 0.0 }
 0x225   : > { %v13356_v45 = vadd.f32 %v13355_v21, %v13353_v28 }
 0x227   : > { %13357 = vst.msk [vmem:[%s262_s13] sm:$0xff] %vm283_vm0, %v13356_v45 }
 0x228 PF: > { %s17_s21 = sadd.s32 1, %s15006_s21  }
 0x229   : > { %p14_p4 = scmp.ge.s32.totalorder %s17_s21, 4  }
 0x22b   :  { %16 = sbr.rel (!%p14_p4) target bundleno = 1 (0x1), region = 137 }

</bundles_post_ra>
